<compile_context>
chip_gen: v7x
topology: tpu7x:2x2x1
jax: 0.10.0
libtpu: 0.0.40
codegen_flags: <defaults>
</compile_context>

<pallas_src>
import functools

import numpy as np
import jax
import jax.numpy as jnp
from jax.experimental import pallas as pl
from jax.experimental.pallas import tpu as pltpu

LEAKY_SLOPE = 0.01   # nn.LeakyReLU() default
BN_EPS = 1e-5        # nn.BatchNorm3d default
LANE = 128
SUBLANE = 8


def _round_up(a, b):
    return (a + b - 1) // b * b


def conv_bn_act_kernel(mask_ref, w_ref, gamma_ref, beta_ref, x_ref,
                       o_ref, sum_ref, sq_ref, rhs_ref, *,
                       ksize, height, width, cin, cin_pad, p_out, n_valid):
    """Fused Conv3d (valid, stride 1) + training-mode BatchNorm + LeakyReLU.

    Grid axis 0 iterates over samples.  Per step:
      * build the (K, P) im2col tile in VMEM from k^3 statically-shifted lane slices of the
        flattened raw input volume (no patches array in HBM),
      * one MXU contraction (Cout, K) @ (K, P),
      * stash the conv output in the VMEM-resident output block and accumulate per-channel
        sum / sum-of-squares over the valid output columns.
    The last step folds the batch statistics into scale/shift and applies
    normalize + LeakyReLU to the whole resident output in place.
    """
    n = pl.program_id(0)

    @pl.when(n == 0)
    def _init():
        sum_ref[...] = jnp.zeros_like(sum_ref)
        sq_ref[...] = jnp.zeros_like(sq_ref)
        rhs_ref[...] = jnp.zeros_like(rhs_ref)   # zero the K-padding rows once

    # ---- in-kernel im2col: k^3 statically shifted slabs of the flat input volume --------
    for t in range(ksize * ksize * ksize):
        kd, rem = divmod(t, ksize * ksize)
        kh, kw = divmod(rem, ksize)
        off = (kd * height + kh) * width + kw               # static lane offset of this tap
        rhs_ref[t * cin_pad:t * cin_pad + cin, :] = x_ref[0, :, off:off + p_out]

    # ---- convolution as a single MXU contraction -----------------------------------------
    y = jnp.dot(w_ref[...], rhs_ref[...], preferred_element_type=jnp.float32)  # (Cout, P)
    o_ref[n] = y

    # ---- batch statistics over the valid output columns ----------------------------------
    ym = y * mask_ref[...]                                   # zero halo / padded columns
    sum_ref[...] += jnp.sum(ym, axis=1, keepdims=True)
    sq_ref[...] += jnp.sum(ym * ym, axis=1, keepdims=True)

    # ---- last step: fold BN stats, normalize + LeakyReLU the resident output -------------
    @pl.when(n == pl.num_programs(0) - 1)
    def _finalize():
        cnt = jnp.float32(n_valid)
        mean = sum_ref[...] / cnt
        var = jnp.maximum(sq_ref[...] / cnt - mean * mean, 0.0)   # biased, like PyTorch
        scale = gamma_ref[...] * jax.lax.rsqrt(var + BN_EPS)      # (Cout, 1)
        shift = beta_ref[...] - mean * scale
        for i in range(o_ref.shape[0]):                           # static, small batch
            z = o_ref[i] * scale + shift
            o_ref[i] = jnp.where(z >= 0.0, z, LEAKY_SLOPE * z)


def conv_block_forward(x, conv_w, conv_b, bn_gamma, bn_beta, *, kernel_size=3):
    """ConvBlock(seq='CBA') forward.  x: (N, Cin, D, H, W) float32, NCDHW."""
    del conv_b  # per-channel conv bias is exactly cancelled by the training-mode BatchNorm
    N, Cin, D, H, W = x.shape
    Cout = conv_w.shape[0]
    k = kernel_size
    Do, Ho, Wo = D - k + 1, H - k + 1, W - k + 1

    cin_pad = _round_up(Cin, SUBLANE)            # 8-aligned rows per tap in the im2col tile
    Kpad = k * k * k * cin_pad
    dhw = D * H * W
    p_out = _round_up(dhw, LANE)                 # lane-dense output width per sample
    max_off = (k - 1) * (H * W + W + 1)          # largest tap shift
    p_in = _round_up(p_out + max_off, LANE)      # halo-padded flat input width

    # Flat, lane-dense per-sample input volume (one small pad copy; no 27x im2col in HBM).
    xflat = jnp.pad(x.astype(jnp.float32).reshape(N, Cin, dhw),
                    ((0, 0), (0, 0), (0, p_in - dhw)))

    # Weights: (Cout, Cin, kd, kh, kw) -> tap-major / channel-minor (Cout, Kpad), matching
    # the row order of the in-kernel im2col tile (padded channel rows are zero).
    wmat = jnp.transpose(conv_w.astype(jnp.float32), (0, 2, 3, 4, 1))
    wmat = wmat.reshape(Cout, k ** 3, Cin)
    wmat = jnp.pad(wmat, ((0, 0), (0, 0), (0, cin_pad - Cin))).reshape(Cout, Kpad)

    gamma = bn_gamma.astype(jnp.float32).reshape(Cout, 1)
    beta = bn_beta.astype(jnp.float32).reshape(Cout, 1)

    # Valid-output-column mask over the flat (d, h, w) index (compile-time constant).
    fl = np.arange(p_out)
    d_idx = fl // (H * W)
    h_idx = (fl // W) % H
    w_idx = fl % W
    mask_np = (fl < dhw) & (d_idx < Do) & (h_idx < Ho) & (w_idx < Wo)
    mask = jnp.asarray(mask_np.astype(np.float32)).reshape(1, p_out)

    n_valid = N * Do * Ho * Wo

    kernel = functools.partial(
        conv_bn_act_kernel, ksize=k, height=H, width=W, cin=Cin,
        cin_pad=cin_pad, p_out=p_out, n_valid=n_valid)

    out_flat = pl.pallas_call(
        kernel,
        out_shape=jax.ShapeDtypeStruct((N, Cout, p_out), jnp.float32),
        grid=(N,),
        in_specs=[
            pl.BlockSpec((1, p_out), lambda n: (0, 0)),         # valid-column mask (resident)
            pl.BlockSpec((Cout, Kpad), lambda n: (0, 0)),       # weight matrix (resident)
            pl.BlockSpec((Cout, 1), lambda n: (0, 0)),          # gamma (resident)
            pl.BlockSpec((Cout, 1), lambda n: (0, 0)),          # beta (resident)
            pl.BlockSpec((1, Cin, p_in), lambda n: (n, 0, 0)),  # per-sample raw input slab
        ],
        out_specs=pl.BlockSpec((N, Cout, p_out), lambda n: (0, 0, 0)),  # VMEM-resident output
        scratch_shapes=[
            pltpu.VMEM((Cout, 1), jnp.float32),       # per-channel sum
            pltpu.VMEM((Cout, 1), jnp.float32),       # per-channel sum of squares
            pltpu.VMEM((Kpad, p_out), jnp.float32),   # im2col tile, built in VMEM
        ],
        compiler_params=pltpu.CompilerParams(
            # Stats accumulate across samples and the final step revisits the whole resident
            # output, so the sample axis must be sequential on a single TensorCore.
            dimension_semantics=("arbitrary",)),
        cost_estimate=pl.CostEstimate(
            flops=2 * N * Cout * Kpad * p_out,
            transcendentals=0,
            bytes_accessed=N * Cin * p_in * 4 + N * Cout * p_out * 4),
    )(mask, wmat, gamma, beta, xflat)

    # Final boundary crop (W->Wo, H->Ho, D->Do); channels/layout already final.
    out = out_flat[:, :, :dhw].reshape(N, Cout, D, H, W)
    return out[:, :, :Do, :Ho, :Wo]


def reference_forward(x, conv_w, conv_b, bn_gamma, bn_beta):
    """Plain-JAX (f32) reference of the same forward, for the correctness check."""
    y = jax.lax.conv_general_dilated(
        x, conv_w, window_strides=(1, 1, 1), padding='VALID',
        dimension_numbers=('NCDHW', 'OIDHW', 'NCDHW'))
    y = y + conv_b.reshape(1, -1, 1, 1, 1)
    mean = jnp.mean(y, axis=(0, 2, 3, 4), keepdims=True)
    var = jnp.mean((y - mean) ** 2, axis=(0, 2, 3, 4), keepdims=True)
    z = (y - mean) * jax.lax.rsqrt(var + BN_EPS)
    z = z * bn_gamma.reshape(1, -1, 1, 1, 1) + bn_beta.reshape(1, -1, 1, 1, 1)
    return jnp.where(z >= 0.0, z, LEAKY_SLOPE * z)


if __name__ == "__main__":
    key = jax.random.PRNGKey(0)
    k_x, k_w, k_b, k_g, k_bt = jax.random.split(key, 5)

    # ConvBlock(in_chan=4) -> out_chan=4, kernel_size=3, stride=1, seq='CBA'
    in_chan, out_chan, ksz = 4, 4, 3
    N, D, H, W = 2, 16, 16, 16

    x = jax.random.normal(k_x, (N, in_chan, D, H, W), dtype=jnp.float32)
    conv_w = 0.1 * jax.random.normal(k_w, (out_chan, in_chan, ksz, ksz, ksz),
                                     dtype=jnp.float32)
    conv_b = 0.1 * jax.random.normal(k_b, (out_chan,), dtype=jnp.float32)
    bn_gamma = 1.0 + 0.1 * jax.random.normal(k_g, (out_chan,), dtype=jnp.float32)
    bn_beta = 0.1 * jax.random.normal(k_bt, (out_chan,), dtype=jnp.float32)

    fwd = jax.jit(functools.partial(conv_block_forward, kernel_size=ksz))
    out = jax.block_until_ready(fwd(x, conv_w, conv_b, bn_gamma, bn_beta))

    ref = jax.block_until_ready(
        reference_forward(x, conv_w, conv_b, bn_gamma, bn_beta))

    Do = D - ksz + 1
    assert out.shape == (N, out_chan, Do, Do, Do), out.shape
    # All-f32 path (conv, stats, normalization) => tight tolerance.
    max_err = float(jnp.max(jnp.abs(out - ref)))
    assert max_err < 1e-3, max_err

    print("KERNEL_OK")
</pallas_src>

<mosaic_0001>
module attributes {stable_mosaic.version = 11 : i64} {
  func.func @conv_bn_act_kernel(%arg0: i32, %arg1: memref<1x4096xf32, #tpu.memory_space<vmem>>, %arg2: memref<4x216xf32, #tpu.memory_space<vmem>>, %arg3: memref<4x1xf32, #tpu.memory_space<vmem>>, %arg4: memref<4x1xf32, #tpu.memory_space<vmem>>, %arg5: memref<1x4x4736xf32, #tpu.memory_space<vmem>>, %arg6: memref<2x4x4096xf32, #tpu.memory_space<vmem>>, %arg7: memref<4x1xf32, #tpu.memory_space<vmem>>, %arg8: memref<4x1xf32, #tpu.memory_space<vmem>>, %arg9: memref<216x4096xf32, #tpu.memory_space<vmem>>) attributes {dimension_semantics = [#tpu.dimension_semantics<arbitrary>], iteration_bounds = array<i64: 2>, scalar_prefetch = 0 : i64, scratch_operands = 3 : i64, tpu.core_type = #tpu.core_type<tc>, window_params = [{pipeline_mode = #tpu.pipeline_mode<synchronous>, transform_indices = @transform_0, window_bounds = array<i64: 1, 4096>}, {pipeline_mode = #tpu.pipeline_mode<synchronous>, transform_indices = @transform_1, window_bounds = array<i64: 4, 216>}, {pipeline_mode = #tpu.pipeline_mode<synchronous>, transform_indices = @transform_2, window_bounds = array<i64: 4, 1>}, {pipeline_mode = #tpu.pipeline_mode<synchronous>, transform_indices = @transform_3, window_bounds = array<i64: 4, 1>}, {transform_indices = @transform_4, window_bounds = array<i64: 1, 4, 4736>}, {pipeline_mode = #tpu.pipeline_mode<synchronous>, transform_indices = @transform_5, window_bounds = array<i64: 2, 4, 4096>}]} {
    %c0_i32 = arith.constant 0 : i32
    %0 = arith.cmpi eq, %arg0, %c0_i32 : i32
    %1 = arith.extui %0 : i1 to i32
    %c0_i32_0 = arith.constant 0 : i32
    %2 = arith.cmpi ne, %1, %c0_i32_0 : i32
    scf.if %2 {
      %cst_104 = arith.constant 0.000000e+00 : f32
      %108 = vector.broadcast %cst_104 : f32 to vector<4x1xf32>
      %c0_105 = arith.constant 0 : index
      %c0_106 = arith.constant 0 : index
      %109 = vector.load %arg7[%c0_105, %c0_106] : memref<4x1xf32, #tpu.memory_space<vmem>>, vector<4x1xf32>
      tpu.vector_store %arg7[%c0_105, %c0_106], %108 {strides = array<i32>} : memref<4x1xf32, #tpu.memory_space<vmem>>, vector<4x1xf32>,
      %cst_107 = arith.constant 0.000000e+00 : f32
      %110 = vector.broadcast %cst_107 : f32 to vector<4x1xf32>
      %c0_108 = arith.constant 0 : index
      %c0_109 = arith.constant 0 : index
      %111 = vector.load %arg8[%c0_108, %c0_109] : memref<4x1xf32, #tpu.memory_space<vmem>>, vector<4x1xf32>
      tpu.vector_store %arg8[%c0_108, %c0_109], %110 {strides = array<i32>} : memref<4x1xf32, #tpu.memory_space<vmem>>, vector<4x1xf32>,
      %cst_110 = arith.constant 0.000000e+00 : f32
      %112 = vector.broadcast %cst_110 : f32 to vector<216x4096xf32>
      %c0_111 = arith.constant 0 : index
      %c0_112 = arith.constant 0 : index
      %113 = vector.load %arg9[%c0_111, %c0_112] : memref<216x4096xf32, #tpu.memory_space<vmem>>, vector<216x4096xf32>
      tpu.vector_store %arg9[%c0_111, %c0_112], %112 {strides = array<i32>} : memref<216x4096xf32, #tpu.memory_space<vmem>>, vector<216x4096xf32>,
    } else {
    }
    %c0 = arith.constant 0 : index
    %c0_1 = arith.constant 0 : index
    %c0_2 = arith.constant 0 : index
    %3 = vector.load %arg5[%c0, %c0_1, %c0_2] : memref<1x4x4736xf32, #tpu.memory_space<vmem>>, vector<1x4x4096xf32>
    %4 = vector.shape_cast %3 : vector<1x4x4096xf32> to vector<4x4096xf32>
    %c0_3 = arith.constant 0 : index
    %c0_4 = arith.constant 0 : index
    %5 = vector.load %arg9[%c0_3, %c0_4] : memref<216x4096xf32, #tpu.memory_space<vmem>>, vector<4x4096xf32>
    tpu.vector_store %arg9[%c0_3, %c0_4], %4 {strides = array<i32>} : memref<216x4096xf32, #tpu.memory_space<vmem>>, vector<4x4096xf32>,
    %c0_5 = arith.constant 0 : index
    %c0_6 = arith.constant 0 : index
    %c1 = arith.constant 1 : index
    %6 = vector.load %arg5[%c0_5, %c0_6, %c1] : memref<1x4x4736xf32, #tpu.memory_space<vmem>>, vector<1x4x4096xf32>
    %7 = vector.shape_cast %6 : vector<1x4x4096xf32> to vector<4x4096xf32>
    %c8 = arith.constant 8 : index
    %c0_7 = arith.constant 0 : index
    %8 = vector.load %arg9[%c8, %c0_7] : memref<216x4096xf32, #tpu.memory_space<vmem>>, vector<4x4096xf32>
    tpu.vector_store %arg9[%c8, %c0_7], %7 {strides = array<i32>} : memref<216x4096xf32, #tpu.memory_space<vmem>>, vector<4x4096xf32>,
    %c0_8 = arith.constant 0 : index
    %c0_9 = arith.constant 0 : index
    %c2 = arith.constant 2 : index
    %9 = vector.load %arg5[%c0_8, %c0_9, %c2] : memref<1x4x4736xf32, #tpu.memory_space<vmem>>, vector<1x4x4096xf32>
    %10 = vector.shape_cast %9 : vector<1x4x4096xf32> to vector<4x4096xf32>
    %c16 = arith.constant 16 : index
    %c0_10 = arith.constant 0 : index
    %11 = vector.load %arg9[%c16, %c0_10] : memref<216x4096xf32, #tpu.memory_space<vmem>>, vector<4x4096xf32>
    tpu.vector_store %arg9[%c16, %c0_10], %10 {strides = array<i32>} : memref<216x4096xf32, #tpu.memory_space<vmem>>, vector<4x4096xf32>,
    %c0_11 = arith.constant 0 : index
    %c0_12 = arith.constant 0 : index
    %c16_13 = arith.constant 16 : index
    %12 = vector.load %arg5[%c0_11, %c0_12, %c16_13] : memref<1x4x4736xf32, #tpu.memory_space<vmem>>, vector<1x4x4096xf32>
    %13 = vector.shape_cast %12 : vector<1x4x4096xf32> to vector<4x4096xf32>
    %c24 = arith.constant 24 : index
    %c0_14 = arith.constant 0 : index
    %14 = vector.load %arg9[%c24, %c0_14] : memref<216x4096xf32, #tpu.memory_space<vmem>>, vector<4x4096xf32>
    tpu.vector_store %arg9[%c24, %c0_14], %13 {strides = array<i32>} : memref<216x4096xf32, #tpu.memory_space<vmem>>, vector<4x4096xf32>,
    %c0_15 = arith.constant 0 : index
    %c0_16 = arith.constant 0 : index
    %c17 = arith.constant 17 : index
    %15 = vector.load %arg5[%c0_15, %c0_16, %c17] : memref<1x4x4736xf32, #tpu.memory_space<vmem>>, vector<1x4x4096xf32>
    %16 = vector.shape_cast %15 : vector<1x4x4096xf32> to vector<4x4096xf32>
    %c32 = arith.constant 32 : index
    %c0_17 = arith.constant 0 : index
    %17 = vector.load %arg9[%c32, %c0_17] : memref<216x4096xf32, #tpu.memory_space<vmem>>, vector<4x4096xf32>
    tpu.vector_store %arg9[%c32, %c0_17], %16 {strides = array<i32>} : memref<216x4096xf32, #tpu.memory_space<vmem>>, vector<4x4096xf32>,
    %c0_18 = arith.constant 0 : index
    %c0_19 = arith.constant 0 : index
    %c18 = arith.constant 18 : index
    %18 = vector.load %arg5[%c0_18, %c0_19, %c18] : memref<1x4x4736xf32, #tpu.memory_space<vmem>>, vector<1x4x4096xf32>
    %19 = vector.shape_cast %18 : vector<1x4x4096xf32> to vector<4x4096xf32>
    %c40 = arith.constant 40 : index
    %c0_20 = arith.constant 0 : index
    %20 = vector.load %arg9[%c40, %c0_20] : memref<216x4096xf32, #tpu.memory_space<vmem>>, vector<4x4096xf32>
    tpu.vector_store %arg9[%c40, %c0_20], %19 {strides = array<i32>} : memref<216x4096xf32, #tpu.memory_space<vmem>>, vector<4x4096xf32>,
    %c0_21 = arith.constant 0 : index
    %c0_22 = arith.constant 0 : index
    %c32_23 = arith.constant 32 : index
    %21 = vector.load %arg5[%c0_21, %c0_22, %c32_23] : memref<1x4x4736xf32, #tpu.memory_space<vmem>>, vector<1x4x4096xf32>
    %22 = vector.shape_cast %21 : vector<1x4x4096xf32> to vector<4x4096xf32>
    %c48 = arith.constant 48 : index
    %c0_24 = arith.constant 0 : index
    %23 = vector.load %arg9[%c48, %c0_24] : memref<216x4096xf32, #tpu.memory_space<vmem>>, vector<4x4096xf32>
    tpu.vector_store %arg9[%c48, %c0_24], %22 {strides = array<i32>} : memref<216x4096xf32, #tpu.memory_space<vmem>>, vector<4x4096xf32>,
    %c0_25 = arith.constant 0 : index
    %c0_26 = arith.constant 0 : index
    %c33 = arith.constant 33 : index
    %24 = vector.load %arg5[%c0_25, %c0_26, %c33] : memref<1x4x4736xf32, #tpu.memory_space<vmem>>, vector<1x4x4096xf32>
    %25 = vector.shape_cast %24 : vector<1x4x4096xf32> to vector<4x4096xf32>
    %c56 = arith.constant 56 : index
    %c0_27 = arith.constant 0 : index
    %26 = vector.load %arg9[%c56, %c0_27] : memref<216x4096xf32, #tpu.memory_space<vmem>>, vector<4x4096xf32>
    tpu.vector_store %arg9[%c56, %c0_27], %25 {strides = array<i32>} : memref<216x4096xf32, #tpu.memory_space<vmem>>, vector<4x4096xf32>,
    %c0_28 = arith.constant 0 : index
    %c0_29 = arith.constant 0 : index
    %c34 = arith.constant 34 : index
    %27 = vector.load %arg5[%c0_28, %c0_29, %c34] : memref<1x4x4736xf32, #tpu.memory_space<vmem>>, vector<1x4x4096xf32>
    %28 = vector.shape_cast %27 : vector<1x4x4096xf32> to vector<4x4096xf32>
    %c64 = arith.constant 64 : index
    %c0_30 = arith.constant 0 : index
    %29 = vector.load %arg9[%c64, %c0_30] : memref<216x4096xf32, #tpu.memory_space<vmem>>, vector<4x4096xf32>
    tpu.vector_store %arg9[%c64, %c0_30], %28 {strides = array<i32>} : memref<216x4096xf32, #tpu.memory_space<vmem>>, vector<4x4096xf32>,
    %c0_31 = arith.constant 0 : index
    %c0_32 = arith.constant 0 : index
    %c256 = arith.constant 256 : index
    %30 = vector.load %arg5[%c0_31, %c0_32, %c256] : memref<1x4x4736xf32, #tpu.memory_space<vmem>>, vector<1x4x4096xf32>
    %31 = vector.shape_cast %30 : vector<1x4x4096xf32> to vector<4x4096xf32>
    %c72 = arith.constant 72 : index
    %c0_33 = arith.constant 0 : index
    %32 = vector.load %arg9[%c72, %c0_33] : memref<216x4096xf32, #tpu.memory_space<vmem>>, vector<4x4096xf32>
    tpu.vector_store %arg9[%c72, %c0_33], %31 {strides = array<i32>} : memref<216x4096xf32, #tpu.memory_space<vmem>>, vector<4x4096xf32>,
    %c0_34 = arith.constant 0 : index
    %c0_35 = arith.constant 0 : index
    %c257 = arith.constant 257 : index
    %33 = vector.load %arg5[%c0_34, %c0_35, %c257] : memref<1x4x4736xf32, #tpu.memory_space<vmem>>, vector<1x4x4096xf32>
    %34 = vector.shape_cast %33 : vector<1x4x4096xf32> to vector<4x4096xf32>
    %c80 = arith.constant 80 : index
    %c0_36 = arith.constant 0 : index
    %35 = vector.load %arg9[%c80, %c0_36] : memref<216x4096xf32, #tpu.memory_space<vmem>>, vector<4x4096xf32>
    tpu.vector_store %arg9[%c80, %c0_36], %34 {strides = array<i32>} : memref<216x4096xf32, #tpu.memory_space<vmem>>, vector<4x4096xf32>,
    %c0_37 = arith.constant 0 : index
    %c0_38 = arith.constant 0 : index
    %c258 = arith.constant 258 : index
    %36 = vector.load %arg5[%c0_37, %c0_38, %c258] : memref<1x4x4736xf32, #tpu.memory_space<vmem>>, vector<1x4x4096xf32>
    %37 = vector.shape_cast %36 : vector<1x4x4096xf32> to vector<4x4096xf32>
    %c88 = arith.constant 88 : index
    %c0_39 = arith.constant 0 : index
    %38 = vector.load %arg9[%c88, %c0_39] : memref<216x4096xf32, #tpu.memory_space<vmem>>, vector<4x4096xf32>
    tpu.vector_store %arg9[%c88, %c0_39], %37 {strides = array<i32>} : memref<216x4096xf32, #tpu.memory_space<vmem>>, vector<4x4096xf32>,
    %c0_40 = arith.constant 0 : index
    %c0_41 = arith.constant 0 : index
    %c272 = arith.constant 272 : index
    %39 = vector.load %arg5[%c0_40, %c0_41, %c272] : memref<1x4x4736xf32, #tpu.memory_space<vmem>>, vector<1x4x4096xf32>
    %40 = vector.shape_cast %39 : vector<1x4x4096xf32> to vector<4x4096xf32>
    %c96 = arith.constant 96 : index
    %c0_42 = arith.constant 0 : index
    %41 = vector.load %arg9[%c96, %c0_42] : memref<216x4096xf32, #tpu.memory_space<vmem>>, vector<4x4096xf32>
    tpu.vector_store %arg9[%c96, %c0_42], %40 {strides = array<i32>} : memref<216x4096xf32, #tpu.memory_space<vmem>>, vector<4x4096xf32>,
    %c0_43 = arith.constant 0 : index
    %c0_44 = arith.constant 0 : index
    %c273 = arith.constant 273 : index
    %42 = vector.load %arg5[%c0_43, %c0_44, %c273] : memref<1x4x4736xf32, #tpu.memory_space<vmem>>, vector<1x4x4096xf32>
    %43 = vector.shape_cast %42 : vector<1x4x4096xf32> to vector<4x4096xf32>
    %c104 = arith.constant 104 : index
    %c0_45 = arith.constant 0 : index
    %44 = vector.load %arg9[%c104, %c0_45] : memref<216x4096xf32, #tpu.memory_space<vmem>>, vector<4x4096xf32>
    tpu.vector_store %arg9[%c104, %c0_45], %43 {strides = array<i32>} : memref<216x4096xf32, #tpu.memory_space<vmem>>, vector<4x4096xf32>,
    %c0_46 = arith.constant 0 : index
    %c0_47 = arith.constant 0 : index
    %c274 = arith.constant 274 : index
    %45 = vector.load %arg5[%c0_46, %c0_47, %c274] : memref<1x4x4736xf32, #tpu.memory_space<vmem>>, vector<1x4x4096xf32>
    %46 = vector.shape_cast %45 : vector<1x4x4096xf32> to vector<4x4096xf32>
    %c112 = arith.constant 112 : index
    %c0_48 = arith.constant 0 : index
    %47 = vector.load %arg9[%c112, %c0_48] : memref<216x4096xf32, #tpu.memory_space<vmem>>, vector<4x4096xf32>
    tpu.vector_store %arg9[%c112, %c0_48], %46 {strides = array<i32>} : memref<216x4096xf32, #tpu.memory_space<vmem>>, vector<4x4096xf32>,
    %c0_49 = arith.constant 0 : index
    %c0_50 = arith.constant 0 : index
    %c288 = arith.constant 288 : index
    %48 = vector.load %arg5[%c0_49, %c0_50, %c288] : memref<1x4x4736xf32, #tpu.memory_space<vmem>>, vector<1x4x4096xf32>
    %49 = vector.shape_cast %48 : vector<1x4x4096xf32> to vector<4x4096xf32>
    %c120 = arith.constant 120 : index
    %c0_51 = arith.constant 0 : index
    %50 = vector.load %arg9[%c120, %c0_51] : memref<216x4096xf32, #tpu.memory_space<vmem>>, vector<4x4096xf32>
    tpu.vector_store %arg9[%c120, %c0_51], %49 {strides = array<i32>} : memref<216x4096xf32, #tpu.memory_space<vmem>>, vector<4x4096xf32>,
    %c0_52 = arith.constant 0 : index
    %c0_53 = arith.constant 0 : index
    %c289 = arith.constant 289 : index
    %51 = vector.load %arg5[%c0_52, %c0_53, %c289] : memref<1x4x4736xf32, #tpu.memory_space<vmem>>, vector<1x4x4096xf32>
    %52 = vector.shape_cast %51 : vector<1x4x4096xf32> to vector<4x4096xf32>
    %c128 = arith.constant 128 : index
    %c0_54 = arith.constant 0 : index
    %53 = vector.load %arg9[%c128, %c0_54] : memref<216x4096xf32, #tpu.memory_space<vmem>>, vector<4x4096xf32>
    tpu.vector_store %arg9[%c128, %c0_54], %52 {strides = array<i32>} : memref<216x4096xf32, #tpu.memory_space<vmem>>, vector<4x4096xf32>,
    %c0_55 = arith.constant 0 : index
    %c0_56 = arith.constant 0 : index
    %c290 = arith.constant 290 : index
    %54 = vector.load %arg5[%c0_55, %c0_56, %c290] : memref<1x4x4736xf32, #tpu.memory_space<vmem>>, vector<1x4x4096xf32>
    %55 = vector.shape_cast %54 : vector<1x4x4096xf32> to vector<4x4096xf32>
    %c136 = arith.constant 136 : index
    %c0_57 = arith.constant 0 : index
    %56 = vector.load %arg9[%c136, %c0_57] : memref<216x4096xf32, #tpu.memory_space<vmem>>, vector<4x4096xf32>
    tpu.vector_store %arg9[%c136, %c0_57], %55 {strides = array<i32>} : memref<216x4096xf32, #tpu.memory_space<vmem>>, vector<4x4096xf32>,
    %c0_58 = arith.constant 0 : index
    %c0_59 = arith.constant 0 : index
    %c512 = arith.constant 512 : index
    %57 = vector.load %arg5[%c0_58, %c0_59, %c512] : memref<1x4x4736xf32, #tpu.memory_space<vmem>>, vector<1x4x4096xf32>
    %58 = vector.shape_cast %57 : vector<1x4x4096xf32> to vector<4x4096xf32>
    %c144 = arith.constant 144 : index
    %c0_60 = arith.constant 0 : index
    %59 = vector.load %arg9[%c144, %c0_60] : memref<216x4096xf32, #tpu.memory_space<vmem>>, vector<4x4096xf32>
    tpu.vector_store %arg9[%c144, %c0_60], %58 {strides = array<i32>} : memref<216x4096xf32, #tpu.memory_space<vmem>>, vector<4x4096xf32>,
    %c0_61 = arith.constant 0 : index
    %c0_62 = arith.constant 0 : index
    %c513 = arith.constant 513 : index
    %60 = vector.load %arg5[%c0_61, %c0_62, %c513] : memref<1x4x4736xf32, #tpu.memory_space<vmem>>, vector<1x4x4096xf32>
    %61 = vector.shape_cast %60 : vector<1x4x4096xf32> to vector<4x4096xf32>
    %c152 = arith.constant 152 : index
    %c0_63 = arith.constant 0 : index
    %62 = vector.load %arg9[%c152, %c0_63] : memref<216x4096xf32, #tpu.memory_space<vmem>>, vector<4x4096xf32>
    tpu.vector_store %arg9[%c152, %c0_63], %61 {strides = array<i32>} : memref<216x4096xf32, #tpu.memory_space<vmem>>, vector<4x4096xf32>,
    %c0_64 = arith.constant 0 : index
    %c0_65 = arith.constant 0 : index
    %c514 = arith.constant 514 : index
    %63 = vector.load %arg5[%c0_64, %c0_65, %c514] : memref<1x4x4736xf32, #tpu.memory_space<vmem>>, vector<1x4x4096xf32>
    %64 = vector.shape_cast %63 : vector<1x4x4096xf32> to vector<4x4096xf32>
    %c160 = arith.constant 160 : index
    %c0_66 = arith.constant 0 : index
    %65 = vector.load %arg9[%c160, %c0_66] : memref<216x4096xf32, #tpu.memory_space<vmem>>, vector<4x4096xf32>
    tpu.vector_store %arg9[%c160, %c0_66], %64 {strides = array<i32>} : memref<216x4096xf32, #tpu.memory_space<vmem>>, vector<4x4096xf32>,
    %c0_67 = arith.constant 0 : index
    %c0_68 = arith.constant 0 : index
    %c528 = arith.constant 528 : index
    %66 = vector.load %arg5[%c0_67, %c0_68, %c528] : memref<1x4x4736xf32, #tpu.memory_space<vmem>>, vector<1x4x4096xf32>
    %67 = vector.shape_cast %66 : vector<1x4x4096xf32> to vector<4x4096xf32>
    %c168 = arith.constant 168 : index
    %c0_69 = arith.constant 0 : index
    %68 = vector.load %arg9[%c168, %c0_69] : memref<216x4096xf32, #tpu.memory_space<vmem>>, vector<4x4096xf32>
    tpu.vector_store %arg9[%c168, %c0_69], %67 {strides = array<i32>} : memref<216x4096xf32, #tpu.memory_space<vmem>>, vector<4x4096xf32>,
    %c0_70 = arith.constant 0 : index
    %c0_71 = arith.constant 0 : index
    %c529 = arith.constant 529 : index
    %69 = vector.load %arg5[%c0_70, %c0_71, %c529] : memref<1x4x4736xf32, #tpu.memory_space<vmem>>, vector<1x4x4096xf32>
    %70 = vector.shape_cast %69 : vector<1x4x4096xf32> to vector<4x4096xf32>
    %c176 = arith.constant 176 : index
    %c0_72 = arith.constant 0 : index
    %71 = vector.load %arg9[%c176, %c0_72] : memref<216x4096xf32, #tpu.memory_space<vmem>>, vector<4x4096xf32>
    tpu.vector_store %arg9[%c176, %c0_72], %70 {strides = array<i32>} : memref<216x4096xf32, #tpu.memory_space<vmem>>, vector<4x4096xf32>,
    %c0_73 = arith.constant 0 : index
    %c0_74 = arith.constant 0 : index
    %c530 = arith.constant 530 : index
    %72 = vector.load %arg5[%c0_73, %c0_74, %c530] : memref<1x4x4736xf32, #tpu.memory_space<vmem>>, vector<1x4x4096xf32>
    %73 = vector.shape_cast %72 : vector<1x4x4096xf32> to vector<4x4096xf32>
    %c184 = arith.constant 184 : index
    %c0_75 = arith.constant 0 : index
    %74 = vector.load %arg9[%c184, %c0_75] : memref<216x4096xf32, #tpu.memory_space<vmem>>, vector<4x4096xf32>
    tpu.vector_store %arg9[%c184, %c0_75], %73 {strides = array<i32>} : memref<216x4096xf32, #tpu.memory_space<vmem>>, vector<4x4096xf32>,
    %c0_76 = arith.constant 0 : index
    %c0_77 = arith.constant 0 : index
    %c544 = arith.constant 544 : index
    %75 = vector.load %arg5[%c0_76, %c0_77, %c544] : memref<1x4x4736xf32, #tpu.memory_space<vmem>>, vector<1x4x4096xf32>
    %76 = vector.shape_cast %75 : vector<1x4x4096xf32> to vector<4x4096xf32>
    %c192 = arith.constant 192 : index
    %c0_78 = arith.constant 0 : index
    %77 = vector.load %arg9[%c192, %c0_78] : memref<216x4096xf32, #tpu.memory_space<vmem>>, vector<4x4096xf32>
    tpu.vector_store %arg9[%c192, %c0_78], %76 {strides = array<i32>} : memref<216x4096xf32, #tpu.memory_space<vmem>>, vector<4x4096xf32>,
    %c0_79 = arith.constant 0 : index
    %c0_80 = arith.constant 0 : index
    %c545 = arith.constant 545 : index
    %78 = vector.load %arg5[%c0_79, %c0_80, %c545] : memref<1x4x4736xf32, #tpu.memory_space<vmem>>, vector<1x4x4096xf32>
    %79 = vector.shape_cast %78 : vector<1x4x4096xf32> to vector<4x4096xf32>
    %c200 = arith.constant 200 : index
    %c0_81 = arith.constant 0 : index
    %80 = vector.load %arg9[%c200, %c0_81] : memref<216x4096xf32, #tpu.memory_space<vmem>>, vector<4x4096xf32>
    tpu.vector_store %arg9[%c200, %c0_81], %79 {strides = array<i32>} : memref<216x4096xf32, #tpu.memory_space<vmem>>, vector<4x4096xf32>,
    %c0_82 = arith.constant 0 : index
    %c0_83 = arith.constant 0 : index
    %c546 = arith.constant 546 : index
    %81 = vector.load %arg5[%c0_82, %c0_83, %c546] : memref<1x4x4736xf32, #tpu.memory_space<vmem>>, vector<1x4x4096xf32>
    %82 = vector.shape_cast %81 : vector<1x4x4096xf32> to vector<4x4096xf32>
    %c208 = arith.constant 208 : index
    %c0_84 = arith.constant 0 : index
    %83 = vector.load %arg9[%c208, %c0_84] : memref<216x4096xf32, #tpu.memory_space<vmem>>, vector<4x4096xf32>
    tpu.vector_store %arg9[%c208, %c0_84], %82 {strides = array<i32>} : memref<216x4096xf32, #tpu.memory_space<vmem>>, vector<4x4096xf32>,
    %c0_85 = arith.constant 0 : index
    %c0_86 = arith.constant 0 : index
    %84 = vector.load %arg2[%c0_85, %c0_86] : memref<4x216xf32, #tpu.memory_space<vmem>>, vector<4x216xf32>
    %c0_87 = arith.constant 0 : index
    %c0_88 = arith.constant 0 : index
    %85 = vector.load %arg9[%c0_87, %c0_88] : memref<216x4096xf32, #tpu.memory_space<vmem>>, vector<216x4096xf32>
    %cst = arith.constant dense<0.000000e+00> : vector<4x4096xf32>
    %86 = tpu.matmul %84, %85, %cst {dimension_numbers = #tpu.dot_dimension_numbers<[1], [0], [0], [1], [0, 0, 1, 1], [], []>} : vector<4x216xf32>, vector<216x4096xf32>, vector<4x4096xf32> -> vector<4x4096xf32>
    %87 = arith.index_cast %arg0 : i32 to index
    %c0_89 = arith.constant 0 : index
    %c0_90 = arith.constant 0 : index
    %88 = vector.load %arg6[%87, %c0_89, %c0_90] : memref<2x4x4096xf32, #tpu.memory_space<vmem>>, vector<1x4x4096xf32>
    %89 = vector.shape_cast %88 : vector<1x4x4096xf32> to vector<4x4096xf32>
    %90 = vector.shape_cast %86 : vector<4x4096xf32> to vector<1x4x4096xf32>
    tpu.vector_store %arg6[%87, %c0_89, %c0_90], %90 {strides = array<i32>} : memref<2x4x4096xf32, #tpu.memory_space<vmem>>, vector<1x4x4096xf32>,
    %c0_91 = arith.constant 0 : index
    %c0_92 = arith.constant 0 : index
    %91 = vector.load %arg1[%c0_91, %c0_92] : memref<1x4096xf32, #tpu.memory_space<vmem>>, vector<1x4096xf32>
    %92 = vector.broadcast %91 : vector<1x4096xf32> to vector<4x4096xf32>
    %93 = arith.mulf %86, %92 : vector<4x4096xf32>
    %c0_93 = arith.constant 0 : index
    %c0_94 = arith.constant 0 : index
    %94 = vector.load %arg7[%c0_93, %c0_94] : memref<4x1xf32, #tpu.memory_space<vmem>>, vector<4x1xf32>
    %cst_95 = arith.constant dense<0.000000e+00> : vector<4xf32>
    %95 = vector.multi_reduction <add>, %93, %cst_95 [1] : vector<4x4096xf32> to vector<4xf32>
    %96 = vector.shape_cast %95 : vector<4xf32> to vector<4x1xf32>
    %97 = arith.addf %94, %96 : vector<4x1xf32>
    %c0_96 = arith.constant 0 : index
    %c0_97 = arith.constant 0 : index
    %98 = vector.load %arg7[%c0_96, %c0_97] : memref<4x1xf32, #tpu.memory_space<vmem>>, vector<4x1xf32>
    tpu.vector_store %arg7[%c0_96, %c0_97], %97 {strides = array<i32>} : memref<4x1xf32, #tpu.memory_space<vmem>>, vector<4x1xf32>,
    %c0_98 = arith.constant 0 : index
    %c0_99 = arith.constant 0 : index
    %99 = vector.load %arg8[%c0_98, %c0_99] : memref<4x1xf32, #tpu.memory_space<vmem>>, vector<4x1xf32>
    %100 = arith.mulf %93, %93 : vector<4x4096xf32>
    %cst_100 = arith.constant dense<0.000000e+00> : vector<4xf32>
    %101 = vector.multi_reduction <add>, %100, %cst_100 [1] : vector<4x4096xf32> to vector<4xf32>
    %102 = vector.shape_cast %101 : vector<4xf32> to vector<4x1xf32>
    %103 = arith.addf %99, %102 : vector<4x1xf32>
    %c0_101 = arith.constant 0 : index
    %c0_102 = arith.constant 0 : index
    %104 = vector.load %arg8[%c0_101, %c0_102] : memref<4x1xf32, #tpu.memory_space<vmem>>, vector<4x1xf32>
    tpu.vector_store %arg8[%c0_101, %c0_102], %103 {strides = array<i32>} : memref<4x1xf32, #tpu.memory_space<vmem>>, vector<4x1xf32>,
    %c1_i32 = arith.constant 1 : i32
    %105 = arith.cmpi eq, %arg0, %c1_i32 : i32
    %106 = arith.extui %105 : i1 to i32
    %c0_i32_103 = arith.constant 0 : i32
    %107 = arith.cmpi ne, %106, %c0_i32_103 : i32
    scf.if %107 {
      %c0_104 = arith.constant 0 : index
      %c0_105 = arith.constant 0 : index
      %108 = vector.load %arg7[%c0_104, %c0_105] : memref<4x1xf32, #tpu.memory_space<vmem>>, vector<4x1xf32>
      %cst_106 = arith.constant 5.488000e+03 : f32
      %109 = vector.broadcast %cst_106 : f32 to vector<4x1xf32>
      %110 = arith.divf %108, %109 : vector<4x1xf32>
      %c0_107 = arith.constant 0 : index
      %c0_108 = arith.constant 0 : index
      %111 = vector.load %arg8[%c0_107, %c0_108] : memref<4x1xf32, #tpu.memory_space<vmem>>, vector<4x1xf32>
      %cst_109 = arith.constant 5.488000e+03 : f32
      %112 = vector.broadcast %cst_109 : f32 to vector<4x1xf32>
      %113 = arith.divf %111, %112 : vector<4x1xf32>
      %114 = arith.mulf %110, %110 : vector<4x1xf32>
      %115 = arith.subf %113, %114 : vector<4x1xf32>
      %cst_110 = arith.constant 0.000000e+00 : f32
      %116 = vector.broadcast %cst_110 : f32 to vector<4x1xf32>
      %117 = arith.maximumf %115, %116 : vector<4x1xf32>
      %c0_111 = arith.constant 0 : index
      %c0_112 = arith.constant 0 : index
      %118 = vector.load %arg3[%c0_111, %c0_112] : memref<4x1xf32, #tpu.memory_space<vmem>>, vector<4x1xf32>
      %cst_113 = arith.constant 9.99999974E-6 : f32
      %119 = vector.broadcast %cst_113 : f32 to vector<4x1xf32>
      %120 = arith.addf %117, %119 : vector<4x1xf32>
      %121 = math.rsqrt %120 : vector<4x1xf32>
      %122 = arith.mulf %118, %121 : vector<4x1xf32>
      %c0_114 = arith.constant 0 : index
      %c0_115 = arith.constant 0 : index
      %123 = vector.load %arg4[%c0_114, %c0_115] : memref<4x1xf32, #tpu.memory_space<vmem>>, vector<4x1xf32>
      %124 = arith.mulf %110, %122 : vector<4x1xf32>
      %125 = arith.subf %123, %124 : vector<4x1xf32>
      %c0_116 = arith.constant 0 : index
      %c0_117 = arith.constant 0 : index
      %c0_118 = arith.constant 0 : index
      %126 = vector.load %arg6[%c0_116, %c0_117, %c0_118] : memref<2x4x4096xf32, #tpu.memory_space<vmem>>, vector<1x4x4096xf32>
      %127 = vector.shape_cast %126 : vector<1x4x4096xf32> to vector<4x4096xf32>
      %128 = vector.broadcast %122 : vector<4x1xf32> to vector<4x4096xf32>
      %129 = arith.mulf %127, %128 : vector<4x4096xf32>
      %130 = vector.broadcast %125 : vector<4x1xf32> to vector<4x4096xf32>
      %131 = arith.addf %129, %130 : vector<4x4096xf32>
      %cst_119 = arith.constant 0.000000e+00 : f32
      %132 = vector.broadcast %cst_119 : f32 to vector<4x4096xf32>
      %133 = arith.cmpf oge, %131, %132 : vector<4x4096xf32>
      %cst_120 = arith.constant 0.00999999977 : f32
      %134 = vector.broadcast %cst_120 : f32 to vector<4x4096xf32>
      %135 = arith.mulf %134, %131 : vector<4x4096xf32>
      %136 = arith.select %133, %131, %135 : vector<4x4096xi1>, vector<4x4096xf32>
      %c0_121 = arith.constant 0 : index
      %c0_122 = arith.constant 0 : index
      %c0_123 = arith.constant 0 : index
      %137 = vector.load %arg6[%c0_121, %c0_122, %c0_123] : memref<2x4x4096xf32, #tpu.memory_space<vmem>>, vector<1x4x4096xf32>
      %138 = vector.shape_cast %137 : vector<1x4x4096xf32> to vector<4x4096xf32>
      %139 = vector.shape_cast %136 : vector<4x4096xf32> to vector<1x4x4096xf32>
      tpu.vector_store %arg6[%c0_121, %c0_122, %c0_123], %139 {strides = array<i32>} : memref<2x4x4096xf32, #tpu.memory_space<vmem>>, vector<1x4x4096xf32>,
      %c1_124 = arith.constant 1 : index
      %c0_125 = arith.constant 0 : index
      %c0_126 = arith.constant 0 : index
      %140 = vector.load %arg6[%c1_124, %c0_125, %c0_126] : memref<2x4x4096xf32, #tpu.memory_space<vmem>>, vector<1x4x4096xf32>
      %141 = vector.shape_cast %140 : vector<1x4x4096xf32> to vector<4x4096xf32>
      %142 = vector.broadcast %122 : vector<4x1xf32> to vector<4x4096xf32>
      %143 = arith.mulf %141, %142 : vector<4x4096xf32>
      %144 = vector.broadcast %125 : vector<4x1xf32> to vector<4x4096xf32>
      %145 = arith.addf %143, %144 : vector<4x4096xf32>
      %cst_127 = arith.constant 0.000000e+00 : f32
      %146 = vector.broadcast %cst_127 : f32 to vector<4x4096xf32>
      %147 = arith.cmpf oge, %145, %146 : vector<4x4096xf32>
      %cst_128 = arith.constant 0.00999999977 : f32
      %148 = vector.broadcast %cst_128 : f32 to vector<4x4096xf32>
      %149 = arith.mulf %148, %145 : vector<4x4096xf32>
      %150 = arith.select %147, %145, %149 : vector<4x4096xi1>, vector<4x4096xf32>
      %c1_129 = arith.constant 1 : index
      %c0_130 = arith.constant 0 : index
      %c0_131 = arith.constant 0 : index
      %151 = vector.load %arg6[%c1_129, %c0_130, %c0_131] : memref<2x4x4096xf32, #tpu.memory_space<vmem>>, vector<1x4x4096xf32>
      %152 = vector.shape_cast %151 : vector<1x4x4096xf32> to vector<4x4096xf32>
      %153 = vector.shape_cast %150 : vector<4x4096xf32> to vector<1x4x4096xf32>
      tpu.vector_store %arg6[%c1_129, %c0_130, %c0_131], %153 {strides = array<i32>} : memref<2x4x4096xf32, #tpu.memory_space<vmem>>, vector<1x4x4096xf32>,
    } else {
    }
    return
  }
  func.func @transform_0(%arg0: i32) -> (i32, i32) {
    %c0_i32 = arith.constant 0 : i32
    %c0_i32_0 = arith.constant 0 : i32
    %c0_i32_1 = arith.constant 0 : i32
    return %c0_i32, %c0_i32_0 : i32, i32
  }
  func.func @transform_1(%arg0: i32) -> (i32, i32) {
    %c0_i32 = arith.constant 0 : i32
    %c0_i32_0 = arith.constant 0 : i32
    %c0_i32_1 = arith.constant 0 : i32
    return %c0_i32, %c0_i32_0 : i32, i32
  }
  func.func @transform_2(%arg0: i32) -> (i32, i32) {
    %c0_i32 = arith.constant 0 : i32
    %c0_i32_0 = arith.constant 0 : i32
    %c0_i32_1 = arith.constant 0 : i32
    return %c0_i32, %c0_i32_0 : i32, i32
  }
  func.func @transform_3(%arg0: i32) -> (i32, i32) {
    %c0_i32 = arith.constant 0 : i32
    %c0_i32_0 = arith.constant 0 : i32
    %c0_i32_1 = arith.constant 0 : i32
    return %c0_i32, %c0_i32_0 : i32, i32
  }
  func.func @transform_4(%arg0: i32) -> (i32, i32, i32) {
    %c0_i32 = arith.constant 0 : i32
    %c0_i32_0 = arith.constant 0 : i32
    %c0_i32_1 = arith.constant 0 : i32
    return %arg0, %c0_i32, %c0_i32_0 : i32, i32, i32
  }
  func.func @transform_5(%arg0: i32) -> (i32, i32, i32) {
    %c0_i32 = arith.constant 0 : i32
    %c0_i32_0 = arith.constant 0 : i32
    %c0_i32_1 = arith.constant 0 : i32
    %c0_i32_2 = arith.constant 0 : i32
    return %c0_i32, %c0_i32_0, %c0_i32_1 : i32, i32, i32
  }
}

</mosaic_0001>

<bundles_post_ra>
// kernel: conv_block_forward.1
= control target key start
LH: loop header
LB: loop body
LE: loop exit
PB: predicated region body
PF: predicated region fallthrough
CT: control target
= control target key end

     0   :  { %s10288_s18 = smov 0   ;;  %s15155_s0 = inlined_call_operand.vmem [shape: f32[1,4096], index: 0, kind: input, shape index: {}]   ;;  %s15156_s1 = inlined_call_operand.vmem [shape: f32[4,216], index: 1, kind: input, shape index: {}]   ;;  %s15157_s2 = inlined_call_operand.vmem [shape: f32[4,1], index: 2, kind: input, shape index: {}]   ;;  %s15158_s3 = inlined_call_operand.vmem [shape: f32[4,1], index: 3, kind: input, shape index: {}]   ;;  %s15159_s4 = inlined_call_operand.vmem [shape: f32[2,4,4736], index: 4, kind: input, shape index: {}]   ;;  %s15160_s5 = inlined_call_operand.vmem [shape: f32[2,4,4096], index: 5, kind: output, shape index: {}]  }
   0x1 LB: > { %s10294_s19 = sadd.s32 4294967295, %s10245_s18   ;;  %p9225_p0 = scmp.ge.s32.totalorder %s10245_s18, 1  ;;  %s10245_s18 = sphi %s10288_s18, %s15_s18  }
   0x2   : > { %p182_p1 = scmp.lt.s32.totalorder %s10245_s18, 3 }
   0x4   : > { %p183_p2 = pnand %p9225_p0, %p182_p1 }
   0x6   : > { %186 = sbr.rel (%p183_p2) target bundleno = 2732 (0xaac), region = 40 }
   0xd   : > { %p205_p3 = scmp.lt.s32.totalorder %s10294_s19, 1  ;;  %p9227_p4 = scmp.ne.s32.totalorder %s10294_s19, 0 }
   0xe   : > { %vm214_vm0 = vcmask (!%p9227_p4), 3072   ;;  %v10247_v0 = vmov (!%p9227_p4), 0.0  }
   0xf   : > { %s206_s20 = scalar_select %p205_p3, %s10294_s19, 1 }
  0x10   : > { %213 = sbr.rel (%p9227_p4) target bundleno = 449 (0x1c1), region = 44  ;;  %215 = vst.msk [vmem:[#allocation2] sm:$0xf] (!%p9227_p4), %vm214_vm0, %v10247_v0  ;;  %216 = vst.msk [vmem:[#allocation3] sm:$0xf] (!%p9227_p4), %vm214_vm0, %v10247_v0 }
  0x11   : > { %s10114_s21 = smul.u32 148, %s206_s20  ;;  %217 = vst [vmem:[#allocation4] sm:$0xff] (!%p9227_p4), %v10247_v0  ;;  %218 = vst [vmem:[#allocation4 + $0x8] sm:$0xff] (!%p9227_p4), %v10247_v0 }
  0x12   : > { %219 = vst [vmem:[#allocation4 + $0x10] sm:$0xff] (!%p9227_p4), %v10247_v0  ;;  %220 = vst [vmem:[#allocation4 + $0x18] sm:$0xff] (!%p9227_p4), %v10247_v0 }
  0x13   : > { %s10303_s24 = scalar_lea.vmem %s15159_s4, %s10114_s21  ;;  %221 = vst [vmem:[#allocation4 + $0x20] sm:$0xff] (!%p9227_p4), %v10247_v0  ;;  %222 = vst [vmem:[#allocation4 + $0x28] sm:$0xff] (!%p9227_p4), %v10247_v0 }
  0x14   : > { %223 = vst [vmem:[#allocation4 + $0x30] sm:$0xff] (!%p9227_p4), %v10247_v0  ;;  %224 = vst [vmem:[#allocation4 + $0x38] sm:$0xff] (!%p9227_p4), %v10247_v0 }
  0x15   : > { %225 = vst [vmem:[#allocation4 + $0x40] sm:$0xff] (!%p9227_p4), %v10247_v0  ;;  %226 = vst [vmem:[#allocation4 + $0x48] sm:$0xff] (!%p9227_p4), %v10247_v0 }
  0x16   : > { %227 = vst [vmem:[#allocation4 + $0x50] sm:$0xff] (!%p9227_p4), %v10247_v0  ;;  %228 = vst [vmem:[#allocation4 + $0x58] sm:$0xff] (!%p9227_p4), %v10247_v0 }
  0x17   : > { %229 = vst [vmem:[#allocation4 + $0x60] sm:$0xff] %v10247_v0  ;;  %230 = vst [vmem:[#allocation4 + $0x68] sm:$0xff] %v10247_v0 }
  0x18   : > { %231 = vst [vmem:[#allocation4 + $0x70] sm:$0xff] %v10247_v0  ;;  %232 = vst [vmem:[#allocation4 + $0x78] sm:$0xff] %v10247_v0  ;;  %v10820_v1 = vld [vmem:[#allocation4] sm:$0xff] }
  0x19   : > { %233 = vst [vmem:[#allocation4 + $0x80] sm:$0xff] %v10247_v0  ;;  %234 = vst [vmem:[#allocation4 + $0x88] sm:$0xff] %v10247_v0 }
  0x1a   : > { %235 = vst [vmem:[#allocation4 + $0x90] sm:$0xff] %v10247_v0  ;;  %236 = vst [vmem:[#allocation4 + $0x98] sm:$0xff] %v10247_v0 }
  0x1b   : > { %237 = vst [vmem:[#allocation4 + $0xa0] sm:$0xff] %v10247_v0  ;;  %238 = vst [vmem:[#allocation4 + $0xa8] sm:$0xff] %v10247_v0 }
  0x1c   : > { %239 = vst [vmem:[#allocation4 + $0xb0] sm:$0xff] %v10247_v0  ;;  %240 = vst [vmem:[#allocation4 + $0xb8] sm:$0xff] %v10247_v0 }
  0x1d   : > { %241 = vst [vmem:[#allocation4 + $0xc0] sm:$0xff] %v10247_v0  ;;  %242 = vst [vmem:[#allocation4 + $0xc8] sm:$0xff] %v10247_v0 }
  0x1e   : > { %243 = vst [vmem:[#allocation4 + $0xd0] sm:$0xff] %v10247_v0  ;;  %244 = vst [vmem:[#allocation4 + $0xd8] sm:$0xff] %v10247_v0 }
  0x1f   : > { %245 = vst [vmem:[#allocation4 + $0xe0] sm:$0xff] %v10247_v0  ;;  %246 = vst [vmem:[#allocation4 + $0xe8] sm:$0xff] %v10247_v0 }
  0x20   : > { %247 = vst [vmem:[#allocation4 + $0xf0] sm:$0xff] %v10247_v0  ;;  %248 = vst [vmem:[#allocation4 + $0xf8] sm:$0xff] %v10247_v0 }
  0x21   : > { %249 = vst [vmem:[#allocation4 + $0x100] sm:$0xff] %v10247_v0  ;;  %250 = vst [vmem:[#allocation4 + $0x108] sm:$0xff] %v10247_v0 }
  0x22   : > { %251 = vst [vmem:[#allocation4 + $0x110] sm:$0xff] %v10247_v0  ;;  %252 = vst [vmem:[#allocation4 + $0x118] sm:$0xff] %v10247_v0 }
  0x23   : > { %253 = vst [vmem:[#allocation4 + $0x120] sm:$0xff] %v10247_v0  ;;  %254 = vst [vmem:[#allocation4 + $0x128] sm:$0xff] %v10247_v0 }
  0x24   : > { %255 = vst [vmem:[#allocation4 + $0x130] sm:$0xff] %v10247_v0  ;;  %256 = vst [vmem:[#allocation4 + $0x138] sm:$0xff] %v10247_v0 }
  0x25   : > { %257 = vst [vmem:[#allocation4 + $0x140] sm:$0xff] %v10247_v0  ;;  %258 = vst [vmem:[#allocation4 + $0x148] sm:$0xff] %v10247_v0 }
  0x26   : > { %259 = vst [vmem:[#allocation4 + $0x150] sm:$0xff] %v10247_v0  ;;  %260 = vst [vmem:[#allocation4 + $0x158] sm:$0xff] %v10247_v0 }
  0x27   : > { %261 = vst [vmem:[#allocation4 + $0x160] sm:$0xff] %v10247_v0  ;;  %262 = vst [vmem:[#allocation4 + $0x168] sm:$0xff] %v10247_v0 }
  0x28   : > { %263 = vst [vmem:[#allocation4 + $0x170] sm:$0xff] %v10247_v0  ;;  %264 = vst [vmem:[#allocation4 + $0x178] sm:$0xff] %v10247_v0 }
  0x29   : > { %265 = vst [vmem:[#allocation4 + $0x180] sm:$0xff] %v10247_v0  ;;  %266 = vst [vmem:[#allocation4 + $0x188] sm:$0xff] %v10247_v0 }
  0x2a   : > { %267 = vst [vmem:[#allocation4 + $0x190] sm:$0xff] %v10247_v0  ;;  %268 = vst [vmem:[#allocation4 + $0x198] sm:$0xff] %v10247_v0 }
  0x2b   : > { %269 = vst [vmem:[#allocation4 + $0x1a0] sm:$0xff] %v10247_v0  ;;  %270 = vst [vmem:[#allocation4 + $0x1a8] sm:$0xff] %v10247_v0 }
  0x2c   : > { %271 = vst [vmem:[#allocation4 + $0x1b0] sm:$0xff] %v10247_v0  ;;  %272 = vst [vmem:[#allocation4 + $0x1b8] sm:$0xff] %v10247_v0 }
  0x2d   : > { %273 = vst [vmem:[#allocation4 + $0x1c0] sm:$0xff] %v10247_v0  ;;  %274 = vst [vmem:[#allocation4 + $0x1c8] sm:$0xff] %v10247_v0 }
  0x2e   : > { %275 = vst [vmem:[#allocation4 + $0x1d0] sm:$0xff] %v10247_v0  ;;  %276 = vst [vmem:[#allocation4 + $0x1d8] sm:$0xff] %v10247_v0 }
  0x2f   : > { %277 = vst [vmem:[#allocation4 + $0x1e0] sm:$0xff] %v10247_v0  ;;  %278 = vst [vmem:[#allocation4 + $0x1e8] sm:$0xff] %v10247_v0 }
  0x30   : > { %279 = vst [vmem:[#allocation4 + $0x1f0] sm:$0xff] %v10247_v0  ;;  %280 = vst [vmem:[#allocation4 + $0x1f8] sm:$0xff] %v10247_v0 }
  0x31   : > { %281 = vst [vmem:[#allocation4 + $0x200] sm:$0xff] %v10247_v0  ;;  %282 = vst [vmem:[#allocation4 + $0x208] sm:$0xff] %v10247_v0 }
  0x32   : > { %283 = vst [vmem:[#allocation4 + $0x210] sm:$0xff] %v10247_v0  ;;  %284 = vst [vmem:[#allocation4 + $0x218] sm:$0xff] %v10247_v0 }
  0x33   : > { %285 = vst [vmem:[#allocation4 + $0x220] sm:$0xff] %v10247_v0  ;;  %286 = vst [vmem:[#allocation4 + $0x228] sm:$0xff] %v10247_v0 }
  0x34   : > { %287 = vst [vmem:[#allocation4 + $0x230] sm:$0xff] %v10247_v0  ;;  %288 = vst [vmem:[#allocation4 + $0x238] sm:$0xff] %v10247_v0 }
  0x35   : > { %289 = vst [vmem:[#allocation4 + $0x240] sm:$0xff] %v10247_v0  ;;  %290 = vst [vmem:[#allocation4 + $0x248] sm:$0xff] %v10247_v0 }
  0x36   : > { %291 = vst [vmem:[#allocation4 + $0x250] sm:$0xff] %v10247_v0  ;;  %292 = vst [vmem:[#allocation4 + $0x258] sm:$0xff] %v10247_v0 }
  0x37   : > { %293 = vst [vmem:[#allocation4 + $0x260] sm:$0xff] %v10247_v0  ;;  %294 = vst [vmem:[#allocation4 + $0x268] sm:$0xff] %v10247_v0 }
  0x38   : > { %295 = vst [vmem:[#allocation4 + $0x270] sm:$0xff] %v10247_v0  ;;  %296 = vst [vmem:[#allocation4 + $0x278] sm:$0xff] %v10247_v0 }
  0x39   : > { %297 = vst [vmem:[#allocation4 + $0x280] sm:$0xff] %v10247_v0  ;;  %298 = vst [vmem:[#allocation4 + $0x288] sm:$0xff] %v10247_v0 }
  0x3a   : > { %299 = vst [vmem:[#allocation4 + $0x290] sm:$0xff] %v10247_v0  ;;  %300 = vst [vmem:[#allocation4 + $0x298] sm:$0xff] %v10247_v0 }
  0x3b   : > { %301 = vst [vmem:[#allocation4 + $0x2a0] sm:$0xff] %v10247_v0  ;;  %302 = vst [vmem:[#allocation4 + $0x2a8] sm:$0xff] %v10247_v0 }
  0x3c   : > { %303 = vst [vmem:[#allocation4 + $0x2b0] sm:$0xff] %v10247_v0  ;;  %304 = vst [vmem:[#allocation4 + $0x2b8] sm:$0xff] %v10247_v0 }
  0x3d   : > { %305 = vst [vmem:[#allocation4 + $0x2c0] sm:$0xff] %v10247_v0  ;;  %306 = vst [vmem:[#allocation4 + $0x2c8] sm:$0xff] %v10247_v0 }
  0x3e   : > { %307 = vst [vmem:[#allocation4 + $0x2d0] sm:$0xff] %v10247_v0  ;;  %308 = vst [vmem:[#allocation4 + $0x2d8] sm:$0xff] %v10247_v0 }
  0x3f   : > { %309 = vst [vmem:[#allocation4 + $0x2e0] sm:$0xff] %v10247_v0  ;;  %310 = vst [vmem:[#allocation4 + $0x2e8] sm:$0xff] %v10247_v0 }
  0x40   : > { %311 = vst [vmem:[#allocation4 + $0x2f0] sm:$0xff] %v10247_v0  ;;  %312 = vst [vmem:[#allocation4 + $0x2f8] sm:$0xff] %v10247_v0 }
  0x41   : > { %313 = vst [vmem:[#allocation4 + $0x300] sm:$0xff] %v10247_v0  ;;  %314 = vst [vmem:[#allocation4 + $0x308] sm:$0xff] %v10247_v0 }
  0x42   : > { %315 = vst [vmem:[#allocation4 + $0x310] sm:$0xff] %v10247_v0  ;;  %316 = vst [vmem:[#allocation4 + $0x318] sm:$0xff] %v10247_v0 }
  0x43   : > { %317 = vst [vmem:[#allocation4 + $0x320] sm:$0xff] %v10247_v0  ;;  %318 = vst [vmem:[#allocation4 + $0x328] sm:$0xff] %v10247_v0 }
  0x44   : > { %319 = vst [vmem:[#allocation4 + $0x330] sm:$0xff] %v10247_v0  ;;  %320 = vst [vmem:[#allocation4 + $0x338] sm:$0xff] %v10247_v0 }
  0x45   : > { %321 = vst [vmem:[#allocation4 + $0x340] sm:$0xff] %v10247_v0  ;;  %322 = vst [vmem:[#allocation4 + $0x348] sm:$0xff] %v10247_v0 }
  0x46   : > { %323 = vst [vmem:[#allocation4 + $0x350] sm:$0xff] %v10247_v0  ;;  %324 = vst [vmem:[#allocation4 + $0x358] sm:$0xff] %v10247_v0 }
  0x47   : > { %325 = vst [vmem:[#allocation4 + $0x360] sm:$0xff] %v10247_v0  ;;  %326 = vst [vmem:[#allocation4 + $0x368] sm:$0xff] %v10247_v0 }
  0x48   : > { %327 = vst [vmem:[#allocation4 + $0x370] sm:$0xff] %v10247_v0  ;;  %328 = vst [vmem:[#allocation4 + $0x378] sm:$0xff] %v10247_v0 }
  0x49   : > { %329 = vst [vmem:[#allocation4 + $0x380] sm:$0xff] %v10247_v0  ;;  %330 = vst [vmem:[#allocation4 + $0x388] sm:$0xff] %v10247_v0 }
  0x4a   : > { %331 = vst [vmem:[#allocation4 + $0x390] sm:$0xff] %v10247_v0  ;;  %332 = vst [vmem:[#allocation4 + $0x398] sm:$0xff] %v10247_v0 }
  0x4b   : > { %333 = vst [vmem:[#allocation4 + $0x3a0] sm:$0xff] %v10247_v0  ;;  %334 = vst [vmem:[#allocation4 + $0x3a8] sm:$0xff] %v10247_v0 }
  0x4c   : > { %335 = vst [vmem:[#allocation4 + $0x3b0] sm:$0xff] %v10247_v0  ;;  %336 = vst [vmem:[#allocation4 + $0x3b8] sm:$0xff] %v10247_v0 }
  0x4d   : > { %337 = vst [vmem:[#allocation4 + $0x3c0] sm:$0xff] %v10247_v0  ;;  %338 = vst [vmem:[#allocation4 + $0x3c8] sm:$0xff] %v10247_v0 }
  0x4e   : > { %339 = vst [vmem:[#allocation4 + $0x3d0] sm:$0xff] %v10247_v0  ;;  %340 = vst [vmem:[#allocation4 + $0x3d8] sm:$0xff] %v10247_v0 }
  0x4f   : > { %341 = vst [vmem:[#allocation4 + $0x3e0] sm:$0xff] %v10247_v0  ;;  %342 = vst [vmem:[#allocation4 + $0x3e8] sm:$0xff] %v10247_v0 }
  0x50   : > { %343 = vst [vmem:[#allocation4 + $0x3f0] sm:$0xff] %v10247_v0  ;;  %344 = vst [vmem:[#allocation4 + $0x3f8] sm:$0xff] %v10247_v0 }
  0x51   : > { %345 = vst [vmem:[#allocation4 + $0x400] sm:$0xff] %v10247_v0  ;;  %346 = vst [vmem:[#allocation4 + $0x408] sm:$0xff] %v10247_v0 }
  0x52   : > { %347 = vst [vmem:[#allocation4 + $0x410] sm:$0xff] %v10247_v0  ;;  %348 = vst [vmem:[#allocation4 + $0x418] sm:$0xff] %v10247_v0 }
  0x53   : > { %349 = vst [vmem:[#allocation4 + $0x420] sm:$0xff] %v10247_v0  ;;  %350 = vst [vmem:[#allocation4 + $0x428] sm:$0xff] %v10247_v0 }
  0x54   : > { %351 = vst [vmem:[#allocation4 + $0x430] sm:$0xff] %v10247_v0  ;;  %352 = vst [vmem:[#allocation4 + $0x438] sm:$0xff] %v10247_v0 }
  0x55   : > { %353 = vst [vmem:[#allocation4 + $0x440] sm:$0xff] %v10247_v0  ;;  %354 = vst [vmem:[#allocation4 + $0x448] sm:$0xff] %v10247_v0 }
  0x56   : > { %355 = vst [vmem:[#allocation4 + $0x450] sm:$0xff] %v10247_v0  ;;  %356 = vst [vmem:[#allocation4 + $0x458] sm:$0xff] %v10247_v0 }
  0x57   : > { %357 = vst [vmem:[#allocation4 + $0x460] sm:$0xff] %v10247_v0  ;;  %358 = vst [vmem:[#allocation4 + $0x468] sm:$0xff] %v10247_v0 }
  0x58   : > { %359 = vst [vmem:[#allocation4 + $0x470] sm:$0xff] %v10247_v0  ;;  %360 = vst [vmem:[#allocation4 + $0x478] sm:$0xff] %v10247_v0 }
  0x59   : > { %361 = vst [vmem:[#allocation4 + $0x480] sm:$0xff] %v10247_v0  ;;  %362 = vst [vmem:[#allocation4 + $0x488] sm:$0xff] %v10247_v0 }
  0x5a   : > { %363 = vst [vmem:[#allocation4 + $0x490] sm:$0xff] %v10247_v0  ;;  %364 = vst [vmem:[#allocation4 + $0x498] sm:$0xff] %v10247_v0 }
  0x5b   : > { %365 = vst [vmem:[#allocation4 + $0x4a0] sm:$0xff] %v10247_v0  ;;  %366 = vst [vmem:[#allocation4 + $0x4a8] sm:$0xff] %v10247_v0 }
  0x5c   : > { %367 = vst [vmem:[#allocation4 + $0x4b0] sm:$0xff] %v10247_v0  ;;  %368 = vst [vmem:[#allocation4 + $0x4b8] sm:$0xff] %v10247_v0 }
  0x5d   : > { %369 = vst [vmem:[#allocation4 + $0x4c0] sm:$0xff] %v10247_v0  ;;  %370 = vst [vmem:[#allocation4 + $0x4c8] sm:$0xff] %v10247_v0 }
  0x5e   : > { %371 = vst [vmem:[#allocation4 + $0x4d0] sm:$0xff] %v10247_v0  ;;  %372 = vst [vmem:[#allocation4 + $0x4d8] sm:$0xff] %v10247_v0 }
  0x5f   : > { %373 = vst [vmem:[#allocation4 + $0x4e0] sm:$0xff] %v10247_v0  ;;  %374 = vst [vmem:[#allocation4 + $0x4e8] sm:$0xff] %v10247_v0 }
  0x60   : > { %375 = vst [vmem:[#allocation4 + $0x4f0] sm:$0xff] %v10247_v0  ;;  %376 = vst [vmem:[#allocation4 + $0x4f8] sm:$0xff] %v10247_v0 }
  0x61   : > { %377 = vst [vmem:[#allocation4 + $0x500] sm:$0xff] %v10247_v0  ;;  %378 = vst [vmem:[#allocation4 + $0x508] sm:$0xff] %v10247_v0 }
  0x62   : > { %379 = vst [vmem:[#allocation4 + $0x510] sm:$0xff] %v10247_v0  ;;  %380 = vst [vmem:[#allocation4 + $0x518] sm:$0xff] %v10247_v0 }
  0x63   : > { %381 = vst [vmem:[#allocation4 + $0x520] sm:$0xff] %v10247_v0  ;;  %382 = vst [vmem:[#allocation4 + $0x528] sm:$0xff] %v10247_v0 }
  0x64   : > { %383 = vst [vmem:[#allocation4 + $0x530] sm:$0xff] %v10247_v0  ;;  %384 = vst [vmem:[#allocation4 + $0x538] sm:$0xff] %v10247_v0 }
  0x65   : > { %385 = vst [vmem:[#allocation4 + $0x540] sm:$0xff] %v10247_v0  ;;  %386 = vst [vmem:[#allocation4 + $0x548] sm:$0xff] %v10247_v0 }
  0x66   : > { %387 = vst [vmem:[#allocation4 + $0x550] sm:$0xff] %v10247_v0  ;;  %388 = vst [vmem:[#allocation4 + $0x558] sm:$0xff] %v10247_v0 }
  0x67   : > { %389 = vst [vmem:[#allocation4 + $0x560] sm:$0xff] %v10247_v0  ;;  %390 = vst [vmem:[#allocation4 + $0x568] sm:$0xff] %v10247_v0 }
  0x68   : > { %391 = vst [vmem:[#allocation4 + $0x570] sm:$0xff] %v10247_v0  ;;  %392 = vst [vmem:[#allocation4 + $0x578] sm:$0xff] %v10247_v0 }
  0x69   : > { %393 = vst [vmem:[#allocation4 + $0x580] sm:$0xff] %v10247_v0  ;;  %394 = vst [vmem:[#allocation4 + $0x588] sm:$0xff] %v10247_v0 }
  0x6a   : > { %395 = vst [vmem:[#allocation4 + $0x590] sm:$0xff] %v10247_v0  ;;  %396 = vst [vmem:[#allocation4 + $0x598] sm:$0xff] %v10247_v0 }
  0x6b   : > { %397 = vst [vmem:[#allocation4 + $0x5a0] sm:$0xff] %v10247_v0  ;;  %398 = vst [vmem:[#allocation4 + $0x5a8] sm:$0xff] %v10247_v0 }
  0x6c   : > { %399 = vst [vmem:[#allocation4 + $0x5b0] sm:$0xff] %v10247_v0  ;;  %400 = vst [vmem:[#allocation4 + $0x5b8] sm:$0xff] %v10247_v0 }
  0x6d   : > { %401 = vst [vmem:[#allocation4 + $0x5c0] sm:$0xff] %v10247_v0  ;;  %402 = vst [vmem:[#allocation4 + $0x5c8] sm:$0xff] %v10247_v0 }
  0x6e   : > { %403 = vst [vmem:[#allocation4 + $0x5d0] sm:$0xff] %v10247_v0  ;;  %404 = vst [vmem:[#allocation4 + $0x5d8] sm:$0xff] %v10247_v0 }
  0x6f   : > { %405 = vst [vmem:[#allocation4 + $0x5e0] sm:$0xff] %v10247_v0  ;;  %406 = vst [vmem:[#allocation4 + $0x5e8] sm:$0xff] %v10247_v0 }
  0x70   : > { %407 = vst [vmem:[#allocation4 + $0x5f0] sm:$0xff] %v10247_v0  ;;  %408 = vst [vmem:[#allocation4 + $0x5f8] sm:$0xff] %v10247_v0 }
  0x71   : > { %409 = vst [vmem:[#allocation4 + $0x600] sm:$0xff] %v10247_v0  ;;  %410 = vst [vmem:[#allocation4 + $0x608] sm:$0xff] %v10247_v0 }
  0x72   : > { %411 = vst [vmem:[#allocation4 + $0x610] sm:$0xff] %v10247_v0  ;;  %412 = vst [vmem:[#allocation4 + $0x618] sm:$0xff] %v10247_v0 }
  0x73   : > { %413 = vst [vmem:[#allocation4 + $0x620] sm:$0xff] %v10247_v0  ;;  %414 = vst [vmem:[#allocation4 + $0x628] sm:$0xff] %v10247_v0 }
  0x74   : > { %415 = vst [vmem:[#allocation4 + $0x630] sm:$0xff] %v10247_v0  ;;  %416 = vst [vmem:[#allocation4 + $0x638] sm:$0xff] %v10247_v0 }
  0x75   : > { %417 = vst [vmem:[#allocation4 + $0x640] sm:$0xff] %v10247_v0  ;;  %418 = vst [vmem:[#allocation4 + $0x648] sm:$0xff] %v10247_v0 }
  0x76   : > { %419 = vst [vmem:[#allocation4 + $0x650] sm:$0xff] %v10247_v0  ;;  %420 = vst [vmem:[#allocation4 + $0x658] sm:$0xff] %v10247_v0 }
  0x77   : > { %421 = vst [vmem:[#allocation4 + $0x660] sm:$0xff] %v10247_v0  ;;  %422 = vst [vmem:[#allocation4 + $0x668] sm:$0xff] %v10247_v0 }
  0x78   : > { %423 = vst [vmem:[#allocation4 + $0x670] sm:$0xff] %v10247_v0  ;;  %424 = vst [vmem:[#allocation4 + $0x678] sm:$0xff] %v10247_v0 }
  0x79   : > { %425 = vst [vmem:[#allocation4 + $0x680] sm:$0xff] %v10247_v0  ;;  %426 = vst [vmem:[#allocation4 + $0x688] sm:$0xff] %v10247_v0 }
  0x7a   : > { %427 = vst [vmem:[#allocation4 + $0x690] sm:$0xff] %v10247_v0  ;;  %428 = vst [vmem:[#allocation4 + $0x698] sm:$0xff] %v10247_v0 }
  0x7b   : > { %429 = vst [vmem:[#allocation4 + $0x6a0] sm:$0xff] %v10247_v0  ;;  %430 = vst [vmem:[#allocation4 + $0x6a8] sm:$0xff] %v10247_v0 }
  0x7c   : > { %431 = vst [vmem:[#allocation4 + $0x6b0] sm:$0xff] %v10247_v0  ;;  %432 = vst [vmem:[#allocation4 + $0x6b8] sm:$0xff] %v10247_v0 }
  0x7d   : > { %433 = vst [vmem:[#allocation4 + $0x6c0] sm:$0xff] %v10247_v0  ;;  %434 = vst [vmem:[#allocation4 + $0x6c8] sm:$0xff] %v10247_v0 }
  0x7e   : > { %435 = vst [vmem:[#allocation4 + $0x6d0] sm:$0xff] %v10247_v0  ;;  %436 = vst [vmem:[#allocation4 + $0x6d8] sm:$0xff] %v10247_v0 }
  0x7f   : > { %437 = vst [vmem:[#allocation4 + $0x6e0] sm:$0xff] %v10247_v0  ;;  %438 = vst [vmem:[#allocation4 + $0x6e8] sm:$0xff] %v10247_v0 }
  0x80   : > { %439 = vst [vmem:[#allocation4 + $0x6f0] sm:$0xff] %v10247_v0  ;;  %440 = vst [vmem:[#allocation4 + $0x6f8] sm:$0xff] %v10247_v0 }
  0x81   : > { %441 = vst [vmem:[#allocation4 + $0x700] sm:$0xff] %v10247_v0  ;;  %442 = vst [vmem:[#allocation4 + $0x708] sm:$0xff] %v10247_v0 }
  0x82   : > { %443 = vst [vmem:[#allocation4 + $0x710] sm:$0xff] %v10247_v0  ;;  %444 = vst [vmem:[#allocation4 + $0x718] sm:$0xff] %v10247_v0 }
  0x83   : > { %445 = vst [vmem:[#allocation4 + $0x720] sm:$0xff] %v10247_v0  ;;  %446 = vst [vmem:[#allocation4 + $0x728] sm:$0xff] %v10247_v0 }
  0x84   : > { %447 = vst [vmem:[#allocation4 + $0x730] sm:$0xff] %v10247_v0  ;;  %448 = vst [vmem:[#allocation4 + $0x738] sm:$0xff] %v10247_v0 }
  0x85   : > { %449 = vst [vmem:[#allocation4 + $0x740] sm:$0xff] %v10247_v0  ;;  %450 = vst [vmem:[#allocation4 + $0x748] sm:$0xff] %v10247_v0 }
  0x86   : > { %451 = vst [vmem:[#allocation4 + $0x750] sm:$0xff] %v10247_v0  ;;  %452 = vst [vmem:[#allocation4 + $0x758] sm:$0xff] %v10247_v0 }
  0x87   : > { %453 = vst [vmem:[#allocation4 + $0x760] sm:$0xff] %v10247_v0  ;;  %454 = vst [vmem:[#allocation4 + $0x768] sm:$0xff] %v10247_v0 }
  0x88   : > { %455 = vst [vmem:[#allocation4 + $0x770] sm:$0xff] %v10247_v0  ;;  %456 = vst [vmem:[#allocation4 + $0x778] sm:$0xff] %v10247_v0 }
  0x89   : > { %457 = vst [vmem:[#allocation4 + $0x780] sm:$0xff] %v10247_v0  ;;  %458 = vst [vmem:[#allocation4 + $0x788] sm:$0xff] %v10247_v0 }
  0x8a   : > { %459 = vst [vmem:[#allocation4 + $0x790] sm:$0xff] %v10247_v0  ;;  %460 = vst [vmem:[#allocation4 + $0x798] sm:$0xff] %v10247_v0 }
  0x8b   : > { %461 = vst [vmem:[#allocation4 + $0x7a0] sm:$0xff] %v10247_v0  ;;  %462 = vst [vmem:[#allocation4 + $0x7a8] sm:$0xff] %v10247_v0 }
  0x8c   : > { %463 = vst [vmem:[#allocation4 + $0x7b0] sm:$0xff] %v10247_v0  ;;  %464 = vst [vmem:[#allocation4 + $0x7b8] sm:$0xff] %v10247_v0 }
  0x8d   : > { %465 = vst [vmem:[#allocation4 + $0x7c0] sm:$0xff] %v10247_v0  ;;  %466 = vst [vmem:[#allocation4 + $0x7c8] sm:$0xff] %v10247_v0 }
  0x8e   : > { %467 = vst [vmem:[#allocation4 + $0x7d0] sm:$0xff] %v10247_v0  ;;  %468 = vst [vmem:[#allocation4 + $0x7d8] sm:$0xff] %v10247_v0 }
  0x8f   : > { %469 = vst [vmem:[#allocation4 + $0x7e0] sm:$0xff] %v10247_v0  ;;  %470 = vst [vmem:[#allocation4 + $0x7e8] sm:$0xff] %v10247_v0 }
  0x90   : > { %471 = vst [vmem:[#allocation4 + $0x7f0] sm:$0xff] %v10247_v0  ;;  %472 = vst [vmem:[#allocation4 + $0x7f8] sm:$0xff] %v10247_v0 }
  0x91   : > { %473 = vst [vmem:[#allocation4 + $0x800] sm:$0xff] %v10247_v0  ;;  %474 = vst [vmem:[#allocation4 + $0x808] sm:$0xff] %v10247_v0 }
  0x92   : > { %475 = vst [vmem:[#allocation4 + $0x810] sm:$0xff] %v10247_v0  ;;  %476 = vst [vmem:[#allocation4 + $0x818] sm:$0xff] %v10247_v0 }
  0x93   : > { %477 = vst [vmem:[#allocation4 + $0x820] sm:$0xff] %v10247_v0  ;;  %478 = vst [vmem:[#allocation4 + $0x828] sm:$0xff] %v10247_v0 }
  0x94   : > { %479 = vst [vmem:[#allocation4 + $0x830] sm:$0xff] %v10247_v0  ;;  %480 = vst [vmem:[#allocation4 + $0x838] sm:$0xff] %v10247_v0 }
  0x95   : > { %481 = vst [vmem:[#allocation4 + $0x840] sm:$0xff] %v10247_v0  ;;  %482 = vst [vmem:[#allocation4 + $0x848] sm:$0xff] %v10247_v0 }
  0x96   : > { %483 = vst [vmem:[#allocation4 + $0x850] sm:$0xff] %v10247_v0  ;;  %484 = vst [vmem:[#allocation4 + $0x858] sm:$0xff] %v10247_v0 }
  0x97   : > { %485 = vst [vmem:[#allocation4 + $0x860] sm:$0xff] %v10247_v0  ;;  %486 = vst [vmem:[#allocation4 + $0x868] sm:$0xff] %v10247_v0 }
  0x98   : > { %487 = vst [vmem:[#allocation4 + $0x870] sm:$0xff] %v10247_v0  ;;  %488 = vst [vmem:[#allocation4 + $0x878] sm:$0xff] %v10247_v0 }
  0x99   : > { %489 = vst [vmem:[#allocation4 + $0x880] sm:$0xff] %v10247_v0  ;;  %490 = vst [vmem:[#allocation4 + $0x888] sm:$0xff] %v10247_v0 }
  0x9a   : > { %491 = vst [vmem:[#allocation4 + $0x890] sm:$0xff] %v10247_v0  ;;  %492 = vst [vmem:[#allocation4 + $0x898] sm:$0xff] %v10247_v0 }
  0x9b   : > { %493 = vst [vmem:[#allocation4 + $0x8a0] sm:$0xff] %v10247_v0  ;;  %494 = vst [vmem:[#allocation4 + $0x8a8] sm:$0xff] %v10247_v0 }
  0x9c   : > { %495 = vst [vmem:[#allocation4 + $0x8b0] sm:$0xff] %v10247_v0  ;;  %496 = vst [vmem:[#allocation4 + $0x8b8] sm:$0xff] %v10247_v0 }
  0x9d   : > { %497 = vst [vmem:[#allocation4 + $0x8c0] sm:$0xff] %v10247_v0  ;;  %498 = vst [vmem:[#allocation4 + $0x8c8] sm:$0xff] %v10247_v0 }
  0x9e   : > { %499 = vst [vmem:[#allocation4 + $0x8d0] sm:$0xff] %v10247_v0  ;;  %500 = vst [vmem:[#allocation4 + $0x8d8] sm:$0xff] %v10247_v0 }
  0x9f   : > { %501 = vst [vmem:[#allocation4 + $0x8e0] sm:$0xff] %v10247_v0  ;;  %502 = vst [vmem:[#allocation4 + $0x8e8] sm:$0xff] %v10247_v0 }
  0xa0   : > { %503 = vst [vmem:[#allocation4 + $0x8f0] sm:$0xff] %v10247_v0  ;;  %504 = vst [vmem:[#allocation4 + $0x8f8] sm:$0xff] %v10247_v0 }
  0xa1   : > { %505 = vst [vmem:[#allocation4 + $0x900] sm:$0xff] %v10247_v0  ;;  %506 = vst [vmem:[#allocation4 + $0x908] sm:$0xff] %v10247_v0 }
  0xa2   : > { %507 = vst [vmem:[#allocation4 + $0x910] sm:$0xff] %v10247_v0  ;;  %508 = vst [vmem:[#allocation4 + $0x918] sm:$0xff] %v10247_v0 }
  0xa3   : > { %509 = vst [vmem:[#allocation4 + $0x920] sm:$0xff] %v10247_v0  ;;  %510 = vst [vmem:[#allocation4 + $0x928] sm:$0xff] %v10247_v0 }
  0xa4   : > { %511 = vst [vmem:[#allocation4 + $0x930] sm:$0xff] %v10247_v0  ;;  %512 = vst [vmem:[#allocation4 + $0x938] sm:$0xff] %v10247_v0 }
  0xa5   : > { %513 = vst [vmem:[#allocation4 + $0x940] sm:$0xff] %v10247_v0  ;;  %514 = vst [vmem:[#allocation4 + $0x948] sm:$0xff] %v10247_v0 }
  0xa6   : > { %515 = vst [vmem:[#allocation4 + $0x950] sm:$0xff] %v10247_v0  ;;  %516 = vst [vmem:[#allocation4 + $0x958] sm:$0xff] %v10247_v0 }
  0xa7   : > { %517 = vst [vmem:[#allocation4 + $0x960] sm:$0xff] %v10247_v0  ;;  %518 = vst [vmem:[#allocation4 + $0x968] sm:$0xff] %v10247_v0 }
  0xa8   : > { %519 = vst [vmem:[#allocation4 + $0x970] sm:$0xff] %v10247_v0  ;;  %520 = vst [vmem:[#allocation4 + $0x978] sm:$0xff] %v10247_v0 }
  0xa9   : > { %521 = vst [vmem:[#allocation4 + $0x980] sm:$0xff] %v10247_v0  ;;  %522 = vst [vmem:[#allocation4 + $0x988] sm:$0xff] %v10247_v0 }
  0xaa   : > { %523 = vst [vmem:[#allocation4 + $0x990] sm:$0xff] %v10247_v0  ;;  %524 = vst [vmem:[#allocation4 + $0x998] sm:$0xff] %v10247_v0 }
  0xab   : > { %525 = vst [vmem:[#allocation4 + $0x9a0] sm:$0xff] %v10247_v0  ;;  %526 = vst [vmem:[#allocation4 + $0x9a8] sm:$0xff] %v10247_v0 }
  0xac   : > { %527 = vst [vmem:[#allocation4 + $0x9b0] sm:$0xff] %v10247_v0  ;;  %528 = vst [vmem:[#allocation4 + $0x9b8] sm:$0xff] %v10247_v0 }
  0xad   : > { %529 = vst [vmem:[#allocation4 + $0x9c0] sm:$0xff] %v10247_v0  ;;  %530 = vst [vmem:[#allocation4 + $0x9c8] sm:$0xff] %v10247_v0 }
  0xae   : > { %531 = vst [vmem:[#allocation4 + $0x9d0] sm:$0xff] %v10247_v0  ;;  %532 = vst [vmem:[#allocation4 + $0x9d8] sm:$0xff] %v10247_v0 }
  0xaf   : > { %533 = vst [vmem:[#allocation4 + $0x9e0] sm:$0xff] %v10247_v0  ;;  %534 = vst [vmem:[#allocation4 + $0x9e8] sm:$0xff] %v10247_v0 }
  0xb0   : > { %535 = vst [vmem:[#allocation4 + $0x9f0] sm:$0xff] %v10247_v0  ;;  %536 = vst [vmem:[#allocation4 + $0x9f8] sm:$0xff] %v10247_v0 }
  0xb1   : > { %537 = vst [vmem:[#allocation4 + $0xa00] sm:$0xff] %v10247_v0  ;;  %538 = vst [vmem:[#allocation4 + $0xa08] sm:$0xff] %v10247_v0 }
  0xb2   : > { %539 = vst [vmem:[#allocation4 + $0xa10] sm:$0xff] %v10247_v0  ;;  %540 = vst [vmem:[#allocation4 + $0xa18] sm:$0xff] %v10247_v0 }
  0xb3   : > { %541 = vst [vmem:[#allocation4 + $0xa20] sm:$0xff] %v10247_v0  ;;  %542 = vst [vmem:[#allocation4 + $0xa28] sm:$0xff] %v10247_v0 }
  0xb4   : > { %543 = vst [vmem:[#allocation4 + $0xa30] sm:$0xff] %v10247_v0  ;;  %544 = vst [vmem:[#allocation4 + $0xa38] sm:$0xff] %v10247_v0 }
  0xb5   : > { %545 = vst [vmem:[#allocation4 + $0xa40] sm:$0xff] %v10247_v0  ;;  %546 = vst [vmem:[#allocation4 + $0xa48] sm:$0xff] %v10247_v0 }
  0xb6   : > { %547 = vst [vmem:[#allocation4 + $0xa50] sm:$0xff] %v10247_v0  ;;  %548 = vst [vmem:[#allocation4 + $0xa58] sm:$0xff] %v10247_v0 }
  0xb7   : > { %549 = vst [vmem:[#allocation4 + $0xa60] sm:$0xff] %v10247_v0  ;;  %550 = vst [vmem:[#allocation4 + $0xa68] sm:$0xff] %v10247_v0 }
  0xb8   : > { %551 = vst [vmem:[#allocation4 + $0xa70] sm:$0xff] %v10247_v0  ;;  %552 = vst [vmem:[#allocation4 + $0xa78] sm:$0xff] %v10247_v0 }
  0xb9   : > { %553 = vst [vmem:[#allocation4 + $0xa80] sm:$0xff] %v10247_v0  ;;  %554 = vst [vmem:[#allocation4 + $0xa88] sm:$0xff] %v10247_v0 }
  0xba   : > { %555 = vst [vmem:[#allocation4 + $0xa90] sm:$0xff] %v10247_v0  ;;  %556 = vst [vmem:[#allocation4 + $0xa98] sm:$0xff] %v10247_v0 }
  0xbb   : > { %557 = vst [vmem:[#allocation4 + $0xaa0] sm:$0xff] %v10247_v0  ;;  %558 = vst [vmem:[#allocation4 + $0xaa8] sm:$0xff] %v10247_v0 }
  0xbc   : > { %559 = vst [vmem:[#allocation4 + $0xab0] sm:$0xff] %v10247_v0  ;;  %560 = vst [vmem:[#allocation4 + $0xab8] sm:$0xff] %v10247_v0 }
  0xbd   : > { %561 = vst [vmem:[#allocation4 + $0xac0] sm:$0xff] %v10247_v0  ;;  %562 = vst [vmem:[#allocation4 + $0xac8] sm:$0xff] %v10247_v0 }
  0xbe   : > { %563 = vst [vmem:[#allocation4 + $0xad0] sm:$0xff] %v10247_v0  ;;  %564 = vst [vmem:[#allocation4 + $0xad8] sm:$0xff] %v10247_v0 }
  0xbf   : > { %565 = vst [vmem:[#allocation4 + $0xae0] sm:$0xff] %v10247_v0  ;;  %566 = vst [vmem:[#allocation4 + $0xae8] sm:$0xff] %v10247_v0 }
  0xc0   : > { %567 = vst [vmem:[#allocation4 + $0xaf0] sm:$0xff] %v10247_v0  ;;  %568 = vst [vmem:[#allocation4 + $0xaf8] sm:$0xff] %v10247_v0 }
  0xc1   : > { %569 = vst [vmem:[#allocation4 + $0xb00] sm:$0xff] %v10247_v0  ;;  %570 = vst [vmem:[#allocation4 + $0xb08] sm:$0xff] %v10247_v0 }
  0xc2   : > { %571 = vst [vmem:[#allocation4 + $0xb10] sm:$0xff] %v10247_v0  ;;  %572 = vst [vmem:[#allocation4 + $0xb18] sm:$0xff] %v10247_v0 }
  0xc3   : > { %573 = vst [vmem:[#allocation4 + $0xb20] sm:$0xff] %v10247_v0  ;;  %574 = vst [vmem:[#allocation4 + $0xb28] sm:$0xff] %v10247_v0 }
  0xc4   : > { %575 = vst [vmem:[#allocation4 + $0xb30] sm:$0xff] %v10247_v0  ;;  %576 = vst [vmem:[#allocation4 + $0xb38] sm:$0xff] %v10247_v0 }
  0xc5   : > { %577 = vst [vmem:[#allocation4 + $0xb40] sm:$0xff] %v10247_v0  ;;  %578 = vst [vmem:[#allocation4 + $0xb48] sm:$0xff] %v10247_v0 }
  0xc6   : > { %579 = vst [vmem:[#allocation4 + $0xb50] sm:$0xff] %v10247_v0  ;;  %580 = vst [vmem:[#allocation4 + $0xb58] sm:$0xff] %v10247_v0 }
  0xc7   : > { %581 = vst [vmem:[#allocation4 + $0xb60] sm:$0xff] %v10247_v0  ;;  %582 = vst [vmem:[#allocation4 + $0xb68] sm:$0xff] %v10247_v0 }
  0xc8   : > { %583 = vst [vmem:[#allocation4 + $0xb70] sm:$0xff] %v10247_v0  ;;  %584 = vst [vmem:[#allocation4 + $0xb78] sm:$0xff] %v10247_v0 }
  0xc9   : > { %585 = vst [vmem:[#allocation4 + $0xb80] sm:$0xff] %v10247_v0  ;;  %586 = vst [vmem:[#allocation4 + $0xb88] sm:$0xff] %v10247_v0 }
  0xca   : > { %587 = vst [vmem:[#allocation4 + $0xb90] sm:$0xff] %v10247_v0  ;;  %588 = vst [vmem:[#allocation4 + $0xb98] sm:$0xff] %v10247_v0 }
  0xcb   : > { %589 = vst [vmem:[#allocation4 + $0xba0] sm:$0xff] %v10247_v0  ;;  %590 = vst [vmem:[#allocation4 + $0xba8] sm:$0xff] %v10247_v0 }
  0xcc   : > { %591 = vst [vmem:[#allocation4 + $0xbb0] sm:$0xff] %v10247_v0  ;;  %592 = vst [vmem:[#allocation4 + $0xbb8] sm:$0xff] %v10247_v0 }
  0xcd   : > { %593 = vst [vmem:[#allocation4 + $0xbc0] sm:$0xff] %v10247_v0  ;;  %594 = vst [vmem:[#allocation4 + $0xbc8] sm:$0xff] %v10247_v0 }
  0xce   : > { %595 = vst [vmem:[#allocation4 + $0xbd0] sm:$0xff] %v10247_v0  ;;  %596 = vst [vmem:[#allocation4 + $0xbd8] sm:$0xff] %v10247_v0 }
  0xcf   : > { %597 = vst [vmem:[#allocation4 + $0xbe0] sm:$0xff] %v10247_v0  ;;  %598 = vst [vmem:[#allocation4 + $0xbe8] sm:$0xff] %v10247_v0 }
  0xd0   : > { %599 = vst [vmem:[#allocation4 + $0xbf0] sm:$0xff] %v10247_v0  ;;  %600 = vst [vmem:[#allocation4 + $0xbf8] sm:$0xff] %v10247_v0 }
  0xd1   : > { %601 = vst [vmem:[#allocation4 + $0xc00] sm:$0xff] %v10247_v0  ;;  %602 = vst [vmem:[#allocation4 + $0xc08] sm:$0xff] %v10247_v0 }
  0xd2   : > { %603 = vst [vmem:[#allocation4 + $0xc10] sm:$0xff] %v10247_v0  ;;  %604 = vst [vmem:[#allocation4 + $0xc18] sm:$0xff] %v10247_v0 }
  0xd3   : > { %605 = vst [vmem:[#allocation4 + $0xc20] sm:$0xff] %v10247_v0  ;;  %606 = vst [vmem:[#allocation4 + $0xc28] sm:$0xff] %v10247_v0 }
  0xd4   : > { %607 = vst [vmem:[#allocation4 + $0xc30] sm:$0xff] %v10247_v0  ;;  %608 = vst [vmem:[#allocation4 + $0xc38] sm:$0xff] %v10247_v0 }
  0xd5   : > { %609 = vst [vmem:[#allocation4 + $0xc40] sm:$0xff] %v10247_v0  ;;  %610 = vst [vmem:[#allocation4 + $0xc48] sm:$0xff] %v10247_v0 }
  0xd6   : > { %611 = vst [vmem:[#allocation4 + $0xc50] sm:$0xff] %v10247_v0  ;;  %612 = vst [vmem:[#allocation4 + $0xc58] sm:$0xff] %v10247_v0 }
  0xd7   : > { %613 = vst [vmem:[#allocation4 + $0xc60] sm:$0xff] %v10247_v0  ;;  %614 = vst [vmem:[#allocation4 + $0xc68] sm:$0xff] %v10247_v0 }
  0xd8   : > { %615 = vst [vmem:[#allocation4 + $0xc70] sm:$0xff] %v10247_v0  ;;  %616 = vst [vmem:[#allocation4 + $0xc78] sm:$0xff] %v10247_v0 }
  0xd9   : > { %617 = vst [vmem:[#allocation4 + $0xc80] sm:$0xff] %v10247_v0  ;;  %618 = vst [vmem:[#allocation4 + $0xc88] sm:$0xff] %v10247_v0 }
  0xda   : > { %619 = vst [vmem:[#allocation4 + $0xc90] sm:$0xff] %v10247_v0  ;;  %620 = vst [vmem:[#allocation4 + $0xc98] sm:$0xff] %v10247_v0 }
  0xdb   : > { %621 = vst [vmem:[#allocation4 + $0xca0] sm:$0xff] %v10247_v0  ;;  %622 = vst [vmem:[#allocation4 + $0xca8] sm:$0xff] %v10247_v0 }
  0xdc   : > { %623 = vst [vmem:[#allocation4 + $0xcb0] sm:$0xff] %v10247_v0  ;;  %624 = vst [vmem:[#allocation4 + $0xcb8] sm:$0xff] %v10247_v0 }
  0xdd   : > { %625 = vst [vmem:[#allocation4 + $0xcc0] sm:$0xff] %v10247_v0  ;;  %626 = vst [vmem:[#allocation4 + $0xcc8] sm:$0xff] %v10247_v0 }
  0xde   : > { %627 = vst [vmem:[#allocation4 + $0xcd0] sm:$0xff] %v10247_v0  ;;  %628 = vst [vmem:[#allocation4 + $0xcd8] sm:$0xff] %v10247_v0 }
  0xdf   : > { %629 = vst [vmem:[#allocation4 + $0xce0] sm:$0xff] %v10247_v0  ;;  %630 = vst [vmem:[#allocation4 + $0xce8] sm:$0xff] %v10247_v0 }
  0xe0   : > { %631 = vst [vmem:[#allocation4 + $0xcf0] sm:$0xff] %v10247_v0  ;;  %632 = vst [vmem:[#allocation4 + $0xcf8] sm:$0xff] %v10247_v0 }
  0xe1   : > { %633 = vst [vmem:[#allocation4 + $0xd00] sm:$0xff] %v10247_v0  ;;  %634 = vst [vmem:[#allocation4 + $0xd08] sm:$0xff] %v10247_v0 }
  0xe2   : > { %635 = vst [vmem:[#allocation4 + $0xd10] sm:$0xff] %v10247_v0  ;;  %636 = vst [vmem:[#allocation4 + $0xd18] sm:$0xff] %v10247_v0 }
  0xe3   : > { %637 = vst [vmem:[#allocation4 + $0xd20] sm:$0xff] %v10247_v0  ;;  %638 = vst [vmem:[#allocation4 + $0xd28] sm:$0xff] %v10247_v0 }
  0xe4   : > { %639 = vst [vmem:[#allocation4 + $0xd30] sm:$0xff] %v10247_v0  ;;  %640 = vst [vmem:[#allocation4 + $0xd38] sm:$0xff] %v10247_v0 }
  0xe5   : > { %641 = vst [vmem:[#allocation4 + $0xd40] sm:$0xff] %v10247_v0  ;;  %642 = vst [vmem:[#allocation4 + $0xd48] sm:$0xff] %v10247_v0 }
  0xe6   : > { %643 = vst [vmem:[#allocation4 + $0xd50] sm:$0xff] %v10247_v0  ;;  %644 = vst [vmem:[#allocation4 + $0xd58] sm:$0xff] %v10247_v0 }
  0xe7   : > { %645 = vst [vmem:[#allocation4 + $0xd60] sm:$0xff] %v10247_v0  ;;  %646 = vst [vmem:[#allocation4 + $0xd68] sm:$0xff] %v10247_v0 }
  0xe8   : > { %647 = vst [vmem:[#allocation4 + $0xd70] sm:$0xff] %v10247_v0  ;;  %648 = vst [vmem:[#allocation4 + $0xd78] sm:$0xff] %v10247_v0 }
  0xe9   : > { %649 = vst [vmem:[#allocation4 + $0xd80] sm:$0xff] %v10247_v0  ;;  %650 = vst [vmem:[#allocation4 + $0xd88] sm:$0xff] %v10247_v0 }
  0xea   : > { %651 = vst [vmem:[#allocation4 + $0xd90] sm:$0xff] %v10247_v0  ;;  %652 = vst [vmem:[#allocation4 + $0xd98] sm:$0xff] %v10247_v0 }
  0xeb   : > { %653 = vst [vmem:[#allocation4 + $0xda0] sm:$0xff] %v10247_v0  ;;  %654 = vst [vmem:[#allocation4 + $0xda8] sm:$0xff] %v10247_v0 }
  0xec   : > { %655 = vst [vmem:[#allocation4 + $0xdb0] sm:$0xff] %v10247_v0  ;;  %656 = vst [vmem:[#allocation4 + $0xdb8] sm:$0xff] %v10247_v0 }
  0xed   : > { %657 = vst [vmem:[#allocation4 + $0xdc0] sm:$0xff] %v10247_v0  ;;  %658 = vst [vmem:[#allocation4 + $0xdc8] sm:$0xff] %v10247_v0 }
  0xee   : > { %659 = vst [vmem:[#allocation4 + $0xdd0] sm:$0xff] %v10247_v0  ;;  %660 = vst [vmem:[#allocation4 + $0xdd8] sm:$0xff] %v10247_v0 }
  0xef   : > { %661 = vst [vmem:[#allocation4 + $0xde0] sm:$0xff] %v10247_v0  ;;  %662 = vst [vmem:[#allocation4 + $0xde8] sm:$0xff] %v10247_v0 }
  0xf0   : > { %663 = vst [vmem:[#allocation4 + $0xdf0] sm:$0xff] %v10247_v0  ;;  %664 = vst [vmem:[#allocation4 + $0xdf8] sm:$0xff] %v10247_v0 }
  0xf1   : > { %665 = vst [vmem:[#allocation4 + $0xe00] sm:$0xff] %v10247_v0  ;;  %666 = vst [vmem:[#allocation4 + $0xe08] sm:$0xff] %v10247_v0 }
  0xf2   : > { %667 = vst [vmem:[#allocation4 + $0xe10] sm:$0xff] %v10247_v0  ;;  %668 = vst [vmem:[#allocation4 + $0xe18] sm:$0xff] %v10247_v0 }
  0xf3   : > { %669 = vst [vmem:[#allocation4 + $0xe20] sm:$0xff] %v10247_v0  ;;  %670 = vst [vmem:[#allocation4 + $0xe28] sm:$0xff] %v10247_v0 }
  0xf4   : > { %671 = vst [vmem:[#allocation4 + $0xe30] sm:$0xff] %v10247_v0  ;;  %672 = vst [vmem:[#allocation4 + $0xe38] sm:$0xff] %v10247_v0 }
  0xf5   : > { %673 = vst [vmem:[#allocation4 + $0xe40] sm:$0xff] %v10247_v0  ;;  %674 = vst [vmem:[#allocation4 + $0xe48] sm:$0xff] %v10247_v0 }
  0xf6   : > { %675 = vst [vmem:[#allocation4 + $0xe50] sm:$0xff] %v10247_v0  ;;  %676 = vst [vmem:[#allocation4 + $0xe58] sm:$0xff] %v10247_v0 }
  0xf7   : > { %677 = vst [vmem:[#allocation4 + $0xe60] sm:$0xff] %v10247_v0  ;;  %678 = vst [vmem:[#allocation4 + $0xe68] sm:$0xff] %v10247_v0 }
  0xf8   : > { %679 = vst [vmem:[#allocation4 + $0xe70] sm:$0xff] %v10247_v0  ;;  %680 = vst [vmem:[#allocation4 + $0xe78] sm:$0xff] %v10247_v0 }
  0xf9   : > { %681 = vst [vmem:[#allocation4 + $0xe80] sm:$0xff] %v10247_v0  ;;  %682 = vst [vmem:[#allocation4 + $0xe88] sm:$0xff] %v10247_v0 }
  0xfa   : > { %683 = vst [vmem:[#allocation4 + $0xe90] sm:$0xff] %v10247_v0  ;;  %684 = vst [vmem:[#allocation4 + $0xe98] sm:$0xff] %v10247_v0 }
  0xfb   : > { %685 = vst [vmem:[#allocation4 + $0xea0] sm:$0xff] %v10247_v0  ;;  %686 = vst [vmem:[#allocation4 + $0xea8] sm:$0xff] %v10247_v0 }
  0xfc   : > { %687 = vst [vmem:[#allocation4 + $0xeb0] sm:$0xff] %v10247_v0  ;;  %688 = vst [vmem:[#allocation4 + $0xeb8] sm:$0xff] %v10247_v0 }
  0xfd   : > { %689 = vst [vmem:[#allocation4 + $0xec0] sm:$0xff] %v10247_v0  ;;  %690 = vst [vmem:[#allocation4 + $0xec8] sm:$0xff] %v10247_v0 }
  0xfe   : > { %691 = vst [vmem:[#allocation4 + $0xed0] sm:$0xff] %v10247_v0  ;;  %692 = vst [vmem:[#allocation4 + $0xed8] sm:$0xff] %v10247_v0 }
  0xff   : > { %693 = vst [vmem:[#allocation4 + $0xee0] sm:$0xff] %v10247_v0  ;;  %694 = vst [vmem:[#allocation4 + $0xee8] sm:$0xff] %v10247_v0 }
 0x100   : > { %695 = vst [vmem:[#allocation4 + $0xef0] sm:$0xff] %v10247_v0  ;;  %696 = vst [vmem:[#allocation4 + $0xef8] sm:$0xff] %v10247_v0 }
 0x101   : > { %697 = vst [vmem:[#allocation4 + $0xf00] sm:$0xff] %v10247_v0  ;;  %698 = vst [vmem:[#allocation4 + $0xf08] sm:$0xff] %v10247_v0 }
 0x102   : > { %699 = vst [vmem:[#allocation4 + $0xf10] sm:$0xff] %v10247_v0  ;;  %700 = vst [vmem:[#allocation4 + $0xf18] sm:$0xff] %v10247_v0 }
 0x103   : > { %701 = vst [vmem:[#allocation4 + $0xf20] sm:$0xff] %v10247_v0  ;;  %702 = vst [vmem:[#allocation4 + $0xf28] sm:$0xff] %v10247_v0 }
 0x104   : > { %703 = vst [vmem:[#allocation4 + $0xf30] sm:$0xff] %v10247_v0  ;;  %704 = vst [vmem:[#allocation4 + $0xf38] sm:$0xff] %v10247_v0 }
 0x105   : > { %705 = vst [vmem:[#allocation4 + $0xf40] sm:$0xff] %v10247_v0  ;;  %706 = vst [vmem:[#allocation4 + $0xf48] sm:$0xff] %v10247_v0 }
 0x106   : > { %707 = vst [vmem:[#allocation4 + $0xf50] sm:$0xff] %v10247_v0  ;;  %708 = vst [vmem:[#allocation4 + $0xf58] sm:$0xff] %v10247_v0 }
 0x107   : > { %709 = vst [vmem:[#allocation4 + $0xf60] sm:$0xff] %v10247_v0  ;;  %710 = vst [vmem:[#allocation4 + $0xf68] sm:$0xff] %v10247_v0 }
 0x108   : > { %711 = vst [vmem:[#allocation4 + $0xf70] sm:$0xff] %v10247_v0  ;;  %712 = vst [vmem:[#allocation4 + $0xf78] sm:$0xff] %v10247_v0 }
 0x109   : > { %713 = vst [vmem:[#allocation4 + $0xf80] sm:$0xff] %v10247_v0  ;;  %714 = vst [vmem:[#allocation4 + $0xf88] sm:$0xff] %v10247_v0 }
 0x10a   : > { %715 = vst [vmem:[#allocation4 + $0xf90] sm:$0xff] %v10247_v0  ;;  %716 = vst [vmem:[#allocation4 + $0xf98] sm:$0xff] %v10247_v0 }
 0x10b   : > { %717 = vst [vmem:[#allocation4 + $0xfa0] sm:$0xff] %v10247_v0  ;;  %718 = vst [vmem:[#allocation4 + $0xfa8] sm:$0xff] %v10247_v0 }
 0x10c   : > { %719 = vst [vmem:[#allocation4 + $0xfb0] sm:$0xff] %v10247_v0  ;;  %720 = vst [vmem:[#allocation4 + $0xfb8] sm:$0xff] %v10247_v0 }
 0x10d   : > { %721 = vst [vmem:[#allocation4 + $0xfc0] sm:$0xff] %v10247_v0  ;;  %722 = vst [vmem:[#allocation4 + $0xfc8] sm:$0xff] %v10247_v0 }
 0x10e   : > { %723 = vst [vmem:[#allocation4 + $0xfd0] sm:$0xff] %v10247_v0  ;;  %724 = vst [vmem:[#allocation4 + $0xfd8] sm:$0xff] %v10247_v0 }
 0x10f   : > { %725 = vst [vmem:[#allocation4 + $0xfe0] sm:$0xff] %v10247_v0  ;;  %726 = vst [vmem:[#allocation4 + $0xfe8] sm:$0xff] %v10247_v0 }
 0x110   : > { %727 = vst [vmem:[#allocation4 + $0xff0] sm:$0xff] %v10247_v0  ;;  %728 = vst [vmem:[#allocation4 + $0xff8] sm:$0xff] %v10247_v0 }
 0x111   : > { %729 = vst [vmem:[#allocation4 + $0x1000] sm:$0xff] %v10820_v1  ;;  %730 = vst [vmem:[#allocation4 + $0x1008] sm:$0xff] %v10820_v1 }
 0x112   : > { %731 = vst [vmem:[#allocation4 + $0x1010] sm:$0xff] %v10820_v1  ;;  %732 = vst [vmem:[#allocation4 + $0x1018] sm:$0xff] %v10820_v1 }
 0x113   : > { %733 = vst [vmem:[#allocation4 + $0x1020] sm:$0xff] %v10820_v1  ;;  %734 = vst [vmem:[#allocation4 + $0x1028] sm:$0xff] %v10820_v1 }
 0x114   : > { %735 = vst [vmem:[#allocation4 + $0x1030] sm:$0xff] %v10820_v1  ;;  %736 = vst [vmem:[#allocation4 + $0x1038] sm:$0xff] %v10820_v1 }
 0x115   : > { %737 = vst [vmem:[#allocation4 + $0x1040] sm:$0xff] %v10820_v1  ;;  %738 = vst [vmem:[#allocation4 + $0x1048] sm:$0xff] %v10820_v1 }
 0x116   : > { %739 = vst [vmem:[#allocation4 + $0x1050] sm:$0xff] %v10820_v1  ;;  %740 = vst [vmem:[#allocation4 + $0x1058] sm:$0xff] %v10820_v1 }
 0x117   : > { %741 = vst [vmem:[#allocation4 + $0x1060] sm:$0xff] %v10820_v1  ;;  %742 = vst [vmem:[#allocation4 + $0x1068] sm:$0xff] %v10820_v1 }
 0x118   : > { %743 = vst [vmem:[#allocation4 + $0x1070] sm:$0xff] %v10820_v1  ;;  %744 = vst [vmem:[#allocation4 + $0x1078] sm:$0xff] %v10820_v1 }
 0x119   : > { %745 = vst [vmem:[#allocation4 + $0x1080] sm:$0xff] %v10820_v1  ;;  %746 = vst [vmem:[#allocation4 + $0x1088] sm:$0xff] %v10820_v1 }
 0x11a   : > { %747 = vst [vmem:[#allocation4 + $0x1090] sm:$0xff] %v10820_v1  ;;  %748 = vst [vmem:[#allocation4 + $0x1098] sm:$0xff] %v10820_v1 }
 0x11b   : > { %749 = vst [vmem:[#allocation4 + $0x10a0] sm:$0xff] %v10820_v1  ;;  %750 = vst [vmem:[#allocation4 + $0x10a8] sm:$0xff] %v10820_v1 }
 0x11c   : > { %751 = vst [vmem:[#allocation4 + $0x10b0] sm:$0xff] %v10820_v1  ;;  %752 = vst [vmem:[#allocation4 + $0x10b8] sm:$0xff] %v10820_v1 }
 0x11d   : > { %753 = vst [vmem:[#allocation4 + $0x10c0] sm:$0xff] %v10820_v1  ;;  %754 = vst [vmem:[#allocation4 + $0x10c8] sm:$0xff] %v10820_v1 }
 0x11e   : > { %755 = vst [vmem:[#allocation4 + $0x10d0] sm:$0xff] %v10820_v1  ;;  %756 = vst [vmem:[#allocation4 + $0x10d8] sm:$0xff] %v10820_v1 }
 0x11f   : > { %757 = vst [vmem:[#allocation4 + $0x10e0] sm:$0xff] %v10820_v1  ;;  %758 = vst [vmem:[#allocation4 + $0x10e8] sm:$0xff] %v10820_v1 }
 0x120   : > { %759 = vst [vmem:[#allocation4 + $0x10f0] sm:$0xff] %v10820_v1  ;;  %760 = vst [vmem:[#allocation4 + $0x10f8] sm:$0xff] %v10820_v1 }
 0x121   : > { %761 = vst [vmem:[#allocation4 + $0x1100] sm:$0xff] %v10820_v1  ;;  %762 = vst [vmem:[#allocation4 + $0x1108] sm:$0xff] %v10820_v1 }
 0x122   : > { %763 = vst [vmem:[#allocation4 + $0x1110] sm:$0xff] %v10820_v1  ;;  %764 = vst [vmem:[#allocation4 + $0x1118] sm:$0xff] %v10820_v1 }
 0x123   : > { %765 = vst [vmem:[#allocation4 + $0x1120] sm:$0xff] %v10820_v1  ;;  %766 = vst [vmem:[#allocation4 + $0x1128] sm:$0xff] %v10820_v1 }
 0x124   : > { %767 = vst [vmem:[#allocation4 + $0x1130] sm:$0xff] %v10820_v1  ;;  %768 = vst [vmem:[#allocation4 + $0x1138] sm:$0xff] %v10820_v1 }
 0x125   : > { %769 = vst [vmem:[#allocation4 + $0x1140] sm:$0xff] %v10820_v1  ;;  %770 = vst [vmem:[#allocation4 + $0x1148] sm:$0xff] %v10820_v1 }
 0x126   : > { %771 = vst [vmem:[#allocation4 + $0x1150] sm:$0xff] %v10820_v1  ;;  %772 = vst [vmem:[#allocation4 + $0x1158] sm:$0xff] %v10820_v1 }
 0x127   : > { %773 = vst [vmem:[#allocation4 + $0x1160] sm:$0xff] %v10820_v1  ;;  %774 = vst [vmem:[#allocation4 + $0x1168] sm:$0xff] %v10820_v1 }
 0x128   : > { %775 = vst [vmem:[#allocation4 + $0x1170] sm:$0xff] %v10820_v1  ;;  %776 = vst [vmem:[#allocation4 + $0x1178] sm:$0xff] %v10820_v1 }
 0x129   : > { %777 = vst [vmem:[#allocation4 + $0x1180] sm:$0xff] %v10820_v1  ;;  %778 = vst [vmem:[#allocation4 + $0x1188] sm:$0xff] %v10820_v1 }
 0x12a   : > { %779 = vst [vmem:[#allocation4 + $0x1190] sm:$0xff] %v10820_v1  ;;  %780 = vst [vmem:[#allocation4 + $0x1198] sm:$0xff] %v10820_v1 }
 0x12b   : > { %781 = vst [vmem:[#allocation4 + $0x11a0] sm:$0xff] %v10820_v1  ;;  %782 = vst [vmem:[#allocation4 + $0x11a8] sm:$0xff] %v10820_v1 }
 0x12c   : > { %783 = vst [vmem:[#allocation4 + $0x11b0] sm:$0xff] %v10820_v1  ;;  %784 = vst [vmem:[#allocation4 + $0x11b8] sm:$0xff] %v10820_v1 }
 0x12d   : > { %785 = vst [vmem:[#allocation4 + $0x11c0] sm:$0xff] %v10820_v1  ;;  %786 = vst [vmem:[#allocation4 + $0x11c8] sm:$0xff] %v10820_v1 }
 0x12e   : > { %787 = vst [vmem:[#allocation4 + $0x11d0] sm:$0xff] %v10820_v1  ;;  %788 = vst [vmem:[#allocation4 + $0x11d8] sm:$0xff] %v10820_v1 }
 0x12f   : > { %789 = vst [vmem:[#allocation4 + $0x11e0] sm:$0xff] %v10820_v1  ;;  %790 = vst [vmem:[#allocation4 + $0x11e8] sm:$0xff] %v10820_v1 }
 0x130   : > { %791 = vst [vmem:[#allocation4 + $0x11f0] sm:$0xff] %v10820_v1  ;;  %792 = vst [vmem:[#allocation4 + $0x11f8] sm:$0xff] %v10820_v1 }
 0x131   : > { %793 = vst [vmem:[#allocation4 + $0x1200] sm:$0xff] %v10820_v1  ;;  %794 = vst [vmem:[#allocation4 + $0x1208] sm:$0xff] %v10820_v1 }
 0x132   : > { %795 = vst [vmem:[#allocation4 + $0x1210] sm:$0xff] %v10820_v1  ;;  %796 = vst [vmem:[#allocation4 + $0x1218] sm:$0xff] %v10820_v1 }
 0x133   : > { %797 = vst [vmem:[#allocation4 + $0x1220] sm:$0xff] %v10820_v1  ;;  %798 = vst [vmem:[#allocation4 + $0x1228] sm:$0xff] %v10820_v1 }
 0x134   : > { %799 = vst [vmem:[#allocation4 + $0x1230] sm:$0xff] %v10820_v1  ;;  %800 = vst [vmem:[#allocation4 + $0x1238] sm:$0xff] %v10820_v1 }
 0x135   : > { %801 = vst [vmem:[#allocation4 + $0x1240] sm:$0xff] %v10820_v1  ;;  %802 = vst [vmem:[#allocation4 + $0x1248] sm:$0xff] %v10820_v1 }
 0x136   : > { %803 = vst [vmem:[#allocation4 + $0x1250] sm:$0xff] %v10820_v1  ;;  %804 = vst [vmem:[#allocation4 + $0x1258] sm:$0xff] %v10820_v1 }
 0x137   : > { %805 = vst [vmem:[#allocation4 + $0x1260] sm:$0xff] %v10820_v1  ;;  %806 = vst [vmem:[#allocation4 + $0x1268] sm:$0xff] %v10820_v1 }
 0x138   : > { %807 = vst [vmem:[#allocation4 + $0x1270] sm:$0xff] %v10820_v1  ;;  %808 = vst [vmem:[#allocation4 + $0x1278] sm:$0xff] %v10820_v1 }
 0x139   : > { %809 = vst [vmem:[#allocation4 + $0x1280] sm:$0xff] %v10820_v1  ;;  %810 = vst [vmem:[#allocation4 + $0x1288] sm:$0xff] %v10820_v1 }
 0x13a   : > { %811 = vst [vmem:[#allocation4 + $0x1290] sm:$0xff] %v10820_v1  ;;  %812 = vst [vmem:[#allocation4 + $0x1298] sm:$0xff] %v10820_v1 }
 0x13b   : > { %813 = vst [vmem:[#allocation4 + $0x12a0] sm:$0xff] %v10820_v1  ;;  %814 = vst [vmem:[#allocation4 + $0x12a8] sm:$0xff] %v10820_v1 }
 0x13c   : > { %815 = vst [vmem:[#allocation4 + $0x12b0] sm:$0xff] %v10820_v1  ;;  %816 = vst [vmem:[#allocation4 + $0x12b8] sm:$0xff] %v10820_v1 }
 0x13d   : > { %817 = vst [vmem:[#allocation4 + $0x12c0] sm:$0xff] %v10820_v1  ;;  %818 = vst [vmem:[#allocation4 + $0x12c8] sm:$0xff] %v10820_v1 }
 0x13e   : > { %819 = vst [vmem:[#allocation4 + $0x12d0] sm:$0xff] %v10820_v1  ;;  %820 = vst [vmem:[#allocation4 + $0x12d8] sm:$0xff] %v10820_v1 }
 0x13f   : > { %821 = vst [vmem:[#allocation4 + $0x12e0] sm:$0xff] %v10820_v1  ;;  %822 = vst [vmem:[#allocation4 + $0x12e8] sm:$0xff] %v10820_v1 }
 0x140   : > { %823 = vst [vmem:[#allocation4 + $0x12f0] sm:$0xff] %v10820_v1  ;;  %824 = vst [vmem:[#allocation4 + $0x12f8] sm:$0xff] %v10820_v1 }
 0x141   : > { %825 = vst [vmem:[#allocation4 + $0x1300] sm:$0xff] %v10820_v1  ;;  %826 = vst [vmem:[#allocation4 + $0x1308] sm:$0xff] %v10820_v1 }
 0x142   : > { %827 = vst [vmem:[#allocation4 + $0x1310] sm:$0xff] %v10820_v1  ;;  %828 = vst [vmem:[#allocation4 + $0x1318] sm:$0xff] %v10820_v1 }
 0x143   : > { %829 = vst [vmem:[#allocation4 + $0x1320] sm:$0xff] %v10820_v1  ;;  %830 = vst [vmem:[#allocation4 + $0x1328] sm:$0xff] %v10820_v1 }
 0x144   : > { %831 = vst [vmem:[#allocation4 + $0x1330] sm:$0xff] %v10820_v1  ;;  %832 = vst [vmem:[#allocation4 + $0x1338] sm:$0xff] %v10820_v1 }
 0x145   : > { %833 = vst [vmem:[#allocation4 + $0x1340] sm:$0xff] %v10820_v1  ;;  %834 = vst [vmem:[#allocation4 + $0x1348] sm:$0xff] %v10820_v1 }
 0x146   : > { %835 = vst [vmem:[#allocation4 + $0x1350] sm:$0xff] %v10820_v1  ;;  %836 = vst [vmem:[#allocation4 + $0x1358] sm:$0xff] %v10820_v1 }
 0x147   : > { %837 = vst [vmem:[#allocation4 + $0x1360] sm:$0xff] %v10820_v1  ;;  %838 = vst [vmem:[#allocation4 + $0x1368] sm:$0xff] %v10820_v1 }
 0x148   : > { %839 = vst [vmem:[#allocation4 + $0x1370] sm:$0xff] %v10820_v1  ;;  %840 = vst [vmem:[#allocation4 + $0x1378] sm:$0xff] %v10820_v1 }
 0x149   : > { %841 = vst [vmem:[#allocation4 + $0x1380] sm:$0xff] %v10820_v1  ;;  %842 = vst [vmem:[#allocation4 + $0x1388] sm:$0xff] %v10820_v1 }
 0x14a   : > { %843 = vst [vmem:[#allocation4 + $0x1390] sm:$0xff] %v10820_v1  ;;  %844 = vst [vmem:[#allocation4 + $0x1398] sm:$0xff] %v10820_v1 }
 0x14b   : > { %845 = vst [vmem:[#allocation4 + $0x13a0] sm:$0xff] %v10820_v1  ;;  %846 = vst [vmem:[#allocation4 + $0x13a8] sm:$0xff] %v10820_v1 }
 0x14c   : > { %847 = vst [vmem:[#allocation4 + $0x13b0] sm:$0xff] %v10820_v1  ;;  %848 = vst [vmem:[#allocation4 + $0x13b8] sm:$0xff] %v10820_v1 }
 0x14d   : > { %849 = vst [vmem:[#allocation4 + $0x13c0] sm:$0xff] %v10820_v1  ;;  %850 = vst [vmem:[#allocation4 + $0x13c8] sm:$0xff] %v10820_v1 }
 0x14e   : > { %851 = vst [vmem:[#allocation4 + $0x13d0] sm:$0xff] %v10820_v1  ;;  %852 = vst [vmem:[#allocation4 + $0x13d8] sm:$0xff] %v10820_v1 }
 0x14f   : > { %853 = vst [vmem:[#allocation4 + $0x13e0] sm:$0xff] %v10820_v1  ;;  %854 = vst [vmem:[#allocation4 + $0x13e8] sm:$0xff] %v10820_v1 }
 0x150   : > { %855 = vst [vmem:[#allocation4 + $0x13f0] sm:$0xff] %v10820_v1  ;;  %856 = vst [vmem:[#allocation4 + $0x13f8] sm:$0xff] %v10820_v1 }
 0x151   : > { %857 = vst [vmem:[#allocation4 + $0x1400] sm:$0xff] %v10820_v1  ;;  %858 = vst [vmem:[#allocation4 + $0x1408] sm:$0xff] %v10820_v1 }
 0x152   : > { %859 = vst [vmem:[#allocation4 + $0x1410] sm:$0xff] %v10820_v1  ;;  %860 = vst [vmem:[#allocation4 + $0x1418] sm:$0xff] %v10820_v1 }
 0x153   : > { %861 = vst [vmem:[#allocation4 + $0x1420] sm:$0xff] %v10820_v1  ;;  %862 = vst [vmem:[#allocation4 + $0x1428] sm:$0xff] %v10820_v1 }
 0x154   : > { %863 = vst [vmem:[#allocation4 + $0x1430] sm:$0xff] %v10820_v1  ;;  %864 = vst [vmem:[#allocation4 + $0x1438] sm:$0xff] %v10820_v1 }
 0x155   : > { %865 = vst [vmem:[#allocation4 + $0x1440] sm:$0xff] %v10820_v1  ;;  %866 = vst [vmem:[#allocation4 + $0x1448] sm:$0xff] %v10820_v1 }
 0x156   : > { %867 = vst [vmem:[#allocation4 + $0x1450] sm:$0xff] %v10820_v1  ;;  %868 = vst [vmem:[#allocation4 + $0x1458] sm:$0xff] %v10820_v1 }
 0x157   : > { %869 = vst [vmem:[#allocation4 + $0x1460] sm:$0xff] %v10820_v1  ;;  %870 = vst [vmem:[#allocation4 + $0x1468] sm:$0xff] %v10820_v1 }
 0x158   : > { %871 = vst [vmem:[#allocation4 + $0x1470] sm:$0xff] %v10820_v1  ;;  %872 = vst [vmem:[#allocation4 + $0x1478] sm:$0xff] %v10820_v1 }
 0x159   : > { %873 = vst [vmem:[#allocation4 + $0x1480] sm:$0xff] %v10820_v1  ;;  %874 = vst [vmem:[#allocation4 + $0x1488] sm:$0xff] %v10820_v1 }
 0x15a   : > { %875 = vst [vmem:[#allocation4 + $0x1490] sm:$0xff] %v10820_v1  ;;  %876 = vst [vmem:[#allocation4 + $0x1498] sm:$0xff] %v10820_v1 }
 0x15b   : > { %877 = vst [vmem:[#allocation4 + $0x14a0] sm:$0xff] %v10820_v1  ;;  %878 = vst [vmem:[#allocation4 + $0x14a8] sm:$0xff] %v10820_v1 }
 0x15c   : > { %879 = vst [vmem:[#allocation4 + $0x14b0] sm:$0xff] %v10820_v1  ;;  %880 = vst [vmem:[#allocation4 + $0x14b8] sm:$0xff] %v10820_v1 }
 0x15d   : > { %881 = vst [vmem:[#allocation4 + $0x14c0] sm:$0xff] %v10820_v1  ;;  %882 = vst [vmem:[#allocation4 + $0x14c8] sm:$0xff] %v10820_v1 }
 0x15e   : > { %883 = vst [vmem:[#allocation4 + $0x14d0] sm:$0xff] %v10820_v1  ;;  %884 = vst [vmem:[#allocation4 + $0x14d8] sm:$0xff] %v10820_v1 }
 0x15f   : > { %885 = vst [vmem:[#allocation4 + $0x14e0] sm:$0xff] %v10820_v1  ;;  %886 = vst [vmem:[#allocation4 + $0x14e8] sm:$0xff] %v10820_v1 }
 0x160   : > { %887 = vst [vmem:[#allocation4 + $0x14f0] sm:$0xff] %v10820_v1  ;;  %888 = vst [vmem:[#allocation4 + $0x14f8] sm:$0xff] %v10820_v1 }
 0x161   : > { %889 = vst [vmem:[#allocation4 + $0x1500] sm:$0xff] %v10820_v1  ;;  %890 = vst [vmem:[#allocation4 + $0x1508] sm:$0xff] %v10820_v1 }
 0x162   : > { %891 = vst [vmem:[#allocation4 + $0x1510] sm:$0xff] %v10820_v1  ;;  %892 = vst [vmem:[#allocation4 + $0x1518] sm:$0xff] %v10820_v1 }
 0x163   : > { %893 = vst [vmem:[#allocation4 + $0x1520] sm:$0xff] %v10820_v1  ;;  %894 = vst [vmem:[#allocation4 + $0x1528] sm:$0xff] %v10820_v1 }
 0x164   : > { %895 = vst [vmem:[#allocation4 + $0x1530] sm:$0xff] %v10820_v1  ;;  %896 = vst [vmem:[#allocation4 + $0x1538] sm:$0xff] %v10820_v1 }
 0x165   : > { %897 = vst [vmem:[#allocation4 + $0x1540] sm:$0xff] %v10820_v1  ;;  %898 = vst [vmem:[#allocation4 + $0x1548] sm:$0xff] %v10820_v1 }
 0x166   : > { %899 = vst [vmem:[#allocation4 + $0x1550] sm:$0xff] %v10820_v1  ;;  %900 = vst [vmem:[#allocation4 + $0x1558] sm:$0xff] %v10820_v1 }
 0x167   : > { %901 = vst [vmem:[#allocation4 + $0x1560] sm:$0xff] %v10820_v1  ;;  %902 = vst [vmem:[#allocation4 + $0x1568] sm:$0xff] %v10820_v1 }
 0x168   : > { %903 = vst [vmem:[#allocation4 + $0x1570] sm:$0xff] %v10820_v1  ;;  %904 = vst [vmem:[#allocation4 + $0x1578] sm:$0xff] %v10820_v1 }
 0x169   : > { %905 = vst [vmem:[#allocation4 + $0x1580] sm:$0xff] %v10820_v1  ;;  %906 = vst [vmem:[#allocation4 + $0x1588] sm:$0xff] %v10820_v1 }
 0x16a   : > { %907 = vst [vmem:[#allocation4 + $0x1590] sm:$0xff] %v10820_v1  ;;  %908 = vst [vmem:[#allocation4 + $0x1598] sm:$0xff] %v10820_v1 }
 0x16b   : > { %909 = vst [vmem:[#allocation4 + $0x15a0] sm:$0xff] %v10820_v1  ;;  %910 = vst [vmem:[#allocation4 + $0x15a8] sm:$0xff] %v10820_v1 }
 0x16c   : > { %911 = vst [vmem:[#allocation4 + $0x15b0] sm:$0xff] %v10820_v1  ;;  %912 = vst [vmem:[#allocation4 + $0x15b8] sm:$0xff] %v10820_v1 }
 0x16d   : > { %913 = vst [vmem:[#allocation4 + $0x15c0] sm:$0xff] %v10820_v1  ;;  %914 = vst [vmem:[#allocation4 + $0x15c8] sm:$0xff] %v10820_v1 }
 0x16e   : > { %915 = vst [vmem:[#allocation4 + $0x15d0] sm:$0xff] %v10820_v1  ;;  %916 = vst [vmem:[#allocation4 + $0x15d8] sm:$0xff] %v10820_v1 }
 0x16f   : > { %917 = vst [vmem:[#allocation4 + $0x15e0] sm:$0xff] %v10820_v1  ;;  %918 = vst [vmem:[#allocation4 + $0x15e8] sm:$0xff] %v10820_v1 }
 0x170   : > { %919 = vst [vmem:[#allocation4 + $0x15f0] sm:$0xff] %v10820_v1  ;;  %920 = vst [vmem:[#allocation4 + $0x15f8] sm:$0xff] %v10820_v1 }
 0x171   : > { %921 = vst [vmem:[#allocation4 + $0x1600] sm:$0xff] %v10820_v1  ;;  %922 = vst [vmem:[#allocation4 + $0x1608] sm:$0xff] %v10820_v1 }
 0x172   : > { %923 = vst [vmem:[#allocation4 + $0x1610] sm:$0xff] %v10820_v1  ;;  %924 = vst [vmem:[#allocation4 + $0x1618] sm:$0xff] %v10820_v1 }
 0x173   : > { %925 = vst [vmem:[#allocation4 + $0x1620] sm:$0xff] %v10820_v1  ;;  %926 = vst [vmem:[#allocation4 + $0x1628] sm:$0xff] %v10820_v1 }
 0x174   : > { %927 = vst [vmem:[#allocation4 + $0x1630] sm:$0xff] %v10820_v1  ;;  %928 = vst [vmem:[#allocation4 + $0x1638] sm:$0xff] %v10820_v1 }
 0x175   : > { %929 = vst [vmem:[#allocation4 + $0x1640] sm:$0xff] %v10820_v1  ;;  %930 = vst [vmem:[#allocation4 + $0x1648] sm:$0xff] %v10820_v1 }
 0x176   : > { %931 = vst [vmem:[#allocation4 + $0x1650] sm:$0xff] %v10820_v1  ;;  %932 = vst [vmem:[#allocation4 + $0x1658] sm:$0xff] %v10820_v1 }
 0x177   : > { %933 = vst [vmem:[#allocation4 + $0x1660] sm:$0xff] %v10820_v1  ;;  %934 = vst [vmem:[#allocation4 + $0x1668] sm:$0xff] %v10820_v1 }
 0x178   : > { %935 = vst [vmem:[#allocation4 + $0x1670] sm:$0xff] %v10820_v1  ;;  %936 = vst [vmem:[#allocation4 + $0x1678] sm:$0xff] %v10820_v1 }
 0x179   : > { %937 = vst [vmem:[#allocation4 + $0x1680] sm:$0xff] %v10820_v1  ;;  %938 = vst [vmem:[#allocation4 + $0x1688] sm:$0xff] %v10820_v1 }
 0x17a   : > { %939 = vst [vmem:[#allocation4 + $0x1690] sm:$0xff] %v10820_v1  ;;  %940 = vst [vmem:[#allocation4 + $0x1698] sm:$0xff] %v10820_v1 }
 0x17b   : > { %941 = vst [vmem:[#allocation4 + $0x16a0] sm:$0xff] %v10820_v1  ;;  %942 = vst [vmem:[#allocation4 + $0x16a8] sm:$0xff] %v10820_v1 }
 0x17c   : > { %943 = vst [vmem:[#allocation4 + $0x16b0] sm:$0xff] %v10820_v1  ;;  %944 = vst [vmem:[#allocation4 + $0x16b8] sm:$0xff] %v10820_v1 }
 0x17d   : > { %945 = vst [vmem:[#allocation4 + $0x16c0] sm:$0xff] %v10820_v1  ;;  %946 = vst [vmem:[#allocation4 + $0x16c8] sm:$0xff] %v10820_v1 }
 0x17e   : > { %947 = vst [vmem:[#allocation4 + $0x16d0] sm:$0xff] %v10820_v1  ;;  %948 = vst [vmem:[#allocation4 + $0x16d8] sm:$0xff] %v10820_v1 }
 0x17f   : > { %949 = vst [vmem:[#allocation4 + $0x16e0] sm:$0xff] %v10820_v1  ;;  %950 = vst [vmem:[#allocation4 + $0x16e8] sm:$0xff] %v10820_v1 }
 0x180   : > { %951 = vst [vmem:[#allocation4 + $0x16f0] sm:$0xff] %v10820_v1  ;;  %952 = vst [vmem:[#allocation4 + $0x16f8] sm:$0xff] %v10820_v1 }
 0x181   : > { %953 = vst [vmem:[#allocation4 + $0x1700] sm:$0xff] %v10820_v1  ;;  %954 = vst [vmem:[#allocation4 + $0x1708] sm:$0xff] %v10820_v1 }
 0x182   : > { %955 = vst [vmem:[#allocation4 + $0x1710] sm:$0xff] %v10820_v1  ;;  %956 = vst [vmem:[#allocation4 + $0x1718] sm:$0xff] %v10820_v1 }
 0x183   : > { %957 = vst [vmem:[#allocation4 + $0x1720] sm:$0xff] %v10820_v1  ;;  %958 = vst [vmem:[#allocation4 + $0x1728] sm:$0xff] %v10820_v1 }
 0x184   : > { %959 = vst [vmem:[#allocation4 + $0x1730] sm:$0xff] %v10820_v1  ;;  %960 = vst [vmem:[#allocation4 + $0x1738] sm:$0xff] %v10820_v1 }
 0x185   : > { %961 = vst [vmem:[#allocation4 + $0x1740] sm:$0xff] %v10820_v1  ;;  %962 = vst [vmem:[#allocation4 + $0x1748] sm:$0xff] %v10820_v1 }
 0x186   : > { %963 = vst [vmem:[#allocation4 + $0x1750] sm:$0xff] %v10820_v1  ;;  %964 = vst [vmem:[#allocation4 + $0x1758] sm:$0xff] %v10820_v1 }
 0x187   : > { %965 = vst [vmem:[#allocation4 + $0x1760] sm:$0xff] %v10820_v1  ;;  %966 = vst [vmem:[#allocation4 + $0x1768] sm:$0xff] %v10820_v1 }
 0x188   : > { %967 = vst [vmem:[#allocation4 + $0x1770] sm:$0xff] %v10820_v1  ;;  %968 = vst [vmem:[#allocation4 + $0x1778] sm:$0xff] %v10820_v1 }
 0x189   : > { %969 = vst [vmem:[#allocation4 + $0x1780] sm:$0xff] %v10820_v1  ;;  %970 = vst [vmem:[#allocation4 + $0x1788] sm:$0xff] %v10820_v1 }
 0x18a   : > { %971 = vst [vmem:[#allocation4 + $0x1790] sm:$0xff] %v10820_v1  ;;  %972 = vst [vmem:[#allocation4 + $0x1798] sm:$0xff] %v10820_v1 }
 0x18b   : > { %973 = vst [vmem:[#allocation4 + $0x17a0] sm:$0xff] %v10820_v1  ;;  %974 = vst [vmem:[#allocation4 + $0x17a8] sm:$0xff] %v10820_v1 }
 0x18c   : > { %975 = vst [vmem:[#allocation4 + $0x17b0] sm:$0xff] %v10820_v1  ;;  %976 = vst [vmem:[#allocation4 + $0x17b8] sm:$0xff] %v10820_v1 }
 0x18d   : > { %977 = vst [vmem:[#allocation4 + $0x17c0] sm:$0xff] %v10820_v1  ;;  %978 = vst [vmem:[#allocation4 + $0x17c8] sm:$0xff] %v10820_v1 }
 0x18e   : > { %979 = vst [vmem:[#allocation4 + $0x17d0] sm:$0xff] %v10820_v1  ;;  %980 = vst [vmem:[#allocation4 + $0x17d8] sm:$0xff] %v10820_v1 }
 0x18f   : > { %981 = vst [vmem:[#allocation4 + $0x17e0] sm:$0xff] %v10820_v1  ;;  %982 = vst [vmem:[#allocation4 + $0x17e8] sm:$0xff] %v10820_v1 }
 0x190   : > { %983 = vst [vmem:[#allocation4 + $0x17f0] sm:$0xff] %v10820_v1  ;;  %984 = vst [vmem:[#allocation4 + $0x17f8] sm:$0xff] %v10820_v1 }
 0x191   : > { %985 = vst [vmem:[#allocation4 + $0x1800] sm:$0xff] %v10820_v1  ;;  %986 = vst [vmem:[#allocation4 + $0x1808] sm:$0xff] %v10820_v1 }
 0x192   : > { %987 = vst [vmem:[#allocation4 + $0x1810] sm:$0xff] %v10820_v1  ;;  %988 = vst [vmem:[#allocation4 + $0x1818] sm:$0xff] %v10820_v1 }
 0x193   : > { %989 = vst [vmem:[#allocation4 + $0x1820] sm:$0xff] %v10820_v1  ;;  %990 = vst [vmem:[#allocation4 + $0x1828] sm:$0xff] %v10820_v1 }
 0x194   : > { %991 = vst [vmem:[#allocation4 + $0x1830] sm:$0xff] %v10820_v1  ;;  %992 = vst [vmem:[#allocation4 + $0x1838] sm:$0xff] %v10820_v1 }
 0x195   : > { %993 = vst [vmem:[#allocation4 + $0x1840] sm:$0xff] %v10820_v1  ;;  %994 = vst [vmem:[#allocation4 + $0x1848] sm:$0xff] %v10820_v1 }
 0x196   : > { %995 = vst [vmem:[#allocation4 + $0x1850] sm:$0xff] %v10820_v1  ;;  %996 = vst [vmem:[#allocation4 + $0x1858] sm:$0xff] %v10820_v1 }
 0x197   : > { %997 = vst [vmem:[#allocation4 + $0x1860] sm:$0xff] %v10820_v1  ;;  %998 = vst [vmem:[#allocation4 + $0x1868] sm:$0xff] %v10820_v1 }
 0x198   : > { %999 = vst [vmem:[#allocation4 + $0x1870] sm:$0xff] %v10820_v1  ;;  %1000 = vst [vmem:[#allocation4 + $0x1878] sm:$0xff] %v10820_v1 }
 0x199   : > { %1001 = vst [vmem:[#allocation4 + $0x1880] sm:$0xff] %v10820_v1  ;;  %1002 = vst [vmem:[#allocation4 + $0x1888] sm:$0xff] %v10820_v1 }
 0x19a   : > { %1003 = vst [vmem:[#allocation4 + $0x1890] sm:$0xff] %v10820_v1  ;;  %1004 = vst [vmem:[#allocation4 + $0x1898] sm:$0xff] %v10820_v1 }
 0x19b   : > { %1005 = vst [vmem:[#allocation4 + $0x18a0] sm:$0xff] %v10820_v1  ;;  %1006 = vst [vmem:[#allocation4 + $0x18a8] sm:$0xff] %v10820_v1 }
 0x19c   : > { %1007 = vst [vmem:[#allocation4 + $0x18b0] sm:$0xff] %v10820_v1  ;;  %1008 = vst [vmem:[#allocation4 + $0x18b8] sm:$0xff] %v10820_v1 }
 0x19d   : > { %1009 = vst [vmem:[#allocation4 + $0x18c0] sm:$0xff] %v10820_v1  ;;  %1010 = vst [vmem:[#allocation4 + $0x18c8] sm:$0xff] %v10820_v1 }
 0x19e   : > { %1011 = vst [vmem:[#allocation4 + $0x18d0] sm:$0xff] %v10820_v1  ;;  %1012 = vst [vmem:[#allocation4 + $0x18d8] sm:$0xff] %v10820_v1 }
 0x19f   : > { %1013 = vst [vmem:[#allocation4 + $0x18e0] sm:$0xff] %v10820_v1  ;;  %1014 = vst [vmem:[#allocation4 + $0x18e8] sm:$0xff] %v10820_v1 }
 0x1a0   : > { %1015 = vst [vmem:[#allocation4 + $0x18f0] sm:$0xff] %v10820_v1  ;;  %1016 = vst [vmem:[#allocation4 + $0x18f8] sm:$0xff] %v10820_v1 }
 0x1a1   : > { %1017 = vst [vmem:[#allocation4 + $0x1900] sm:$0xff] %v10820_v1  ;;  %1018 = vst [vmem:[#allocation4 + $0x1908] sm:$0xff] %v10820_v1 }
 0x1a2   : > { %1019 = vst [vmem:[#allocation4 + $0x1910] sm:$0xff] %v10820_v1  ;;  %1020 = vst [vmem:[#allocation4 + $0x1918] sm:$0xff] %v10820_v1 }
 0x1a3   : > { %1021 = vst [vmem:[#allocation4 + $0x1920] sm:$0xff] %v10820_v1  ;;  %1022 = vst [vmem:[#allocation4 + $0x1928] sm:$0xff] %v10820_v1 }
 0x1a4   : > { %1023 = vst [vmem:[#allocation4 + $0x1930] sm:$0xff] %v10820_v1  ;;  %1024 = vst [vmem:[#allocation4 + $0x1938] sm:$0xff] %v10820_v1 }
 0x1a5   : > { %1025 = vst [vmem:[#allocation4 + $0x1940] sm:$0xff] %v10820_v1  ;;  %1026 = vst [vmem:[#allocation4 + $0x1948] sm:$0xff] %v10820_v1 }
 0x1a6   : > { %1027 = vst [vmem:[#allocation4 + $0x1950] sm:$0xff] %v10820_v1  ;;  %1028 = vst [vmem:[#allocation4 + $0x1958] sm:$0xff] %v10820_v1 }
 0x1a7   : > { %1029 = vst [vmem:[#allocation4 + $0x1960] sm:$0xff] %v10820_v1  ;;  %1030 = vst [vmem:[#allocation4 + $0x1968] sm:$0xff] %v10820_v1 }
 0x1a8   : > { %1031 = vst [vmem:[#allocation4 + $0x1970] sm:$0xff] %v10820_v1  ;;  %1032 = vst [vmem:[#allocation4 + $0x1978] sm:$0xff] %v10820_v1 }
 0x1a9   : > { %1033 = vst [vmem:[#allocation4 + $0x1980] sm:$0xff] %v10820_v1  ;;  %1034 = vst [vmem:[#allocation4 + $0x1988] sm:$0xff] %v10820_v1 }
 0x1aa   : > { %1035 = vst [vmem:[#allocation4 + $0x1990] sm:$0xff] %v10820_v1  ;;  %1036 = vst [vmem:[#allocation4 + $0x1998] sm:$0xff] %v10820_v1 }
 0x1ab   : > { %1037 = vst [vmem:[#allocation4 + $0x19a0] sm:$0xff] %v10820_v1  ;;  %1038 = vst [vmem:[#allocation4 + $0x19a8] sm:$0xff] %v10820_v1 }
 0x1ac   : > { %1039 = vst [vmem:[#allocation4 + $0x19b0] sm:$0xff] %v10820_v1  ;;  %1040 = vst [vmem:[#allocation4 + $0x19b8] sm:$0xff] %v10820_v1 }
 0x1ad   : > { %1041 = vst [vmem:[#allocation4 + $0x19c0] sm:$0xff] %v10820_v1  ;;  %1042 = vst [vmem:[#allocation4 + $0x19c8] sm:$0xff] %v10820_v1 }
 0x1ae   : > { %1043 = vst [vmem:[#allocation4 + $0x19d0] sm:$0xff] %v10820_v1  ;;  %1044 = vst [vmem:[#allocation4 + $0x19d8] sm:$0xff] %v10820_v1 }
 0x1af   : > { %1045 = vst [vmem:[#allocation4 + $0x19e0] sm:$0xff] %v10820_v1  ;;  %1046 = vst [vmem:[#allocation4 + $0x19e8] sm:$0xff] %v10820_v1 }
 0x1b0   : > { %1047 = vst [vmem:[#allocation4 + $0x19f0] sm:$0xff] %v10820_v1  ;;  %1048 = vst [vmem:[#allocation4 + $0x19f8] sm:$0xff] %v10820_v1 }
 0x1b1   : > { %1049 = vst [vmem:[#allocation4 + $0x1a00] sm:$0xff] %v10820_v1  ;;  %1050 = vst [vmem:[#allocation4 + $0x1a08] sm:$0xff] %v10820_v1 }
 0x1b2   : > { %1051 = vst [vmem:[#allocation4 + $0x1a10] sm:$0xff] %v10820_v1  ;;  %1052 = vst [vmem:[#allocation4 + $0x1a18] sm:$0xff] %v10820_v1 }
 0x1b3   : > { %1053 = vst [vmem:[#allocation4 + $0x1a20] sm:$0xff] %v10820_v1  ;;  %1054 = vst [vmem:[#allocation4 + $0x1a28] sm:$0xff] %v10820_v1 }
 0x1b4   : > { %1055 = vst [vmem:[#allocation4 + $0x1a30] sm:$0xff] %v10820_v1  ;;  %1056 = vst [vmem:[#allocation4 + $0x1a38] sm:$0xff] %v10820_v1 }
 0x1b5   : > { %1057 = vst [vmem:[#allocation4 + $0x1a40] sm:$0xff] %v10820_v1  ;;  %1058 = vst [vmem:[#allocation4 + $0x1a48] sm:$0xff] %v10820_v1 }
 0x1b6   : > { %1059 = vst [vmem:[#allocation4 + $0x1a50] sm:$0xff] %v10820_v1  ;;  %1060 = vst [vmem:[#allocation4 + $0x1a58] sm:$0xff] %v10820_v1 }
 0x1b7   : > { %1061 = vst [vmem:[#allocation4 + $0x1a60] sm:$0xff] %v10820_v1  ;;  %1062 = vst [vmem:[#allocation4 + $0x1a68] sm:$0xff] %v10820_v1 }
 0x1b8   : > { %1063 = vst [vmem:[#allocation4 + $0x1a70] sm:$0xff] %v10820_v1  ;;  %1064 = vst [vmem:[#allocation4 + $0x1a78] sm:$0xff] %v10820_v1 }
 0x1b9   : > { %1065 = vst [vmem:[#allocation4 + $0x1a80] sm:$0xff] %v10820_v1  ;;  %1066 = vst [vmem:[#allocation4 + $0x1a88] sm:$0xff] %v10820_v1 }
 0x1ba   : > { %1067 = vst [vmem:[#allocation4 + $0x1a90] sm:$0xff] %v10820_v1  ;;  %1068 = vst [vmem:[#allocation4 + $0x1a98] sm:$0xff] %v10820_v1 }
 0x1bb   : > { %1069 = vst [vmem:[#allocation4 + $0x1aa0] sm:$0xff] %v10820_v1  ;;  %1070 = vst [vmem:[#allocation4 + $0x1aa8] sm:$0xff] %v10820_v1 }
 0x1bc   : > { %1071 = vst [vmem:[#allocation4 + $0x1ab0] sm:$0xff] %v10820_v1  ;;  %1072 = vst [vmem:[#allocation4 + $0x1ab8] sm:$0xff] %v10820_v1 }
 0x1bd   : > { %1073 = vst [vmem:[#allocation4 + $0x1ac0] sm:$0xff] %v10820_v1  ;;  %1074 = vst [vmem:[#allocation4 + $0x1ac8] sm:$0xff] %v10820_v1 }
 0x1be   : > { %1075 = vst [vmem:[#allocation4 + $0x1ad0] sm:$0xff] %v10820_v1  ;;  %1076 = vst [vmem:[#allocation4 + $0x1ad8] sm:$0xff] %v10820_v1 }
 0x1bf   : > { %1077 = vst [vmem:[#allocation4 + $0x1ae0] sm:$0xff] %v10820_v1  ;;  %1078 = vst [vmem:[#allocation4 + $0x1ae8] sm:$0xff] %v10820_v1 }
 0x1c0   : > { %1079 = vst [vmem:[#allocation4 + $0x1af0] sm:$0xff] %v10820_v1  ;;  %1080 = vst [vmem:[#allocation4 + $0x1af8] sm:$0xff] %v10820_v1 }
 0x1c1 PF: > { %v11175_v2 = vld [vmem:[%s10303_s24 + $0x8] sm:$0xff]  ;;  %v11178_v3 = vld [vmem:[%s10303_s24] sm:$0xff]  ;;  %s10248_s25 = smov 127   ;;  %v11195_v6 = vld [vmem:[%s10303_s24 + $0x10] sm:$0xff]  ;;  %s10249_s26 = smov 126   ;;  %vm1293_vm1 = vcmask 1039360  }
 0x1c2   : > { %1231 = vrot.lane.b32.xlu1 %v11175_v2, %s10248_s25  ;;  %v11184_v4 = vcombine.high %v11175_v2, %v11175_v2  ;;  %1227 = vrot.lane.b32.xlu0 %v11178_v3, %s10248_s25  ;;  %v11190_v5 = vcombine.high %v11178_v3, %v11178_v3  ;;  %1145 = vst [vmem:[#allocation4] sm:$0xf] %v11178_v3  ;;  %1147 = vst [vmem:[#allocation4 + $0x10] sm:$0xf] %v11175_v2  ;;  %v11208_v8 = vld [vmem:[%s10303_s24 + $0x18] sm:$0xff]  ;;  %v11211_v9 = vld [vmem:[%s10303_s24 + $0x10] sm:$0xff] }
 0x1c3   : > { %v11205_v7 = vcombine.high %v11195_v6, %v11195_v6  ;;  %v11215_v10 = vcombine.high %v11211_v9, %v11211_v9  ;;  %v11218_v11 = vld [vmem:[%s10303_s24 + $0x18] sm:$0xff]  ;;  %4737 = vst [vmem:[#allocation4 + $0x1200] sm:$0xf] %v11211_v9  ;;  %1149 = vst [vmem:[#allocation4 + $0x20] sm:$0xf] %v11211_v9  ;;  %v2884_v12 = vld [vmem:[%s10303_s24 + $0x20] sm:$0xff]  ;;  %v11235_v14 = vcombine.high %v11208_v8, %v11208_v8 }
 0x1c4   : > { %1146 = vst [vmem:[#allocation4 + $0x8] sm:$0xf] %v11190_v5  ;;  %1148 = vst [vmem:[#allocation4 + $0x18] sm:$0xf] %v11184_v4  ;;  %v11225_v13 = vcombine.high %v11218_v11, %v11218_v11  ;;  %v2916_v15 = vcombine.high %v2884_v12, %v2884_v12  ;;  %v11240_v16 = vld [vmem:[%s10303_s24 + $0x20] sm:$0xff]  ;;  %v4676_v17 = vld [vmem:[%s10303_s24 + $0x28] sm:$0xff] }
 0x1c5   : > { %4739 = vst [vmem:[#allocation4 + $0x1210] sm:$0xf] %v11218_v11  ;;  %1151 = vst [vmem:[#allocation4 + $0x30] sm:$0xf] %v11218_v11  ;;  %v11251_v18 = vcombine.high %v11240_v16, %v11240_v16  ;;  %v4708_v19 = vcombine.high %v4676_v17, %v4676_v17  ;;  %v11254_v20 = vld [vmem:[%s10303_s24 + $0x28] sm:$0xff]  ;;  %v2886_v21 = vld [vmem:[%s10303_s24 + $0x30] sm:$0xff] }
 0x1c6   : > { %1233 = vrot.lane.b32.xlu1 %v11184_v4, %s10248_s25  ;;  %1229 = vrot.lane.b32.xlu0 %v11190_v5, %s10248_s25  ;;  %2951 = vst [vmem:[#allocation4 + $0x930] sm:$0xf] %v2884_v12  ;;  %4741 = vst [vmem:[#allocation4 + $0x1220] sm:$0xf] %v2884_v12  ;;  %v11263_v22 = vcombine.high %v11254_v20, %v11254_v20  ;;  %v2918_v23 = vcombine.high %v2886_v21, %v2886_v21  ;;  %v11266_v24 = vld [vmem:[%s10303_s24 + $0x30] sm:$0xff]  ;;  %v4678_v25 = vld [vmem:[%s10303_s24 + $0x38] sm:$0xff] }
 0x1c7   : > { %1153 = vst [vmem:[#allocation4 + $0x40] sm:$0xf] %v2884_v12  ;;  %4738 = vst [vmem:[#allocation4 + $0x1208] sm:$0xf] %v11215_v10  ;;  %v11275_v26 = vcombine.high %v11266_v24, %v11266_v24  ;;  %v4710_v27 = vcombine.high %v4678_v25, %v4678_v25  ;;  %v11278_v28 = vld [vmem:[%s10303_s24 + $0x38] sm:$0xff]  ;;  %v2888_v29 = vld [vmem:[%s10303_s24 + $0x40] sm:$0xff] }
 0x1c8   : > { %1150 = vst [vmem:[#allocation4 + $0x28] sm:$0xf] %v11215_v10  ;;  %4740 = vst [vmem:[#allocation4 + $0x1218] sm:$0xf] %v11225_v13  ;;  %v11287_v30 = vcombine.high %v11278_v28, %v11278_v28  ;;  %v11290_v31 = vld [vmem:[%s10303_s24 + $0x40] sm:$0xff]  ;;  %v2920_v32 = vcombine.high %v2888_v29, %v2888_v29  ;;  %v4680_v33 = vld [vmem:[%s10303_s24 + $0x48] sm:$0xff] }
 0x1c9   : > { %1152 = vst [vmem:[#allocation4 + $0x38] sm:$0xf] %v11225_v13  ;;  %2952 = vst [vmem:[#allocation4 + $0x938] sm:$0xf] %v2916_v15  ;;  %v11299_v34 = vcombine.high %v11290_v31, %v11290_v31  ;;  %v11302_v35 = vld [vmem:[%s10303_s24 + $0x48] sm:$0xff]  ;;  %v4712_v36 = vcombine.high %v4680_v33, %v4680_v33  ;;  %v2890_v37 = vld [vmem:[%s10303_s24 + $0x50] sm:$0xff] }
 0x1ca   : > { %1237 = vrot.lane.b32.xlu1 %v11205_v7, %s10248_s25  ;;  %1235 = vrot.lane.b32.xlu0 %v11195_v6, %s10248_s25  ;;  %4742 = vst [vmem:[#allocation4 + $0x1228] sm:$0xf] %v2916_v15  ;;  %4743 = vst [vmem:[#allocation4 + $0x1230] sm:$0xf] %v4676_v17  ;;  %v11311_v38 = vcombine.high %v11302_v35, %v11302_v35  ;;  %v11314_v39 = vld [vmem:[%s10303_s24 + $0x50] sm:$0xff]  ;;  %v2922_v40 = vcombine.high %v2890_v37, %v2890_v37  ;;  %v4682_v41 = vld [vmem:[%s10303_s24 + $0x58] sm:$0xff] }
 0x1cb   : > { %1154 = vst [vmem:[#allocation4 + $0x48] sm:$0xf] %v2916_v15  ;;  %1155 = vst [vmem:[#allocation4 + $0x50] sm:$0xf] %v4676_v17  ;;  %v11323_v42 = vcombine.high %v11314_v39, %v11314_v39  ;;  %v11326_v43 = vld [vmem:[%s10303_s24 + $0x58] sm:$0xff]  ;;  %v4714_v44 = vcombine.high %v4682_v41, %v4682_v41  ;;  %v2892_v45 = vld [vmem:[%s10303_s24 + $0x60] sm:$0xff] }
 0x1cc   : > { %2953 = vst [vmem:[#allocation4 + $0x940] sm:$0xf] %v4676_v17  ;;  %4744 = vst [vmem:[#allocation4 + $0x1238] sm:$0xf] %v4708_v19  ;;  %v11335_v46 = vcombine.high %v11326_v43, %v11326_v43  ;;  %v11338_v47 = vld [vmem:[%s10303_s24 + $0x60] sm:$0xff]  ;;  %v2924_v48 = vcombine.high %v2892_v45, %v2892_v45  ;;  %v4684_v49 = vld [vmem:[%s10303_s24 + $0x68] sm:$0xff] }
 0x1cd   : > { %1156 = vst [vmem:[#allocation4 + $0x58] sm:$0xf] %v4708_v19  ;;  %2954 = vst [vmem:[#allocation4 + $0x948] sm:$0xf] %v4708_v19  ;;  %v11347_v50 = vcombine.high %v11338_v47, %v11338_v47  ;;  %v11350_v51 = vld [vmem:[%s10303_s24 + $0x68] sm:$0xff]  ;;  %v4716_v52 = vcombine.high %v4684_v49, %v4684_v49  ;;  %v2894_v53 = vld [vmem:[%s10303_s24 + $0x70] sm:$0xff] }
 0x1ce   : > { %1241 = vrot.lane.b32.xlu1 %v11235_v14, %s10248_s25  ;;  %1239 = vrot.lane.b32.xlu0 %v11208_v8, %s10248_s25  ;;  %2955 = vst [vmem:[#allocation4 + $0x950] sm:$0xf] %v2886_v21  ;;  %4745 = vst [vmem:[#allocation4 + $0x1240] sm:$0xf] %v2886_v21  ;;  %v11359_v54 = vcombine.high %v11350_v51, %v11350_v51  ;;  %v11362_v55 = vld [vmem:[%s10303_s24 + $0x70] sm:$0xff]  ;;  %v2926_v56 = vcombine.high %v2894_v53, %v2894_v53  ;;  %v4686_v57 = vld [vmem:[%s10303_s24 + $0x78] sm:$0xff] }
 0x1cf   : > { %1157 = vst [vmem:[#allocation4 + $0x60] sm:$0xf] %v2886_v21  ;;  %2956 = vst [vmem:[#allocation4 + $0x958] sm:$0xf] %v2918_v23  ;;  %v11371_v58 = vcombine.high %v11362_v55, %v11362_v55  ;;  %v11374_v59 = vld [vmem:[%s10303_s24 + $0x78] sm:$0xff]  ;;  %v4718_v60 = vcombine.high %v4686_v57, %v4686_v57  ;;  %s10250_s27 = smov 112  }
 0x1d0   : > { %4746 = vst [vmem:[#allocation4 + $0x1248] sm:$0xf] %v2918_v23  ;;  %4747 = vst [vmem:[#allocation4 + $0x1250] sm:$0xf] %v4678_v25  ;;  %v11382_v61 = vcombine.high %v11374_v59, %v11374_v59  ;;  %v1193_v62 = vld [vmem:[%s10303_s24 + $0x80] sm:$0xf] }
 0x1d1   : > { %1158 = vst [vmem:[#allocation4 + $0x68] sm:$0xf] %v2918_v23  ;;  %1159 = vst [vmem:[#allocation4 + $0x70] sm:$0xf] %v4678_v25  ;;  %vm1506_vm2 = vcmask 1031168   ;;  %s10251_s28 = smov 111  }
 0x1d2   : > { %1245 = vrot.lane.b32.xlu1 %v11251_v18, %s10248_s25  ;;  %1243 = vrot.lane.b32.xlu0 %v11240_v16, %s10248_s25  ;;  %2957 = vst [vmem:[#allocation4 + $0x960] sm:$0xf] %v4678_v25  ;;  %4748 = vst [vmem:[#allocation4 + $0x1258] sm:$0xf] %v4710_v27  ;;  %vm1719_vm3 = vcmask 916480   ;;  %s10252_s29 = smov 110  }
 0x1d3   : > { %1160 = vst [vmem:[#allocation4 + $0x78] sm:$0xf] %v4710_v27  ;;  %2958 = vst [vmem:[#allocation4 + $0x968] sm:$0xf] %v4710_v27  ;;  %vm1932_vm4 = vcmask 908288   ;;  %s10253_s30 = smov 96  }
 0x1d4   : > { %2959 = vst [vmem:[#allocation4 + $0x970] sm:$0xf] %v2888_v29  ;;  %4749 = vst [vmem:[#allocation4 + $0x1260] sm:$0xf] %v2888_v29  ;;  %vm2145_vm5 = vcmask 900096   ;;  %s10254_s6 = smov 95  }
 0x1d5   : > { %1161 = vst [vmem:[#allocation4 + $0x80] sm:$0xf] %v2888_v29  ;;  %2960 = vst [vmem:[#allocation4 + $0x978] sm:$0xf] %v2920_v32  ;;  %v1406_v29 = vld [vmem:[%s10303_s24 + $0x80] sm:$0xf] }
 0x1d6   : > { %1249 = vrot.lane.b32.xlu1 %v11263_v22, %s10248_s25  ;;  %1247 = vrot.lane.b32.xlu0 %v11254_v20, %s10248_s25  ;;  %4750 = vst [vmem:[#allocation4 + $0x1268] sm:$0xf] %v2920_v32  ;;  %4751 = vst [vmem:[#allocation4 + $0x1270] sm:$0xf] %v4680_v33  ;;  %vm2358_vm6 = vcmask 785408   ;;  %s10255_s7 = smov 94  }
 0x1d7   : > { %1162 = vst [vmem:[#allocation4 + $0x88] sm:$0xf] %v2920_v32  ;;  %1163 = vst [vmem:[#allocation4 + $0x90] sm:$0xf] %v4680_v33  ;;  %v6467_v32 = vld [vmem:[#allocation4 + $0x8] sm:$0xff]  ;;  %vm2571_vm7 = vcmask 777216  }
 0x1d8   : > { %2961 = vst [vmem:[#allocation4 + $0x980] sm:$0xf] %v4680_v33  ;;  %4752 = vst [vmem:[#allocation4 + $0x1278] sm:$0xf] %v4712_v36  ;;  %v6466_v33 = vld [vmem:[#allocation4] sm:$0xff]  ;;  %vm2784_vm8 = vcmask 769024  }
 0x1d9   : > { %1164 = vst [vmem:[#allocation4 + $0x98] sm:$0xf] %v4712_v36  ;;  %2962 = vst [vmem:[#allocation4 + $0x988] sm:$0xf] %v4712_v36  ;;  %vm7332_vm9 = vcmask 719872   ;;  %s9281_s16 = sshll.u32 %s10294_s19, 7 }
 0x1da   : > { %1253 = vrot.lane.b32.xlu1 %v11275_v26, %s10248_s25  ;;  %1251 = vrot.lane.b32.xlu0 %v11266_v24, %s10248_s25  ;;  %2963 = vst [vmem:[#allocation4 + $0x990] sm:$0xf] %v2890_v37  ;;  %4753 = vst [vmem:[#allocation4 + $0x1280] sm:$0xf] %v2890_v37  ;;  %vm8755_vm10 = vcmask 1043456   ;;  %s14088_s21 = scalar_lea.vmem %s15160_s5, %s9281_s16  ;;  %vm8822_vm11 = vcmask 3072  }
 0x1db   : > { %1165 = vst [vmem:[#allocation4 + $0xa0] sm:$0xf] %v2890_v37  ;;  %2964 = vst [vmem:[#allocation4 + $0x998] sm:$0xf] %v2922_v40  ;;  %p9246_p5 = scmp.ne.s32.totalorder %s10294_s19, 1 }
 0x1dc   : > { %4754 = vst [vmem:[#allocation4 + $0x1288] sm:$0xf] %v2922_v40  ;;  %4755 = vst [vmem:[#allocation4 + $0x1290] sm:$0xf] %v4682_v41 }
 0x1dd   : > { %1166 = vst [vmem:[#allocation4 + $0xa8] sm:$0xf] %v2922_v40  ;;  %1167 = vst [vmem:[#allocation4 + $0xb0] sm:$0xf] %v4682_v41 }
 0x1de   : > { %1257 = vrot.lane.b32.xlu1 %v11287_v30, %s10248_s25  ;;  %1255 = vrot.lane.b32.xlu0 %v11278_v28, %s10248_s25  ;;  %2965 = vst [vmem:[#allocation4 + $0x9a0] sm:$0xf] %v4682_v41  ;;  %4756 = vst [vmem:[#allocation4 + $0x1298] sm:$0xf] %v4714_v44 }
 0x1df   : > { %1168 = vst [vmem:[#allocation4 + $0xb8] sm:$0xf] %v4714_v44  ;;  %2966 = vst [vmem:[#allocation4 + $0x9a8] sm:$0xf] %v4714_v44 }
 0x1e0   : > { %2967 = vst [vmem:[#allocation4 + $0x9b0] sm:$0xf] %v2892_v45  ;;  %4757 = vst [vmem:[#allocation4 + $0x12a0] sm:$0xf] %v2892_v45 }
 0x1e1   : > { %1169 = vst [vmem:[#allocation4 + $0xc0] sm:$0xf] %v2892_v45  ;;  %2968 = vst [vmem:[#allocation4 + $0x9b8] sm:$0xf] %v2924_v48 }
 0x1e2   : > { %1261 = vrot.lane.b32.xlu1 %v11299_v34, %s10248_s25  ;;  %1259 = vrot.lane.b32.xlu0 %v11290_v31, %s10248_s25  ;;  %4758 = vst [vmem:[#allocation4 + $0x12a8] sm:$0xf] %v2924_v48  ;;  %4759 = vst [vmem:[#allocation4 + $0x12b0] sm:$0xf] %v4684_v49 }
 0x1e3   : > { %1170 = vst [vmem:[#allocation4 + $0xc8] sm:$0xf] %v2924_v48  ;;  %1171 = vst [vmem:[#allocation4 + $0xd0] sm:$0xf] %v4684_v49 }
 0x1e4   : > { %2969 = vst [vmem:[#allocation4 + $0x9c0] sm:$0xf] %v4684_v49  ;;  %4760 = vst [vmem:[#allocation4 + $0x12b8] sm:$0xf] %v4716_v52 }
 0x1e5   : > { %1172 = vst [vmem:[#allocation4 + $0xd8] sm:$0xf] %v4716_v52  ;;  %2970 = vst [vmem:[#allocation4 + $0x9c8] sm:$0xf] %v4716_v52  ;;  %v6469_v52 = vld [vmem:[#allocation4 + $0x18] sm:$0xff] }
 0x1e6   : > { %1265 = vrot.lane.b32.xlu1 %v11311_v38, %s10248_s25  ;;  %1263 = vrot.lane.b32.xlu0 %v11302_v35, %s10248_s25  ;;  %2971 = vst [vmem:[#allocation4 + $0x9d0] sm:$0xf] %v2894_v53  ;;  %4761 = vst [vmem:[#allocation4 + $0x12c0] sm:$0xf] %v2894_v53 }
 0x1e7   : > { %1173 = vst [vmem:[#allocation4 + $0xe0] sm:$0xf] %v2894_v53  ;;  %2972 = vst [vmem:[#allocation4 + $0x9d8] sm:$0xf] %v2926_v56 }
 0x1e8   : > { %4762 = vst [vmem:[#allocation4 + $0x12c8] sm:$0xf] %v2926_v56  ;;  %4763 = vst [vmem:[#allocation4 + $0x12d0] sm:$0xf] %v4686_v57 }
 0x1e9   : > { %1174 = vst [vmem:[#allocation4 + $0xe8] sm:$0xf] %v2926_v56  ;;  %1175 = vst [vmem:[#allocation4 + $0xf0] sm:$0xf] %v4686_v57 }
 0x1ea   : > { %1269 = vrot.lane.b32.xlu1 %v11323_v42, %s10248_s25  ;;  %1267 = vrot.lane.b32.xlu0 %v11314_v39, %s10248_s25  ;;  %2973 = vst [vmem:[#allocation4 + $0x9e0] sm:$0xf] %v4686_v57  ;;  %4764 = vst [vmem:[#allocation4 + $0x12d8] sm:$0xf] %v4718_v60  ;;  %v6468_v57 = vld [vmem:[#allocation4 + $0x10] sm:$0xff] }
 0x1eb   : > { %1176 = vst [vmem:[#allocation4 + $0xf8] sm:$0xf] %v4718_v60  ;;  %2974 = vst [vmem:[#allocation4 + $0x9e8] sm:$0xf] %v4718_v60 }
 0x1ee   : > { %1273 = vrot.lane.b32.xlu1 %v11335_v46, %s10248_s25  ;;  %1271 = vrot.lane.b32.xlu0 %v11326_v43, %s10248_s25 }
 0x1f2   : > { %1277 = vrot.lane.b32.xlu1 %v11347_v50, %s10248_s25  ;;  %1275 = vrot.lane.b32.xlu0 %v11338_v47, %s10248_s25 }
 0x1f6   : > { %1281 = vrot.lane.b32.xlu1 %v11359_v54, %s10248_s25  ;;  %1279 = vrot.lane.b32.xlu0 %v11350_v51, %s10248_s25 }
 0x1fa   : > { %1285 = vrot.lane.b32.xlu1 %v11371_v58, %s10248_s25  ;;  %1283 = vrot.lane.b32.xlu0 %v11362_v55, %s10248_s25 }
 0x1fe   : > { %1289 = vrot.lane.b32.xlu1 %v11382_v61, %s10248_s25  ;;  %1287 = vrot.lane.b32.xlu0 %v11374_v59, %s10248_s25 }
 0x202   : > { %1440 = vrot.lane.b32.xlu1 %v11178_v3, %s10249_s26  ;;  %1291 = vrot.lane.b32.xlu0 %v1193_v62, %s10248_s25 }
 0x206   : > { %1444 = vrot.lane.b32.xlu1 %v11175_v2, %s10249_s26  ;;  %1442 = vrot.lane.b32.xlu0 %v11190_v5, %s10249_s26 }
 0x20a   : > { %1448 = vrot.lane.b32.xlu1 %v11195_v6, %s10249_s26  ;;  %1446 = vrot.lane.b32.xlu0 %v11184_v4, %s10249_s26 }
 0x20e   : > { %1452 = vrot.lane.b32.xlu1 %v11208_v8, %s10249_s26  ;;  %1450 = vrot.lane.b32.xlu0 %v11205_v7, %s10249_s26 }
 0x212   : > { %1456 = vrot.lane.b32.xlu1 %v11240_v16, %s10249_s26  ;;  %1454 = vrot.lane.b32.xlu0 %v11235_v14, %s10249_s26 }
 0x216   : > { %1460 = vrot.lane.b32.xlu1 %v11254_v20, %s10249_s26  ;;  %1458 = vrot.lane.b32.xlu0 %v11251_v18, %s10249_s26 }
 0x21a   : > { %1464 = vrot.lane.b32.xlu1 %v11266_v24, %s10249_s26  ;;  %1462 = vrot.lane.b32.xlu0 %v11263_v22, %s10249_s26 }
 0x21e   : > { %1468 = vrot.lane.b32.xlu1 %v11278_v28, %s10249_s26  ;;  %1466 = vrot.lane.b32.xlu0 %v11275_v26, %s10249_s26 }
 0x222   : > { %1472 = vrot.lane.b32.xlu1 %v11290_v31, %s10249_s26  ;;  %1470 = vrot.lane.b32.xlu0 %v11287_v30, %s10249_s26 }
 0x226   : > { %1476 = vrot.lane.b32.xlu1 %v11302_v35, %s10249_s26  ;;  %1474 = vrot.lane.b32.xlu0 %v11299_v34, %s10249_s26 }
 0x22a   : > { %1480 = vrot.lane.b32.xlu1 %v11314_v39, %s10249_s26  ;;  %1478 = vrot.lane.b32.xlu0 %v11311_v38, %s10249_s26 }
 0x22e   : > { %1484 = vrot.lane.b32.xlu1 %v11326_v43, %s10249_s26  ;;  %1482 = vrot.lane.b32.xlu0 %v11323_v42, %s10249_s26 }
 0x232   : > { %1488 = vrot.lane.b32.xlu1 %v11338_v47, %s10249_s26  ;;  %1486 = vrot.lane.b32.xlu0 %v11335_v46, %s10249_s26 }
 0x234   : > { %v1232_v63 = vpop.permute.xlu1 %1231  ;;  %v1228_v0 = vpop.permute.xlu0 %1227 }
 0x236   : > { %1492 = vrot.lane.b32.xlu1 %v11350_v51, %s10249_s26  ;;  %1490 = vrot.lane.b32.xlu0 %v11347_v50, %s10249_s26 }
 0x238   : > { %v1234_v1 = vpop.permute.xlu1 %1233  ;;  %v1230_v12 = vpop.permute.xlu0 %1229 }
 0x239   : > { %v1296_v15 = vsel %vm1293_vm1, %v1232_v63, %v1234_v1  ;;  %v1294_v17 = vsel %vm1293_vm1, %v1228_v0, %v1230_v12  ;;  %v1295_v19 = vsel %vm1293_vm1, %v1230_v12, %v1232_v63 }
 0x23a   : > { %1360 = vst [vmem:[#allocation4 + $0x110] sm:$0xf] %v1296_v15  ;;  %1358 = vst [vmem:[#allocation4 + $0x100] sm:$0xf] %v1294_v17  ;;  %1496 = vrot.lane.b32.xlu1 %v11362_v55, %s10249_s26  ;;  %1494 = vrot.lane.b32.xlu0 %v11359_v54, %s10249_s26 }
 0x23b   : > { %1359 = vst [vmem:[#allocation4 + $0x108] sm:$0xf] %v1295_v19 }
 0x23c   : > { %v1238_v21 = vpop.permute.xlu1 %1237  ;;  %v1236_v23 = vpop.permute.xlu0 %1235 }
 0x23d   : > { %v1297_v25 = vsel %vm1293_vm1, %v1234_v1, %v1236_v23  ;;  %v1298_v27 = vsel %vm1293_vm1, %v1236_v23, %v1238_v21 }
 0x23e   : > { %1361 = vst [vmem:[#allocation4 + $0x118] sm:$0xf] %v1297_v25  ;;  %1362 = vst [vmem:[#allocation4 + $0x120] sm:$0xf] %v1298_v27  ;;  %1500 = vrot.lane.b32.xlu1 %v11374_v59, %s10249_s26  ;;  %1498 = vrot.lane.b32.xlu0 %v11371_v58, %s10249_s26 }
 0x240   : > { %v1242_v36 = vpop.permute.xlu1 %1241  ;;  %v1240_v37 = vpop.permute.xlu0 %1239 }
 0x241   : > { %v1299_v40 = vsel %vm1293_vm1, %v1238_v21, %v1240_v37  ;;  %v1300_v41 = vsel %vm1293_vm1, %v1240_v37, %v1242_v36  ;;  %v6498_v45 = vld [vmem:[#allocation4 + $0x100] sm:$0xff]  ;;  %v6500_v60 = vld [vmem:[#allocation4 + $0x110] sm:$0xff] }
 0x242   : > { %v6499_v44 = vld [vmem:[#allocation4 + $0x108] sm:$0xff]  ;;  %1363 = vst [vmem:[#allocation4 + $0x128] sm:$0xf] %v1299_v40  ;;  %1364 = vst [vmem:[#allocation4 + $0x130] sm:$0xf] %v1300_v41  ;;  %1504 = vrot.lane.b32.xlu1 %v1406_v29, %s10249_s26  ;;  %1502 = vrot.lane.b32.xlu0 %v11382_v61, %s10249_s26  ;;  %v9284_v49 = vpack.c.bf16 %v6498_v45, %v6466_v33  ;;  %v9336_v12 = vpack.c.bf16 %v6500_v60, %v6468_v57 }
 0x243   : > { %v9282_v48 = vpack.c.bf16 %v6499_v44, %v6467_v32 }
 0x244   : > { %v1246_v53 = vpop.permute.xlu1 %1245  ;;  %v1244_v56 = vpop.permute.xlu0 %1243 }
 0x245   : > { %9283 = vmatprep.subr.bf16.mxu0 %v9282_v48  ;;  %v1301_v62 = vsel %vm1293_vm1, %v1242_v36, %v1244_v56  ;;  %v1302_v63 = vsel %vm1293_vm1, %v1244_v56, %v1246_v53  ;;  %v6501_v0 = vld [vmem:[#allocation4 + $0x118] sm:$0xff] }
 0x246   : > { %9285 = vmatpush1.bf16.msra.mxu0 %v9284_v49  ;;  %1365 = vst [vmem:[#allocation4 + $0x138] sm:$0xf] %v1301_v62  ;;  %1366 = vst [vmem:[#allocation4 + $0x140] sm:$0xf] %v1302_v63  ;;  %1655 = vrot.lane.b32.xlu1 %v11190_v5, %s10250_s27  ;;  %v9334_v1 = vpack.c.bf16 %v6501_v0, %v6469_v52 }
 0x247   : > { %1653 = vrot.lane.b32.xlu0 %v11178_v3, %s10250_s27 }
 0x248   : > { %v1250_v15 = vpop.permute.xlu1 %1249  ;;  %v1248_v17 = vpop.permute.xlu0 %1247  ;;  %9335 = vmatprep.subr.bf16.mxu1 %v9334_v1 }
 0x249   : > { %v1303_v19 = vsel %vm1293_vm1, %v1246_v53, %v1248_v17  ;;  %v1304_v21 = vsel %vm1293_vm1, %v1248_v17, %v1250_v15  ;;  %9337 = vmatpush1.bf16.msra.mxu1 %v9336_v12 }
 0x24a   : > { %1367 = vst [vmem:[#allocation4 + $0x148] sm:$0xf] %v1303_v19  ;;  %1368 = vst [vmem:[#allocation4 + $0x150] sm:$0xf] %v1304_v21  ;;  %1659 = vrot.lane.b32.xlu1 %v11184_v4, %s10250_s27 }
 0x24b   : > { %1657 = vrot.lane.b32.xlu0 %v11175_v2, %s10250_s27 }
 0x24c   : > { %v1254_v23 = vpop.permute.xlu1 %1253  ;;  %v1252_v25 = vpop.permute.xlu0 %1251 }
 0x24d   : > { %v1305_v27 = vsel %vm1293_vm1, %v1250_v15, %v1252_v25  ;;  %v1306_v29 = vsel %vm1293_vm1, %v1252_v25, %v1254_v23 }
 0x24e   : > { %1369 = vst [vmem:[#allocation4 + $0x158] sm:$0xf] %v1305_v27  ;;  %1370 = vst [vmem:[#allocation4 + $0x160] sm:$0xf] %v1306_v29  ;;  %1663 = vrot.lane.b32.xlu1 %v11205_v7, %s10250_s27 }
 0x24f   : > { %1661 = vrot.lane.b32.xlu0 %v11195_v6, %s10250_s27 }
 0x250   : > { %v1258_v32 = vpop.permute.xlu1 %1257  ;;  %v1256_v33 = vpop.permute.xlu0 %1255 }
 0x251   : > { %v1307_v36 = vsel %vm1293_vm1, %v1254_v23, %v1256_v33  ;;  %v1308_v37 = vsel %vm1293_vm1, %v1256_v33, %v1258_v32 }
 0x252   : > { %1371 = vst [vmem:[#allocation4 + $0x168] sm:$0xf] %v1307_v36  ;;  %1372 = vst [vmem:[#allocation4 + $0x170] sm:$0xf] %v1308_v37  ;;  %1667 = vrot.lane.b32.xlu1 %v11235_v14, %s10250_s27 }
 0x253   : > { %1665 = vrot.lane.b32.xlu0 %v11208_v8, %s10250_s27 }
 0x254   : > { %v1262_v40 = vpop.permute.xlu1 %1261  ;;  %v1260_v41 = vpop.permute.xlu0 %1259 }
 0x255   : > { %v1309_v44 = vsel %vm1293_vm1, %v1258_v32, %v1260_v41  ;;  %v1310_v45 = vsel %vm1293_vm1, %v1260_v41, %v1262_v40 }
 0x256   : > { %1373 = vst [vmem:[#allocation4 + $0x178] sm:$0xf] %v1309_v44  ;;  %1374 = vst [vmem:[#allocation4 + $0x180] sm:$0xf] %v1310_v45  ;;  %1671 = vrot.lane.b32.xlu1 %v11251_v18, %s10250_s27 }
 0x257   : > { %1669 = vrot.lane.b32.xlu0 %v11240_v16, %s10250_s27 }
 0x258   : > { %v1266_v48 = vpop.permute.xlu1 %1265  ;;  %v1264_v49 = vpop.permute.xlu0 %1263 }
 0x259   : > { %v1311_v52 = vsel %vm1293_vm1, %v1262_v40, %v1264_v49  ;;  %v1312_v53 = vsel %vm1293_vm1, %v1264_v49, %v1266_v48 }
 0x25a   : > { %1375 = vst [vmem:[#allocation4 + $0x188] sm:$0xf] %v1311_v52  ;;  %1376 = vst [vmem:[#allocation4 + $0x190] sm:$0xf] %v1312_v53  ;;  %1675 = vrot.lane.b32.xlu1 %v11263_v22, %s10250_s27 }
 0x25b   : > { %1673 = vrot.lane.b32.xlu0 %v11254_v20, %s10250_s27 }
 0x25c   : > { %v1270_v56 = vpop.permute.xlu1 %1269  ;;  %v1268_v57 = vpop.permute.xlu0 %1267 }
 0x25d   : > { %v1313_v60 = vsel %vm1293_vm1, %v1266_v48, %v1268_v57  ;;  %v1314_v62 = vsel %vm1293_vm1, %v1268_v57, %v1270_v56 }
 0x25e   : > { %1377 = vst [vmem:[#allocation4 + $0x198] sm:$0xf] %v1313_v60  ;;  %1378 = vst [vmem:[#allocation4 + $0x1a0] sm:$0xf] %v1314_v62  ;;  %1679 = vrot.lane.b32.xlu1 %v11275_v26, %s10250_s27 }
 0x25f   : > { %1677 = vrot.lane.b32.xlu0 %v11266_v24, %s10250_s27 }
 0x260   : > { %v1274_v63 = vpop.permute.xlu1 %1273  ;;  %v1272_v0 = vpop.permute.xlu0 %1271 }
 0x261   : > { %v1315_v1 = vsel %vm1293_vm1, %v1270_v56, %v1272_v0  ;;  %v1316_v12 = vsel %vm1293_vm1, %v1272_v0, %v1274_v63 }
 0x262   : > { %1379 = vst [vmem:[#allocation4 + $0x1a8] sm:$0xf] %v1315_v1  ;;  %1380 = vst [vmem:[#allocation4 + $0x1b0] sm:$0xf] %v1316_v12  ;;  %1683 = vrot.lane.b32.xlu1 %v11287_v30, %s10250_s27 }
 0x263   : > { %1681 = vrot.lane.b32.xlu0 %v11278_v28, %s10250_s27 }
 0x264   : > { %v1278_v15 = vpop.permute.xlu1 %1277  ;;  %v1276_v17 = vpop.permute.xlu0 %1275 }
 0x265   : > { %v1317_v19 = vsel %vm1293_vm1, %v1274_v63, %v1276_v17  ;;  %v1318_v21 = vsel %vm1293_vm1, %v1276_v17, %v1278_v15 }
 0x266   : > { %1381 = vst [vmem:[#allocation4 + $0x1b8] sm:$0xf] %v1317_v19  ;;  %1382 = vst [vmem:[#allocation4 + $0x1c0] sm:$0xf] %v1318_v21  ;;  %1687 = vrot.lane.b32.xlu1 %v11299_v34, %s10250_s27  ;;  %v1619_v21 = vld [vmem:[%s10303_s24 + $0x80] sm:$0xf] }
 0x267   : > { %1685 = vrot.lane.b32.xlu0 %v11290_v31, %s10250_s27 }
 0x268   : > { %v1282_v23 = vpop.permute.xlu1 %1281  ;;  %v1280_v25 = vpop.permute.xlu0 %1279 }
 0x269   : > { %v1319_v27 = vsel %vm1293_vm1, %v1278_v15, %v1280_v25  ;;  %v1320_v29 = vsel %vm1293_vm1, %v1280_v25, %v1282_v23 }
 0x26a   : > { %1383 = vst [vmem:[#allocation4 + $0x1c8] sm:$0xf] %v1319_v27  ;;  %1384 = vst [vmem:[#allocation4 + $0x1d0] sm:$0xf] %v1320_v29  ;;  %1691 = vrot.lane.b32.xlu1 %v11311_v38, %s10250_s27 }
 0x26b   : > { %1689 = vrot.lane.b32.xlu0 %v11302_v35, %s10250_s27 }
 0x26c   : > { %v1286_v32 = vpop.permute.xlu1 %1285  ;;  %v1284_v33 = vpop.permute.xlu0 %1283 }
 0x26d   : > { %v1321_v36 = vsel %vm1293_vm1, %v1282_v23, %v1284_v33  ;;  %v1322_v37 = vsel %vm1293_vm1, %v1284_v33, %v1286_v32 }
 0x26e   : > { %1385 = vst [vmem:[#allocation4 + $0x1d8] sm:$0xf] %v1321_v36  ;;  %1386 = vst [vmem:[#allocation4 + $0x1e0] sm:$0xf] %v1322_v37  ;;  %1695 = vrot.lane.b32.xlu1 %v11323_v42, %s10250_s27 }
 0x26f   : > { %1693 = vrot.lane.b32.xlu0 %v11314_v39, %s10250_s27 }
 0x270   : > { %v1290_v40 = vpop.permute.xlu1 %1289  ;;  %v1288_v41 = vpop.permute.xlu0 %1287 }
 0x271   : > { %v1323_v44 = vsel %vm1293_vm1, %v1286_v32, %v1288_v41  ;;  %v1324_v45 = vsel %vm1293_vm1, %v1288_v41, %v1290_v40 }
 0x272   : > { %1387 = vst [vmem:[#allocation4 + $0x1e8] sm:$0xf] %v1323_v44  ;;  %1388 = vst [vmem:[#allocation4 + $0x1f0] sm:$0xf] %v1324_v45  ;;  %1699 = vrot.lane.b32.xlu1 %v11335_v46, %s10250_s27 }
 0x273   : > { %1697 = vrot.lane.b32.xlu0 %v11326_v43, %s10250_s27 }
 0x274   : > { %v1441_v48 = vpop.permute.xlu1 %1440  ;;  %v1292_v49 = vpop.permute.xlu0 %1291 }
 0x275   : > { %v1325_v52 = vsel %vm1293_vm1, %v1290_v40, %v1292_v49 }
 0x276   : > { %1389 = vst [vmem:[#allocation4 + $0x1f8] sm:$0xf] %v1325_v52  ;;  %1703 = vrot.lane.b32.xlu1 %v11347_v50, %s10250_s27 }
 0x277   : > { %1701 = vrot.lane.b32.xlu0 %v11338_v47, %s10250_s27 }
 0x278   : > { %v1445_v53 = vpop.permute.xlu1 %1444  ;;  %v1443_v56 = vpop.permute.xlu0 %1442 }
 0x279   : > { %v1507_v57 = vsel %vm1506_vm2, %v1441_v48, %v1443_v56  ;;  %v1508_v60 = vsel %vm1506_vm2, %v1443_v56, %v1445_v53 }
 0x27a   : > { %1571 = vst [vmem:[#allocation4 + $0x200] sm:$0xf] %v1507_v57  ;;  %1572 = vst [vmem:[#allocation4 + $0x208] sm:$0xf] %v1508_v60  ;;  %1707 = vrot.lane.b32.xlu1 %v11359_v54, %s10250_s27 }
 0x27b   : > { %1705 = vrot.lane.b32.xlu0 %v11350_v51, %s10250_s27 }
 0x27c   : > { %v1449_v62 = vpop.permute.xlu1 %1448  ;;  %v1447_v63 = vpop.permute.xlu0 %1446 }
 0x27d   : > { %v1509_v0 = vsel %vm1506_vm2, %v1445_v53, %v1447_v63  ;;  %v1510_v1 = vsel %vm1506_vm2, %v1447_v63, %v1449_v62 }
 0x27e   : > { %1573 = vst [vmem:[#allocation4 + $0x210] sm:$0xf] %v1509_v0  ;;  %1574 = vst [vmem:[#allocation4 + $0x218] sm:$0xf] %v1510_v1  ;;  %1711 = vrot.lane.b32.xlu1 %v11371_v58, %s10250_s27 }
 0x27f   : > { %1709 = vrot.lane.b32.xlu0 %v11362_v55, %s10250_s27 }
 0x280   : > { %v1453_v12 = vpop.permute.xlu1 %1452  ;;  %v1451_v15 = vpop.permute.xlu0 %1450 }
 0x281   : > { %v1511_v17 = vsel %vm1506_vm2, %v1449_v62, %v1451_v15  ;;  %v1512_v19 = vsel %vm1506_vm2, %v1451_v15, %v1453_v12 }
 0x282   : > { %1575 = vst [vmem:[#allocation4 + $0x220] sm:$0xf] %v1511_v17  ;;  %1576 = vst [vmem:[#allocation4 + $0x228] sm:$0xf] %v1512_v19  ;;  %1715 = vrot.lane.b32.xlu1 %v11382_v61, %s10250_s27 }
 0x283   : > { %1713 = vrot.lane.b32.xlu0 %v11374_v59, %s10250_s27 }
 0x284   : > { %v1457_v23 = vpop.permute.xlu1 %1456  ;;  %v1455_v25 = vpop.permute.xlu0 %1454 }
 0x285   : > { %v1513_v27 = vsel %vm1506_vm2, %v1453_v12, %v1455_v25  ;;  %v1514_v29 = vsel %vm1506_vm2, %v1455_v25, %v1457_v23 }
 0x286   : > { %1577 = vst [vmem:[#allocation4 + $0x230] sm:$0xf] %v1513_v27  ;;  %1578 = vst [vmem:[#allocation4 + $0x238] sm:$0xf] %v1514_v29  ;;  %1866 = vrot.lane.b32.xlu1 %v11178_v3, %s10251_s28 }
 0x287   : > { %1717 = vrot.lane.b32.xlu0 %v1619_v21, %s10250_s27 }
 0x288   : > { %v1461_v32 = vpop.permute.xlu1 %1460  ;;  %v1459_v33 = vpop.permute.xlu0 %1458 }
 0x289   : > { %v1515_v36 = vsel %vm1506_vm2, %v1457_v23, %v1459_v33  ;;  %v1516_v37 = vsel %vm1506_vm2, %v1459_v33, %v1461_v32 }
 0x28a   : > { %1579 = vst [vmem:[#allocation4 + $0x240] sm:$0xf] %v1515_v36  ;;  %1580 = vst [vmem:[#allocation4 + $0x248] sm:$0xf] %v1516_v37  ;;  %1870 = vrot.lane.b32.xlu1 %v11175_v2, %s10251_s28 }
 0x28b   : > { %1868 = vrot.lane.b32.xlu0 %v11190_v5, %s10251_s28 }
 0x28c   : > { %v1465_v40 = vpop.permute.xlu1 %1464  ;;  %v1463_v41 = vpop.permute.xlu0 %1462 }
 0x28d   : > { %v1517_v3 = vsel %vm1506_vm2, %v1461_v32, %v1463_v41  ;;  %v1518_v44 = vsel %vm1506_vm2, %v1463_v41, %v1465_v40  ;;  %v11655_v41 = vld [vmem:[%s10303_s24] sm:$0xff] }
 0x28e   : > { %1581 = vst [vmem:[#allocation4 + $0x250] sm:$0xf] %v1517_v3  ;;  %1582 = vst [vmem:[#allocation4 + $0x258] sm:$0xf] %v1518_v44  ;;  %1874 = vrot.lane.b32.xlu1 %v11195_v6, %s10251_s28 }
 0x28f   : > { %1872 = vrot.lane.b32.xlu0 %v11184_v4, %s10251_s28 }
 0x290   : > { %v1469_v45 = vpop.permute.xlu1 %1468  ;;  %v1467_v48 = vpop.permute.xlu0 %1466 }
 0x291   : > { %v1519_v2 = vsel %vm1506_vm2, %v1465_v40, %v1467_v48  ;;  %v1520_v5 = vsel %vm1506_vm2, %v1467_v48, %v1469_v45  ;;  %v1832_v40 = vld [vmem:[%s10303_s24 + $0x80] sm:$0xf]  ;;  %v6531_v48 = vld [vmem:[#allocation4 + $0x208] sm:$0xff] }
 0x292   : > { %1583 = vst [vmem:[#allocation4 + $0x260] sm:$0xf] %v1519_v2  ;;  %1584 = vst [vmem:[#allocation4 + $0x268] sm:$0xf] %v1520_v5  ;;  %1878 = vrot.lane.b32.xlu1 %v11208_v8, %s10251_s28  ;;  %v11664_v5 = vcombine.high %v11655_v41, %v11655_v41 }
 0x293   : > { %1876 = vrot.lane.b32.xlu0 %v11205_v7, %s10251_s28 }
 0x294   : > { %v1473_v49 = vpop.permute.xlu1 %1472  ;;  %v1471_v52 = vpop.permute.xlu0 %1470 }
 0x295   : > { %v1521_v6 = vsel %vm1506_vm2, %v1469_v45, %v1471_v52  ;;  %v1522_v4 = vsel %vm1506_vm2, %v1471_v52, %v1473_v49  ;;  %v11667_v52 = vld [vmem:[%s10303_s24 + $0x8] sm:$0xff] }
 0x296   : > { %1585 = vst [vmem:[#allocation4 + $0x270] sm:$0xf] %v1521_v6  ;;  %1586 = vst [vmem:[#allocation4 + $0x278] sm:$0xf] %v1522_v4  ;;  %1882 = vrot.lane.b32.xlu1 %v11240_v16, %s10251_s28 }
 0x297   : > { %1880 = vrot.lane.b32.xlu0 %v11235_v14, %s10251_s28 }
 0x298   : > { %v1477_v53 = vpop.permute.xlu1 %1476  ;;  %v1475_v56 = vpop.permute.xlu0 %1474 }
 0x299   : > { %v1523_v8 = vsel %vm1506_vm2, %v1473_v49, %v1475_v56  ;;  %v1524_v7 = vsel %vm1506_vm2, %v1475_v56, %v1477_v53 }
 0x29a   : > { %1587 = vst [vmem:[#allocation4 + $0x280] sm:$0xf] %v1523_v8  ;;  %1588 = vst [vmem:[#allocation4 + $0x288] sm:$0xf] %v1524_v7  ;;  %1886 = vrot.lane.b32.xlu1 %v11254_v20, %s10251_s28 }
 0x29b   : > { %1884 = vrot.lane.b32.xlu0 %v11251_v18, %s10251_s28 }
 0x29c   : > { %v1481_v57 = vpop.permute.xlu1 %1480  ;;  %v1479_v60 = vpop.permute.xlu0 %1478 }
 0x29d   : > { %v1525_v16 = vsel %vm1506_vm2, %v1477_v53, %v1479_v60  ;;  %v1526_v14 = vsel %vm1506_vm2, %v1479_v60, %v1481_v57  ;;  %v6532_v60 = vld [vmem:[#allocation4 + $0x210] sm:$0xff] }
 0x29e   : > { %1589 = vst [vmem:[#allocation4 + $0x290] sm:$0xf] %v1525_v16  ;;  %1590 = vst [vmem:[#allocation4 + $0x298] sm:$0xf] %v1526_v14  ;;  %1890 = vrot.lane.b32.xlu1 %v11266_v24, %s10251_s28  ;;  %v11677_v16 = vcombine.high %v11667_v52, %v11667_v52 }
 0x29f   : > { %1888 = vrot.lane.b32.xlu0 %v11263_v22, %s10251_s28 }
 0x2a0   : > { %v1485_v62 = vpop.permute.xlu1 %1484  ;;  %v1483_v63 = vpop.permute.xlu0 %1482 }
 0x2a1   : > { %v1527_v20 = vsel %vm1506_vm2, %v1481_v57, %v1483_v63  ;;  %v1528_v18 = vsel %vm1506_vm2, %v1483_v63, %v1485_v62 }
 0x2a2   : > { %1591 = vst [vmem:[#allocation4 + $0x2a0] sm:$0xf] %v1527_v20  ;;  %1592 = vst [vmem:[#allocation4 + $0x2a8] sm:$0xf] %v1528_v18  ;;  %1894 = vrot.lane.b32.xlu1 %v11278_v28, %s10251_s28 }
 0x2a3   : > { %1892 = vrot.lane.b32.xlu0 %v11275_v26, %s10251_s28 }
 0x2a4   : > { %v1489_v0 = vpop.permute.xlu1 %1488  ;;  %v1487_v1 = vpop.permute.xlu0 %1486 }
 0x2a5   : > { %v1529_v24 = vsel %vm1506_vm2, %v1485_v62, %v1487_v1  ;;  %v1530_v22 = vsel %vm1506_vm2, %v1487_v1, %v1489_v0  ;;  %v11680_v62 = vld [vmem:[%s10303_s24 + $0x10] sm:$0xff] }
 0x2a6   : > { %1593 = vst [vmem:[#allocation4 + $0x2b0] sm:$0xf] %v1529_v24  ;;  %1594 = vst [vmem:[#allocation4 + $0x2b8] sm:$0xf] %v1530_v22  ;;  %1898 = vrot.lane.b32.xlu1 %v11290_v31, %s10251_s28  ;;  %v11690_v1 = vcombine.high %v11680_v62, %v11680_v62  ;;  %v11693_v24 = vld [vmem:[%s10303_s24 + $0x18] sm:$0xff] }
 0x2a7   : > { %1896 = vrot.lane.b32.xlu0 %v11287_v30, %s10251_s28 }
 0x2a8   : > { %v1493_v12 = vpop.permute.xlu1 %1492  ;;  %v1491_v15 = vpop.permute.xlu0 %1490 }
 0x2a9   : > { %v1531_v28 = vsel %vm1506_vm2, %v1489_v0, %v1491_v15  ;;  %v1532_v26 = vsel %vm1506_vm2, %v1491_v15, %v1493_v12 }
 0x2aa   : > { %1595 = vst [vmem:[#allocation4 + $0x2c0] sm:$0xf] %v1531_v28  ;;  %1596 = vst [vmem:[#allocation4 + $0x2c8] sm:$0xf] %v1532_v26  ;;  %1902 = vrot.lane.b32.xlu1 %v11302_v35, %s10251_s28  ;;  %v11703_v26 = vcombine.high %v11693_v24, %v11693_v24 }
 0x2ab   : > { %1900 = vrot.lane.b32.xlu0 %v11299_v34, %s10251_s28 }
 0x2ac   : > { %v1497_v17 = vpop.permute.xlu1 %1496  ;;  %v1495_v19 = vpop.permute.xlu0 %1494 }
 0x2ad   : > { %v1533_v31 = vsel %vm1506_vm2, %v1493_v12, %v1495_v19  ;;  %v1534_v30 = vsel %vm1506_vm2, %v1495_v19, %v1497_v17 }
 0x2ae   : > { %1597 = vst [vmem:[#allocation4 + $0x2d0] sm:$0xf] %v1533_v31  ;;  %1598 = vst [vmem:[#allocation4 + $0x2d8] sm:$0xf] %v1534_v30  ;;  %1906 = vrot.lane.b32.xlu1 %v11314_v39, %s10251_s28 }
 0x2af   : > { %1904 = vrot.lane.b32.xlu0 %v11311_v38, %s10251_s28 }
 0x2b0   : > { %v1501_v21 = vpop.permute.xlu1 %1500  ;;  %v1499_v23 = vpop.permute.xlu0 %1498 }
 0x2b1   : > { %v1535_v35 = vsel %vm1506_vm2, %v1497_v17, %v1499_v23  ;;  %v1536_v34 = vsel %vm1506_vm2, %v1499_v23, %v1501_v21  ;;  %v11706_v17 = vld [vmem:[%s10303_s24 + $0x20] sm:$0xff] }
 0x2b2   : > { %1599 = vst [vmem:[#allocation4 + $0x2e0] sm:$0xf] %v1535_v35  ;;  %1600 = vst [vmem:[#allocation4 + $0x2e8] sm:$0xf] %v1536_v34  ;;  %1910 = vrot.lane.b32.xlu1 %v11326_v43, %s10251_s28  ;;  %v11716_v23 = vcombine.high %v11706_v17, %v11706_v17  ;;  %v11719_v35 = vld [vmem:[%s10303_s24 + $0x28] sm:$0xff] }
 0x2b3   : > { %1908 = vrot.lane.b32.xlu0 %v11323_v42, %s10251_s28 }
 0x2b4   : > { %v1505_v25 = vpop.permute.xlu1 %1504  ;;  %v1503_v27 = vpop.permute.xlu0 %1502 }
 0x2b5   : > { %v1537_v39 = vsel %vm1506_vm2, %v1501_v21, %v1503_v27  ;;  %v1538_v38 = vsel %vm1506_vm2, %v1503_v27, %v1505_v25 }
 0x2b6   : > { %1601 = vst [vmem:[#allocation4 + $0x2f0] sm:$0xf] %v1537_v39  ;;  %1602 = vst [vmem:[#allocation4 + $0x2f8] sm:$0xf] %v1538_v38  ;;  %1914 = vrot.lane.b32.xlu1 %v11338_v47, %s10251_s28  ;;  %v11729_v38 = vcombine.high %v11719_v35, %v11719_v35 }
 0x2b7   : > { %1912 = vrot.lane.b32.xlu0 %v11335_v46, %s10251_s28 }
 0x2b8   : > { %v1656_v29 = vpop.permute.xlu1 %1655 }
 0x2b9   : > { %v1654_v43 = vpop.permute.xlu0 %1653 }
 0x2ba   : > { %v1720_v32 = vsel %vm1719_vm3, %v1654_v43, %v1656_v29  ;;  %1918 = vrot.lane.b32.xlu1 %v11350_v51, %s10251_s28 }
 0x2bb   : > { %1784 = vst [vmem:[#allocation4 + $0x300] sm:$0xf] %v1720_v32  ;;  %1916 = vrot.lane.b32.xlu0 %v11347_v50, %s10251_s28 }
 0x2bc   : > { %v1660_v42 = vpop.permute.xlu1 %1659 }
 0x2bd   : > { %v1658_v33 = vpop.permute.xlu0 %1657 }
 0x2be   : > { %v1721_v47 = vsel %vm1719_vm3, %v1656_v29, %v1658_v33  ;;  %v1722_v46 = vsel %vm1719_vm3, %v1658_v33, %v1660_v42  ;;  %1922 = vrot.lane.b32.xlu1 %v11362_v55, %s10251_s28  ;;  %v11732_v29 = vld [vmem:[%s10303_s24 + $0x30] sm:$0xff] }
 0x2bf   : > { %1785 = vst [vmem:[#allocation4 + $0x308] sm:$0xf] %v1721_v47  ;;  %1786 = vst [vmem:[#allocation4 + $0x310] sm:$0xf] %v1722_v46  ;;  %1920 = vrot.lane.b32.xlu0 %v11359_v54, %s10251_s28  ;;  %v11742_v47 = vcombine.high %v11732_v29, %v11732_v29  ;;  %v11745_v46 = vld [vmem:[%s10303_s24 + $0x38] sm:$0xff] }
 0x2c0   : > { %v1664_v51 = vpop.permute.xlu1 %1663 }
 0x2c1   : > { %v1662_v36 = vpop.permute.xlu0 %1661 }
 0x2c2   : > { %v1723_v50 = vsel %vm1719_vm3, %v1660_v42, %v1662_v36  ;;  %v1724_v37 = vsel %vm1719_vm3, %v1662_v36, %v1664_v51  ;;  %1926 = vrot.lane.b32.xlu1 %v11374_v59, %s10251_s28  ;;  %v6562_v3 = vld [vmem:[#allocation4 + $0x300] sm:$0xff] }
 0x2c3   : > { %1787 = vst [vmem:[#allocation4 + $0x318] sm:$0xf] %v1723_v50  ;;  %1788 = vst [vmem:[#allocation4 + $0x320] sm:$0xf] %v1724_v37  ;;  %1924 = vrot.lane.b32.xlu0 %v11371_v58, %s10251_s28  ;;  %v6530_v59 = vld [vmem:[#allocation4 + $0x200] sm:$0xff] }
 0x2c4   : > { %v1668_v55 = vpop.permute.xlu1 %1667  ;;  %v9288_v49 = vpack.c.bf16 %v6562_v3, %v6530_v59 }
 0x2c5   : > { %v1666_v54 = vpop.permute.xlu0 %1665 }
 0x2c6   : > { %v1725_v44 = vsel %vm1719_vm3, %v1664_v51, %v1666_v54  ;;  %v1726_v45 = vsel %vm1719_vm3, %v1666_v54, %v1668_v55  ;;  %v6563_v2 = vld [vmem:[#allocation4 + $0x308] sm:$0xff]  ;;  %1930 = vrot.lane.b32.xlu1 %v1832_v40, %s10251_s28  ;;  %v6564_v53 = vld [vmem:[#allocation4 + $0x310] sm:$0xff]  ;;  %v11755_v40 = vcombine.high %v11745_v46, %v11745_v46 }
 0x2c7   : > { %1789 = vst [vmem:[#allocation4 + $0x328] sm:$0xf] %v1725_v44  ;;  %1790 = vst [vmem:[#allocation4 + $0x330] sm:$0xf] %v1726_v45  ;;  %1928 = vrot.lane.b32.xlu0 %v11382_v61, %s10251_s28  ;;  %v9286_v58 = vpack.c.bf16 %v6563_v2, %v6531_v48  ;;  %v6533_v61 = vld [vmem:[#allocation4 + $0x218] sm:$0xff]  ;;  %v9340_v14 = vpack.c.bf16 %v6564_v53, %v6532_v60  ;;  %v11771_v2 = vld [vmem:[%s10303_s24 + $0x48] sm:$0xff] }
 0x2c8   : > { %v1672_v6 = vpop.permute.xlu1 %1671  ;;  %v11784_v53 = vld [vmem:[%s10303_s24 + $0x50] sm:$0xff]  ;;  %v11797_v60 = vld [vmem:[%s10303_s24 + $0x58] sm:$0xff] }
 0x2c9   : > { %v1670_v4 = vpop.permute.xlu0 %1669  ;;  %9287 = vmatprep.subr.bf16.mxu0 %v9286_v58 }
 0x2ca   : > { %v1727_v56 = vsel %vm1719_vm3, %v1668_v55, %v1670_v4  ;;  %v1728_v8 = vsel %vm1719_vm3, %v1670_v4, %v1672_v6  ;;  %9289 = vmatpush1.bf16.msra.mxu0 %v9288_v49  ;;  %v6565_v7 = vld [vmem:[#allocation4 + $0x318] sm:$0xff]  ;;  %2081 = vrot.lane.b32.xlu1 %v11664_v5, %s10252_s29  ;;  %v11781_v4 = vcombine.high %v11771_v2, %v11771_v2 }
 0x2cb   : > { %1791 = vst [vmem:[#allocation4 + $0x338] sm:$0xf] %v1727_v56  ;;  %1792 = vst [vmem:[#allocation4 + $0x340] sm:$0xf] %v1728_v8  ;;  %2079 = vrot.lane.b32.xlu0 %v11655_v41, %s10252_s29  ;;  %v9338_v57 = vpack.c.bf16 %v6565_v7, %v6533_v61  ;;  %v11758_v55 = vld [vmem:[%s10303_s24 + $0x40] sm:$0xff] }
 0x2cc   : > { %v1676_v63 = vpop.permute.xlu1 %1675  ;;  %v11768_v48 = vcombine.high %v11758_v55, %v11758_v55 }
 0x2cd   : > { %v1674_v20 = vpop.permute.xlu0 %1673  ;;  %9339 = vmatprep.subr.bf16.mxu1 %v9338_v57  ;;  %v11794_v57 = vcombine.high %v11784_v53, %v11784_v53 }
 0x2ce   : > { %v1729_v18 = vsel %vm1719_vm3, %v1672_v6, %v1674_v20  ;;  %v1730_v0 = vsel %vm1719_vm3, %v1674_v20, %v1676_v63  ;;  %9341 = vmatpush1.bf16.msra.mxu1 %v9340_v14  ;;  %2085 = vrot.lane.b32.xlu1 %v11677_v16, %s10252_s29 }
 0x2cf   : > { %1793 = vst [vmem:[#allocation4 + $0x348] sm:$0xf] %v1729_v18  ;;  %1794 = vst [vmem:[#allocation4 + $0x350] sm:$0xf] %v1730_v0  ;;  %2083 = vrot.lane.b32.xlu0 %v11667_v52, %s10252_s29  ;;  %v11807_v0 = vcombine.high %v11797_v60, %v11797_v60 }
 0x2d0   : > { %v1680_v22 = vpop.permute.xlu1 %1679 }
 0x2d1   : > { %v1678_v12 = vpop.permute.xlu0 %1677 }
 0x2d2   : > { %v1731_v15 = vsel %vm1719_vm3, %v1676_v63, %v1678_v12  ;;  %v1732_v28 = vsel %vm1719_vm3, %v1678_v12, %v1680_v22  ;;  %2089 = vrot.lane.b32.xlu1 %v11690_v1, %s10252_s29 }
 0x2d3   : > { %1795 = vst [vmem:[#allocation4 + $0x358] sm:$0xf] %v1731_v15  ;;  %1796 = vst [vmem:[#allocation4 + $0x360] sm:$0xf] %v1732_v28  ;;  %2087 = vrot.lane.b32.xlu0 %v11680_v62, %s10252_s29 }
 0x2d4   : > { %v1684_v19 = vpop.permute.xlu1 %1683 }
 0x2d5   : > { %v1682_v31 = vpop.permute.xlu0 %1681 }
 0x2d6   : > { %v1733_v30 = vsel %vm1719_vm3, %v1680_v22, %v1682_v31  ;;  %v1734_v21 = vsel %vm1719_vm3, %v1682_v31, %v1684_v19  ;;  %2093 = vrot.lane.b32.xlu1 %v11703_v26, %s10252_s29  ;;  %v11810_v22 = vld [vmem:[%s10303_s24 + $0x60] sm:$0xff] }
 0x2d7   : > { %1797 = vst [vmem:[#allocation4 + $0x368] sm:$0xf] %v1733_v30  ;;  %1798 = vst [vmem:[#allocation4 + $0x370] sm:$0xf] %v1734_v21  ;;  %2091 = vrot.lane.b32.xlu0 %v11693_v24, %s10252_s29  ;;  %v11820_v31 = vcombine.high %v11810_v22, %v11810_v22  ;;  %v11823_v30 = vld [vmem:[%s10303_s24 + $0x68] sm:$0xff] }
 0x2d8   : > { %v1688_v34 = vpop.permute.xlu1 %1687 }
 0x2d9   : > { %v1686_v25 = vpop.permute.xlu0 %1685 }
 0x2da   : > { %v1735_v27 = vsel %vm1719_vm3, %v1684_v19, %v1686_v25  ;;  %v1736_v39 = vsel %vm1719_vm3, %v1686_v25, %v1688_v34  ;;  %2097 = vrot.lane.b32.xlu1 %v11716_v23, %s10252_s29 }
 0x2db   : > { %1799 = vst [vmem:[#allocation4 + $0x378] sm:$0xf] %v1735_v27  ;;  %1800 = vst [vmem:[#allocation4 + $0x380] sm:$0xf] %v1736_v39  ;;  %2095 = vrot.lane.b32.xlu0 %v11706_v17, %s10252_s29  ;;  %v11832_v27 = vcombine.high %v11823_v30, %v11823_v30  ;;  %v11835_v39 = vld [vmem:[%s10303_s24 + $0x70] sm:$0xff] }
 0x2dc   : > { %v1692_v43 = vpop.permute.xlu1 %1691 }
 0x2dd   : > { %v1690_v32 = vpop.permute.xlu0 %1689 }
 0x2de   : > { %v1737_v42 = vsel %vm1719_vm3, %v1688_v34, %v1690_v32  ;;  %v1738_v33 = vsel %vm1719_vm3, %v1690_v32, %v1692_v43  ;;  %2101 = vrot.lane.b32.xlu1 %v11729_v38, %s10252_s29 }
 0x2df   : > { %1801 = vst [vmem:[#allocation4 + $0x388] sm:$0xf] %v1737_v42  ;;  %1802 = vst [vmem:[#allocation4 + $0x390] sm:$0xf] %v1738_v33  ;;  %2099 = vrot.lane.b32.xlu0 %v11719_v35, %s10252_s29 }
 0x2e0   : > { %v1696_v51 = vpop.permute.xlu1 %1695 }
 0x2e1   : > { %v1694_v36 = vpop.permute.xlu0 %1693 }
 0x2e2   : > { %v1739_v50 = vsel %vm1719_vm3, %v1692_v43, %v1694_v36  ;;  %v1740_v37 = vsel %vm1719_vm3, %v1694_v36, %v1696_v51  ;;  %2105 = vrot.lane.b32.xlu1 %v11742_v47, %s10252_s29  ;;  %v11848_v36 = vld [vmem:[%s10303_s24 + $0x78] sm:$0xff] }
 0x2e3   : > { %1803 = vst [vmem:[#allocation4 + $0x398] sm:$0xf] %v1739_v50  ;;  %1804 = vst [vmem:[#allocation4 + $0x3a0] sm:$0xf] %v1740_v37  ;;  %2103 = vrot.lane.b32.xlu0 %v11732_v29, %s10252_s29 }
 0x2e4   : > { %v1700_v54 = vpop.permute.xlu1 %1699 }
 0x2e5   : > { %v1698_v3 = vpop.permute.xlu0 %1697 }
 0x2e6   : > { %v1741_v44 = vsel %vm1719_vm3, %v1696_v51, %v1698_v3  ;;  %v1742_v45 = vsel %vm1719_vm3, %v1698_v3, %v1700_v54  ;;  %2109 = vrot.lane.b32.xlu1 %v11755_v40, %s10252_s29  ;;  %v11845_v51 = vcombine.high %v11835_v39, %v11835_v39 }
 0x2e7   : > { %1805 = vst [vmem:[#allocation4 + $0x3a8] sm:$0xf] %v1741_v44  ;;  %1806 = vst [vmem:[#allocation4 + $0x3b0] sm:$0xf] %v1742_v45  ;;  %2107 = vrot.lane.b32.xlu0 %v11745_v46, %s10252_s29  ;;  %v11858_v44 = vcombine.high %v11848_v36, %v11848_v36 }
 0x2e8   : > { %v1704_v58 = vpop.permute.xlu1 %1703 }
 0x2e9   : > { %v1702_v59 = vpop.permute.xlu0 %1701 }
 0x2ea   : > { %v1743_v49 = vsel %vm1719_vm3, %v1700_v54, %v1702_v59  ;;  %v1744_v6 = vsel %vm1719_vm3, %v1702_v59, %v1704_v58  ;;  %2113 = vrot.lane.b32.xlu1 %v11768_v48, %s10252_s29 }
 0x2eb   : > { %1807 = vst [vmem:[#allocation4 + $0x3b8] sm:$0xf] %v1743_v49  ;;  %1808 = vst [vmem:[#allocation4 + $0x3c0] sm:$0xf] %v1744_v6  ;;  %2111 = vrot.lane.b32.xlu0 %v11758_v55, %s10252_s29  ;;  %v2045_v6 = vld [vmem:[%s10303_s24 + $0x80] sm:$0xf] }
 0x2ec   : > { %v1708_v56 = vpop.permute.xlu1 %1707 }
 0x2ed   : > { %v1706_v8 = vpop.permute.xlu0 %1705 }
 0x2ee   : > { %v1745_v61 = vsel %vm1719_vm3, %v1704_v58, %v1706_v8  ;;  %v1746_v7 = vsel %vm1719_vm3, %v1706_v8, %v1708_v56  ;;  %2117 = vrot.lane.b32.xlu1 %v11781_v4, %s10252_s29 }
 0x2ef   : > { %1809 = vst [vmem:[#allocation4 + $0x3c8] sm:$0xf] %v1745_v61  ;;  %1810 = vst [vmem:[#allocation4 + $0x3d0] sm:$0xf] %v1746_v7  ;;  %2115 = vrot.lane.b32.xlu0 %v11771_v2, %s10252_s29 }
 0x2f0   : > { %v1712_v14 = vpop.permute.xlu1 %1711 }
 0x2f1   : > { %v1710_v63 = vpop.permute.xlu0 %1709 }
 0x2f2   : > { %v1747_v20 = vsel %vm1719_vm3, %v1708_v56, %v1710_v63  ;;  %v1748_v18 = vsel %vm1719_vm3, %v1710_v63, %v1712_v14  ;;  %2121 = vrot.lane.b32.xlu1 %v11794_v57, %s10252_s29 }
 0x2f3   : > { %1811 = vst [vmem:[#allocation4 + $0x3d8] sm:$0xf] %v1747_v20  ;;  %1812 = vst [vmem:[#allocation4 + $0x3e0] sm:$0xf] %v1748_v18  ;;  %2119 = vrot.lane.b32.xlu0 %v11784_v53, %s10252_s29 }
 0x2f4   : > { %v1716_v12 = vpop.permute.xlu1 %1715 }
 0x2f5   : > { %v1714_v15 = vpop.permute.xlu0 %1713 }
 0x2f6   : > { %v1749_v28 = vsel %vm1719_vm3, %v1712_v14, %v1714_v15  ;;  %v1750_v19 = vsel %vm1719_vm3, %v1714_v15, %v1716_v12  ;;  %2125 = vrot.lane.b32.xlu1 %v11807_v0, %s10252_s29 }
 0x2f7   : > { %1813 = vst [vmem:[#allocation4 + $0x3e8] sm:$0xf] %v1749_v28  ;;  %1814 = vst [vmem:[#allocation4 + $0x3f0] sm:$0xf] %v1750_v19  ;;  %2123 = vrot.lane.b32.xlu0 %v11797_v60, %s10252_s29 }
 0x2f8   : > { %v1867_v21 = vpop.permute.xlu1 %1866 }
 0x2f9   : > { %v1718_v34 = vpop.permute.xlu0 %1717 }
 0x2fa   : > { %v1751_v25 = vsel %vm1719_vm3, %v1716_v12, %v1718_v34  ;;  %2129 = vrot.lane.b32.xlu1 %v11820_v31, %s10252_s29 }
 0x2fb   : > { %1815 = vst [vmem:[#allocation4 + $0x3f8] sm:$0xf] %v1751_v25  ;;  %2127 = vrot.lane.b32.xlu0 %v11810_v22, %s10252_s29 }
 0x2fc   : > { %v1871_v43 = vpop.permute.xlu1 %1870 }
 0x2fd   : > { %v1869_v32 = vpop.permute.xlu0 %1868 }
 0x2fe   : > { %v1933_v42 = vsel %vm1932_vm4, %v1867_v21, %v1869_v32  ;;  %v1934_v33 = vsel %vm1932_vm4, %v1869_v32, %v1871_v43  ;;  %2133 = vrot.lane.b32.xlu1 %v11832_v27, %s10252_s29 }
 0x2ff   : > { %1997 = vst [vmem:[#allocation4 + $0x400] sm:$0xf] %v1933_v42  ;;  %1998 = vst [vmem:[#allocation4 + $0x408] sm:$0xf] %v1934_v33  ;;  %2131 = vrot.lane.b32.xlu0 %v11823_v30, %s10252_s29 }
 0x300   : > { %v1875_v50 = vpop.permute.xlu1 %1874 }
 0x301   : > { %v1873_v37 = vpop.permute.xlu0 %1872 }
 0x302   : > { %v1935_v54 = vsel %vm1932_vm4, %v1871_v43, %v1873_v37  ;;  %v1936_v3 = vsel %vm1932_vm4, %v1873_v37, %v1875_v50  ;;  %2137 = vrot.lane.b32.xlu1 %v11845_v51, %s10252_s29 }
 0x303   : > { %1999 = vst [vmem:[#allocation4 + $0x410] sm:$0xf] %v1935_v54  ;;  %2000 = vst [vmem:[#allocation4 + $0x418] sm:$0xf] %v1936_v3  ;;  %2135 = vrot.lane.b32.xlu0 %v11835_v39, %s10252_s29 }
 0x304   : > { %v1879_v45 = vpop.permute.xlu1 %1878 }
 0x305   : > { %v1877_v58 = vpop.permute.xlu0 %1876 }
 0x306   : > { %v1937_v59 = vsel %vm1932_vm4, %v1875_v50, %v1877_v58  ;;  %v1938_v49 = vsel %vm1932_vm4, %v1877_v58, %v1879_v45  ;;  %2141 = vrot.lane.b32.xlu1 %v11858_v44, %s10252_s29 }
 0x307   : > { %2001 = vst [vmem:[#allocation4 + $0x420] sm:$0xf] %v1937_v59  ;;  %2002 = vst [vmem:[#allocation4 + $0x428] sm:$0xf] %v1938_v49  ;;  %2139 = vrot.lane.b32.xlu0 %v11848_v36, %s10252_s29 }
 0x308   : > { %v1883_v56 = vpop.permute.xlu1 %1882 }
 0x309   : > { %v1881_v8 = vpop.permute.xlu0 %1880 }
 0x30a   : > { %v1939_v61 = vsel %vm1932_vm4, %v1879_v45, %v1881_v8  ;;  %v1940_v7 = vsel %vm1932_vm4, %v1881_v8, %v1883_v56  ;;  %2292 = vrot.lane.b32.xlu1 %v11655_v41, %s10253_s30 }
 0x30b   : > { %2003 = vst [vmem:[#allocation4 + $0x430] sm:$0xf] %v1939_v61  ;;  %2004 = vst [vmem:[#allocation4 + $0x438] sm:$0xf] %v1940_v7  ;;  %2143 = vrot.lane.b32.xlu0 %v2045_v6, %s10252_s29 }
 0x30c   : > { %v1887_v14 = vpop.permute.xlu1 %1886 }
 0x30d   : > { %v1885_v63 = vpop.permute.xlu0 %1884 }
 0x30e   : > { %v1941_v20 = vsel %vm1932_vm4, %v1883_v56, %v1885_v63  ;;  %v1942_v18 = vsel %vm1932_vm4, %v1885_v63, %v1887_v14  ;;  %2296 = vrot.lane.b32.xlu1 %v11667_v52, %s10253_s30 }
 0x30f   : > { %2005 = vst [vmem:[#allocation4 + $0x440] sm:$0xf] %v1941_v20  ;;  %2006 = vst [vmem:[#allocation4 + $0x448] sm:$0xf] %v1942_v18  ;;  %2294 = vrot.lane.b32.xlu0 %v11664_v5, %s10253_s30 }
 0x310   : > { %v1891_v12 = vpop.permute.xlu1 %1890 }
 0x311   : > { %v1889_v15 = vpop.permute.xlu0 %1888 }
 0x312   : > { %v1943_v28 = vsel %vm1932_vm4, %v1887_v14, %v1889_v15  ;;  %v1944_v19 = vsel %vm1932_vm4, %v1889_v15, %v1891_v12  ;;  %2300 = vrot.lane.b32.xlu1 %v11680_v62, %s10253_s30 }
 0x313   : > { %2007 = vst [vmem:[#allocation4 + $0x450] sm:$0xf] %v1943_v28  ;;  %2008 = vst [vmem:[#allocation4 + $0x458] sm:$0xf] %v1944_v19  ;;  %2298 = vrot.lane.b32.xlu0 %v11677_v16, %s10253_s30 }
 0x314   : > { %v1895_v21 = vpop.permute.xlu1 %1894 }
 0x315   : > { %v1893_v34 = vpop.permute.xlu0 %1892 }
 0x316   : > { %v1945_v25 = vsel %vm1932_vm4, %v1891_v12, %v1893_v34  ;;  %v1946_v43 = vsel %vm1932_vm4, %v1893_v34, %v1895_v21  ;;  %2304 = vrot.lane.b32.xlu1 %v11693_v24, %s10253_s30 }
 0x317   : > { %2009 = vst [vmem:[#allocation4 + $0x460] sm:$0xf] %v1945_v25  ;;  %2010 = vst [vmem:[#allocation4 + $0x468] sm:$0xf] %v1946_v43  ;;  %2302 = vrot.lane.b32.xlu0 %v11690_v1, %s10253_s30 }
 0x318   : > { %v1899_v32 = vpop.permute.xlu1 %1898 }
 0x319   : > { %v1897_v42 = vpop.permute.xlu0 %1896 }
 0x31a   : > { %v1947_v33 = vsel %vm1932_vm4, %v1895_v21, %v1897_v42  ;;  %v1948_v50 = vsel %vm1932_vm4, %v1897_v42, %v1899_v32  ;;  %2308 = vrot.lane.b32.xlu1 %v11706_v17, %s10253_s30 }
 0x31b   : > { %2011 = vst [vmem:[#allocation4 + $0x470] sm:$0xf] %v1947_v33  ;;  %2012 = vst [vmem:[#allocation4 + $0x478] sm:$0xf] %v1948_v50  ;;  %2306 = vrot.lane.b32.xlu0 %v11703_v26, %s10253_s30 }
 0x31c   : > { %v1903_v37 = vpop.permute.xlu1 %1902 }
 0x31d   : > { %v1901_v54 = vpop.permute.xlu0 %1900 }
 0x31e   : > { %v1949_v3 = vsel %vm1932_vm4, %v1899_v32, %v1901_v54  ;;  %v1950_v45 = vsel %vm1932_vm4, %v1901_v54, %v1903_v37  ;;  %2312 = vrot.lane.b32.xlu1 %v11719_v35, %s10253_s30 }
 0x31f   : > { %2013 = vst [vmem:[#allocation4 + $0x480] sm:$0xf] %v1949_v3  ;;  %2014 = vst [vmem:[#allocation4 + $0x488] sm:$0xf] %v1950_v45  ;;  %2310 = vrot.lane.b32.xlu0 %v11716_v23, %s10253_s30 }
 0x320   : > { %v1907_v58 = vpop.permute.xlu1 %1906 }
 0x321   : > { %v1905_v59 = vpop.permute.xlu0 %1904 }
 0x322   : > { %v1951_v49 = vsel %vm1932_vm4, %v1903_v37, %v1905_v59  ;;  %v1952_v6 = vsel %vm1932_vm4, %v1905_v59, %v1907_v58  ;;  %2316 = vrot.lane.b32.xlu1 %v11732_v29, %s10253_s30 }
 0x323   : > { %2015 = vst [vmem:[#allocation4 + $0x490] sm:$0xf] %v1951_v49  ;;  %2016 = vst [vmem:[#allocation4 + $0x498] sm:$0xf] %v1952_v6  ;;  %2314 = vrot.lane.b32.xlu0 %v11729_v38, %s10253_s30 }
 0x324   : > { %v1911_v56 = vpop.permute.xlu1 %1910 }
 0x325   : > { %v1909_v8 = vpop.permute.xlu0 %1908 }
 0x326   : > { %v1953_v61 = vsel %vm1932_vm4, %v1907_v58, %v1909_v8  ;;  %v1954_v7 = vsel %vm1932_vm4, %v1909_v8, %v1911_v56  ;;  %2320 = vrot.lane.b32.xlu1 %v11745_v46, %s10253_s30 }
 0x327   : > { %2017 = vst [vmem:[#allocation4 + $0x4a0] sm:$0xf] %v1953_v61  ;;  %2018 = vst [vmem:[#allocation4 + $0x4a8] sm:$0xf] %v1954_v7  ;;  %2318 = vrot.lane.b32.xlu0 %v11742_v47, %s10253_s30 }
 0x328   : > { %v1915_v14 = vpop.permute.xlu1 %1914 }
 0x329   : > { %v1913_v63 = vpop.permute.xlu0 %1912 }
 0x32a   : > { %v1955_v20 = vsel %vm1932_vm4, %v1911_v56, %v1913_v63  ;;  %v1956_v18 = vsel %vm1932_vm4, %v1913_v63, %v1915_v14  ;;  %2324 = vrot.lane.b32.xlu1 %v11758_v55, %s10253_s30 }
 0x32b   : > { %2019 = vst [vmem:[#allocation4 + $0x4b0] sm:$0xf] %v1955_v20  ;;  %2020 = vst [vmem:[#allocation4 + $0x4b8] sm:$0xf] %v1956_v18  ;;  %2322 = vrot.lane.b32.xlu0 %v11755_v40, %s10253_s30  ;;  %v2258_v18 = vld [vmem:[%s10303_s24 + $0x80] sm:$0xf] }
 0x32c   : > { %v1919_v12 = vpop.permute.xlu1 %1918 }
 0x32d   : > { %v1917_v15 = vpop.permute.xlu0 %1916 }
 0x32e   : > { %v1957_v28 = vsel %vm1932_vm4, %v1915_v14, %v1917_v15  ;;  %v1958_v19 = vsel %vm1932_vm4, %v1917_v15, %v1919_v12  ;;  %2328 = vrot.lane.b32.xlu1 %v11771_v2, %s10253_s30 }
 0x32f   : > { %2021 = vst [vmem:[#allocation4 + $0x4c0] sm:$0xf] %v1957_v28  ;;  %2022 = vst [vmem:[#allocation4 + $0x4c8] sm:$0xf] %v1958_v19  ;;  %2326 = vrot.lane.b32.xlu0 %v11768_v48, %s10253_s30 }
 0x330   : > { %v1923_v21 = vpop.permute.xlu1 %1922 }
 0x331   : > { %v1921_v34 = vpop.permute.xlu0 %1920 }
 0x332   : > { %v1959_v25 = vsel %vm1932_vm4, %v1919_v12, %v1921_v34  ;;  %v1960_v43 = vsel %vm1932_vm4, %v1921_v34, %v1923_v21  ;;  %2332 = vrot.lane.b32.xlu1 %v11784_v53, %s10253_s30  ;;  %v6595_v34 = vld [vmem:[#allocation4 + $0x408] sm:$0xff] }
 0x333   : > { %2023 = vst [vmem:[#allocation4 + $0x4d0] sm:$0xf] %v1959_v25  ;;  %2024 = vst [vmem:[#allocation4 + $0x4d8] sm:$0xf] %v1960_v43  ;;  %2330 = vrot.lane.b32.xlu0 %v11781_v4, %s10253_s30 }
 0x334   : > { %v1927_v32 = vpop.permute.xlu1 %1926 }
 0x335   : > { %v1925_v42 = vpop.permute.xlu0 %1924 }
 0x336   : > { %v1961_v33 = vsel %vm1932_vm4, %v1923_v21, %v1925_v42  ;;  %v1962_v50 = vsel %vm1932_vm4, %v1925_v42, %v1927_v32  ;;  %2336 = vrot.lane.b32.xlu1 %v11797_v60, %s10253_s30 }
 0x337   : > { %2025 = vst [vmem:[#allocation4 + $0x4e0] sm:$0xf] %v1961_v33  ;;  %2026 = vst [vmem:[#allocation4 + $0x4e8] sm:$0xf] %v1962_v50  ;;  %2334 = vrot.lane.b32.xlu0 %v11794_v57, %s10253_s30 }
 0x338   : > { %v1931_v37 = vpop.permute.xlu1 %1930 }
 0x339   : > { %v1929_v54 = vpop.permute.xlu0 %1928 }
 0x33a   : > { %v1963_v3 = vsel %vm1932_vm4, %v1927_v32, %v1929_v54  ;;  %v1964_v45 = vsel %vm1932_vm4, %v1929_v54, %v1931_v37  ;;  %2340 = vrot.lane.b32.xlu1 %v11810_v22, %s10253_s30  ;;  %v6594_v32 = vld [vmem:[#allocation4 + $0x400] sm:$0xff] }
 0x33b   : > { %2027 = vst [vmem:[#allocation4 + $0x4f0] sm:$0xf] %v1963_v3  ;;  %2028 = vst [vmem:[#allocation4 + $0x4f8] sm:$0xf] %v1964_v45  ;;  %2338 = vrot.lane.b32.xlu0 %v11807_v0, %s10253_s30  ;;  %v6597_v45 = vld [vmem:[#allocation4 + $0x418] sm:$0xff] }
 0x33c   : > { %v2082_v58 = vpop.permute.xlu1 %2081 }
 0x33d   : > { %v2080_v59 = vpop.permute.xlu0 %2079 }
 0x33e   : > { %v2146_v49 = vsel %vm2145_vm5, %v2080_v59, %v2082_v58  ;;  %2344 = vrot.lane.b32.xlu1 %v11823_v30, %s10253_s30 }
 0x33f   : > { %2210 = vst [vmem:[#allocation4 + $0x500] sm:$0xf] %v2146_v49  ;;  %2342 = vrot.lane.b32.xlu0 %v11820_v31, %s10253_s30  ;;  %v6596_v49 = vld [vmem:[#allocation4 + $0x410] sm:$0xff] }
 0x340   : > { %v2086_v6 = vpop.permute.xlu1 %2085 }
 0x341   : > { %v2084_v56 = vpop.permute.xlu0 %2083 }
 0x342   : > { %v2147_v8 = vsel %vm2145_vm5, %v2082_v58, %v2084_v56  ;;  %v2148_v61 = vsel %vm2145_vm5, %v2084_v56, %v2086_v6  ;;  %2348 = vrot.lane.b32.xlu1 %v11835_v39, %s10253_s30  ;;  %v11974_v56 = vld [vmem:[%s10303_s24 + $0x8] sm:$0xff] }
 0x343   : > { %2211 = vst [vmem:[#allocation4 + $0x508] sm:$0xf] %v2147_v8  ;;  %2212 = vst [vmem:[#allocation4 + $0x510] sm:$0xf] %v2148_v61  ;;  %2346 = vrot.lane.b32.xlu0 %v11832_v27, %s10253_s30 }
 0x344   : > { %v2090_v7 = vpop.permute.xlu1 %2089  ;;  %2945 = vst [vmem:[#allocation4 + $0x900] sm:$0xf] %v11974_v56 }
 0x345   : > { %v2088_v14 = vpop.permute.xlu0 %2087 }
 0x346   : > { %v2149_v63 = vsel %vm2145_vm5, %v2086_v6, %v2088_v14  ;;  %v2150_v20 = vsel %vm2145_vm5, %v2088_v14, %v2090_v7  ;;  %2352 = vrot.lane.b32.xlu1 %v11848_v36, %s10253_s30  ;;  %v6626_v28 = vld [vmem:[#allocation4 + $0x500] sm:$0xff] }
 0x347   : > { %2213 = vst [vmem:[#allocation4 + $0x518] sm:$0xf] %v2149_v63  ;;  %2214 = vst [vmem:[#allocation4 + $0x520] sm:$0xf] %v2150_v20  ;;  %2350 = vrot.lane.b32.xlu0 %v11845_v51, %s10253_s30  ;;  %v9292_v42 = vpack.c.bf16 %v6626_v28, %v6594_v32 }
 0x348   : > { %v2094_v12 = vpop.permute.xlu1 %2093 }
 0x349   : > { %v2092_v15 = vpop.permute.xlu0 %2091 }
 0x34a   : > { %v2151_v19 = vsel %vm2145_vm5, %v2090_v7, %v2092_v15  ;;  %v2152_v21 = vsel %vm2145_vm5, %v2092_v15, %v2094_v12  ;;  %v6627_v25 = vld [vmem:[#allocation4 + $0x508] sm:$0xff]  ;;  %2356 = vrot.lane.b32.xlu1 %v2258_v18, %s10253_s30  ;;  %v6628_v37 = vld [vmem:[#allocation4 + $0x510] sm:$0xff]  ;;  %v11978_v7 = vcombine.high %v11974_v56, %v11974_v56 }
 0x34b   : > { %2215 = vst [vmem:[#allocation4 + $0x528] sm:$0xf] %v2151_v19  ;;  %2216 = vst [vmem:[#allocation4 + $0x530] sm:$0xf] %v2152_v21  ;;  %2354 = vrot.lane.b32.xlu0 %v11858_v44, %s10253_s30  ;;  %v9290_v43 = vpack.c.bf16 %v6627_v25, %v6595_v34  ;;  %v9344_v6 = vpack.c.bf16 %v6628_v37, %v6596_v49 }
 0x34c   : > { %v2098_v33 = vpop.permute.xlu1 %2097  ;;  %2946 = vst [vmem:[#allocation4 + $0x908] sm:$0xf] %v11978_v7 }
 0x34d   : > { %v2096_v50 = vpop.permute.xlu0 %2095  ;;  %9291 = vmatprep.subr.bf16.mxu0 %v9290_v43 }
 0x34e   : > { %v2153_v54 = vsel %vm2145_vm5, %v2094_v12, %v2096_v50  ;;  %v2154_v3 = vsel %vm2145_vm5, %v2096_v50, %v2098_v33  ;;  %9293 = vmatpush1.bf16.msra.mxu0 %v9292_v42  ;;  %v6629_v58 = vld [vmem:[#allocation4 + $0x518] sm:$0xff]  ;;  %2507 = vrot.lane.b32.xlu1 %v11664_v5, %s10254_s6 }
 0x34f   : > { %2217 = vst [vmem:[#allocation4 + $0x538] sm:$0xf] %v2153_v54  ;;  %2218 = vst [vmem:[#allocation4 + $0x540] sm:$0xf] %v2154_v3  ;;  %2505 = vrot.lane.b32.xlu0 %v11655_v41, %s10254_s6  ;;  %v9342_v59 = vpack.c.bf16 %v6629_v58, %v6597_v45  ;;  %v11989_v41 = vld [vmem:[%s10303_s24 + $0x10] sm:$0xff] }
 0x350   : > { %v2102_v8 = vpop.permute.xlu1 %2101  ;;  %v11993_v18 = vcombine.high %v11989_v41, %v11989_v41  ;;  %2947 = vst [vmem:[#allocation4 + $0x910] sm:$0xf] %v11989_v41 }
 0x351   : > { %v2100_v61 = vpop.permute.xlu0 %2099  ;;  %9343 = vmatprep.subr.bf16.mxu1 %v9342_v59 }
 0x352   : > { %v2155_v5 = vsel %vm2145_vm5, %v2098_v33, %v2100_v61  ;;  %v2156_v14 = vsel %vm2145_vm5, %v2100_v61, %v2102_v8  ;;  %9345 = vmatpush1.bf16.msra.mxu1 %v9344_v6  ;;  %2511 = vrot.lane.b32.xlu1 %v11677_v16, %s10254_s6  ;;  %2948 = vst [vmem:[#allocation4 + $0x918] sm:$0xf] %v11993_v18 }
 0x353   : > { %2219 = vst [vmem:[#allocation4 + $0x548] sm:$0xf] %v2155_v5  ;;  %2220 = vst [vmem:[#allocation4 + $0x550] sm:$0xf] %v2156_v14  ;;  %2509 = vrot.lane.b32.xlu0 %v11667_v52, %s10254_s6 }
 0x354   : > { %v2106_v63 = vpop.permute.xlu1 %2105 }
 0x355   : > { %v2104_v20 = vpop.permute.xlu0 %2103 }
 0x356   : > { %v2157_v12 = vsel %vm2145_vm5, %v2102_v8, %v2104_v20  ;;  %v2158_v15 = vsel %vm2145_vm5, %v2104_v20, %v2106_v63  ;;  %2515 = vrot.lane.b32.xlu1 %v11690_v1, %s10254_s6 }
 0x357   : > { %2221 = vst [vmem:[#allocation4 + $0x558] sm:$0xf] %v2157_v12  ;;  %2222 = vst [vmem:[#allocation4 + $0x560] sm:$0xf] %v2158_v15  ;;  %2513 = vrot.lane.b32.xlu0 %v11680_v62, %s10254_s6 }
 0x358   : > { %v2110_v28 = vpop.permute.xlu1 %2109 }
 0x359   : > { %v2108_v19 = vpop.permute.xlu0 %2107 }
 0x35a   : > { %v2159_v21 = vsel %vm2145_vm5, %v2106_v63, %v2108_v19  ;;  %v2160_v34 = vsel %vm2145_vm5, %v2108_v19, %v2110_v28  ;;  %2519 = vrot.lane.b32.xlu1 %v11703_v26, %s10254_s6 }
 0x35b   : > { %2223 = vst [vmem:[#allocation4 + $0x568] sm:$0xf] %v2159_v21  ;;  %2224 = vst [vmem:[#allocation4 + $0x570] sm:$0xf] %v2160_v34  ;;  %2517 = vrot.lane.b32.xlu0 %v11693_v24, %s10254_s6 }
 0x35c   : > { %v2114_v25 = vpop.permute.xlu1 %2113 }
 0x35d   : > { %v2112_v43 = vpop.permute.xlu0 %2111 }
 0x35e   : > { %v2161_v32 = vsel %vm2145_vm5, %v2110_v28, %v2112_v43  ;;  %v2162_v42 = vsel %vm2145_vm5, %v2112_v43, %v2114_v25  ;;  %2523 = vrot.lane.b32.xlu1 %v11716_v23, %s10254_s6 }
 0x35f   : > { %2225 = vst [vmem:[#allocation4 + $0x578] sm:$0xf] %v2161_v32  ;;  %2226 = vst [vmem:[#allocation4 + $0x580] sm:$0xf] %v2162_v42  ;;  %2521 = vrot.lane.b32.xlu0 %v11706_v17, %s10254_s6 }
 0x360   : > { %v2118_v33 = vpop.permute.xlu1 %2117 }
 0x361   : > { %v2116_v50 = vpop.permute.xlu0 %2115 }
 0x362   : > { %v2163_v37 = vsel %vm2145_vm5, %v2114_v25, %v2116_v50  ;;  %v2164_v54 = vsel %vm2145_vm5, %v2116_v50, %v2118_v33  ;;  %2527 = vrot.lane.b32.xlu1 %v11729_v38, %s10254_s6 }
 0x363   : > { %2227 = vst [vmem:[#allocation4 + $0x588] sm:$0xf] %v2163_v37  ;;  %2228 = vst [vmem:[#allocation4 + $0x590] sm:$0xf] %v2164_v54  ;;  %2525 = vrot.lane.b32.xlu0 %v11719_v35, %s10254_s6 }
 0x364   : > { %v2122_v3 = vpop.permute.xlu1 %2121 }
 0x365   : > { %v2120_v45 = vpop.permute.xlu0 %2119 }
 0x366   : > { %v2165_v58 = vsel %vm2145_vm5, %v2118_v33, %v2120_v45  ;;  %v2166_v59 = vsel %vm2145_vm5, %v2120_v45, %v2122_v3  ;;  %2531 = vrot.lane.b32.xlu1 %v11742_v47, %s10254_s6 }
 0x367   : > { %2229 = vst [vmem:[#allocation4 + $0x598] sm:$0xf] %v2165_v58  ;;  %2230 = vst [vmem:[#allocation4 + $0x5a0] sm:$0xf] %v2166_v59  ;;  %2529 = vrot.lane.b32.xlu0 %v11732_v29, %s10254_s6 }
 0x368   : > { %v2126_v49 = vpop.permute.xlu1 %2125 }
 0x369   : > { %v2124_v6 = vpop.permute.xlu0 %2123 }
 0x36a   : > { %v2167_v8 = vsel %vm2145_vm5, %v2122_v3, %v2124_v6  ;;  %v2168_v61 = vsel %vm2145_vm5, %v2124_v6, %v2126_v49  ;;  %2535 = vrot.lane.b32.xlu1 %v11755_v40, %s10254_s6 }
 0x36b   : > { %2231 = vst [vmem:[#allocation4 + $0x5a8] sm:$0xf] %v2167_v8  ;;  %2232 = vst [vmem:[#allocation4 + $0x5b0] sm:$0xf] %v2168_v61  ;;  %2533 = vrot.lane.b32.xlu0 %v11745_v46, %s10254_s6 }
 0x36c   : > { %v2130_v5 = vpop.permute.xlu1 %2129 }
 0x36d   : > { %v2128_v14 = vpop.permute.xlu0 %2127 }
 0x36e   : > { %v2169_v63 = vsel %vm2145_vm5, %v2126_v49, %v2128_v14  ;;  %v2170_v20 = vsel %vm2145_vm5, %v2128_v14, %v2130_v5  ;;  %2539 = vrot.lane.b32.xlu1 %v11768_v48, %s10254_s6 }
 0x36f   : > { %2233 = vst [vmem:[#allocation4 + $0x5b8] sm:$0xf] %v2169_v63  ;;  %2234 = vst [vmem:[#allocation4 + $0x5c0] sm:$0xf] %v2170_v20  ;;  %2537 = vrot.lane.b32.xlu0 %v11758_v55, %s10254_s6 }
 0x370   : > { %v2134_v12 = vpop.permute.xlu1 %2133 }
 0x371   : > { %v2132_v15 = vpop.permute.xlu0 %2131 }
 0x372   : > { %v2171_v28 = vsel %vm2145_vm5, %v2130_v5, %v2132_v15  ;;  %v2172_v19 = vsel %vm2145_vm5, %v2132_v15, %v2134_v12  ;;  %2543 = vrot.lane.b32.xlu1 %v11781_v4, %s10254_s6  ;;  %v2668_v15 = vld [vmem:[%s10303_s24] sm:$0xff] }
 0x373   : > { %2235 = vst [vmem:[#allocation4 + $0x5c8] sm:$0xf] %v2171_v28  ;;  %2236 = vst [vmem:[#allocation4 + $0x5d0] sm:$0xf] %v2172_v19  ;;  %2541 = vrot.lane.b32.xlu0 %v11771_v2, %s10254_s6  ;;  %v2471_v28 = vld [vmem:[%s10303_s24 + $0x80] sm:$0xf] }
 0x374   : > { %v2138_v21 = vpop.permute.xlu1 %2137 }
 0x375   : > { %v2136_v34 = vpop.permute.xlu0 %2135 }
 0x376   : > { %v2173_v25 = vsel %vm2145_vm5, %v2134_v12, %v2136_v34  ;;  %v2174_v43 = vsel %vm2145_vm5, %v2136_v34, %v2138_v21  ;;  %2547 = vrot.lane.b32.xlu1 %v11794_v57, %s10254_s6 }
 0x377   : > { %2237 = vst [vmem:[#allocation4 + $0x5d8] sm:$0xf] %v2173_v25  ;;  %2238 = vst [vmem:[#allocation4 + $0x5e0] sm:$0xf] %v2174_v43  ;;  %2545 = vrot.lane.b32.xlu0 %v11784_v53, %s10254_s6  ;;  %v2702_v43 = vcombine.high %v2668_v15, %v2668_v15 }
 0x378   : > { %v2142_v32 = vpop.permute.xlu1 %2141 }
 0x379   : > { %v2140_v42 = vpop.permute.xlu0 %2139 }
 0x37a   : > { %v2175_v33 = vsel %vm2145_vm5, %v2138_v21, %v2140_v42  ;;  %v2176_v50 = vsel %vm2145_vm5, %v2140_v42, %v2142_v32  ;;  %2551 = vrot.lane.b32.xlu1 %v11807_v0, %s10254_s6 }
 0x37b   : > { %2239 = vst [vmem:[#allocation4 + $0x5e8] sm:$0xf] %v2175_v33  ;;  %2240 = vst [vmem:[#allocation4 + $0x5f0] sm:$0xf] %v2176_v50  ;;  %2549 = vrot.lane.b32.xlu0 %v11797_v60, %s10254_s6 }
 0x37c   : > { %v2293_v37 = vpop.permute.xlu1 %2292 }
 0x37d   : > { %v2144_v54 = vpop.permute.xlu0 %2143 }
 0x37e   : > { %v2177_v3 = vsel %vm2145_vm5, %v2142_v32, %v2144_v54  ;;  %2555 = vrot.lane.b32.xlu1 %v11820_v31, %s10254_s6  ;;  %v2883_v32 = vld [vmem:[%s10303_s24 + $0x18] sm:$0xff] }
 0x37f   : > { %2241 = vst [vmem:[#allocation4 + $0x5f8] sm:$0xf] %v2177_v3  ;;  %2553 = vrot.lane.b32.xlu0 %v11810_v22, %s10254_s6  ;;  %v2915_v42 = vcombine.high %v2883_v32, %v2883_v32  ;;  %2949 = vst [vmem:[#allocation4 + $0x920] sm:$0xf] %v2883_v32 }
 0x380   : > { %v2297_v45 = vpop.permute.xlu1 %2296 }
 0x381   : > { %v2295_v58 = vpop.permute.xlu0 %2294  ;;  %2950 = vst [vmem:[#allocation4 + $0x928] sm:$0xf] %v2915_v42 }
 0x382   : > { %v2359_v59 = vsel %vm2358_vm6, %v2293_v37, %v2295_v58  ;;  %v2360_v49 = vsel %vm2358_vm6, %v2295_v58, %v2297_v45  ;;  %2559 = vrot.lane.b32.xlu1 %v11832_v27, %s10254_s6 }
 0x383   : > { %2423 = vst [vmem:[#allocation4 + $0x600] sm:$0xf] %v2359_v59  ;;  %2424 = vst [vmem:[#allocation4 + $0x608] sm:$0xf] %v2360_v49  ;;  %2557 = vrot.lane.b32.xlu0 %v11823_v30, %s10254_s6 }
 0x384   : > { %v2301_v6 = vpop.permute.xlu1 %2300 }
 0x385   : > { %v2299_v8 = vpop.permute.xlu0 %2298 }
 0x386   : > { %v2361_v61 = vsel %vm2358_vm6, %v2297_v45, %v2299_v8  ;;  %v2362_v5 = vsel %vm2358_vm6, %v2299_v8, %v2301_v6  ;;  %2563 = vrot.lane.b32.xlu1 %v11845_v51, %s10254_s6 }
 0x387   : > { %2425 = vst [vmem:[#allocation4 + $0x610] sm:$0xf] %v2361_v61  ;;  %2426 = vst [vmem:[#allocation4 + $0x618] sm:$0xf] %v2362_v5  ;;  %2561 = vrot.lane.b32.xlu0 %v11835_v39, %s10254_s6 }
 0x388   : > { %v2305_v14 = vpop.permute.xlu1 %2304 }
 0x389   : > { %v2303_v63 = vpop.permute.xlu0 %2302 }
 0x38a   : > { %v2363_v20 = vsel %vm2358_vm6, %v2301_v6, %v2303_v63  ;;  %v2364_v12 = vsel %vm2358_vm6, %v2303_v63, %v2305_v14  ;;  %2567 = vrot.lane.b32.xlu1 %v11858_v44, %s10254_s6 }
 0x38b   : > { %2427 = vst [vmem:[#allocation4 + $0x620] sm:$0xf] %v2363_v20  ;;  %2428 = vst [vmem:[#allocation4 + $0x628] sm:$0xf] %v2364_v12  ;;  %2565 = vrot.lane.b32.xlu0 %v11848_v36, %s10254_s6 }
 0x38c   : > { %v2309_v19 = vpop.permute.xlu1 %2308 }
 0x38d   : > { %v2307_v21 = vpop.permute.xlu0 %2306 }
 0x38e   : > { %v2365_v34 = vsel %vm2358_vm6, %v2305_v14, %v2307_v21  ;;  %v2366_v25 = vsel %vm2358_vm6, %v2307_v21, %v2309_v19  ;;  %2718 = vrot.lane.b32.xlu1 %v2668_v15, %s10255_s7 }
 0x38f   : > { %2429 = vst [vmem:[#allocation4 + $0x630] sm:$0xf] %v2365_v34  ;;  %2430 = vst [vmem:[#allocation4 + $0x638] sm:$0xf] %v2366_v25  ;;  %2569 = vrot.lane.b32.xlu0 %v2471_v28, %s10254_s6 }
 0x390   : > { %v2313_v33 = vpop.permute.xlu1 %2312 }
 0x391   : > { %v2311_v50 = vpop.permute.xlu0 %2310 }
 0x392   : > { %v2367_v37 = vsel %vm2358_vm6, %v2309_v19, %v2311_v50  ;;  %v2368_v54 = vsel %vm2358_vm6, %v2311_v50, %v2313_v33  ;;  %2722 = vrot.lane.b32.xlu1 %v11667_v52, %s10255_s7 }
 0x393   : > { %2431 = vst [vmem:[#allocation4 + $0x640] sm:$0xf] %v2367_v37  ;;  %2432 = vst [vmem:[#allocation4 + $0x648] sm:$0xf] %v2368_v54  ;;  %2720 = vrot.lane.b32.xlu0 %v2702_v43, %s10255_s7 }
 0x394   : > { %v2317_v3 = vpop.permute.xlu1 %2316 }
 0x395   : > { %v2315_v45 = vpop.permute.xlu0 %2314 }
 0x396   : > { %v2369_v58 = vsel %vm2358_vm6, %v2313_v33, %v2315_v45  ;;  %v2370_v59 = vsel %vm2358_vm6, %v2315_v45, %v2317_v3  ;;  %2726 = vrot.lane.b32.xlu1 %v11680_v62, %s10255_s7 }
 0x397   : > { %2433 = vst [vmem:[#allocation4 + $0x650] sm:$0xf] %v2369_v58  ;;  %2434 = vst [vmem:[#allocation4 + $0x658] sm:$0xf] %v2370_v59  ;;  %2724 = vrot.lane.b32.xlu0 %v11677_v16, %s10255_s7 }
 0x398   : > { %v2321_v49 = vpop.permute.xlu1 %2320 }
 0x399   : > { %v2319_v6 = vpop.permute.xlu0 %2318 }
 0x39a   : > { %v2371_v52 = vsel %vm2358_vm6, %v2317_v3, %v2319_v6  ;;  %v2372_v8 = vsel %vm2358_vm6, %v2319_v6, %v2321_v49  ;;  %2730 = vrot.lane.b32.xlu1 %v11693_v24, %s10255_s7  ;;  %v2896_v3 = vld [vmem:[%s10303_s24 + $0x80] sm:$0xff] }
 0x39b   : > { %2435 = vst [vmem:[#allocation4 + $0x660] sm:$0xf] %v2371_v52  ;;  %2436 = vst [vmem:[#allocation4 + $0x668] sm:$0xf] %v2372_v8  ;;  %2728 = vrot.lane.b32.xlu0 %v11690_v1, %s10255_s7  ;;  %v2928_v59 = vcombine.high %v2896_v3, %v2896_v3 }
 0x39c   : > { %v2325_v61 = vpop.permute.xlu1 %2324  ;;  %2975 = vst [vmem:[#allocation4 + $0x9f0] sm:$0xf] %v2896_v3  ;;  %4765 = vst [vmem:[#allocation4 + $0x12e0] sm:$0xf] %v2896_v3 }
 0x39d   : > { %v2323_v5 = vpop.permute.xlu0 %2322  ;;  %2976 = vst [vmem:[#allocation4 + $0x9f8] sm:$0xf] %v2928_v59  ;;  %4766 = vst [vmem:[#allocation4 + $0x12e8] sm:$0xf] %v2928_v59 }
 0x39e   : > { %v2373_v62 = vsel %vm2358_vm6, %v2321_v49, %v2323_v5  ;;  %v2374_v16 = vsel %vm2358_vm6, %v2323_v5, %v2325_v61  ;;  %2734 = vrot.lane.b32.xlu1 %v11706_v17, %s10255_s7 }
 0x39f   : > { %2437 = vst [vmem:[#allocation4 + $0x670] sm:$0xf] %v2373_v62  ;;  %2438 = vst [vmem:[#allocation4 + $0x678] sm:$0xf] %v2374_v16  ;;  %2732 = vrot.lane.b32.xlu0 %v11703_v26, %s10255_s7  ;;  %v6659_v62 = vld [vmem:[#allocation4 + $0x608] sm:$0xff] }
 0x3a0   : > { %v2329_v14 = vpop.permute.xlu1 %2328 }
 0x3a1   : > { %v2327_v63 = vpop.permute.xlu0 %2326 }
 0x3a2   : > { %v2375_v24 = vsel %vm2358_vm6, %v2325_v61, %v2327_v63  ;;  %v2376_v1 = vsel %vm2358_vm6, %v2327_v63, %v2329_v14  ;;  %2738 = vrot.lane.b32.xlu1 %v11719_v35, %s10255_s7 }
 0x3a3   : > { %2439 = vst [vmem:[#allocation4 + $0x680] sm:$0xf] %v2375_v24  ;;  %2440 = vst [vmem:[#allocation4 + $0x688] sm:$0xf] %v2376_v1  ;;  %2736 = vrot.lane.b32.xlu0 %v11716_v23, %s10255_s7 }
 0x3a4   : > { %v2333_v20 = vpop.permute.xlu1 %2332 }
 0x3a5   : > { %v2331_v12 = vpop.permute.xlu0 %2330 }
 0x3a6   : > { %v2377_v17 = vsel %vm2358_vm6, %v2329_v14, %v2331_v12  ;;  %v2378_v26 = vsel %vm2358_vm6, %v2331_v12, %v2333_v20  ;;  %2742 = vrot.lane.b32.xlu1 %v11732_v29, %s10255_s7  ;;  %v6658_v14 = vld [vmem:[#allocation4 + $0x600] sm:$0xff] }
 0x3a7   : > { %2441 = vst [vmem:[#allocation4 + $0x690] sm:$0xf] %v2377_v17  ;;  %2442 = vst [vmem:[#allocation4 + $0x698] sm:$0xf] %v2378_v26  ;;  %2740 = vrot.lane.b32.xlu0 %v11729_v38, %s10255_s7  ;;  %v6661_v17 = vld [vmem:[#allocation4 + $0x618] sm:$0xff] }
 0x3a8   : > { %v2337_v15 = vpop.permute.xlu1 %2336 }
 0x3a9   : > { %v2335_v28 = vpop.permute.xlu0 %2334 }
 0x3aa   : > { %v2379_v35 = vsel %vm2358_vm6, %v2333_v20, %v2335_v28  ;;  %v2380_v23 = vsel %vm2358_vm6, %v2335_v28, %v2337_v15  ;;  %2746 = vrot.lane.b32.xlu1 %v11745_v46, %s10255_s7 }
 0x3ab   : > { %2443 = vst [vmem:[#allocation4 + $0x6a0] sm:$0xf] %v2379_v35  ;;  %2444 = vst [vmem:[#allocation4 + $0x6a8] sm:$0xf] %v2380_v23  ;;  %2744 = vrot.lane.b32.xlu0 %v11742_v47, %s10255_s7  ;;  %v12189_v35 = vld [vmem:[%s10303_s24 + $0x18] sm:$0xff] }
 0x3ac   : > { %v2341_v19 = vpop.permute.xlu1 %2340 }
 0x3ad   : > { %v2339_v21 = vpop.permute.xlu0 %2338 }
 0x3ae   : > { %v2381_v29 = vsel %vm2358_vm6, %v2337_v15, %v2339_v21  ;;  %v2382_v38 = vsel %vm2358_vm6, %v2339_v21, %v2341_v19  ;;  %2750 = vrot.lane.b32.xlu1 %v11758_v55, %s10255_s7  ;;  %v6660_v15 = vld [vmem:[#allocation4 + $0x610] sm:$0xff] }
 0x3af   : > { %2445 = vst [vmem:[#allocation4 + $0x6b0] sm:$0xf] %v2381_v29  ;;  %2446 = vst [vmem:[#allocation4 + $0x6b8] sm:$0xf] %v2382_v38  ;;  %2748 = vrot.lane.b32.xlu0 %v11755_v40, %s10255_s7  ;;  %v12199_v38 = vcombine.high %v12189_v35, %v12189_v35 }
 0x3b0   : > { %v2345_v34 = vpop.permute.xlu1 %2344 }
 0x3b1   : > { %v2343_v25 = vpop.permute.xlu0 %2342 }
 0x3b2   : > { %v2383_v46 = vsel %vm2358_vm6, %v2341_v19, %v2343_v25  ;;  %v2384_v47 = vsel %vm2358_vm6, %v2343_v25, %v2345_v34  ;;  %2754 = vrot.lane.b32.xlu1 %v11771_v2, %s10255_s7 }
 0x3b3   : > { %2447 = vst [vmem:[#allocation4 + $0x6c0] sm:$0xf] %v2383_v46  ;;  %2448 = vst [vmem:[#allocation4 + $0x6c8] sm:$0xf] %v2384_v47  ;;  %2752 = vrot.lane.b32.xlu0 %v11768_v48, %s10255_s7 }
 0x3b4   : > { %v2349_v43 = vpop.permute.xlu1 %2348 }
 0x3b5   : > { %v2347_v32 = vpop.permute.xlu0 %2346 }
 0x3b6   : > { %v2385_v55 = vsel %vm2358_vm6, %v2345_v34, %v2347_v32  ;;  %v2386_v40 = vsel %vm2358_vm6, %v2347_v32, %v2349_v43  ;;  %2758 = vrot.lane.b32.xlu1 %v11784_v53, %s10255_s7  ;;  %v12202_v34 = vld [vmem:[%s10303_s24 + $0x20] sm:$0xff] }
 0x3b7   : > { %2449 = vst [vmem:[#allocation4 + $0x6d0] sm:$0xf] %v2385_v55  ;;  %2450 = vst [vmem:[#allocation4 + $0x6d8] sm:$0xf] %v2386_v40  ;;  %2756 = vrot.lane.b32.xlu0 %v11781_v4, %s10255_s7  ;;  %v12212_v32 = vcombine.high %v12202_v34, %v12202_v34  ;;  %v12215_v55 = vld [vmem:[%s10303_s24 + $0x28] sm:$0xff] }
 0x3b8   : > { %v2353_v42 = vpop.permute.xlu1 %2352 }
 0x3b9   : > { %v2351_v33 = vpop.permute.xlu0 %2350 }
 0x3ba   : > { %v2387_v2 = vsel %vm2358_vm6, %v2349_v43, %v2351_v33  ;;  %v2388_v48 = vsel %vm2358_vm6, %v2351_v33, %v2353_v42  ;;  %2762 = vrot.lane.b32.xlu1 %v11797_v60, %s10255_s7 }
 0x3bb   : > { %2451 = vst [vmem:[#allocation4 + $0x6e0] sm:$0xf] %v2387_v2  ;;  %2452 = vst [vmem:[#allocation4 + $0x6e8] sm:$0xf] %v2388_v48  ;;  %2760 = vrot.lane.b32.xlu0 %v11794_v57, %s10255_s7  ;;  %v12225_v48 = vcombine.high %v12215_v55, %v12215_v55 }
 0x3bc   : > { %v2357_v50 = vpop.permute.xlu1 %2356 }
 0x3bd   : > { %v2355_v53 = vpop.permute.xlu0 %2354 }
 0x3be   : > { %v2389_v37 = vsel %vm2358_vm6, %v2353_v42, %v2355_v53  ;;  %v2390_v4 = vsel %vm2358_vm6, %v2355_v53, %v2357_v50  ;;  %2766 = vrot.lane.b32.xlu1 %v11810_v22, %s10255_s7  ;;  %v12228_v50 = vld [vmem:[%s10303_s24 + $0x30] sm:$0xff] }
 0x3bf   : > { %2453 = vst [vmem:[#allocation4 + $0x6f0] sm:$0xf] %v2389_v37  ;;  %2454 = vst [vmem:[#allocation4 + $0x6f8] sm:$0xf] %v2390_v4  ;;  %2764 = vrot.lane.b32.xlu0 %v11807_v0, %s10255_s7 }
 0x3c0   : > { %v2508_v60 = vpop.permute.xlu1 %2507 }
 0x3c1   : > { %v2506_v54 = vpop.permute.xlu0 %2505 }
 0x3c2   : > { %v2572_v57 = vsel %vm2571_vm7, %v2506_v54, %v2508_v60  ;;  %2770 = vrot.lane.b32.xlu1 %v11823_v30, %s10255_s7  ;;  %v12238_v54 = vcombine.high %v12228_v50, %v12228_v50 }
 0x3c3   : > { %2636 = vst [vmem:[#allocation4 + $0x700] sm:$0xf] %v2572_v57  ;;  %2768 = vrot.lane.b32.xlu0 %v11820_v31, %s10255_s7  ;;  %v12241_v57 = vld [vmem:[%s10303_s24 + $0x38] sm:$0xff] }
 0x3c4   : > { %v2512_v45 = vpop.permute.xlu1 %2511 }
 0x3c5   : > { %v2510_v58 = vpop.permute.xlu0 %2509 }
 0x3c6   : > { %v2573_v0 = vsel %vm2571_vm7, %v2508_v60, %v2510_v58  ;;  %v2574_v22 = vsel %vm2571_vm7, %v2510_v58, %v2512_v45  ;;  %2774 = vrot.lane.b32.xlu1 %v11835_v39, %s10255_s7  ;;  %v2684_v39 = vld [vmem:[%s10303_s24 + $0x80] sm:$0xf] }
 0x3c7   : > { %2637 = vst [vmem:[#allocation4 + $0x708] sm:$0xf] %v2573_v0  ;;  %2638 = vst [vmem:[#allocation4 + $0x710] sm:$0xf] %v2574_v22  ;;  %2772 = vrot.lane.b32.xlu0 %v11832_v27, %s10255_s7  ;;  %v12251_v0 = vcombine.high %v12241_v57, %v12241_v57  ;;  %v12254_v22 = vld [vmem:[%s10303_s24 + $0x40] sm:$0xff] }
 0x3c8   : > { %v2516_v31 = vpop.permute.xlu1 %2515 }
 0x3c9   : > { %v2514_v30 = vpop.permute.xlu0 %2513 }
 0x3ca   : > { %v2575_v49 = vsel %vm2571_vm7, %v2512_v45, %v2514_v30  ;;  %v2576_v6 = vsel %vm2571_vm7, %v2514_v30, %v2516_v31  ;;  %2778 = vrot.lane.b32.xlu1 %v11848_v36, %s10255_s7  ;;  %v6690_v27 = vld [vmem:[#allocation4 + $0x700] sm:$0xff] }
 0x3cb   : > { %2639 = vst [vmem:[#allocation4 + $0x718] sm:$0xf] %v2575_v49  ;;  %2640 = vst [vmem:[#allocation4 + $0x720] sm:$0xf] %v2576_v6  ;;  %2776 = vrot.lane.b32.xlu0 %v11845_v51, %s10255_s7  ;;  %v9296_v51 = vpack.c.bf16 %v6690_v27, %v6658_v14 }
 0x3cc   : > { %v2520_v52 = vpop.permute.xlu1 %2519 }
 0x3cd   : > { %v2518_v8 = vpop.permute.xlu0 %2517 }
 0x3ce   : > { %v2577_v61 = vsel %vm2571_vm7, %v2516_v31, %v2518_v8  ;;  %v2578_v5 = vsel %vm2571_vm7, %v2518_v8, %v2520_v52  ;;  %v6691_v16 = vld [vmem:[#allocation4 + $0x708] sm:$0xff]  ;;  %2782 = vrot.lane.b32.xlu1 %v2684_v39, %s10255_s7  ;;  %v6692_v1 = vld [vmem:[#allocation4 + $0x710] sm:$0xff]  ;;  %v12264_v39 = vcombine.high %v12254_v22, %v12254_v22 }
 0x3cf   : > { %2641 = vst [vmem:[#allocation4 + $0x728] sm:$0xf] %v2577_v61  ;;  %2642 = vst [vmem:[#allocation4 + $0x730] sm:$0xf] %v2578_v5  ;;  %2780 = vrot.lane.b32.xlu0 %v11858_v44, %s10255_s7  ;;  %v9294_v36 = vpack.c.bf16 %v6691_v16, %v6659_v62  ;;  %v9348_v28 = vpack.c.bf16 %v6692_v1, %v6660_v15  ;;  %v12280_v16 = vld [vmem:[%s10303_s24 + $0x50] sm:$0xff]  ;;  %v12293_v1 = vld [vmem:[%s10303_s24 + $0x58] sm:$0xff] }
 0x3d0   : > { %v2524_v63 = vpop.permute.xlu1 %2523  ;;  %v12306_v15 = vld [vmem:[%s10303_s24 + $0x60] sm:$0xff] }
 0x3d1   : > { %v2522_v24 = vpop.permute.xlu0 %2521  ;;  %9295 = vmatprep.subr.bf16.mxu0 %v9294_v36 }
 0x3d2   : > { %v2579_v20 = vsel %vm2571_vm7, %v2520_v52, %v2522_v24  ;;  %v2580_v12 = vsel %vm2571_vm7, %v2522_v24, %v2524_v63  ;;  %9297 = vmatpush1.bf16.msra.mxu0 %v9296_v51  ;;  %v6693_v26 = vld [vmem:[#allocation4 + $0x718] sm:$0xff]  ;;  %3029 = vrot.lane.b32.xlu1 %v11978_v7, %s10248_s25  ;;  %v12267_v52 = vld [vmem:[%s10303_s24 + $0x48] sm:$0xff]  ;;  %v12290_v24 = vcombine.high %v12280_v16, %v12280_v16 }
 0x3d3   : > { %2643 = vst [vmem:[#allocation4 + $0x738] sm:$0xf] %v2579_v20  ;;  %2644 = vst [vmem:[#allocation4 + $0x740] sm:$0xf] %v2580_v12  ;;  %3027 = vrot.lane.b32.xlu0 %v11974_v56, %s10248_s25  ;;  %v9346_v44 = vpack.c.bf16 %v6693_v26, %v6661_v17  ;;  %v12277_v62 = vcombine.high %v12267_v52, %v12267_v52 }
 0x3d4   : > { %v2528_v23 = vpop.permute.xlu1 %2527 }
 0x3d5   : > { %v2526_v19 = vpop.permute.xlu0 %2525  ;;  %9347 = vmatprep.subr.bf16.mxu1 %v9346_v44  ;;  %v12303_v44 = vcombine.high %v12293_v1, %v12293_v1 }
 0x3d6   : > { %v2581_v21 = vsel %vm2571_vm7, %v2524_v63, %v2526_v19  ;;  %v2582_v29 = vsel %vm2571_vm7, %v2526_v19, %v2528_v23  ;;  %9349 = vmatpush1.bf16.msra.mxu1 %v9348_v28  ;;  %3033 = vrot.lane.b32.xlu1 %v11993_v18, %s10248_s25 }
 0x3d7   : > { %2645 = vst [vmem:[#allocation4 + $0x748] sm:$0xf] %v2581_v21  ;;  %2646 = vst [vmem:[#allocation4 + $0x750] sm:$0xf] %v2582_v29  ;;  %3031 = vrot.lane.b32.xlu0 %v11989_v41, %s10248_s25  ;;  %v12316_v29 = vcombine.high %v12306_v15, %v12306_v15 }
 0x3d8   : > { %v2532_v25 = vpop.permute.xlu1 %2531 }
 0x3d9   : > { %v2530_v46 = vpop.permute.xlu0 %2529 }
 0x3da   : > { %v2583_v47 = vsel %vm2571_vm7, %v2528_v23, %v2530_v46  ;;  %v2584_v43 = vsel %vm2571_vm7, %v2530_v46, %v2532_v25  ;;  %3037 = vrot.lane.b32.xlu1 %v12199_v38, %s10248_s25 }
 0x3db   : > { %2647 = vst [vmem:[#allocation4 + $0x758] sm:$0xf] %v2583_v47  ;;  %2648 = vst [vmem:[#allocation4 + $0x760] sm:$0xf] %v2584_v43  ;;  %3035 = vrot.lane.b32.xlu0 %v12189_v35, %s10248_s25 }
 0x3dc   : > { %v2536_v40 = vpop.permute.xlu1 %2535 }
 0x3dd   : > { %v2534_v42 = vpop.permute.xlu0 %2533 }
 0x3de   : > { %v2585_v33 = vsel %vm2571_vm7, %v2532_v25, %v2534_v42  ;;  %v2586_v2 = vsel %vm2571_vm7, %v2534_v42, %v2536_v40  ;;  %3041 = vrot.lane.b32.xlu1 %v12212_v32, %s10248_s25  ;;  %v12319_v25 = vld [vmem:[%s10303_s24 + $0x68] sm:$0xff] }
 0x3df   : > { %2649 = vst [vmem:[#allocation4 + $0x768] sm:$0xf] %v2585_v33  ;;  %2650 = vst [vmem:[#allocation4 + $0x770] sm:$0xf] %v2586_v2  ;;  %3039 = vrot.lane.b32.xlu0 %v12202_v34, %s10248_s25  ;;  %v12329_v42 = vcombine.high %v12319_v25, %v12319_v25  ;;  %v12332_v33 = vld [vmem:[%s10303_s24 + $0x70] sm:$0xff] }
 0x3e0   : > { %v2540_v53 = vpop.permute.xlu1 %2539 }
 0x3e1   : > { %v2538_v37 = vpop.permute.xlu0 %2537 }
 0x3e2   : > { %v2587_v4 = vsel %vm2571_vm7, %v2536_v40, %v2538_v37  ;;  %v2588_v60 = vsel %vm2571_vm7, %v2538_v37, %v2540_v53  ;;  %3045 = vrot.lane.b32.xlu1 %v12225_v48, %s10248_s25 }
 0x3e3   : > { %2651 = vst [vmem:[#allocation4 + $0x778] sm:$0xf] %v2587_v4  ;;  %2652 = vst [vmem:[#allocation4 + $0x780] sm:$0xf] %v2588_v60  ;;  %3043 = vrot.lane.b32.xlu0 %v12215_v55, %s10248_s25  ;;  %v12341_v4 = vcombine.high %v12332_v33, %v12332_v33  ;;  %v12344_v60 = vld [vmem:[%s10303_s24 + $0x78] sm:$0xff] }
 0x3e4   : > { %v2544_v3 = vpop.permute.xlu1 %2543 }
 0x3e5   : > { %v2542_v45 = vpop.permute.xlu0 %2541 }
 0x3e6   : > { %v2589_v58 = vsel %vm2571_vm7, %v2540_v53, %v2542_v45  ;;  %v2590_v59 = vsel %vm2571_vm7, %v2542_v45, %v2544_v3  ;;  %3049 = vrot.lane.b32.xlu1 %v12238_v54, %s10248_s25 }
 0x3e7   : > { %2653 = vst [vmem:[#allocation4 + $0x788] sm:$0xf] %v2589_v58  ;;  %2654 = vst [vmem:[#allocation4 + $0x790] sm:$0xf] %v2590_v59  ;;  %3047 = vrot.lane.b32.xlu0 %v12228_v50, %s10248_s25 }
 0x3e8   : > { %v2548_v31 = vpop.permute.xlu1 %2547 }
 0x3e9   : > { %v2546_v30 = vpop.permute.xlu0 %2545 }
 0x3ea   : > { %v2591_v49 = vsel %vm2571_vm7, %v2544_v3, %v2546_v30  ;;  %v2592_v6 = vsel %vm2571_vm7, %v2546_v30, %v2548_v31  ;;  %3053 = vrot.lane.b32.xlu1 %v12251_v0, %s10248_s25  ;;  %v12357_v30 = vld [vmem:[%s10303_s24 + $0x80] sm:$0xff] }
 0x3eb   : > { %2655 = vst [vmem:[#allocation4 + $0x798] sm:$0xf] %v2591_v49  ;;  %2656 = vst [vmem:[#allocation4 + $0x7a0] sm:$0xf] %v2592_v6  ;;  %3051 = vrot.lane.b32.xlu0 %v12241_v57, %s10248_s25 }
 0x3ec   : > { %v2552_v8 = vpop.permute.xlu1 %2551 }
 0x3ed   : > { %v2550_v27 = vpop.permute.xlu0 %2549 }
 0x3ee   : > { %v2593_v61 = vsel %vm2571_vm7, %v2548_v31, %v2550_v27  ;;  %v2594_v5 = vsel %vm2571_vm7, %v2550_v27, %v2552_v8  ;;  %3057 = vrot.lane.b32.xlu1 %v12264_v39, %s10248_s25  ;;  %v12354_v31 = vcombine.high %v12344_v60, %v12344_v60 }
 0x3ef   : > { %2657 = vst [vmem:[#allocation4 + $0x7a8] sm:$0xf] %v2593_v61  ;;  %2658 = vst [vmem:[#allocation4 + $0x7b0] sm:$0xf] %v2594_v5  ;;  %3055 = vrot.lane.b32.xlu0 %v12254_v22, %s10248_s25  ;;  %v12367_v61 = vcombine.high %v12357_v30, %v12357_v30  ;;  %v6755_v5 = vld [vmem:[#allocation4 + $0x908] sm:$0xff] }
 0x3f0   : > { %v2556_v36 = vpop.permute.xlu1 %2555 }
 0x3f1   : > { %v2554_v14 = vpop.permute.xlu0 %2553 }
 0x3f2   : > { %v2595_v51 = vsel %vm2571_vm7, %v2552_v8, %v2554_v14  ;;  %v2596_v63 = vsel %vm2571_vm7, %v2554_v14, %v2556_v36  ;;  %3061 = vrot.lane.b32.xlu1 %v12277_v62, %s10248_s25 }
 0x3f3   : > { %2659 = vst [vmem:[#allocation4 + $0x7b8] sm:$0xf] %v2595_v51  ;;  %2660 = vst [vmem:[#allocation4 + $0x7c0] sm:$0xf] %v2596_v63  ;;  %3059 = vrot.lane.b32.xlu0 %v12267_v52, %s10248_s25 }
 0x3f4   : > { %v2560_v20 = vpop.permute.xlu1 %2559 }
 0x3f5   : > { %v2558_v12 = vpop.permute.xlu0 %2557 }
 0x3f6   : > { %v2597_v17 = vsel %vm2571_vm7, %v2556_v36, %v2558_v12  ;;  %v2598_v26 = vsel %vm2571_vm7, %v2558_v12, %v2560_v20  ;;  %3065 = vrot.lane.b32.xlu1 %v12290_v24, %s10248_s25  ;;  %v6754_v36 = vld [vmem:[#allocation4 + $0x900] sm:$0xff] }
 0x3f7   : > { %2661 = vst [vmem:[#allocation4 + $0x7c8] sm:$0xf] %v2597_v17  ;;  %2662 = vst [vmem:[#allocation4 + $0x7d0] sm:$0xf] %v2598_v26  ;;  %3063 = vrot.lane.b32.xlu0 %v12280_v16, %s10248_s25 }
 0x3f8   : > { %v2564_v28 = vpop.permute.xlu1 %2563 }
 0x3f9   : > { %v2562_v23 = vpop.permute.xlu0 %2561 }
 0x3fa   : > { %v2599_v19 = vsel %vm2571_vm7, %v2560_v20, %v2562_v23  ;;  %v2600_v21 = vsel %vm2571_vm7, %v2562_v23, %v2564_v28  ;;  %3069 = vrot.lane.b32.xlu1 %v12303_v44, %s10248_s25  ;;  %v2993_v23 = vld [vmem:[%s10303_s24 + $0x88] sm:$0xf] }
 0x3fb   : > { %2663 = vst [vmem:[#allocation4 + $0x7d8] sm:$0xf] %v2599_v19  ;;  %2664 = vst [vmem:[#allocation4 + $0x7e0] sm:$0xf] %v2600_v21  ;;  %3067 = vrot.lane.b32.xlu0 %v12293_v1, %s10248_s25  ;;  %v6757_v19 = vld [vmem:[#allocation4 + $0x918] sm:$0xff]  ;;  %v6756_v21 = vld [vmem:[#allocation4 + $0x910] sm:$0xff] }
 0x3fc   : > { %v2568_v46 = vpop.permute.xlu1 %2567 }
 0x3fd   : > { %v2566_v47 = vpop.permute.xlu0 %2565 }
 0x3fe   : > { %v2601_v43 = vsel %vm2571_vm7, %v2564_v28, %v2566_v47  ;;  %v2602_v40 = vsel %vm2571_vm7, %v2566_v47, %v2568_v46  ;;  %3073 = vrot.lane.b32.xlu1 %v12316_v29, %s10248_s25 }
 0x3ff   : > { %2665 = vst [vmem:[#allocation4 + $0x7e8] sm:$0xf] %v2601_v43  ;;  %2666 = vst [vmem:[#allocation4 + $0x7f0] sm:$0xf] %v2602_v40  ;;  %3071 = vrot.lane.b32.xlu0 %v12306_v15, %s10248_s25 }
 0x400   : > { %v2719_v2 = vpop.permute.xlu1 %2718 }
 0x401   : > { %v2570_v53 = vpop.permute.xlu0 %2569 }
 0x402   : > { %v2603_v37 = vsel %vm2571_vm7, %v2568_v46, %v2570_v53  ;;  %3077 = vrot.lane.b32.xlu1 %v12329_v42, %s10248_s25 }
 0x403   : > { %2667 = vst [vmem:[#allocation4 + $0x7f8] sm:$0xf] %v2603_v37  ;;  %3075 = vrot.lane.b32.xlu0 %v12319_v25, %s10248_s25 }
 0x404   : > { %v2723_v3 = vpop.permute.xlu1 %2722 }
 0x405   : > { %v2721_v45 = vpop.permute.xlu0 %2720 }
 0x406   : > { %v2785_v58 = vsel %vm2784_vm8, %v2719_v2, %v2721_v45  ;;  %v2786_v59 = vsel %vm2784_vm8, %v2721_v45, %v2723_v3  ;;  %3081 = vrot.lane.b32.xlu1 %v12341_v4, %s10248_s25 }
 0x407   : > { %2849 = vst [vmem:[#allocation4 + $0x800] sm:$0xf] %v2785_v58  ;;  %2850 = vst [vmem:[#allocation4 + $0x808] sm:$0xf] %v2786_v59  ;;  %3079 = vrot.lane.b32.xlu0 %v12332_v33, %s10248_s25 }
 0x408   : > { %v2727_v49 = vpop.permute.xlu1 %2726 }
 0x409   : > { %v2725_v6 = vpop.permute.xlu0 %2724 }
 0x40a   : > { %v2787_v8 = vsel %vm2784_vm8, %v2723_v3, %v2725_v6  ;;  %v2788_v27 = vsel %vm2784_vm8, %v2725_v6, %v2727_v49  ;;  %3085 = vrot.lane.b32.xlu1 %v12354_v31, %s10248_s25 }
 0x40b   : > { %2851 = vst [vmem:[#allocation4 + $0x810] sm:$0xf] %v2787_v8  ;;  %2852 = vst [vmem:[#allocation4 + $0x818] sm:$0xf] %v2788_v27  ;;  %3083 = vrot.lane.b32.xlu0 %v12344_v60, %s10248_s25 }
 0x40c   : > { %v2731_v14 = vpop.permute.xlu1 %2730 }
 0x40d   : > { %v2729_v51 = vpop.permute.xlu0 %2728 }
 0x40e   : > { %v2789_v63 = vsel %vm2784_vm8, %v2727_v49, %v2729_v51  ;;  %v2790_v20 = vsel %vm2784_vm8, %v2729_v51, %v2731_v14  ;;  %v6723_v12 = vld [vmem:[#allocation4 + $0x808] sm:$0xff]  ;;  %v6722_v17 = vld [vmem:[#allocation4 + $0x800] sm:$0xff]  ;;  %3089 = vrot.lane.b32.xlu1 %v12367_v61, %s10248_s25 }
 0x40f   : > { %2853 = vst [vmem:[#allocation4 + $0x820] sm:$0xf] %v2789_v63  ;;  %2854 = vst [vmem:[#allocation4 + $0x828] sm:$0xf] %v2790_v20  ;;  %3087 = vrot.lane.b32.xlu0 %v12357_v30, %s10248_s25  ;;  %v9298_v26 = vpack.c.bf16 %v6755_v5, %v6723_v12  ;;  %v9300_v28 = vpack.c.bf16 %v6754_v36, %v6722_v17 }
 0x410   : > { %v2735_v46 = vpop.permute.xlu1 %2734 }
 0x411   : > { %v2733_v47 = vpop.permute.xlu0 %2732  ;;  %9299 = vmatprep.subr.bf16.mxu0 %v9298_v26 }
 0x412   : > { %v2791_v43 = vsel %vm2784_vm8, %v2731_v14, %v2733_v47  ;;  %v2792_v40 = vsel %vm2784_vm8, %v2733_v47, %v2735_v46  ;;  %9301 = vmatpush1.bf16.msra.mxu0 %v9300_v28  ;;  %v6725_v2 = vld [vmem:[#allocation4 + $0x818] sm:$0xff]  ;;  %v6724_v53 = vld [vmem:[#allocation4 + $0x810] sm:$0xff]  ;;  %3239 = vrot.lane.b32.xlu1 %v11974_v56, %s10249_s26 }
 0x413   : > { %2855 = vst [vmem:[#allocation4 + $0x830] sm:$0xf] %v2791_v43  ;;  %2856 = vst [vmem:[#allocation4 + $0x838] sm:$0xf] %v2792_v40  ;;  %3091 = vrot.lane.b32.xlu0 %v2993_v23, %s10248_s25  ;;  %v9350_v37 = vpack.c.bf16 %v6757_v19, %v6725_v2  ;;  %v9352_v3 = vpack.c.bf16 %v6756_v21, %v6724_v53 }
 0x414   : > { %v2739_v45 = vpop.permute.xlu1 %2738 }
 0x415   : > { %v2737_v58 = vpop.permute.xlu0 %2736  ;;  %9351 = vmatprep.subr.bf16.mxu1 %v9350_v37 }
 0x416   : > { %v2793_v59 = vsel %vm2784_vm8, %v2735_v46, %v2737_v58  ;;  %v2794_v49 = vsel %vm2784_vm8, %v2737_v58, %v2739_v45  ;;  %9353 = vmatpush1.bf16.msra.mxu1 %v9352_v3  ;;  %3243 = vrot.lane.b32.xlu1 %v11989_v41, %s10249_s26 }
 0x417   : > { %2857 = vst [vmem:[#allocation4 + $0x840] sm:$0xf] %v2793_v59  ;;  %2858 = vst [vmem:[#allocation4 + $0x848] sm:$0xf] %v2794_v49  ;;  %3241 = vrot.lane.b32.xlu0 %v11978_v7, %s10249_s26 }
 0x418   : > { %v2743_v6 = vpop.permute.xlu1 %2742 }
 0x419   : > { %v2741_v8 = vpop.permute.xlu0 %2740 }
 0x41a   : > { %v2795_v27 = vsel %vm2784_vm8, %v2739_v45, %v2741_v8  ;;  %v2796_v5 = vsel %vm2784_vm8, %v2741_v8, %v2743_v6  ;;  %3247 = vrot.lane.b32.xlu1 %v12189_v35, %s10249_s26 }
 0x41b   : > { %2859 = vst [vmem:[#allocation4 + $0x850] sm:$0xf] %v2795_v27  ;;  %2860 = vst [vmem:[#allocation4 + $0x858] sm:$0xf] %v2796_v5  ;;  %3245 = vrot.lane.b32.xlu0 %v11993_v18, %s10249_s26 }
 0x41c   : > { %v2747_v36 = vpop.permute.xlu1 %2746 }
 0x41d   : > { %v2745_v14 = vpop.permute.xlu0 %2744 }
 0x41e   : > { %v2797_v51 = vsel %vm2784_vm8, %v2743_v6, %v2745_v14  ;;  %v2798_v63 = vsel %vm2784_vm8, %v2745_v14, %v2747_v36  ;;  %3251 = vrot.lane.b32.xlu1 %v12202_v34, %s10249_s26 }
 0x41f   : > { %2861 = vst [vmem:[#allocation4 + $0x860] sm:$0xf] %v2797_v51  ;;  %2862 = vst [vmem:[#allocation4 + $0x868] sm:$0xf] %v2798_v63  ;;  %3249 = vrot.lane.b32.xlu0 %v12199_v38, %s10249_s26 }
 0x420   : > { %v2751_v20 = vpop.permute.xlu1 %2750 }
 0x421   : > { %v2749_v12 = vpop.permute.xlu0 %2748 }
 0x422   : > { %v2799_v17 = vsel %vm2784_vm8, %v2747_v36, %v2749_v12  ;;  %v2800_v26 = vsel %vm2784_vm8, %v2749_v12, %v2751_v20  ;;  %3255 = vrot.lane.b32.xlu1 %v12215_v55, %s10249_s26 }
 0x423   : > { %2863 = vst [vmem:[#allocation4 + $0x870] sm:$0xf] %v2799_v17  ;;  %2864 = vst [vmem:[#allocation4 + $0x878] sm:$0xf] %v2800_v26  ;;  %3253 = vrot.lane.b32.xlu0 %v12212_v32, %s10249_s26 }
 0x424   : > { %v2755_v28 = vpop.permute.xlu1 %2754 }
 0x425   : > { %v2753_v23 = vpop.permute.xlu0 %2752 }
 0x426   : > { %v2801_v19 = vsel %vm2784_vm8, %v2751_v20, %v2753_v23  ;;  %v2802_v21 = vsel %vm2784_vm8, %v2753_v23, %v2755_v28  ;;  %3259 = vrot.lane.b32.xlu1 %v12228_v50, %s10249_s26 }
 0x427   : > { %2865 = vst [vmem:[#allocation4 + $0x880] sm:$0xf] %v2801_v19  ;;  %2866 = vst [vmem:[#allocation4 + $0x888] sm:$0xf] %v2802_v21  ;;  %3257 = vrot.lane.b32.xlu0 %v12225_v48, %s10249_s26 }
 0x428   : > { %v2759_v46 = vpop.permute.xlu1 %2758 }
 0x429   : > { %v2757_v47 = vpop.permute.xlu0 %2756 }
 0x42a   : > { %v2803_v43 = vsel %vm2784_vm8, %v2755_v28, %v2757_v47  ;;  %v2804_v40 = vsel %vm2784_vm8, %v2757_v47, %v2759_v46  ;;  %3263 = vrot.lane.b32.xlu1 %v12241_v57, %s10249_s26 }
 0x42b   : > { %2867 = vst [vmem:[#allocation4 + $0x890] sm:$0xf] %v2803_v43  ;;  %2868 = vst [vmem:[#allocation4 + $0x898] sm:$0xf] %v2804_v40  ;;  %3261 = vrot.lane.b32.xlu0 %v12238_v54, %s10249_s26 }
 0x42c   : > { %v2763_v2 = vpop.permute.xlu1 %2762 }
 0x42d   : > { %v2761_v53 = vpop.permute.xlu0 %2760 }
 0x42e   : > { %v2805_v37 = vsel %vm2784_vm8, %v2759_v46, %v2761_v53  ;;  %v2806_v3 = vsel %vm2784_vm8, %v2761_v53, %v2763_v2  ;;  %3267 = vrot.lane.b32.xlu1 %v12254_v22, %s10249_s26 }
 0x42f   : > { %2869 = vst [vmem:[#allocation4 + $0x8a0] sm:$0xf] %v2805_v37  ;;  %2870 = vst [vmem:[#allocation4 + $0x8a8] sm:$0xf] %v2806_v3  ;;  %3265 = vrot.lane.b32.xlu0 %v12251_v0, %s10249_s26 }
 0x430   : > { %v2767_v45 = vpop.permute.xlu1 %2766 }
 0x431   : > { %v2765_v58 = vpop.permute.xlu0 %2764 }
 0x432   : > { %v2807_v59 = vsel %vm2784_vm8, %v2763_v2, %v2765_v58  ;;  %v2808_v49 = vsel %vm2784_vm8, %v2765_v58, %v2767_v45  ;;  %3271 = vrot.lane.b32.xlu1 %v12267_v52, %s10249_s26 }
 0x433   : > { %2871 = vst [vmem:[#allocation4 + $0x8b0] sm:$0xf] %v2807_v59  ;;  %2872 = vst [vmem:[#allocation4 + $0x8b8] sm:$0xf] %v2808_v49  ;;  %3269 = vrot.lane.b32.xlu0 %v12264_v39, %s10249_s26  ;;  %v3205_v49 = vld [vmem:[%s10303_s24 + $0x88] sm:$0xf] }
 0x434   : > { %v2771_v6 = vpop.permute.xlu1 %2770 }
 0x435   : > { %v2769_v8 = vpop.permute.xlu0 %2768 }
 0x436   : > { %v2809_v27 = vsel %vm2784_vm8, %v2767_v45, %v2769_v8  ;;  %v2810_v5 = vsel %vm2784_vm8, %v2769_v8, %v2771_v6  ;;  %3275 = vrot.lane.b32.xlu1 %v12280_v16, %s10249_s26 }
 0x437   : > { %2873 = vst [vmem:[#allocation4 + $0x8c0] sm:$0xf] %v2809_v27  ;;  %2874 = vst [vmem:[#allocation4 + $0x8c8] sm:$0xf] %v2810_v5  ;;  %3273 = vrot.lane.b32.xlu0 %v12277_v62, %s10249_s26 }
 0x438   : > { %v2775_v36 = vpop.permute.xlu1 %2774 }
 0x439   : > { %v2773_v14 = vpop.permute.xlu0 %2772 }
 0x43a   : > { %v2811_v51 = vsel %vm2784_vm8, %v2771_v6, %v2773_v14  ;;  %v2812_v63 = vsel %vm2784_vm8, %v2773_v14, %v2775_v36  ;;  %3279 = vrot.lane.b32.xlu1 %v12293_v1, %s10249_s26 }
 0x43b   : > { %2875 = vst [vmem:[#allocation4 + $0x8d0] sm:$0xf] %v2811_v51  ;;  %2876 = vst [vmem:[#allocation4 + $0x8d8] sm:$0xf] %v2812_v63  ;;  %3277 = vrot.lane.b32.xlu0 %v12290_v24, %s10249_s26 }
 0x43c   : > { %v2779_v20 = vpop.permute.xlu1 %2778 }
 0x43d   : > { %v2777_v12 = vpop.permute.xlu0 %2776 }
 0x43e   : > { %v2813_v17 = vsel %vm2784_vm8, %v2775_v36, %v2777_v12  ;;  %v2814_v26 = vsel %vm2784_vm8, %v2777_v12, %v2779_v20  ;;  %3283 = vrot.lane.b32.xlu1 %v12306_v15, %s10249_s26 }
 0x43f   : > { %2877 = vst [vmem:[#allocation4 + $0x8e0] sm:$0xf] %v2813_v17  ;;  %2878 = vst [vmem:[#allocation4 + $0x8e8] sm:$0xf] %v2814_v26  ;;  %3281 = vrot.lane.b32.xlu0 %v12303_v44, %s10249_s26 }
 0x440   : > { %v2783_v28 = vpop.permute.xlu1 %2782 }
 0x441   : > { %v2781_v23 = vpop.permute.xlu0 %2780 }
 0x442   : > { %v2815_v19 = vsel %vm2784_vm8, %v2779_v20, %v2781_v23  ;;  %v2816_v21 = vsel %vm2784_vm8, %v2781_v23, %v2783_v28  ;;  %3287 = vrot.lane.b32.xlu1 %v12319_v25, %s10249_s26 }
 0x443   : > { %2879 = vst [vmem:[#allocation4 + $0x8f0] sm:$0xf] %v2815_v19  ;;  %2880 = vst [vmem:[#allocation4 + $0x8f8] sm:$0xf] %v2816_v21  ;;  %3285 = vrot.lane.b32.xlu0 %v12316_v29, %s10249_s26 }
 0x444   : > { %v3030_v46 = vpop.permute.xlu1 %3029 }
 0x445   : > { %v3028_v47 = vpop.permute.xlu0 %3027 }
 0x446   : > { %v3093_v43 = vsel %vm1293_vm1, %v3028_v47, %v3030_v46  ;;  %3291 = vrot.lane.b32.xlu1 %v12332_v33, %s10249_s26 }
 0x447   : > { %3157 = vst [vmem:[#allocation4 + $0xa00] sm:$0xf] %v3093_v43  ;;  %3289 = vrot.lane.b32.xlu0 %v12329_v42, %s10249_s26 }
 0x448   : > { %v3034_v40 = vpop.permute.xlu1 %3033 }
 0x449   : > { %v3032_v2 = vpop.permute.xlu0 %3031 }
 0x44a   : > { %v3094_v53 = vsel %vm1293_vm1, %v3030_v46, %v3032_v2  ;;  %v3095_v37 = vsel %vm1293_vm1, %v3032_v2, %v3034_v40  ;;  %3295 = vrot.lane.b32.xlu1 %v12344_v60, %s10249_s26 }
 0x44b   : > { %3158 = vst [vmem:[#allocation4 + $0xa08] sm:$0xf] %v3094_v53  ;;  %3159 = vst [vmem:[#allocation4 + $0xa10] sm:$0xf] %v3095_v37  ;;  %3293 = vrot.lane.b32.xlu0 %v12341_v4, %s10249_s26 }
 0x44c   : > { %v3038_v3 = vpop.permute.xlu1 %3037 }
 0x44d   : > { %v3036_v45 = vpop.permute.xlu0 %3035 }
 0x44e   : > { %v3096_v58 = vsel %vm1293_vm1, %v3034_v40, %v3036_v45  ;;  %v3097_v59 = vsel %vm1293_vm1, %v3036_v45, %v3038_v3  ;;  %3299 = vrot.lane.b32.xlu1 %v12357_v30, %s10249_s26 }
 0x44f   : > { %3160 = vst [vmem:[#allocation4 + $0xa18] sm:$0xf] %v3096_v58  ;;  %3161 = vst [vmem:[#allocation4 + $0xa20] sm:$0xf] %v3097_v59  ;;  %3297 = vrot.lane.b32.xlu0 %v12354_v31, %s10249_s26 }
 0x450   : > { %v3042_v6 = vpop.permute.xlu1 %3041 }
 0x451   : > { %v3040_v8 = vpop.permute.xlu0 %3039 }
 0x452   : > { %v3098_v27 = vsel %vm1293_vm1, %v3038_v3, %v3040_v8  ;;  %v3099_v5 = vsel %vm1293_vm1, %v3040_v8, %v3042_v6  ;;  %3303 = vrot.lane.b32.xlu1 %v3205_v49, %s10249_s26 }
 0x453   : > { %3162 = vst [vmem:[#allocation4 + $0xa28] sm:$0xf] %v3098_v27  ;;  %3163 = vst [vmem:[#allocation4 + $0xa30] sm:$0xf] %v3099_v5  ;;  %3301 = vrot.lane.b32.xlu0 %v12367_v61, %s10249_s26 }
 0x454   : > { %v3046_v36 = vpop.permute.xlu1 %3045 }
 0x455   : > { %v3044_v14 = vpop.permute.xlu0 %3043 }
 0x456   : > { %v3100_v51 = vsel %vm1293_vm1, %v3042_v6, %v3044_v14  ;;  %v3101_v63 = vsel %vm1293_vm1, %v3044_v14, %v3046_v36  ;;  %3453 = vrot.lane.b32.xlu1 %v11978_v7, %s10250_s27 }
 0x457   : > { %3164 = vst [vmem:[#allocation4 + $0xa38] sm:$0xf] %v3100_v51  ;;  %3165 = vst [vmem:[#allocation4 + $0xa40] sm:$0xf] %v3101_v63  ;;  %3451 = vrot.lane.b32.xlu0 %v11974_v56, %s10250_s27 }
 0x458   : > { %v3050_v20 = vpop.permute.xlu1 %3049 }
 0x459   : > { %v3048_v12 = vpop.permute.xlu0 %3047 }
 0x45a   : > { %v3102_v17 = vsel %vm1293_vm1, %v3046_v36, %v3048_v12  ;;  %v3103_v26 = vsel %vm1293_vm1, %v3048_v12, %v3050_v20  ;;  %3457 = vrot.lane.b32.xlu1 %v11993_v18, %s10250_s27 }
 0x45b   : > { %3166 = vst [vmem:[#allocation4 + $0xa48] sm:$0xf] %v3102_v17  ;;  %3167 = vst [vmem:[#allocation4 + $0xa50] sm:$0xf] %v3103_v26  ;;  %3455 = vrot.lane.b32.xlu0 %v11989_v41, %s10250_s27  ;;  %v6786_v17 = vld [vmem:[#allocation4 + $0xa00] sm:$0xff] }
 0x45c   : > { %v3054_v28 = vpop.permute.xlu1 %3053 }
 0x45d   : > { %v3052_v23 = vpop.permute.xlu0 %3051 }
 0x45e   : > { %v3104_v7 = vsel %vm1293_vm1, %v3050_v20, %v3052_v23  ;;  %v3105_v56 = vsel %vm1293_vm1, %v3052_v23, %v3054_v28  ;;  %3461 = vrot.lane.b32.xlu1 %v12199_v38, %s10250_s27 }
 0x45f   : > { %3168 = vst [vmem:[#allocation4 + $0xa58] sm:$0xf] %v3104_v7  ;;  %3169 = vst [vmem:[#allocation4 + $0xa60] sm:$0xf] %v3105_v56  ;;  %3459 = vrot.lane.b32.xlu0 %v12189_v35, %s10250_s27  ;;  %v12572_v56 = vld [vmem:[%s10303_s24 + $0x8] sm:$0xff] }
 0x460   : > { %v3058_v19 = vpop.permute.xlu1 %3057 }
 0x461   : > { %v3056_v21 = vpop.permute.xlu0 %3055 }
 0x462   : > { %v3106_v18 = vsel %vm1293_vm1, %v3054_v28, %v3056_v21  ;;  %v3107_v41 = vsel %vm1293_vm1, %v3056_v21, %v3058_v19  ;;  %3465 = vrot.lane.b32.xlu1 %v12212_v32, %s10250_s27  ;;  %v6787_v28 = vld [vmem:[#allocation4 + $0xa08] sm:$0xff] }
 0x463   : > { %3170 = vst [vmem:[#allocation4 + $0xa68] sm:$0xf] %v3106_v18  ;;  %3171 = vst [vmem:[#allocation4 + $0xa70] sm:$0xf] %v3107_v41  ;;  %3463 = vrot.lane.b32.xlu0 %v12202_v34, %s10250_s27  ;;  %v6788_v41 = vld [vmem:[#allocation4 + $0xa10] sm:$0xff] }
 0x464   : > { %v3062_v46 = vpop.permute.xlu1 %3061 }
 0x465   : > { %v3060_v47 = vpop.permute.xlu0 %3059 }
 0x466   : > { %v3108_v38 = vsel %vm1293_vm1, %v3058_v19, %v3060_v47  ;;  %v3109_v35 = vsel %vm1293_vm1, %v3060_v47, %v3062_v46  ;;  %3469 = vrot.lane.b32.xlu1 %v12225_v48, %s10250_s27  ;;  %v3417_v19 = vld [vmem:[%s10303_s24 + $0x88] sm:$0xf] }
 0x467   : > { %3172 = vst [vmem:[#allocation4 + $0xa78] sm:$0xf] %v3108_v38  ;;  %3173 = vst [vmem:[#allocation4 + $0xa80] sm:$0xf] %v3109_v35  ;;  %3467 = vrot.lane.b32.xlu0 %v12215_v55, %s10250_s27  ;;  %v6789_v38 = vld [vmem:[#allocation4 + $0xa18] sm:$0xff] }
 0x468   : > { %v3066_v43 = vpop.permute.xlu1 %3065 }
 0x469   : > { %v3064_v40 = vpop.permute.xlu0 %3063 }
 0x46a   : > { %v3110_v32 = vsel %vm1293_vm1, %v3062_v46, %v3064_v40  ;;  %v3111_v34 = vsel %vm1293_vm1, %v3064_v40, %v3066_v43  ;;  %3473 = vrot.lane.b32.xlu1 %v12238_v54, %s10250_s27 }
 0x46b   : > { %3174 = vst [vmem:[#allocation4 + $0xa88] sm:$0xf] %v3110_v32  ;;  %3175 = vst [vmem:[#allocation4 + $0xa90] sm:$0xf] %v3111_v34  ;;  %3471 = vrot.lane.b32.xlu0 %v12228_v50, %s10250_s27  ;;  %v12585_v32 = vld [vmem:[%s10303_s24 + $0x10] sm:$0xff] }
 0x46c   : > { %v3070_v2 = vpop.permute.xlu1 %3069 }
 0x46d   : > { %v3068_v53 = vpop.permute.xlu0 %3067 }
 0x46e   : > { %v3112_v48 = vsel %vm1293_vm1, %v3066_v43, %v3068_v53  ;;  %v3113_v55 = vsel %vm1293_vm1, %v3068_v53, %v3070_v2  ;;  %3477 = vrot.lane.b32.xlu1 %v12251_v0, %s10250_s27 }
 0x46f   : > { %3176 = vst [vmem:[#allocation4 + $0xa98] sm:$0xf] %v3112_v48  ;;  %3177 = vst [vmem:[#allocation4 + $0xaa0] sm:$0xf] %v3113_v55  ;;  %3475 = vrot.lane.b32.xlu0 %v12241_v57, %s10250_s27  ;;  %v12591_v55 = vcombine.high %v12585_v32, %v12585_v32 }
 0x470   : > { %v3074_v37 = vpop.permute.xlu1 %3073 }
 0x471   : > { %v3072_v3 = vpop.permute.xlu0 %3071 }
 0x472   : > { %v3114_v54 = vsel %vm1293_vm1, %v3070_v2, %v3072_v3  ;;  %v3115_v50 = vsel %vm1293_vm1, %v3072_v3, %v3074_v37  ;;  %3481 = vrot.lane.b32.xlu1 %v12264_v39, %s10250_s27 }
 0x473   : > { %3178 = vst [vmem:[#allocation4 + $0xaa8] sm:$0xf] %v3114_v54  ;;  %3179 = vst [vmem:[#allocation4 + $0xab0] sm:$0xf] %v3115_v50  ;;  %3479 = vrot.lane.b32.xlu0 %v12254_v22, %s10250_s27 }
 0x474   : > { %v3078_v45 = vpop.permute.xlu1 %3077 }
 0x475   : > { %v3076_v58 = vpop.permute.xlu0 %3075 }
 0x476   : > { %v3116_v0 = vsel %vm1293_vm1, %v3074_v37, %v3076_v58  ;;  %v3117_v57 = vsel %vm1293_vm1, %v3076_v58, %v3078_v45  ;;  %3485 = vrot.lane.b32.xlu1 %v12277_v62, %s10250_s27  ;;  %v12598_v37 = vld [vmem:[%s10303_s24 + $0x18] sm:$0xff] }
 0x477   : > { %3180 = vst [vmem:[#allocation4 + $0xab8] sm:$0xf] %v3116_v0  ;;  %3181 = vst [vmem:[#allocation4 + $0xac0] sm:$0xf] %v3117_v57  ;;  %3483 = vrot.lane.b32.xlu0 %v12267_v52, %s10250_s27  ;;  %v12604_v58 = vcombine.high %v12598_v37, %v12598_v37  ;;  %v12611_v0 = vld [vmem:[%s10303_s24 + $0x20] sm:$0xff] }
 0x478   : > { %v3082_v59 = vpop.permute.xlu1 %3081 }
 0x479   : > { %v3080_v49 = vpop.permute.xlu0 %3079 }
 0x47a   : > { %v3118_v39 = vsel %vm1293_vm1, %v3078_v45, %v3080_v49  ;;  %v3119_v22 = vsel %vm1293_vm1, %v3080_v49, %v3082_v59  ;;  %3489 = vrot.lane.b32.xlu1 %v12290_v24, %s10250_s27 }
 0x47b   : > { %3182 = vst [vmem:[#allocation4 + $0xac8] sm:$0xf] %v3118_v39  ;;  %3183 = vst [vmem:[#allocation4 + $0xad0] sm:$0xf] %v3119_v22  ;;  %3487 = vrot.lane.b32.xlu0 %v12280_v16, %s10250_s27  ;;  %v12617_v22 = vcombine.high %v12611_v0, %v12611_v0 }
 0x47c   : > { %v3086_v6 = vpop.permute.xlu1 %3085 }
 0x47d   : > { %v3084_v8 = vpop.permute.xlu0 %3083 }
 0x47e   : > { %v3120_v62 = vsel %vm1293_vm1, %v3082_v59, %v3084_v8  ;;  %v3121_v52 = vsel %vm1293_vm1, %v3084_v8, %v3086_v6  ;;  %3493 = vrot.lane.b32.xlu1 %v12303_v44, %s10250_s27 }
 0x47f   : > { %3184 = vst [vmem:[#allocation4 + $0xad8] sm:$0xf] %v3120_v62  ;;  %3185 = vst [vmem:[#allocation4 + $0xae0] sm:$0xf] %v3121_v52  ;;  %3491 = vrot.lane.b32.xlu0 %v12293_v1, %s10250_s27 }
 0x480   : > { %v3090_v27 = vpop.permute.xlu1 %3089 }
 0x481   : > { %v3088_v5 = vpop.permute.xlu0 %3087 }
 0x482   : > { %v3122_v24 = vsel %vm1293_vm1, %v3086_v6, %v3088_v5  ;;  %v3123_v16 = vsel %vm1293_vm1, %v3088_v5, %v3090_v27  ;;  %3497 = vrot.lane.b32.xlu1 %v12316_v29, %s10250_s27  ;;  %v12624_v6 = vld [vmem:[%s10303_s24 + $0x28] sm:$0xff] }
 0x483   : > { %3186 = vst [vmem:[#allocation4 + $0xae8] sm:$0xf] %v3122_v24  ;;  %3187 = vst [vmem:[#allocation4 + $0xaf0] sm:$0xf] %v3123_v16  ;;  %3495 = vrot.lane.b32.xlu0 %v12306_v15, %s10250_s27  ;;  %v12630_v5 = vcombine.high %v12624_v6, %v12624_v6  ;;  %v12637_v24 = vld [vmem:[%s10303_s24 + $0x30] sm:$0xff] }
 0x484   : > { %v3240_v36 = vpop.permute.xlu1 %3239 }
 0x485   : > { %v3092_v14 = vpop.permute.xlu0 %3091 }
 0x486   : > { %v3124_v44 = vsel %vm1293_vm1, %v3090_v27, %v3092_v14  ;;  %3501 = vrot.lane.b32.xlu1 %v12329_v42, %s10250_s27 }
 0x487   : > { %3188 = vst [vmem:[#allocation4 + $0xaf8] sm:$0xf] %v3124_v44  ;;  %3499 = vrot.lane.b32.xlu0 %v12319_v25, %s10250_s27 }
 0x488   : > { %v3244_v1 = vpop.permute.xlu1 %3243 }
 0x489   : > { %v3242_v51 = vpop.permute.xlu0 %3241 }
 0x48a   : > { %v3305_v63 = vsel %vm1506_vm2, %v3240_v36, %v3242_v51  ;;  %v3306_v29 = vsel %vm1506_vm2, %v3242_v51, %v3244_v1  ;;  %3505 = vrot.lane.b32.xlu1 %v12341_v4, %s10250_s27  ;;  %v12650_v51 = vld [vmem:[%s10303_s24 + $0x38] sm:$0xff] }
 0x48b   : > { %3369 = vst [vmem:[#allocation4 + $0xb00] sm:$0xf] %v3305_v63  ;;  %3370 = vst [vmem:[#allocation4 + $0xb08] sm:$0xf] %v3306_v29  ;;  %3503 = vrot.lane.b32.xlu0 %v12332_v33, %s10250_s27 }
 0x48c   : > { %v3248_v15 = vpop.permute.xlu1 %3247 }
 0x48d   : > { %v3246_v20 = vpop.permute.xlu0 %3245 }
 0x48e   : > { %v3307_v42 = vsel %vm1506_vm2, %v3244_v1, %v3246_v20  ;;  %v3308_v25 = vsel %vm1506_vm2, %v3246_v20, %v3248_v15  ;;  %3509 = vrot.lane.b32.xlu1 %v12354_v31, %s10250_s27  ;;  %v12643_v1 = vcombine.high %v12637_v24, %v12637_v24 }
 0x48f   : > { %3371 = vst [vmem:[#allocation4 + $0xb10] sm:$0xf] %v3307_v42  ;;  %3372 = vst [vmem:[#allocation4 + $0xb18] sm:$0xf] %v3308_v25  ;;  %3507 = vrot.lane.b32.xlu0 %v12344_v60, %s10250_s27  ;;  %v12656_v42 = vcombine.high %v12650_v51, %v12650_v51  ;;  %v12663_v25 = vld [vmem:[%s10303_s24 + $0x40] sm:$0xff] }
 0x490   : > { %v3252_v4 = vpop.permute.xlu1 %3251 }
 0x491   : > { %v3250_v12 = vpop.permute.xlu0 %3249 }
 0x492   : > { %v3309_v33 = vsel %vm1506_vm2, %v3248_v15, %v3250_v12  ;;  %v3310_v26 = vsel %vm1506_vm2, %v3250_v12, %v3252_v4  ;;  %v6819_v23 = vld [vmem:[#allocation4 + $0xb08] sm:$0xff]  ;;  %v6818_v7 = vld [vmem:[#allocation4 + $0xb00] sm:$0xff]  ;;  %3513 = vrot.lane.b32.xlu1 %v12367_v61, %s10250_s27 }
 0x493   : > { %3373 = vst [vmem:[#allocation4 + $0xb20] sm:$0xf] %v3309_v33  ;;  %3374 = vst [vmem:[#allocation4 + $0xb28] sm:$0xf] %v3310_v26  ;;  %3511 = vrot.lane.b32.xlu0 %v12357_v30, %s10250_s27  ;;  %v9302_v60 = vpack.c.bf16 %v6819_v23, %v6787_v28  ;;  %v9304_v31 = vpack.c.bf16 %v6818_v7, %v6786_v17  ;;  %v12579_v30 = vcombine.high %v12572_v56, %v12572_v56  ;;  %v12676_v28 = vld [vmem:[%s10303_s24 + $0x48] sm:$0xff] }
 0x494   : > { %v3256_v21 = vpop.permute.xlu1 %3255  ;;  %v12669_v26 = vcombine.high %v12663_v25, %v12663_v25 }
 0x495   : > { %v3254_v18 = vpop.permute.xlu0 %3253  ;;  %9303 = vmatprep.subr.bf16.mxu0 %v9302_v60 }
 0x496   : > { %v3311_v46 = vsel %vm1506_vm2, %v3252_v4, %v3254_v18  ;;  %v3312_v47 = vsel %vm1506_vm2, %v3254_v18, %v3256_v21  ;;  %9305 = vmatpush1.bf16.msra.mxu0 %v9304_v31  ;;  %v6821_v61 = vld [vmem:[#allocation4 + $0xb18] sm:$0xff]  ;;  %v6820_v35 = vld [vmem:[#allocation4 + $0xb10] sm:$0xff]  ;;  %3663 = vrot.lane.b32.xlu1 %v12572_v56, %s10251_s28 }
 0x497   : > { %3375 = vst [vmem:[#allocation4 + $0xb30] sm:$0xf] %v3311_v46  ;;  %3376 = vst [vmem:[#allocation4 + $0xb38] sm:$0xf] %v3312_v47  ;;  %3515 = vrot.lane.b32.xlu0 %v3417_v19, %s10250_s27  ;;  %v9354_v43 = vpack.c.bf16 %v6821_v61, %v6789_v38  ;;  %v9356_v40 = vpack.c.bf16 %v6820_v35, %v6788_v41  ;;  %v12682_v19 = vcombine.high %v12676_v28, %v12676_v28  ;;  %v3623_v61 = vld [vmem:[%s10303_s24 + $0x58] sm:$0xff] }
 0x498   : > { %v3260_v34 = vpop.permute.xlu1 %3259 }
 0x499   : > { %v3258_v2 = vpop.permute.xlu0 %3257  ;;  %9355 = vmatprep.subr.bf16.mxu1 %v9354_v43 }
 0x49a   : > { %v3313_v53 = vsel %vm1506_vm2, %v3256_v21, %v3258_v2  ;;  %v3314_v48 = vsel %vm1506_vm2, %v3258_v2, %v3260_v34  ;;  %9357 = vmatpush1.bf16.msra.mxu1 %v9356_v40  ;;  %3667 = vrot.lane.b32.xlu1 %v12585_v32, %s10251_s28  ;;  %v12689_v21 = vld [vmem:[%s10303_s24 + $0x50] sm:$0xff]  ;;  %v3657_v2 = vcombine.high %v3623_v61, %v3623_v61 }
 0x49b   : > { %3377 = vst [vmem:[#allocation4 + $0xb40] sm:$0xf] %v3313_v53  ;;  %3378 = vst [vmem:[#allocation4 + $0xb48] sm:$0xf] %v3314_v48  ;;  %3665 = vrot.lane.b32.xlu0 %v12579_v30, %s10251_s28  ;;  %v12695_v38 = vcombine.high %v12689_v21, %v12689_v21  ;;  %v3624_v53 = vld [vmem:[%s10303_s24 + $0x60] sm:$0xff] }
 0x49c   : > { %v3264_v3 = vpop.permute.xlu1 %3263 }
 0x49d   : > { %v3262_v54 = vpop.permute.xlu0 %3261 }
 0x49e   : > { %v3315_v50 = vsel %vm1506_vm2, %v3260_v34, %v3262_v54  ;;  %v3316_v45 = vsel %vm1506_vm2, %v3262_v54, %v3264_v3  ;;  %3671 = vrot.lane.b32.xlu1 %v12598_v37, %s10251_s28 }
 0x49f   : > { %3379 = vst [vmem:[#allocation4 + $0xb50] sm:$0xf] %v3315_v50  ;;  %3380 = vst [vmem:[#allocation4 + $0xb58] sm:$0xf] %v3316_v45  ;;  %3669 = vrot.lane.b32.xlu0 %v12591_v55, %s10251_s28  ;;  %v3658_v45 = vcombine.high %v3624_v53, %v3624_v53 }
 0x4a0   : > { %v3268_v57 = vpop.permute.xlu1 %3267 }
 0x4a1   : > { %v3266_v59 = vpop.permute.xlu0 %3265 }
 0x4a2   : > { %v3317_v49 = vsel %vm1506_vm2, %v3264_v3, %v3266_v59  ;;  %v3318_v39 = vsel %vm1506_vm2, %v3266_v59, %v3268_v57  ;;  %3675 = vrot.lane.b32.xlu1 %v12611_v0, %s10251_s28 }
 0x4a3   : > { %3381 = vst [vmem:[#allocation4 + $0xb60] sm:$0xf] %v3317_v49  ;;  %3382 = vst [vmem:[#allocation4 + $0xb68] sm:$0xf] %v3318_v39  ;;  %3673 = vrot.lane.b32.xlu0 %v12604_v58, %s10251_s28 }
 0x4a4   : > { %v3272_v8 = vpop.permute.xlu1 %3271 }
 0x4a5   : > { %v3270_v62 = vpop.permute.xlu0 %3269 }
 0x4a6   : > { %v3319_v52 = vsel %vm1506_vm2, %v3268_v57, %v3270_v62  ;;  %v3320_v27 = vsel %vm1506_vm2, %v3270_v62, %v3272_v8  ;;  %3679 = vrot.lane.b32.xlu1 %v12624_v6, %s10251_s28  ;;  %v3625_v57 = vld [vmem:[%s10303_s24 + $0x68] sm:$0xff] }
 0x4a7   : > { %3383 = vst [vmem:[#allocation4 + $0xb70] sm:$0xf] %v3319_v52  ;;  %3384 = vst [vmem:[#allocation4 + $0xb78] sm:$0xf] %v3320_v27  ;;  %3677 = vrot.lane.b32.xlu0 %v12617_v22, %s10251_s28  ;;  %v3659_v62 = vcombine.high %v3625_v57, %v3625_v57  ;;  %v3626_v52 = vld [vmem:[%s10303_s24 + $0x70] sm:$0xff] }
 0x4a8   : > { %v3276_v16 = vpop.permute.xlu1 %3275 }
 0x4a9   : > { %v3274_v36 = vpop.permute.xlu0 %3273 }
 0x4aa   : > { %v3321_v14 = vsel %vm1506_vm2, %v3272_v8, %v3274_v36  ;;  %v3322_v44 = vsel %vm1506_vm2, %v3274_v36, %v3276_v16  ;;  %3683 = vrot.lane.b32.xlu1 %v12637_v24, %s10251_s28 }
 0x4ab   : > { %3385 = vst [vmem:[#allocation4 + $0xb80] sm:$0xf] %v3321_v14  ;;  %3386 = vst [vmem:[#allocation4 + $0xb88] sm:$0xf] %v3322_v44  ;;  %3681 = vrot.lane.b32.xlu0 %v12630_v5, %s10251_s28  ;;  %v3660_v14 = vcombine.high %v3626_v52, %v3626_v52  ;;  %v3627_v44 = vld [vmem:[%s10303_s24 + $0x78] sm:$0xff] }
 0x4ac   : > { %v3280_v63 = vpop.permute.xlu1 %3279 }
 0x4ad   : > { %v3278_v29 = vpop.permute.xlu0 %3277 }
 0x4ae   : > { %v3323_v15 = vsel %vm1506_vm2, %v3276_v16, %v3278_v29  ;;  %v3324_v20 = vsel %vm1506_vm2, %v3278_v29, %v3280_v63  ;;  %3687 = vrot.lane.b32.xlu1 %v12650_v51, %s10251_s28 }
 0x4af   : > { %3387 = vst [vmem:[#allocation4 + $0xb90] sm:$0xf] %v3323_v15  ;;  %3388 = vst [vmem:[#allocation4 + $0xb98] sm:$0xf] %v3324_v20  ;;  %3685 = vrot.lane.b32.xlu0 %v12643_v1, %s10251_s28 }
 0x4b0   : > { %v3284_v4 = vpop.permute.xlu1 %3283 }
 0x4b1   : > { %v3282_v12 = vpop.permute.xlu0 %3281 }
 0x4b2   : > { %v3325_v17 = vsel %vm1506_vm2, %v3280_v63, %v3282_v12  ;;  %v3326_v33 = vsel %vm1506_vm2, %v3282_v12, %v3284_v4  ;;  %3691 = vrot.lane.b32.xlu1 %v12663_v25, %s10251_s28  ;;  %v3628_v12 = vld [vmem:[%s10303_s24 + $0x80] sm:$0xff] }
 0x4b3   : > { %3389 = vst [vmem:[#allocation4 + $0xba0] sm:$0xf] %v3325_v17  ;;  %3390 = vst [vmem:[#allocation4 + $0xba8] sm:$0xf] %v3326_v33  ;;  %3689 = vrot.lane.b32.xlu0 %v12656_v42, %s10251_s28 }
 0x4b4   : > { %v3288_v23 = vpop.permute.xlu1 %3287 }
 0x4b5   : > { %v3286_v7 = vpop.permute.xlu0 %3285 }
 0x4b6   : > { %v3327_v60 = vsel %vm1506_vm2, %v3284_v4, %v3286_v7  ;;  %v3328_v31 = vsel %vm1506_vm2, %v3286_v7, %v3288_v23  ;;  %3695 = vrot.lane.b32.xlu1 %v12676_v28, %s10251_s28  ;;  %v3661_v4 = vcombine.high %v3627_v44, %v3627_v44 }
 0x4b7   : > { %3391 = vst [vmem:[#allocation4 + $0xbb0] sm:$0xf] %v3327_v60  ;;  %3392 = vst [vmem:[#allocation4 + $0xbb8] sm:$0xf] %v3328_v31  ;;  %3693 = vrot.lane.b32.xlu0 %v12669_v26, %s10251_s28  ;;  %v3662_v60 = vcombine.high %v3628_v12, %v3628_v12  ;;  %v3629_v31 = vld [vmem:[%s10303_s24 + $0x88] sm:$0xf] }
 0x4b8   : > { %v3292_v18 = vpop.permute.xlu1 %3291 }
 0x4b9   : > { %v3290_v41 = vpop.permute.xlu0 %3289 }
 0x4ba   : > { %v3329_v46 = vsel %vm1506_vm2, %v3288_v23, %v3290_v41  ;;  %v3330_v47 = vsel %vm1506_vm2, %v3290_v41, %v3292_v18  ;;  %3699 = vrot.lane.b32.xlu1 %v12689_v21, %s10251_s28 }
 0x4bb   : > { %3393 = vst [vmem:[#allocation4 + $0xbc0] sm:$0xf] %v3329_v46  ;;  %3394 = vst [vmem:[#allocation4 + $0xbc8] sm:$0xf] %v3330_v47  ;;  %3697 = vrot.lane.b32.xlu0 %v12682_v19, %s10251_s28 }
 0x4bc   : > { %v3296_v35 = vpop.permute.xlu1 %3295 }
 0x4bd   : > { %v3294_v43 = vpop.permute.xlu0 %3293 }
 0x4be   : > { %v3331_v40 = vsel %vm1506_vm2, %v3292_v18, %v3294_v43  ;;  %v3332_v34 = vsel %vm1506_vm2, %v3294_v43, %v3296_v35  ;;  %3703 = vrot.lane.b32.xlu1 %v3623_v61, %s10251_s28 }
 0x4bf   : > { %3395 = vst [vmem:[#allocation4 + $0xbd0] sm:$0xf] %v3331_v40  ;;  %3396 = vst [vmem:[#allocation4 + $0xbd8] sm:$0xf] %v3332_v34  ;;  %3701 = vrot.lane.b32.xlu0 %v12695_v38, %s10251_s28 }
 0x4c0   : > { %v3300_v48 = vpop.permute.xlu1 %3299 }
 0x4c1   : > { %v3298_v3 = vpop.permute.xlu0 %3297 }
 0x4c2   : > { %v3333_v54 = vsel %vm1506_vm2, %v3296_v35, %v3298_v3  ;;  %v3334_v50 = vsel %vm1506_vm2, %v3298_v3, %v3300_v48  ;;  %3707 = vrot.lane.b32.xlu1 %v3624_v53, %s10251_s28 }
 0x4c3   : > { %3397 = vst [vmem:[#allocation4 + $0xbe0] sm:$0xf] %v3333_v54  ;;  %3398 = vst [vmem:[#allocation4 + $0xbe8] sm:$0xf] %v3334_v50  ;;  %3705 = vrot.lane.b32.xlu0 %v3657_v2, %s10251_s28 }
 0x4c4   : > { %v3304_v59 = vpop.permute.xlu1 %3303 }
 0x4c5   : > { %v3302_v49 = vpop.permute.xlu0 %3301 }
 0x4c6   : > { %v3335_v39 = vsel %vm1506_vm2, %v3300_v48, %v3302_v49  ;;  %v3336_v8 = vsel %vm1506_vm2, %v3302_v49, %v3304_v59  ;;  %3711 = vrot.lane.b32.xlu1 %v3625_v57, %s10251_s28 }
 0x4c7   : > { %3399 = vst [vmem:[#allocation4 + $0xbf0] sm:$0xf] %v3335_v39  ;;  %3400 = vst [vmem:[#allocation4 + $0xbf8] sm:$0xf] %v3336_v8  ;;  %3709 = vrot.lane.b32.xlu0 %v3658_v45, %s10251_s28 }
 0x4c8   : > { %v3454_v27 = vpop.permute.xlu1 %3453 }
 0x4c9   : > { %v3452_v16 = vpop.permute.xlu0 %3451 }
 0x4ca   : > { %v3517_v36 = vsel %vm1719_vm3, %v3452_v16, %v3454_v27  ;;  %3715 = vrot.lane.b32.xlu1 %v3626_v52, %s10251_s28 }
 0x4cb   : > { %3581 = vst [vmem:[#allocation4 + $0xc00] sm:$0xf] %v3517_v36  ;;  %3713 = vrot.lane.b32.xlu0 %v3659_v62, %s10251_s28 }
 0x4cc   : > { %v3458_v63 = vpop.permute.xlu1 %3457 }
 0x4cd   : > { %v3456_v29 = vpop.permute.xlu0 %3455 }
 0x4ce   : > { %v3518_v15 = vsel %vm1719_vm3, %v3454_v27, %v3456_v29  ;;  %v3519_v20 = vsel %vm1719_vm3, %v3456_v29, %v3458_v63  ;;  %3719 = vrot.lane.b32.xlu1 %v3627_v44, %s10251_s28 }
 0x4cf   : > { %3582 = vst [vmem:[#allocation4 + $0xc08] sm:$0xf] %v3518_v15  ;;  %3583 = vst [vmem:[#allocation4 + $0xc10] sm:$0xf] %v3519_v20  ;;  %3717 = vrot.lane.b32.xlu0 %v3660_v14, %s10251_s28 }
 0x4d0   : > { %v3462_v17 = vpop.permute.xlu1 %3461 }
 0x4d1   : > { %v3460_v33 = vpop.permute.xlu0 %3459 }
 0x4d2   : > { %v3520_v23 = vsel %vm1719_vm3, %v3458_v63, %v3460_v33  ;;  %v3521_v7 = vsel %vm1719_vm3, %v3460_v33, %v3462_v17  ;;  %3723 = vrot.lane.b32.xlu1 %v3628_v12, %s10251_s28 }
 0x4d3   : > { %3584 = vst [vmem:[#allocation4 + $0xc18] sm:$0xf] %v3520_v23  ;;  %3585 = vst [vmem:[#allocation4 + $0xc20] sm:$0xf] %v3521_v7  ;;  %3721 = vrot.lane.b32.xlu0 %v3661_v4, %s10251_s28 }
 0x4d4   : > { %v3466_v18 = vpop.permute.xlu1 %3465 }
 0x4d5   : > { %v3464_v41 = vpop.permute.xlu0 %3463 }
 0x4d6   : > { %v3522_v46 = vsel %vm1719_vm3, %v3462_v17, %v3464_v41  ;;  %v3523_v47 = vsel %vm1719_vm3, %v3464_v41, %v3466_v18  ;;  %3727 = vrot.lane.b32.xlu1 %v3629_v31, %s10251_s28 }
 0x4d7   : > { %3586 = vst [vmem:[#allocation4 + $0xc28] sm:$0xf] %v3522_v46  ;;  %3587 = vst [vmem:[#allocation4 + $0xc30] sm:$0xf] %v3523_v47  ;;  %3725 = vrot.lane.b32.xlu0 %v3662_v60, %s10251_s28 }
 0x4d8   : > { %v3470_v61 = vpop.permute.xlu1 %3469 }
 0x4d9   : > { %v3468_v35 = vpop.permute.xlu0 %3467 }
 0x4da   : > { %v3524_v43 = vsel %vm1719_vm3, %v3466_v18, %v3468_v35  ;;  %v3525_v40 = vsel %vm1719_vm3, %v3468_v35, %v3470_v61  ;;  %3877 = vrot.lane.b32.xlu1 %v12579_v30, %s10252_s29 }
 0x4db   : > { %3588 = vst [vmem:[#allocation4 + $0xc38] sm:$0xf] %v3524_v43  ;;  %3589 = vst [vmem:[#allocation4 + $0xc40] sm:$0xf] %v3525_v40  ;;  %3875 = vrot.lane.b32.xlu0 %v12572_v56, %s10252_s29 }
 0x4dc   : > { %v3474_v34 = vpop.permute.xlu1 %3473 }
 0x4dd   : > { %v3472_v2 = vpop.permute.xlu0 %3471 }
 0x4de   : > { %v3526_v53 = vsel %vm1719_vm3, %v3470_v61, %v3472_v2  ;;  %v3527_v48 = vsel %vm1719_vm3, %v3472_v2, %v3474_v34  ;;  %3881 = vrot.lane.b32.xlu1 %v12591_v55, %s10252_s29 }
 0x4df   : > { %3590 = vst [vmem:[#allocation4 + $0xc48] sm:$0xf] %v3526_v53  ;;  %3591 = vst [vmem:[#allocation4 + $0xc50] sm:$0xf] %v3527_v48  ;;  %3879 = vrot.lane.b32.xlu0 %v12585_v32, %s10252_s29 }
 0x4e0   : > { %v3478_v3 = vpop.permute.xlu1 %3477 }
 0x4e1   : > { %v3476_v54 = vpop.permute.xlu0 %3475 }
 0x4e2   : > { %v3528_v50 = vsel %vm1719_vm3, %v3474_v34, %v3476_v54  ;;  %v3529_v45 = vsel %vm1719_vm3, %v3476_v54, %v3478_v3  ;;  %3885 = vrot.lane.b32.xlu1 %v12604_v58, %s10252_s29 }
 0x4e3   : > { %3592 = vst [vmem:[#allocation4 + $0xc58] sm:$0xf] %v3528_v50  ;;  %3593 = vst [vmem:[#allocation4 + $0xc60] sm:$0xf] %v3529_v45  ;;  %3883 = vrot.lane.b32.xlu0 %v12598_v37, %s10252_s29  ;;  %v6850_v50 = vld [vmem:[#allocation4 + $0xc00] sm:$0xff] }
 0x4e4   : > { %v3482_v57 = vpop.permute.xlu1 %3481 }
 0x4e5   : > { %v3480_v59 = vpop.permute.xlu0 %3479 }
 0x4e6   : > { %v3530_v49 = vsel %vm1719_vm3, %v3478_v3, %v3480_v59  ;;  %v3531_v39 = vsel %vm1719_vm3, %v3480_v59, %v3482_v57  ;;  %3889 = vrot.lane.b32.xlu1 %v12617_v22, %s10252_s29 }
 0x4e7   : > { %3594 = vst [vmem:[#allocation4 + $0xc68] sm:$0xf] %v3530_v49  ;;  %3595 = vst [vmem:[#allocation4 + $0xc70] sm:$0xf] %v3531_v39  ;;  %3887 = vrot.lane.b32.xlu0 %v12611_v0, %s10252_s29 }
 0x4e8   : > { %v3486_v8 = vpop.permute.xlu1 %3485 }
 0x4e9   : > { %v3484_v62 = vpop.permute.xlu0 %3483 }
 0x4ea   : > { %v3532_v52 = vsel %vm1719_vm3, %v3482_v57, %v3484_v62  ;;  %v3533_v27 = vsel %vm1719_vm3, %v3484_v62, %v3486_v8  ;;  %3893 = vrot.lane.b32.xlu1 %v12630_v5, %s10252_s29  ;;  %v6851_v57 = vld [vmem:[#allocation4 + $0xc08] sm:$0xff] }
 0x4eb   : > { %3596 = vst [vmem:[#allocation4 + $0xc78] sm:$0xf] %v3532_v52  ;;  %3597 = vst [vmem:[#allocation4 + $0xc80] sm:$0xf] %v3533_v27  ;;  %3891 = vrot.lane.b32.xlu0 %v12624_v6, %s10252_s29  ;;  %v6852_v52 = vld [vmem:[#allocation4 + $0xc10] sm:$0xff] }
 0x4ec   : > { %v3490_v16 = vpop.permute.xlu1 %3489 }
 0x4ed   : > { %v3488_v36 = vpop.permute.xlu0 %3487 }
 0x4ee   : > { %v3534_v14 = vsel %vm1719_vm3, %v3486_v8, %v3488_v36  ;;  %v3535_v44 = vsel %vm1719_vm3, %v3488_v36, %v3490_v16  ;;  %3897 = vrot.lane.b32.xlu1 %v12643_v1, %s10252_s29  ;;  %v6853_v36 = vld [vmem:[#allocation4 + $0xc18] sm:$0xff] }
 0x4ef   : > { %3598 = vst [vmem:[#allocation4 + $0xc88] sm:$0xf] %v3534_v14  ;;  %3599 = vst [vmem:[#allocation4 + $0xc90] sm:$0xf] %v3535_v44  ;;  %3895 = vrot.lane.b32.xlu0 %v12637_v24, %s10252_s29 }
 0x4f0   : > { %v3494_v63 = vpop.permute.xlu1 %3493 }
 0x4f1   : > { %v3492_v29 = vpop.permute.xlu0 %3491 }
 0x4f2   : > { %v3536_v5 = vsel %vm1719_vm3, %v3490_v16, %v3492_v29  ;;  %v3537_v6 = vsel %vm1719_vm3, %v3492_v29, %v3494_v63  ;;  %3901 = vrot.lane.b32.xlu1 %v12656_v42, %s10252_s29 }
 0x4f3   : > { %3600 = vst [vmem:[#allocation4 + $0xc98] sm:$0xf] %v3536_v5  ;;  %3601 = vst [vmem:[#allocation4 + $0xca0] sm:$0xf] %v3537_v6  ;;  %3899 = vrot.lane.b32.xlu0 %v12650_v51, %s10252_s29 }
 0x4f4   : > { %v3498_v15 = vpop.permute.xlu1 %3497 }
 0x4f5   : > { %v3496_v20 = vpop.permute.xlu0 %3495 }
 0x4f6   : > { %v3538_v1 = vsel %vm1719_vm3, %v3494_v63, %v3496_v20  ;;  %v3539_v24 = vsel %vm1719_vm3, %v3496_v20, %v3498_v15  ;;  %3905 = vrot.lane.b32.xlu1 %v12669_v26, %s10252_s29 }
 0x4f7   : > { %3602 = vst [vmem:[#allocation4 + $0xca8] sm:$0xf] %v3538_v1  ;;  %3603 = vst [vmem:[#allocation4 + $0xcb0] sm:$0xf] %v3539_v24  ;;  %3903 = vrot.lane.b32.xlu0 %v12663_v25, %s10252_s29 }
 0x4f8   : > { %v3502_v4 = vpop.permute.xlu1 %3501 }
 0x4f9   : > { %v3500_v12 = vpop.permute.xlu0 %3499 }
 0x4fa   : > { %v3540_v42 = vsel %vm1719_vm3, %v3498_v15, %v3500_v12  ;;  %v3541_v51 = vsel %vm1719_vm3, %v3500_v12, %v3502_v4  ;;  %3909 = vrot.lane.b32.xlu1 %v12682_v19, %s10252_s29 }
 0x4fb   : > { %3604 = vst [vmem:[#allocation4 + $0xcb8] sm:$0xf] %v3540_v42  ;;  %3605 = vst [vmem:[#allocation4 + $0xcc0] sm:$0xf] %v3541_v51  ;;  %3907 = vrot.lane.b32.xlu0 %v12676_v28, %s10252_s29 }
 0x4fc   : > { %v3506_v17 = vpop.permute.xlu1 %3505 }
 0x4fd   : > { %v3504_v33 = vpop.permute.xlu0 %3503 }
 0x4fe   : > { %v3542_v26 = vsel %vm1719_vm3, %v3502_v4, %v3504_v33  ;;  %v3543_v25 = vsel %vm1719_vm3, %v3504_v33, %v3506_v17  ;;  %4089 = vrot.lane.b32.xlu1 %v12579_v30, %s10253_s30 }
 0x4ff   : > { %3606 = vst [vmem:[#allocation4 + $0xcc8] sm:$0xf] %v3542_v26  ;;  %3607 = vst [vmem:[#allocation4 + $0xcd0] sm:$0xf] %v3543_v25  ;;  %3911 = vrot.lane.b32.xlu0 %v12689_v21, %s10252_s29 }
 0x500   : > { %v3510_v23 = vpop.permute.xlu1 %3509 }
 0x501   : > { %v3508_v7 = vpop.permute.xlu0 %3507 }
 0x502   : > { %v3544_v19 = vsel %vm1719_vm3, %v3506_v17, %v3508_v7  ;;  %v3545_v28 = vsel %vm1719_vm3, %v3508_v7, %v3510_v23  ;;  %4087 = vrot.lane.b32.xlu1 %v12572_v56, %s10253_s30 }
 0x503   : > { %3608 = vst [vmem:[#allocation4 + $0xcd8] sm:$0xf] %v3544_v19  ;;  %3609 = vst [vmem:[#allocation4 + $0xce0] sm:$0xf] %v3545_v28  ;;  %4091 = vrot.lane.b32.xlu0 %v12585_v32, %s10253_s30 }
 0x504   : > { %v3514_v60 = vpop.permute.xlu1 %3513 }
 0x505   : > { %v3512_v31 = vpop.permute.xlu0 %3511 }
 0x506   : > { %v3546_v18 = vsel %vm1719_vm3, %v3510_v23, %v3512_v31  ;;  %v3547_v21 = vsel %vm1719_vm3, %v3512_v31, %v3514_v60  ;;  %4095 = vrot.lane.b32.xlu1 %v12598_v37, %s10253_s30 }
 0x507   : > { %3610 = vst [vmem:[#allocation4 + $0xce8] sm:$0xf] %v3546_v18  ;;  %3611 = vst [vmem:[#allocation4 + $0xcf0] sm:$0xf] %v3547_v21  ;;  %4093 = vrot.lane.b32.xlu0 %v12591_v55, %s10253_s30 }
 0x508   : > { %v3664_v41 = vpop.permute.xlu1 %3663 }
 0x509   : > { %v3516_v46 = vpop.permute.xlu0 %3515 }
 0x50a   : > { %v3548_v47 = vsel %vm1719_vm3, %v3514_v60, %v3516_v46  ;;  %4303 = vrot.lane.b32.xlu1 %v12585_v32, %s10254_s6 }
 0x50b   : > { %3612 = vst [vmem:[#allocation4 + $0xcf8] sm:$0xf] %v3548_v47  ;;  %4301 = vrot.lane.b32.xlu0 %v12579_v30, %s10254_s6 }
 0x50c   : > { %v3668_v61 = vpop.permute.xlu1 %3667 }
 0x50d   : > { %v3666_v35 = vpop.permute.xlu0 %3665 }
 0x50e   : > { %v3729_v43 = vsel %vm1932_vm4, %v3664_v41, %v3666_v35  ;;  %v3730_v40 = vsel %vm1932_vm4, %v3666_v35, %v3668_v61  ;;  %4515 = vrot.lane.b32.xlu1 %v12585_v32, %s10255_s7 }
 0x50f   : > { %3793 = vst [vmem:[#allocation4 + $0xd00] sm:$0xf] %v3729_v43  ;;  %3794 = vst [vmem:[#allocation4 + $0xd08] sm:$0xf] %v3730_v40  ;;  %4513 = vrot.lane.b32.xlu0 %v12579_v30, %s10255_s7 }
 0x510   : > { %v3672_v34 = vpop.permute.xlu1 %3671 }
 0x511   : > { %v3670_v2 = vpop.permute.xlu0 %3669 }
 0x512   : > { %v3731_v53 = vsel %vm1932_vm4, %v3668_v61, %v3670_v2  ;;  %v3732_v48 = vsel %vm1932_vm4, %v3670_v2, %v3672_v34  ;;  %4511 = vrot.lane.b32.xlu1 %v12572_v56, %s10255_s7 }
 0x513   : > { %3795 = vst [vmem:[#allocation4 + $0xd10] sm:$0xf] %v3731_v53  ;;  %3796 = vst [vmem:[#allocation4 + $0xd18] sm:$0xf] %v3732_v48  ;;  %4299 = vrot.lane.b32.xlu0 %v12572_v56, %s10254_s6 }
 0x514   : > { %v3676_v3 = vpop.permute.xlu1 %3675 }
 0x515   : > { %v3674_v54 = vpop.permute.xlu0 %3673 }
 0x516   : > { %v3733_v45 = vsel %vm1932_vm4, %v3672_v34, %v3674_v54  ;;  %v3734_v30 = vsel %vm1932_vm4, %v3674_v54, %v3676_v3  ;;  %v6883_v59 = vld [vmem:[#allocation4 + $0xd08] sm:$0xff]  ;;  %v6882_v49 = vld [vmem:[#allocation4 + $0xd00] sm:$0xff]  ;;  %4307 = vrot.lane.b32.xlu1 %v12598_v37, %s10254_s6 }
 0x517   : > { %3797 = vst [vmem:[#allocation4 + $0xd20] sm:$0xf] %v3733_v45  ;;  %3798 = vst [vmem:[#allocation4 + $0xd28] sm:$0xf] %v3734_v30  ;;  %4305 = vrot.lane.b32.xlu0 %v12591_v55, %s10254_s6  ;;  %v9306_v39 = vpack.c.bf16 %v6883_v59, %v6851_v57  ;;  %v9308_v56 = vpack.c.bf16 %v6882_v49, %v6850_v50 }
 0x518   : > { %v3680_v8 = vpop.permute.xlu1 %3679 }
 0x519   : > { %v3678_v62 = vpop.permute.xlu0 %3677  ;;  %9307 = vmatprep.subr.bf16.mxu0 %v9306_v39 }
 0x51a   : > { %v3735_v27 = vsel %vm1932_vm4, %v3676_v3, %v3678_v62  ;;  %v3736_v16 = vsel %vm1932_vm4, %v3678_v62, %v3680_v8  ;;  %9309 = vmatpush1.bf16.msra.mxu0 %v9308_v56  ;;  %v6885_v14 = vld [vmem:[#allocation4 + $0xd18] sm:$0xff]  ;;  %v6884_v44 = vld [vmem:[#allocation4 + $0xd10] sm:$0xff]  ;;  %4519 = vrot.lane.b32.xlu1 %v12598_v37, %s10255_s7 }
 0x51b   : > { %3799 = vst [vmem:[#allocation4 + $0xd30] sm:$0xf] %v3735_v27  ;;  %3800 = vst [vmem:[#allocation4 + $0xd38] sm:$0xf] %v3736_v16  ;;  %4517 = vrot.lane.b32.xlu0 %v12591_v55, %s10255_s7  ;;  %v9358_v63 = vpack.c.bf16 %v6885_v14, %v6853_v36  ;;  %v9360_v29 = vpack.c.bf16 %v6884_v44, %v6852_v52 }
 0x51c   : > { %v3684_v5 = vpop.permute.xlu1 %3683 }
 0x51d   : > { %v3682_v6 = vpop.permute.xlu0 %3681  ;;  %9359 = vmatprep.subr.bf16.mxu1 %v9358_v63 }
 0x51e   : > { %v3737_v15 = vsel %vm1932_vm4, %v3680_v8, %v3682_v6  ;;  %v3738_v20 = vsel %vm1932_vm4, %v3682_v6, %v3684_v5  ;;  %9361 = vmatpush1.bf16.msra.mxu1 %v9360_v29  ;;  %4823 = vrot.lane.b32.xlu1 %v12598_v37, %s10248_s25 }
 0x51f   : > { %3801 = vst [vmem:[#allocation4 + $0xd40] sm:$0xf] %v3737_v15  ;;  %3802 = vst [vmem:[#allocation4 + $0xd48] sm:$0xf] %v3738_v20  ;;  %4821 = vrot.lane.b32.xlu0 %v12591_v55, %s10248_s25 }
 0x520   : > { %v3688_v1 = vpop.permute.xlu1 %3687 }
 0x521   : > { %v3686_v24 = vpop.permute.xlu0 %3685 }
 0x522   : > { %v3739_v4 = vsel %vm1932_vm4, %v3684_v5, %v3686_v24  ;;  %v3740_v12 = vsel %vm1932_vm4, %v3686_v24, %v3688_v1  ;;  %4825 = vrot.lane.b32.xlu1 %v12604_v58, %s10248_s25 }
 0x523   : > { %3803 = vst [vmem:[#allocation4 + $0xd50] sm:$0xf] %v3739_v4  ;;  %3804 = vst [vmem:[#allocation4 + $0xd58] sm:$0xf] %v3740_v12  ;;  %4819 = vrot.lane.b32.xlu0 %v12585_v32, %s10248_s25 }
 0x524   : > { %v3692_v42 = vpop.permute.xlu1 %3691 }
 0x525   : > { %v3690_v51 = vpop.permute.xlu0 %3689 }
 0x526   : > { %v3741_v17 = vsel %vm1932_vm4, %v3688_v1, %v3690_v51  ;;  %v3742_v33 = vsel %vm1932_vm4, %v3690_v51, %v3692_v42  ;;  %5033 = vrot.lane.b32.xlu1 %v12591_v55, %s10249_s26 }
 0x527   : > { %3805 = vst [vmem:[#allocation4 + $0xd60] sm:$0xf] %v3741_v17  ;;  %3806 = vst [vmem:[#allocation4 + $0xd68] sm:$0xf] %v3742_v33  ;;  %4827 = vrot.lane.b32.xlu0 %v12611_v0, %s10248_s25 }
 0x528   : > { %v3696_v26 = vpop.permute.xlu1 %3695 }
 0x529   : > { %v3694_v25 = vpop.permute.xlu0 %3693 }
 0x52a   : > { %v3743_v23 = vsel %vm1932_vm4, %v3692_v42, %v3694_v25  ;;  %v3744_v7 = vsel %vm1932_vm4, %v3694_v25, %v3696_v26  ;;  %5245 = vrot.lane.b32.xlu1 %v12591_v55, %s10250_s27 }
 0x52b   : > { %3807 = vst [vmem:[#allocation4 + $0xd70] sm:$0xf] %v3743_v23  ;;  %3808 = vst [vmem:[#allocation4 + $0xd78] sm:$0xf] %v3744_v7  ;;  %5035 = vrot.lane.b32.xlu0 %v12598_v37, %s10249_s26  ;;  %v12947_v7 = vld [vmem:[%s15156_s1] sm:$0xff] }
 0x52c   : > { %v3700_v19 = vpop.permute.xlu1 %3699 }
 0x52d   : > { %v3698_v28 = vpop.permute.xlu0 %3697 }
 0x52e   : > { %v3745_v60 = vsel %vm1932_vm4, %v3696_v26, %v3698_v28  ;;  %v3746_v31 = vsel %vm1932_vm4, %v3698_v28, %v3700_v19  ;;  %5031 = vrot.lane.b32.xlu1 %v12585_v32, %s10249_s26 }
 0x52f   : > { %3809 = vst [vmem:[#allocation4 + $0xd80] sm:$0xf] %v3745_v60  ;;  %3810 = vst [vmem:[#allocation4 + $0xd88] sm:$0xf] %v3746_v31  ;;  %5247 = vrot.lane.b32.xlu0 %v12598_v37, %s10250_s27 }
 0x530   : > { %v3704_v18 = vpop.permute.xlu1 %3703 }
 0x531   : > { %v3702_v21 = vpop.permute.xlu0 %3701 }
 0x532   : > { %v3747_v41 = vsel %vm1932_vm4, %v3700_v19, %v3702_v21  ;;  %v3748_v46 = vsel %vm1932_vm4, %v3702_v21, %v3704_v18  ;;  %5037 = vrot.lane.b32.xlu1 %v12604_v58, %s10249_s26  ;;  %v12951_v19 = vcombine.high %v12947_v7, %v12947_v7 }
 0x533   : > { %3811 = vst [vmem:[#allocation4 + $0xd90] sm:$0xf] %v3747_v41  ;;  %3812 = vst [vmem:[#allocation4 + $0xd98] sm:$0xf] %v3748_v46  ;;  %5243 = vrot.lane.b32.xlu0 %v12585_v32, %s10250_s27 }
 0x534   : > { %v3708_v47 = vpop.permute.xlu1 %3707  ;;  %9228 = vmatprep.mubr.msk.f32.mxu0 %vm7332_vm9, %v12951_v19  ;;  %9229 = vmatprep.mubr.msk.f32.mxu1 %vm7332_vm9, %v12951_v19 }
 0x535   : > { %v3706_v61 = vpop.permute.xlu0 %3705 }
 0x536   : > { %v3749_v35 = vsel %vm1932_vm4, %v3704_v18, %v3706_v61  ;;  %v3750_v43 = vsel %vm1932_vm4, %v3706_v61, %v3708_v47  ;;  %5249 = vrot.lane.b32.xlu1 %v12604_v58, %s10250_s27 }
 0x537   : > { %3813 = vst [vmem:[#allocation4 + $0xda0] sm:$0xf] %v3749_v35  ;;  %3814 = vst [vmem:[#allocation4 + $0xda8] sm:$0xf] %v3750_v43  ;;  %5039 = vrot.lane.b32.xlu0 %v12611_v0, %s10249_s26  ;;  %v12977_v43 = vld [vmem:[%s10303_s24 + $0x28] sm:$0xff] }
 0x538   : > { %v3712_v40 = vpop.permute.xlu1 %3711 }
 0x539   : > { %v3710_v34 = vpop.permute.xlu0 %3709 }
 0x53a   : > { %v3751_v2 = vsel %vm1932_vm4, %v3708_v47, %v3710_v34  ;;  %v3752_v53 = vsel %vm1932_vm4, %v3710_v34, %v3712_v40  ;;  %5457 = vrot.lane.b32.xlu1 %v12591_v55, %s10251_s28 }
 0x53b   : > { %3815 = vst [vmem:[#allocation4 + $0xdb0] sm:$0xf] %v3751_v2  ;;  %3816 = vst [vmem:[#allocation4 + $0xdb8] sm:$0xf] %v3752_v53  ;;  %5251 = vrot.lane.b32.xlu0 %v12611_v0, %s10250_s27 }
 0x53c   : > { %v3716_v48 = vpop.permute.xlu1 %3715 }
 0x53d   : > { %v3714_v3 = vpop.permute.xlu0 %3713 }
 0x53e   : > { %v3753_v54 = vsel %vm1932_vm4, %v3712_v40, %v3714_v3  ;;  %v3754_v50 = vsel %vm1932_vm4, %v3714_v3, %v3716_v48  ;;  %5669 = vrot.lane.b32.xlu1 %v12591_v55, %s10252_s29 }
 0x53f   : > { %3817 = vst [vmem:[#allocation4 + $0xdc0] sm:$0xf] %v3753_v54  ;;  %3818 = vst [vmem:[#allocation4 + $0xdc8] sm:$0xf] %v3754_v50  ;;  %5459 = vrot.lane.b32.xlu0 %v12598_v37, %s10251_s28 }
 0x540   : > { %v3720_v45 = vpop.permute.xlu1 %3719 }
 0x541   : > { %v3718_v30 = vpop.permute.xlu0 %3717 }
 0x542   : > { %v3755_v57 = vsel %vm1932_vm4, %v3716_v48, %v3718_v30  ;;  %v3756_v59 = vsel %vm1932_vm4, %v3718_v30, %v3720_v45  ;;  %5455 = vrot.lane.b32.xlu1 %v12585_v32, %s10251_s28 }
 0x543   : > { %3819 = vst [vmem:[#allocation4 + $0xdd0] sm:$0xf] %v3755_v57  ;;  %3820 = vst [vmem:[#allocation4 + $0xdd8] sm:$0xf] %v3756_v59  ;;  %5671 = vrot.lane.b32.xlu0 %v12598_v37, %s10252_s29 }
 0x544   : > { %v3724_v49 = vpop.permute.xlu1 %3723 }
 0x545   : > { %v3722_v39 = vpop.permute.xlu0 %3721 }
 0x546   : > { %v3757_v56 = vsel %vm1932_vm4, %v3720_v45, %v3722_v39  ;;  %v3758_v8 = vsel %vm1932_vm4, %v3722_v39, %v3724_v49  ;;  %5461 = vrot.lane.b32.xlu1 %v12604_v58, %s10251_s28 }
 0x547   : > { %3821 = vst [vmem:[#allocation4 + $0xde0] sm:$0xf] %v3757_v56  ;;  %3822 = vst [vmem:[#allocation4 + $0xde8] sm:$0xf] %v3758_v8  ;;  %5667 = vrot.lane.b32.xlu0 %v12585_v32, %s10252_s29 }
 0x548   : > { %v3728_v62 = vpop.permute.xlu1 %3727 }
 0x549   : > { %v3726_v52 = vpop.permute.xlu0 %3725 }
 0x54a   : > { %v3759_v27 = vsel %vm1932_vm4, %v3724_v49, %v3726_v52  ;;  %v3760_v16 = vsel %vm1932_vm4, %v3726_v52, %v3728_v62  ;;  %5673 = vrot.lane.b32.xlu1 %v12604_v58, %s10252_s29 }
 0x54b   : > { %3823 = vst [vmem:[#allocation4 + $0xdf0] sm:$0xf] %v3759_v27  ;;  %3824 = vst [vmem:[#allocation4 + $0xdf8] sm:$0xf] %v3760_v16  ;;  %5463 = vrot.lane.b32.xlu0 %v12611_v0, %s10251_s28 }
 0x54c   : > { %v3878_v36 = vpop.permute.xlu1 %3877 }
 0x54d   : > { %v3876_v14 = vpop.permute.xlu0 %3875 }
 0x54e   : > { %v3941_v44 = vsel %vm2145_vm5, %v3876_v14, %v3878_v36  ;;  %5881 = vrot.lane.b32.xlu1 %v12591_v55, %s10253_s30 }
 0x54f   : > { %4005 = vst [vmem:[#allocation4 + $0xe00] sm:$0xf] %v3941_v44  ;;  %5675 = vrot.lane.b32.xlu0 %v12611_v0, %s10252_s29 }
 0x550   : > { %v3882_v63 = vpop.permute.xlu1 %3881 }
 0x551   : > { %v3880_v29 = vpop.permute.xlu0 %3879 }
 0x552   : > { %v3942_v5 = vsel %vm2145_vm5, %v3878_v36, %v3880_v29  ;;  %v3943_v6 = vsel %vm2145_vm5, %v3880_v29, %v3882_v63  ;;  %6093 = vrot.lane.b32.xlu1 %v12591_v55, %s10254_s6 }
 0x553   : > { %4006 = vst [vmem:[#allocation4 + $0xe08] sm:$0xf] %v3942_v5  ;;  %4007 = vst [vmem:[#allocation4 + $0xe10] sm:$0xf] %v3943_v6  ;;  %5883 = vrot.lane.b32.xlu0 %v12598_v37, %s10253_s30 }
 0x554   : > { %v3886_v15 = vpop.permute.xlu1 %3885 }
 0x555   : > { %v3884_v20 = vpop.permute.xlu0 %3883 }
 0x556   : > { %v3944_v1 = vsel %vm2145_vm5, %v3882_v63, %v3884_v20  ;;  %v3945_v24 = vsel %vm2145_vm5, %v3884_v20, %v3886_v15  ;;  %5879 = vrot.lane.b32.xlu1 %v12585_v32, %s10253_s30  ;;  %v6914_v49 = vld [vmem:[#allocation4 + $0xe00] sm:$0xff] }
 0x557   : > { %4008 = vst [vmem:[#allocation4 + $0xe18] sm:$0xf] %v3944_v1  ;;  %4009 = vst [vmem:[#allocation4 + $0xe20] sm:$0xf] %v3945_v24  ;;  %6095 = vrot.lane.b32.xlu0 %v12598_v37, %s10254_s6 }
 0x558   : > { %v3890_v4 = vpop.permute.xlu1 %3889 }
 0x559   : > { %v3888_v12 = vpop.permute.xlu0 %3887 }
 0x55a   : > { %v3946_v55 = vsel %vm2145_vm5, %v3886_v15, %v3888_v12  ;;  %v3947_v42 = vsel %vm2145_vm5, %v3888_v12, %v3890_v4  ;;  %5885 = vrot.lane.b32.xlu1 %v12604_v58, %s10253_s30  ;;  %v6915_v56 = vld [vmem:[#allocation4 + $0xe08] sm:$0xff] }
 0x55b   : > { %4010 = vst [vmem:[#allocation4 + $0xe28] sm:$0xf] %v3946_v55  ;;  %4011 = vst [vmem:[#allocation4 + $0xe30] sm:$0xf] %v3947_v42  ;;  %6091 = vrot.lane.b32.xlu0 %v12585_v32, %s10254_s6  ;;  %v13021_v12 = vld [vmem:[%s10303_s24 + $0x30] sm:$0xff] }
 0x55c   : > { %v3894_v51 = vpop.permute.xlu1 %3893 }
 0x55d   : > { %v3892_v17 = vpop.permute.xlu0 %3891 }
 0x55e   : > { %v3948_v33 = vsel %vm2145_vm5, %v3890_v4, %v3892_v17  ;;  %v3949_v37 = vsel %vm2145_vm5, %v3892_v17, %v3894_v51  ;;  %6097 = vrot.lane.b32.xlu1 %v12604_v58, %s10254_s6  ;;  %v6917_v44 = vld [vmem:[#allocation4 + $0xe18] sm:$0xff]  ;;  %v13014_v4 = vcombine.high %v12977_v43, %v12977_v43 }
 0x55f   : > { %4012 = vst [vmem:[#allocation4 + $0xe38] sm:$0xf] %v3948_v33  ;;  %4013 = vst [vmem:[#allocation4 + $0xe40] sm:$0xf] %v3949_v37  ;;  %5887 = vrot.lane.b32.xlu0 %v12611_v0, %s10253_s30 }
 0x560   : > { %v3898_v26 = vpop.permute.xlu1 %3897 }
 0x561   : > { %v3896_v25 = vpop.permute.xlu0 %3895 }
 0x562   : > { %v3950_v23 = vsel %vm2145_vm5, %v3894_v51, %v3896_v25  ;;  %v3951_v32 = vsel %vm2145_vm5, %v3896_v25, %v3898_v26  ;;  %6305 = vrot.lane.b32.xlu1 %v11215_v10, %s10255_s7  ;;  %v6255_v10 = vld [vmem:[%s10303_s24 + $0x20] sm:$0xff] }
 0x563   : > { %4014 = vst [vmem:[#allocation4 + $0xe48] sm:$0xf] %v3950_v23  ;;  %4015 = vst [vmem:[#allocation4 + $0xe50] sm:$0xf] %v3951_v32  ;;  %6099 = vrot.lane.b32.xlu0 %v12611_v0, %s10254_s6  ;;  %v12971_v35 = vcombine.high %v6255_v10, %v6255_v10 }
 0x564   : > { %v3902_v28 = vpop.permute.xlu1 %3901 }
 0x565   : > { %v3900_v60 = vpop.permute.xlu0 %3899 }
 0x566   : > { %v3952_v31 = vsel %vm2145_vm5, %v3898_v26, %v3900_v60  ;;  %v3953_v18 = vsel %vm2145_vm5, %v3900_v60, %v3902_v28  ;;  %6303 = vrot.lane.b32.xlu1 %v11211_v9, %s10255_s7 }
 0x567   : > { %4016 = vst [vmem:[#allocation4 + $0xe58] sm:$0xf] %v3952_v31  ;;  %4017 = vst [vmem:[#allocation4 + $0xe60] sm:$0xf] %v3953_v18  ;;  %6307 = vrot.lane.b32.xlu0 %v11218_v11, %s10255_s7 }
 0x568   : > { %v3906_v0 = vpop.permute.xlu1 %3905 }
 0x569   : > { %v3904_v21 = vpop.permute.xlu0 %3903 }
 0x56a   : > { %v3954_v41 = vsel %vm2145_vm5, %v3902_v28, %v3904_v21  ;;  %v3955_v46 = vsel %vm2145_vm5, %v3904_v21, %v3906_v0  ;;  %6311 = vrot.lane.b32.xlu1 %v6255_v10, %s10255_s7 }
 0x56b   : > { %4018 = vst [vmem:[#allocation4 + $0xe68] sm:$0xf] %v3954_v41  ;;  %4019 = vst [vmem:[#allocation4 + $0xe70] sm:$0xf] %v3955_v46  ;;  %6309 = vrot.lane.b32.xlu0 %v11225_v13, %s10255_s7 }
 0x56c   : > { %v3910_v47 = vpop.permute.xlu1 %3909 }
 0x56d   : > { %v3908_v9 = vpop.permute.xlu0 %3907 }
 0x56e   : > { %v3956_v61 = vsel %vm2145_vm5, %v3906_v0, %v3908_v9  ;;  %v3957_v11 = vsel %vm2145_vm5, %v3908_v9, %v3910_v47  ;;  %4099 = vrot.lane.b32.xlu1 %v6255_v10, %s10253_s30 }
 0x56f   : > { %4020 = vst [vmem:[#allocation4 + $0xe78] sm:$0xf] %v3956_v61  ;;  %4021 = vst [vmem:[#allocation4 + $0xe80] sm:$0xf] %v3957_v11  ;;  %4097 = vrot.lane.b32.xlu0 %v12604_v58, %s10253_s30 }
 0x570   : > { %v4090_v40 = vpop.permute.xlu1 %4089 }
 0x571   : > { %v12979_v34 = vpop.permute.xlu0 %3911 }
 0x572   : > { %v3958_v13 = vsel %vm2145_vm5, %v3910_v47, %v12979_v34  ;;  %4103 = vrot.lane.b32.xlu1 %v12977_v43, %s10253_s30 }
 0x573   : > { %4022 = vst [vmem:[#allocation4 + $0xe88] sm:$0xf] %v3958_v13  ;;  %4101 = vrot.lane.b32.xlu0 %v12971_v35, %s10253_s30 }
 0x574   : > { %v4088_v2 = vpop.permute.xlu1 %4087 }
 0x575   : > { %v4092_v53 = vpop.permute.xlu0 %4091  ;;  %v4153_v48 = vsel %vm2358_vm6, %v4088_v2, %v4090_v40 }
 0x576   : > { %v4154_v3 = vsel %vm2358_vm6, %v4090_v40, %v4092_v53  ;;  %4217 = vst [vmem:[#allocation4 + $0xf00] sm:$0xf] %v4153_v48  ;;  %4311 = vrot.lane.b32.xlu1 %v6255_v10, %s10254_s6  ;;  %v7043_v48 = vld [vmem:[#allocation4 + $0x1208] sm:$0xff] }
 0x577   : > { %4218 = vst [vmem:[#allocation4 + $0xf08] sm:$0xf] %v4154_v3  ;;  %4309 = vrot.lane.b32.xlu0 %v12604_v58, %s10254_s6 }
 0x578   : > { %v12992_v54 = vpop.permute.xlu1 %4095 }
 0x579   : > { %v4094_v50 = vpop.permute.xlu0 %4093 }
 0x57a   : > { %v4155_v45 = vsel %vm2358_vm6, %v4092_v53, %v4094_v50  ;;  %v4156_v30 = vsel %vm2358_vm6, %v4094_v50, %v12992_v54  ;;  %4523 = vrot.lane.b32.xlu1 %v6255_v10, %s10255_s7 }
 0x57b   : > { %4219 = vst [vmem:[#allocation4 + $0xf10] sm:$0xf] %v4155_v45  ;;  %4220 = vst [vmem:[#allocation4 + $0xf18] sm:$0xf] %v4156_v30  ;;  %4521 = vrot.lane.b32.xlu0 %v12604_v58, %s10255_s7  ;;  %v6916_v58 = vld [vmem:[#allocation4 + $0xe10] sm:$0xff] }
 0x57c   : > { %v4304_v57 = vpop.permute.xlu1 %4303 }
 0x57d   : > { %v4302_v59 = vpop.permute.xlu0 %4301  ;;  %v6946_v62 = vld [vmem:[#allocation4 + $0xf00] sm:$0xff] }
 0x57e   : > { %v4366_v39 = vsel %vm2571_vm7, %v4302_v59, %v4304_v57  ;;  %v6947_v8 = vld [vmem:[#allocation4 + $0xf08] sm:$0xff]  ;;  %4315 = vrot.lane.b32.xlu1 %v12977_v43, %s10254_s6  ;;  %v9312_v27 = vpack.c.bf16 %v6946_v62, %v6914_v49 }
 0x57f   : > { %4430 = vst [vmem:[#allocation4 + $0x1008] sm:$0xf] %v4366_v39  ;;  %4313 = vrot.lane.b32.xlu0 %v12971_v35, %s10254_s6  ;;  %v9310_v52 = vpack.c.bf16 %v6947_v8, %v6915_v56 }
 0x580   : > { %v4516_v16 = vpop.permute.xlu1 %4515 }
 0x581   : > { %v4514_v36 = vpop.permute.xlu0 %4513  ;;  %9311 = vmatprep.subr.bf16.mxu0 %v9310_v52  ;;  %v7045_v52 = vld [vmem:[#allocation4 + $0x1218] sm:$0xff] }
 0x582   : > { %v4578_v14 = vsel %vm2784_vm8, %v4514_v36, %v4516_v16  ;;  %9313 = vmatpush1.bf16.msra.mxu0 %v9312_v27  ;;  %v6949_v63 = vld [vmem:[#allocation4 + $0xf18] sm:$0xff]  ;;  %v6948_v29 = vld [vmem:[#allocation4 + $0xf10] sm:$0xff]  ;;  %4527 = vrot.lane.b32.xlu1 %v12977_v43, %s10255_s7 }
 0x583   : > { %4642 = vst [vmem:[#allocation4 + $0x1108] sm:$0xf] %v4578_v14  ;;  %4525 = vrot.lane.b32.xlu0 %v12971_v35, %s10255_s7  ;;  %v9362_v5 = vpack.c.bf16 %v6949_v63, %v6917_v44  ;;  %v9364_v6 = vpack.c.bf16 %v6948_v29, %v6916_v58 }
 0x584   : > { %v4512_v15 = vpop.permute.xlu1 %4511 }
 0x585   : > { %v4300_v20 = vpop.permute.xlu0 %4299  ;;  %9363 = vmatprep.subr.bf16.mxu1 %v9362_v5  ;;  %v4577_v1 = vsel %vm2784_vm8, %v4512_v15, %v4514_v36  ;;  %v7044_v36 = vld [vmem:[#allocation4 + $0x1210] sm:$0xff] }
 0x586   : > { %v4365_v24 = vsel %vm2571_vm7, %v4300_v20, %v4302_v59  ;;  %9365 = vmatpush1.bf16.msra.mxu1 %v9364_v6  ;;  %4641 = vst [vmem:[#allocation4 + $0x1100] sm:$0xf] %v4577_v1  ;;  %4831 = vrot.lane.b32.xlu1 %v12977_v43, %s10248_s25  ;;  %v6979_v33 = vld [vmem:[#allocation4 + $0x1008] sm:$0xff]  ;;  %v7042_v59 = vld [vmem:[#allocation4 + $0x1200] sm:$0xff] }
 0x587   : > { %4429 = vst [vmem:[#allocation4 + $0x1000] sm:$0xf] %v4365_v24  ;;  %4829 = vrot.lane.b32.xlu0 %v12617_v22, %s10248_s25 }
 0x588   : > { %v13023_v55 = vpop.permute.xlu1 %4307 }
 0x589   : > { %v4306_v42 = vpop.permute.xlu0 %4305 }
 0x58a   : > { %v4367_v51 = vsel %vm2571_vm7, %v4304_v57, %v4306_v42  ;;  %v4368_v17 = vsel %vm2571_vm7, %v4306_v42, %v13023_v55  ;;  %v7011_v37 = vld [vmem:[#allocation4 + $0x1108] sm:$0xff]  ;;  %4835 = vrot.lane.b32.xlu1 %v13021_v12, %s10248_s25 }
 0x58b   : > { %4431 = vst [vmem:[#allocation4 + $0x1010] sm:$0xf] %v4367_v51  ;;  %4432 = vst [vmem:[#allocation4 + $0x1018] sm:$0xf] %v4368_v17  ;;  %4833 = vrot.lane.b32.xlu0 %v13014_v4, %s10248_s25  ;;  %v9314_v26 = vpack.c.bf16 %v7011_v37, %v6979_v33 }
 0x58c   : > { %v13032_v25 = vpop.permute.xlu1 %4519 }
 0x58d   : > { %v4518_v23 = vpop.permute.xlu0 %4517  ;;  %9315 = vmatprep.subr.bf16.mxu0 %v9314_v26  ;;  %v7010_v31 = vld [vmem:[#allocation4 + $0x1100] sm:$0xff] }
 0x58e   : > { %v4579_v32 = vsel %vm2784_vm8, %v4516_v16, %v4518_v23  ;;  %v4580_v28 = vsel %vm2784_vm8, %v4518_v23, %v13032_v25  ;;  %v6978_v60 = vld [vmem:[#allocation4 + $0x1000] sm:$0xff]  ;;  %5043 = vrot.lane.b32.xlu1 %v12977_v43, %s10249_s26 }
 0x58f   : > { %4643 = vst [vmem:[#allocation4 + $0x1110] sm:$0xf] %v4579_v32  ;;  %4644 = vst [vmem:[#allocation4 + $0x1118] sm:$0xf] %v4580_v28  ;;  %5041 = vrot.lane.b32.xlu0 %v12617_v22, %s10249_s26  ;;  %v9316_v18 = vpack.c.bf16 %v7010_v31, %v6978_v60 }
 0x590   : > { %v4824_v10 = vpop.permute.xlu1 %4823 }
 0x591   : > { %v4822_v0 = vpop.permute.xlu0 %4821  ;;  %9317 = vmatpush1.bf16.msra.mxu0 %v9316_v18 }
 0x592   : > { %v4886_v21 = vsel %vm1293_vm1, %v4822_v0, %v4824_v10  ;;  %5255 = vrot.lane.b32.xlu1 %v12977_v43, %s10250_s27  ;;  %v6981_v47 = vld [vmem:[#allocation4 + $0x1018] sm:$0xff]  ;;  %v6980_v40 = vld [vmem:[#allocation4 + $0x1010] sm:$0xff] }
 0x593   : > { %4950 = vst [vmem:[#allocation4 + $0x1308] sm:$0xf] %v4886_v21  ;;  %5253 = vrot.lane.b32.xlu0 %v12617_v22, %s10250_s27 }
 0x594   : > { %v4826_v41 = vpop.permute.xlu1 %4825 }
 0x595   : > { %v4820_v46 = vpop.permute.xlu0 %4819  ;;  %v4887_v9 = vsel %vm1293_vm1, %v4824_v10, %v4826_v41 }
 0x596   : > { %v4885_v61 = vsel %vm1293_vm1, %v4820_v46, %v4822_v0  ;;  %v7013_v11 = vld [vmem:[#allocation4 + $0x1118] sm:$0xff]  ;;  %v7012_v13 = vld [vmem:[#allocation4 + $0x1110] sm:$0xff]  ;;  %4951 = vst [vmem:[#allocation4 + $0x1310] sm:$0xf] %v4887_v9  ;;  %5047 = vrot.lane.b32.xlu1 %v13021_v12, %s10249_s26 }
 0x597   : > { %4949 = vst [vmem:[#allocation4 + $0x1300] sm:$0xf] %v4885_v61  ;;  %5045 = vrot.lane.b32.xlu0 %v13014_v4, %s10249_s26  ;;  %v9366_v2 = vpack.c.bf16 %v7013_v11, %v6981_v47  ;;  %v9368_v53 = vpack.c.bf16 %v7012_v13, %v6980_v40 }
 0x598   : > { %v5034_v3 = vpop.permute.xlu1 %5033 }
 0x599   : > { %v13052_v50 = vpop.permute.xlu0 %4827  ;;  %9367 = vmatprep.subr.bf16.mxu1 %v9366_v2 }
 0x59a   : > { %v4888_v45 = vsel %vm1293_vm1, %v4826_v41, %v13052_v50  ;;  %9369 = vmatpush1.bf16.msra.mxu1 %v9368_v53  ;;  %v7075_v30 = vld [vmem:[#allocation4 + $0x1308] sm:$0xff]  ;;  %5259 = vrot.lane.b32.xlu1 %v13021_v12, %s10250_s27 }
 0x59b   : > { %4952 = vst [vmem:[#allocation4 + $0x1318] sm:$0xf] %v4888_v45  ;;  %5257 = vrot.lane.b32.xlu0 %v13014_v4, %s10250_s27  ;;  %v9318_v57 = vpack.c.bf16 %v7075_v30, %v7043_v48 }
 0x59c   : > { %v5246_v49 = vpop.permute.xlu1 %5245 }
 0x59d   : > { %v5036_v39 = vpop.permute.xlu0 %5035  ;;  %9319 = vmatprep.subr.bf16.mxu0 %v9318_v57  ;;  %v7076_v58 = vld [vmem:[#allocation4 + $0x1310] sm:$0xff] }
 0x59e   : > { %v5098_v56 = vsel %vm1506_vm2, %v5034_v3, %v5036_v39  ;;  %v7074_v8 = vld [vmem:[#allocation4 + $0x1300] sm:$0xff]  ;;  %5467 = vrot.lane.b32.xlu1 %v12977_v43, %s10251_s28  ;;  %v9372_v5 = vpack.c.bf16 %v7076_v58, %v7044_v36 }
 0x59f   : > { %5162 = vst [vmem:[#allocation4 + $0x1408] sm:$0xf] %v5098_v56  ;;  %5465 = vrot.lane.b32.xlu0 %v12617_v22, %s10251_s28  ;;  %v9320_v62 = vpack.c.bf16 %v7074_v8, %v7042_v59 }
 0x5a0   : > { %v5032_v27 = vpop.permute.xlu1 %5031 }
 0x5a1   : > { %v5248_v16 = vpop.permute.xlu0 %5247  ;;  %9321 = vmatpush1.bf16.msra.mxu0 %v9320_v62  ;;  %v5097_v14 = vsel %vm1506_vm2, %v5032_v27, %v5034_v3 }
 0x5a2   : > { %v5310_v44 = vsel %vm1719_vm3, %v5246_v49, %v5248_v16  ;;  %v7077_v63 = vld [vmem:[#allocation4 + $0x1318] sm:$0xff]  ;;  %5161 = vst [vmem:[#allocation4 + $0x1400] sm:$0xf] %v5097_v14  ;;  %5679 = vrot.lane.b32.xlu1 %v12977_v43, %s10252_s29 }
 0x5a3   : > { %5374 = vst [vmem:[#allocation4 + $0x1508] sm:$0xf] %v5310_v44  ;;  %5677 = vrot.lane.b32.xlu0 %v12617_v22, %s10252_s29  ;;  %v9370_v29 = vpack.c.bf16 %v7077_v63, %v7045_v52  ;;  %v13131_v44 = vcombine.high %v13021_v12, %v13021_v12  ;;  %v13138_v63 = vld [vmem:[%s10303_s24 + $0x38] sm:$0xff] }
 0x5a4   : > { %v5038_v6 = vpop.permute.xlu1 %5037 }
 0x5a5   : > { %v5244_v15 = vpop.permute.xlu0 %5243  ;;  %9371 = vmatprep.subr.bf16.mxu1 %v9370_v29  ;;  %v5099_v20 = vsel %vm1506_vm2, %v5036_v39, %v5038_v6 }
 0x5a6   : > { %v5309_v1 = vsel %vm1719_vm3, %v5244_v15, %v5246_v49  ;;  %9373 = vmatpush1.bf16.msra.mxu1 %v9372_v5  ;;  %5163 = vst [vmem:[#allocation4 + $0x1410] sm:$0xf] %v5099_v20  ;;  %5471 = vrot.lane.b32.xlu1 %v13021_v12, %s10251_s28  ;;  %v7107_v33 = vld [vmem:[#allocation4 + $0x1408] sm:$0xff] }
 0x5a7   : > { %5373 = vst [vmem:[#allocation4 + $0x1500] sm:$0xf] %v5309_v1  ;;  %5469 = vrot.lane.b32.xlu0 %v13014_v4, %s10251_s28 }
 0x5a8   : > { %v5250_v24 = vpop.permute.xlu1 %5249 }
 0x5a9   : > { %v13077_v42 = vpop.permute.xlu0 %5039  ;;  %v5311_v51 = vsel %vm1719_vm3, %v5248_v16, %v5250_v24  ;;  %v7106_v60 = vld [vmem:[#allocation4 + $0x1400] sm:$0xff] }
 0x5aa   : > { %v5100_v17 = vsel %vm1506_vm2, %v5038_v6, %v13077_v42  ;;  %v7139_v37 = vld [vmem:[#allocation4 + $0x1508] sm:$0xff]  ;;  %5375 = vst [vmem:[#allocation4 + $0x1510] sm:$0xf] %v5311_v51  ;;  %5683 = vrot.lane.b32.xlu1 %v13021_v12, %s10252_s29 }
 0x5ab   : > { %5164 = vst [vmem:[#allocation4 + $0x1418] sm:$0xf] %v5100_v17  ;;  %5681 = vrot.lane.b32.xlu0 %v13014_v4, %s10252_s29  ;;  %v9322_v26 = vpack.c.bf16 %v7139_v37, %v7107_v33 }
 0x5ac   : > { %v5458_v23 = vpop.permute.xlu1 %5457 }
 0x5ad   : > { %v13086_v32 = vpop.permute.xlu0 %5251  ;;  %9323 = vmatprep.subr.bf16.mxu0 %v9322_v26  ;;  %v7108_v2 = vld [vmem:[#allocation4 + $0x1410] sm:$0xff] }
 0x5ae   : > { %v5312_v28 = vsel %vm1719_vm3, %v5250_v24, %v13086_v32  ;;  %v7138_v31 = vld [vmem:[#allocation4 + $0x1500] sm:$0xff]  ;;  %5891 = vrot.lane.b32.xlu1 %v12977_v43, %s10253_s30 }
 0x5af   : > { %5376 = vst [vmem:[#allocation4 + $0x1518] sm:$0xf] %v5312_v28  ;;  %5889 = vrot.lane.b32.xlu0 %v12617_v22, %s10253_s30  ;;  %v9324_v18 = vpack.c.bf16 %v7138_v31, %v7106_v60 }
 0x5b0   : > { %v5670_v10 = vpop.permute.xlu1 %5669 }
 0x5b1   : > { %v5460_v0 = vpop.permute.xlu0 %5459  ;;  %9325 = vmatpush1.bf16.msra.mxu0 %v9324_v18  ;;  %v7140_v47 = vld [vmem:[#allocation4 + $0x1510] sm:$0xff] }
 0x5b2   : > { %v5522_v21 = vsel %vm1932_vm4, %v5458_v23, %v5460_v0  ;;  %6103 = vrot.lane.b32.xlu1 %v12977_v43, %s10254_s6  ;;  %v7109_v11 = vld [vmem:[#allocation4 + $0x1418] sm:$0xff] }
 0x5b3   : > { %5586 = vst [vmem:[#allocation4 + $0x1608] sm:$0xf] %v5522_v21  ;;  %6101 = vrot.lane.b32.xlu0 %v12617_v22, %s10254_s6  ;;  %v9376_v22 = vpack.c.bf16 %v7140_v47, %v7108_v2 }
 0x5b4   : > { %v5456_v41 = vpop.permute.xlu1 %5455 }
 0x5b5   : > { %v5672_v46 = vpop.permute.xlu0 %5671  ;;  %v5521_v9 = vsel %vm1932_vm4, %v5456_v41, %v5458_v23 }
 0x5b6   : > { %v5734_v61 = vsel %vm2145_vm5, %v5670_v10, %v5672_v46  ;;  %v7141_v40 = vld [vmem:[#allocation4 + $0x1518] sm:$0xff]  ;;  %5585 = vst [vmem:[#allocation4 + $0x1600] sm:$0xf] %v5521_v9  ;;  %5895 = vrot.lane.b32.xlu1 %v13021_v12, %s10253_s30 }
 0x5b7   : > { %5798 = vst [vmem:[#allocation4 + $0x1708] sm:$0xf] %v5734_v61  ;;  %5893 = vrot.lane.b32.xlu0 %v13014_v4, %s10253_s30  ;;  %v9374_v13 = vpack.c.bf16 %v7141_v40, %v7109_v11 }
 0x5b8   : > { %v5462_v53 = vpop.permute.xlu1 %5461 }
 0x5b9   : > { %v5668_v48 = vpop.permute.xlu0 %5667  ;;  %9375 = vmatprep.subr.bf16.mxu1 %v9374_v13  ;;  %v5523_v3 = vsel %vm1932_vm4, %v5460_v0, %v5462_v53 }
 0x5ba   : > { %v5733_v45 = vsel %vm2145_vm5, %v5668_v48, %v5670_v10  ;;  %9377 = vmatpush1.bf16.msra.mxu1 %v9376_v22  ;;  %5587 = vst [vmem:[#allocation4 + $0x1610] sm:$0xf] %v5523_v3  ;;  %6107 = vrot.lane.b32.xlu1 %v13021_v12, %s10254_s6  ;;  %v7171_v39 = vld [vmem:[#allocation4 + $0x1608] sm:$0xff] }
 0x5bb   : > { %5797 = vst [vmem:[#allocation4 + $0x1700] sm:$0xf] %v5733_v45  ;;  %6105 = vrot.lane.b32.xlu0 %v13014_v4, %s10254_s6 }
 0x5bc   : > { %v5674_v30 = vpop.permute.xlu1 %5673 }
 0x5bd   : > { %v13111_v57 = vpop.permute.xlu0 %5463  ;;  %v5735_v59 = vsel %vm2145_vm5, %v5672_v46, %v5674_v30  ;;  %v7170_v16 = vld [vmem:[#allocation4 + $0x1600] sm:$0xff] }
 0x5be   : > { %v5524_v49 = vsel %vm1932_vm4, %v5462_v53, %v13111_v57  ;;  %v7203_v56 = vld [vmem:[#allocation4 + $0x1708] sm:$0xff]  ;;  %5799 = vst [vmem:[#allocation4 + $0x1710] sm:$0xf] %v5735_v59  ;;  %6315 = vrot.lane.b32.xlu1 %v12977_v43, %s10255_s7 }
 0x5bf   : > { %5588 = vst [vmem:[#allocation4 + $0x1618] sm:$0xf] %v5524_v49  ;;  %6313 = vrot.lane.b32.xlu0 %v12971_v35, %s10255_s7  ;;  %v9326_v8 = vpack.c.bf16 %v7203_v56, %v7171_v39  ;;  %v13182_v49 = vcombine.high %v13138_v63, %v13138_v63 }
 0x5c0   : > { %v5882_v62 = vpop.permute.xlu1 %5881 }
 0x5c1   : > { %v13120_v52 = vpop.permute.xlu0 %5675  ;;  %9327 = vmatprep.subr.bf16.mxu0 %v9326_v8  ;;  %v7172_v17 = vld [vmem:[#allocation4 + $0x1610] sm:$0xff] }
 0x5c2   : > { %v5736_v27 = vsel %vm2145_vm5, %v5674_v30, %v13120_v52  ;;  %v7202_v36 = vld [vmem:[#allocation4 + $0x1700] sm:$0xff]  ;;  %6319 = vrot.lane.b32.xlu1 %v13021_v12, %s10255_s7 }
 0x5c3   : > { %5800 = vst [vmem:[#allocation4 + $0x1718] sm:$0xf] %v5736_v27  ;;  %6317 = vrot.lane.b32.xlu0 %v13014_v4, %s10255_s7  ;;  %v9328_v43 = vpack.c.bf16 %v7202_v36, %v7170_v16  ;;  %v6471_v36 = vld [vmem:[#allocation4 + $0x28] sm:$0xff] }
 0x5c4   : > { %v6094_v35 = vpop.permute.xlu1 %6093 }
 0x5c5   : > { %v5884_v58 = vpop.permute.xlu0 %5883  ;;  %9329 = vmatpush1.bf16.msra.mxu0 %v9328_v43  ;;  %v7204_v6 = vld [vmem:[#allocation4 + $0x1710] sm:$0xff]  ;;  %v6503_v43 = vld [vmem:[#allocation4 + $0x128] sm:$0xff] }
 0x5c6   : > { %v5946_v14 = vsel %vm2358_vm6, %v5882_v62, %v5884_v58  ;;  %4107 = vrot.lane.b32.xlu1 %v13021_v12, %s10253_s30  ;;  %v7173_v1 = vld [vmem:[#allocation4 + $0x1618] sm:$0xff]  ;;  %v9380_v33 = vpack.c.bf16 %v7204_v6, %v7172_v17  ;;  %v6502_v6 = vld [vmem:[#allocation4 + $0x120] sm:$0xff] }
 0x5c7   : > { %6010 = vst [vmem:[#allocation4 + $0x1808] sm:$0xf] %v5946_v14  ;;  %4105 = vrot.lane.b32.xlu0 %v13014_v4, %s10253_s30 }
 0x5c8   : > { %v5880_v29 = vpop.permute.xlu1 %5879 }
 0x5c9   : > { %v6096_v5 = vpop.permute.xlu0 %6095  ;;  %v5945_v15 = vsel %vm2358_vm6, %v5880_v29, %v5882_v62  ;;  %v13189_v62 = vld [vmem:[%s10303_s24 + $0x40] sm:$0xff] }
 0x5ca   : > { %v6158_v20 = vsel %vm2571_vm7, %v6094_v35, %v6096_v5  ;;  %v7205_v24 = vld [vmem:[#allocation4 + $0x1718] sm:$0xff]  ;;  %6009 = vst [vmem:[#allocation4 + $0x1800] sm:$0xf] %v5945_v15  ;;  %4111 = vrot.lane.b32.xlu1 %v13138_v63, %s10253_s30  ;;  %v9386_v15 = vpack.c.bf16 %v6503_v43, %v6471_v36 }
 0x5cb   : > { %6222 = vst [vmem:[#allocation4 + $0x1908] sm:$0xf] %v6158_v20  ;;  %4109 = vrot.lane.b32.xlu0 %v13131_v44, %s10253_s30  ;;  %v9378_v51 = vpack.c.bf16 %v7205_v24, %v7173_v1  ;;  %v6567_v20 = vld [vmem:[#allocation4 + $0x328] sm:$0xff]  ;;  %v6473_v1 = vld [vmem:[#allocation4 + $0x38] sm:$0xff]  ;;  %v6472_v24 = vld [vmem:[#allocation4 + $0x30] sm:$0xff] }
 0x5cc   : > { %v5886_v37 = vpop.permute.xlu1 %5885  ;;  %v6601_v36 = vld [vmem:[#allocation4 + $0x438] sm:$0xff] }
 0x5cd   : > { %v6092_v26 = vpop.permute.xlu0 %6091  ;;  %9379 = vmatprep.subr.bf16.mxu1 %v9378_v51  ;;  %v5947_v23 = vsel %vm2358_vm6, %v5884_v58, %v5886_v37 }
 0x5ce   : > { %v6157_v28 = vsel %vm2571_vm7, %v6092_v26, %v6094_v35  ;;  %9381 = vmatpush1.bf16.msra.mxu1 %v9380_v33  ;;  %6011 = vst [vmem:[#allocation4 + $0x1810] sm:$0xf] %v5947_v23  ;;  %4319 = vrot.lane.b32.xlu1 %v13021_v12, %s10254_s6  ;;  %v7235_v0 = vld [vmem:[#allocation4 + $0x1808] sm:$0xff]  ;;  %v6470_v35 = vld [vmem:[#allocation4 + $0x20] sm:$0xff]  ;;  %v6504_v26 = vld [vmem:[#allocation4 + $0x130] sm:$0xff] }
 0x5cf   : > { %6221 = vst [vmem:[#allocation4 + $0x1900] sm:$0xf] %v6157_v28  ;;  %4317 = vrot.lane.b32.xlu0 %v13014_v4, %s10254_s6  ;;  %v9388_v17 = vpack.c.bf16 %v6502_v6, %v6470_v35  ;;  %v6535_v33 = vld [vmem:[#allocation4 + $0x228] sm:$0xff] }
 0x5d0   : > { %v6098_v60 = vpop.permute.xlu1 %6097 }
 0x5d1   : > { %v13152_v31 = vpop.permute.xlu0 %5887  ;;  %v6159_v18 = vsel %vm2571_vm7, %v6096_v5, %v6098_v60  ;;  %v7234_v61 = vld [vmem:[#allocation4 + $0x1800] sm:$0xff] }
 0x5d2   : > { %v5948_v10 = vsel %vm2358_vm6, %v5886_v37, %v13152_v31  ;;  %v7267_v21 = vld [vmem:[#allocation4 + $0x1908] sm:$0xff]  ;;  %6223 = vst [vmem:[#allocation4 + $0x1910] sm:$0xf] %v6159_v18  ;;  %4531 = vrot.lane.b32.xlu1 %v13021_v12, %s10255_s7  ;;  %v6505_v37 = vld [vmem:[#allocation4 + $0x138] sm:$0xff] }
 0x5d3   : > { %6012 = vst [vmem:[#allocation4 + $0x1818] sm:$0xf] %v5948_v10  ;;  %4529 = vrot.lane.b32.xlu0 %v13014_v4, %s10255_s7  ;;  %v9330_v41 = vpack.c.bf16 %v7267_v21, %v7235_v0  ;;  %v6566_v10 = vld [vmem:[#allocation4 + $0x320] sm:$0xff]  ;;  %v9390_v0 = vpack.c.bf16 %v6567_v20, %v6535_v33  ;;  %v9438_v21 = vpack.c.bf16 %v6505_v37, %v6473_v1  ;;  %v6600_v20 = vld [vmem:[#allocation4 + $0x430] sm:$0xff]  ;;  %v6759_v1 = vld [vmem:[#allocation4 + $0x928] sm:$0xff] }
 0x5d4   : > { %v6306_v46 = vpop.permute.xlu1 %6305 }
 0x5d5   : > { %v13161_v47 = vpop.permute.xlu0 %6099  ;;  %9331 = vmatprep.subr.bf16.mxu0 %v9330_v41  ;;  %v7236_v56 = vld [vmem:[#allocation4 + $0x1810] sm:$0xff]  ;;  %v6534_v41 = vld [vmem:[#allocation4 + $0x220] sm:$0xff] }
 0x5d6   : > { %v6160_v9 = vsel %vm2571_vm7, %v6098_v60, %v13161_v47  ;;  %v7266_v11 = vld [vmem:[#allocation4 + $0x1900] sm:$0xff]  ;;  %4323 = vrot.lane.b32.xlu1 %v13138_v63, %s10254_s6 }
 0x5d7   : > { %6224 = vst [vmem:[#allocation4 + $0x1918] sm:$0xf] %v6160_v9  ;;  %4321 = vrot.lane.b32.xlu0 %v13131_v44, %s10254_s6  ;;  %v9332_v12 = vpack.c.bf16 %v7266_v11, %v7234_v61  ;;  %v6569_v9 = vld [vmem:[#allocation4 + $0x338] sm:$0xff] }
 0x5d8   : > { %v6304_v40 = vpop.permute.xlu1 %6303 }
 0x5d9   : > { %v6308_v4 = vpop.permute.xlu0 %6307  ;;  %9333 = vmatpush1.bf16.msra.mxu0 %v9332_v12  ;;  %v6369_v13 = vsel %vm2784_vm8, %v6304_v40, %v6306_v46  ;;  %v7268_v48 = vld [vmem:[#allocation4 + $0x1910] sm:$0xff]  ;;  %v9392_v12 = vpack.c.bf16 %v6566_v10, %v6534_v41  ;;  %v9440_v40 = vpack.c.bf16 %v6504_v26, %v6472_v24  ;;  %v6697_v24 = vld [vmem:[#allocation4 + $0x738] sm:$0xff] }
 0x5da   : > { %v6370_v2 = vsel %vm2784_vm8, %v6306_v46, %v6308_v4  ;;  %6433 = vst [vmem:[#allocation4 + $0x1a00] sm:$0xf] %v6369_v13  ;;  %4535 = vrot.lane.b32.xlu1 %v13138_v63, %s10255_s7  ;;  %v7237_v30 = vld [vmem:[#allocation4 + $0x1818] sm:$0xff]  ;;  %v9384_v8 = vpack.c.bf16 %v7268_v48, %v7236_v56  ;;  %v6631_v46 = vld [vmem:[#allocation4 + $0x528] sm:$0xff]  ;;  %v6630_v48 = vld [vmem:[#allocation4 + $0x520] sm:$0xff] }
 0x5db   : > { %6434 = vst [vmem:[#allocation4 + $0x1a08] sm:$0xf] %v6370_v2  ;;  %4533 = vrot.lane.b32.xlu0 %v13131_v44, %s10255_s7  ;;  %v6633_v56 = vld [vmem:[#allocation4 + $0x538] sm:$0xff]  ;;  %v6696_v10 = vld [vmem:[#allocation4 + $0x730] sm:$0xff] }
 0x5dc   : > { %v13175_v22 = vpop.permute.xlu1 %6311  ;;  %v9446_v6 = vpack.c.bf16 %v6633_v56, %v6601_v36  ;;  %v6665_v26 = vld [vmem:[#allocation4 + $0x638] sm:$0xff]  ;;  %v6664_v41 = vld [vmem:[#allocation4 + $0x630] sm:$0xff] }
 0x5dd   : > { %v6310_v53 = vpop.permute.xlu0 %6309  ;;  %v6825_v56 = vld [vmem:[#allocation4 + $0xb38] sm:$0xff] }
 0x5de   : > { %v6371_v3 = vsel %vm2784_vm8, %v6308_v4, %v6310_v53  ;;  %v6372_v45 = vsel %vm2784_vm8, %v6310_v53, %v13175_v22  ;;  %v7269_v59 = vld [vmem:[#allocation4 + $0x1918] sm:$0xff]  ;;  %4839 = vrot.lane.b32.xlu1 %v13138_v63, %s10248_s25  ;;  %v6599_v53 = vld [vmem:[#allocation4 + $0x428] sm:$0xff] }
 0x5df   : > { %6435 = vst [vmem:[#allocation4 + $0x1a10] sm:$0xf] %v6371_v3  ;;  %6436 = vst [vmem:[#allocation4 + $0x1a18] sm:$0xf] %v6372_v45  ;;  %4837 = vrot.lane.b32.xlu0 %v13131_v44, %s10248_s25  ;;  %v9382_v39 = vpack.c.bf16 %v7269_v59, %v7237_v30  ;;  %v6537_v4 = vld [vmem:[#allocation4 + $0x238] sm:$0xff]  ;;  %v6568_v3 = vld [vmem:[#allocation4 + $0x330] sm:$0xff]  ;;  %v9394_v45 = vpack.c.bf16 %v6631_v46, %v6599_v53 }
 0x5e0   : > { %v4100_v27 = vpop.permute.xlu1 %4099  ;;  %v9442_v30 = vpack.c.bf16 %v6569_v9, %v6537_v4  ;;  %v6536_v59 = vld [vmem:[#allocation4 + $0x230] sm:$0xff]  ;;  %v6823_v46 = vld [vmem:[#allocation4 + $0xb28] sm:$0xff]  ;;  %v6729_v9 = vld [vmem:[#allocation4 + $0x838] sm:$0xff]  ;;  %v9452_v4 = vpack.c.bf16 %v6696_v10, %v6664_v41 }
 0x5e1   : > { %v4098_v16 = vpop.permute.xlu0 %4097  ;;  %9383 = vmatprep.subr.bf16.mxu1 %v9382_v39  ;;  %v7298_v5 = vld [vmem:[#allocation4 + $0x1a00] sm:$0xff]  ;;  %v6695_v39 = vld [vmem:[#allocation4 + $0x728] sm:$0xff]  ;;  %v6793_v36 = vld [vmem:[#allocation4 + $0xa38] sm:$0xff] }
 0x5e2   : > { %v4157_v58 = vsel %vm2358_vm6, %v12992_v54, %v4098_v16  ;;  %v4158_v14 = vsel %vm2358_vm6, %v4098_v16, %v4100_v27  ;;  %9385 = vmatpush1.bf16.msra.mxu1 %v9384_v8  ;;  %v7299_v29 = vld [vmem:[#allocation4 + $0x1a08] sm:$0xff]  ;;  %4843 = vrot.lane.b32.xlu1 %v13189_v62, %s10248_s25  ;;  %v9444_v16 = vpack.c.bf16 %v6568_v3, %v6536_v59  ;;  %v6822_v3 = vld [vmem:[#allocation4 + $0xb20] sm:$0xff] }
 0x5e3   : > { %4221 = vst [vmem:[#allocation4 + $0xf20] sm:$0xf] %v4157_v58  ;;  %4222 = vst [vmem:[#allocation4 + $0xf28] sm:$0xf] %v4158_v14  ;;  %4841 = vrot.lane.b32.xlu0 %v13182_v49, %s10248_s25  ;;  %7387 = vmatprep.subr.mxu0 %v7299_v29  ;;  %v6663_v58 = vld [vmem:[#allocation4 + $0x628] sm:$0xff]  ;;  %v6694_v14 = vld [vmem:[#allocation4 + $0x720] sm:$0xff] }
 0x5e4   : > { %7388 = vmatpush1.msra.mxu0 %v7298_v5  ;;  %v13198_v54 = vpop.permute.xlu1 %4103  ;;  %v6632_v29 = vld [vmem:[#allocation4 + $0x530] sm:$0xff]  ;;  %v9398_v5 = vpack.c.bf16 %v6695_v39, %v6663_v58  ;;  %v6887_v39 = vld [vmem:[#allocation4 + $0xd28] sm:$0xff]  ;;  %v6918_v41 = vld [vmem:[#allocation4 + $0xe20] sm:$0xff] }
 0x5e5   : > { %v4102_v51 = vpop.permute.xlu0 %4101  ;;  %9387 = vmatprep.subr.bf16.mxu0 %v9386_v15  ;;  %7400 = vmatmul.mubr.f32.vlgmr.msra.gmra.mrb[0].mxu0 %v12947_v7  ;;  %v6662_v15 = vld [vmem:[#allocation4 + $0x620] sm:$0xff]  ;;  %v9448_v37 = vpack.c.bf16 %v6632_v29, %v6600_v20  ;;  %v6855_v58 = vld [vmem:[#allocation4 + $0xc28] sm:$0xff]  ;;  %v6824_v29 = vld [vmem:[#allocation4 + $0xb30] sm:$0xff] }
 0x5e6   : > { %v4159_v23 = vsel %vm2358_vm6, %v4100_v27, %v4102_v51  ;;  %v4160_v28 = vsel %vm2358_vm6, %v4102_v51, %v13198_v54  ;;  %v7301_v60 = vld [vmem:[#allocation4 + $0x1a18] sm:$0xff]  ;;  %v7300_v18 = vld [vmem:[#allocation4 + $0x1a10] sm:$0xff]  ;;  %9389 = vmatpush1.bf16.msra.mxu0 %v9388_v17  ;;  %5051 = vrot.lane.b32.xlu1 %v13138_v63, %s10249_s26  ;;  %v9400_v33 = vpack.c.bf16 %v6694_v14, %v6662_v15  ;;  %v6886_v14 = vld [vmem:[#allocation4 + $0xd20] sm:$0xff] }
 0x5e7   : > { %4223 = vst [vmem:[#allocation4 + $0xf30] sm:$0xf] %v4159_v23  ;;  %4224 = vst [vmem:[#allocation4 + $0xf38] sm:$0xf] %v4160_v28  ;;  %5049 = vrot.lane.b32.xlu0 %v13131_v44, %s10249_s26  ;;  %7458 = vmatprep.subr.mxu1 %v7301_v60  ;;  %v6726_v60 = vld [vmem:[#allocation4 + $0x820] sm:$0xff]  ;;  %v6792_v15 = vld [vmem:[#allocation4 + $0xa30] sm:$0xff] }
 0x5e8   : > { %9391 = vmatprep.subr.bf16.mxu0 %v9390_v0  ;;  %7459 = vmatpush1.msra.mxu1 %v7300_v18  ;;  %v4312_v61 = vpop.permute.xlu1 %4311  ;;  %v6758_v18 = vld [vmem:[#allocation4 + $0x920] sm:$0xff] }
 0x5e9   : > { %v4310_v11 = vpop.permute.xlu0 %4309  ;;  %9439 = vmatprep.subr.bf16.mxu1 %v9438_v21  ;;  %7471 = vmatmul.mubr.f32.vlgmr.msra.gmra.mrb[0].mxu1 %v12947_v7  ;;  %v9450_v21 = vpack.c.bf16 %v6697_v24, %v6665_v26  ;;  %v6854_v20 = vld [vmem:[#allocation4 + $0xc20] sm:$0xff] }
 0x5ea   : > { %v4369_v13 = vsel %vm2571_vm7, %v13023_v55, %v4310_v11  ;;  %v4370_v2 = vsel %vm2571_vm7, %v4310_v11, %v4312_v61  ;;  %9393 = vmatpush1.bf16.msra.mxu0 %v9392_v12  ;;  %9441 = vmatpush1.bf16.msra.mxu1 %v9440_v40  ;;  %v6598_v55 = vld [vmem:[#allocation4 + $0x420] sm:$0xff]  ;;  %v9404_v40 = vpack.c.bf16 %v6758_v18, %v6726_v60  ;;  %v6888_v18 = vld [vmem:[#allocation4 + $0xd30] sm:$0xff] }
 0x5eb   : > { %4433 = vst [vmem:[#allocation4 + $0x1020] sm:$0xf] %v4369_v13  ;;  %4434 = vst [vmem:[#allocation4 + $0x1028] sm:$0xf] %v4370_v2  ;;  %5263 = vrot.lane.b32.xlu1 %v13138_v63, %s10250_s27  ;;  %5261 = vrot.lane.b32.xlu0 %v13131_v44, %s10250_s27  ;;  %v9396_v27 = vpack.c.bf16 %v6630_v48, %v6598_v55  ;;  %v6760_v13 = vld [vmem:[#allocation4 + $0x930] sm:$0xff]  ;;  %v6791_v48 = vld [vmem:[#allocation4 + $0xa28] sm:$0xff] }
 0x5ec   : > { %9395 = vmatprep.subr.bf16.mxu0 %v9394_v45  ;;  %9443 = vmatprep.subr.bf16.mxu1 %v9442_v30  ;;  %v4524_v7 = vpop.permute.xlu1 %4523  ;;  %v6728_v45 = vld [vmem:[#allocation4 + $0x830] sm:$0xff]  ;;  %v9406_v30 = vpack.c.bf16 %v6823_v46, %v6791_v48  ;;  %v6790_v55 = vld [vmem:[#allocation4 + $0xa20] sm:$0xff] }
 0x5ed   : > { %v4522_v8 = vpop.permute.xlu0 %4521  ;;  %9230 = vmatprep.mubr.msk.f32.mxu0 %vm7332_vm9, %v12951_v19  ;;  %9231 = vmatprep.mubr.msk.f32.mxu1 %vm7332_vm9, %v12951_v19  ;;  %v6950_v60 = vld [vmem:[#allocation4 + $0xf20] sm:$0xff] }
 0x5ee   : > { %v4581_v43 = vsel %vm2784_vm8, %v13032_v25, %v4522_v8  ;;  %v4582_v35 = vsel %vm2784_vm8, %v4522_v8, %v4524_v7  ;;  %9397 = vmatpush1.bf16.msra.mxu0 %v9396_v27  ;;  %9445 = vmatpush1.bf16.msra.mxu1 %v9444_v16  ;;  %v6727_v25 = vld [vmem:[#allocation4 + $0x828] sm:$0xff]  ;;  %v9408_v27 = vpack.c.bf16 %v6822_v3, %v6790_v55  ;;  %v6920_v55 = vld [vmem:[#allocation4 + $0xe30] sm:$0xff] }
 0x5ef   : > { %4645 = vst [vmem:[#allocation4 + $0x1120] sm:$0xf] %v4581_v43  ;;  %4646 = vst [vmem:[#allocation4 + $0x1128] sm:$0xf] %v4582_v35  ;;  %5055 = vrot.lane.b32.xlu1 %v13189_v62, %s10249_s26  ;;  %5053 = vrot.lane.b32.xlu0 %v13182_v49, %s10249_s26  ;;  %v9402_v0 = vpack.c.bf16 %v6759_v1, %v6727_v25  ;;  %v9456_v16 = vpack.c.bf16 %v6760_v13, %v6728_v45  ;;  %v6889_v25 = vld [vmem:[#allocation4 + $0xd38] sm:$0xff]  ;;  %v6952_v45 = vld [vmem:[#allocation4 + $0xf30] sm:$0xff] }
 0x5f0   : > { %9399 = vmatprep.subr.bf16.mxu0 %v9398_v5  ;;  %9447 = vmatprep.subr.bf16.mxu1 %v9446_v6  ;;  %v13227_v51 = vpop.permute.xlu1 %4315  ;;  %v9410_v5 = vpack.c.bf16 %v6887_v39, %v6855_v58  ;;  %v9458_v6 = vpack.c.bf16 %v6825_v56, %v6793_v36  ;;  %v6921_v13 = vld [vmem:[#allocation4 + $0xe38] sm:$0xff]  ;;  %v7047_v39 = vld [vmem:[#allocation4 + $0x1228] sm:$0xff]  ;;  %v9468_v36 = vpack.c.bf16 %v6952_v45, %v6920_v55 }
 0x5f1   : > { %v4314_v17 = vpop.permute.xlu0 %4313 }
 0x5f2   : > { %v4371_v23 = vsel %vm2571_vm7, %v4312_v61, %v4314_v17  ;;  %v4372_v28 = vsel %vm2571_vm7, %v4314_v17, %v13227_v51  ;;  %9401 = vmatpush1.bf16.msra.mxu0 %v9400_v33  ;;  %9449 = vmatpush1.bf16.msra.mxu1 %v9448_v37  ;;  %v6761_v61 = vld [vmem:[#allocation4 + $0x938] sm:$0xff]  ;;  %v9412_v17 = vpack.c.bf16 %v6886_v14, %v6854_v20  ;;  %v6983_v48 = vld [vmem:[#allocation4 + $0x1028] sm:$0xff] }
 0x5f3   : > { %4435 = vst [vmem:[#allocation4 + $0x1030] sm:$0xf] %v4371_v23  ;;  %4436 = vst [vmem:[#allocation4 + $0x1038] sm:$0xf] %v4372_v28  ;;  %5267 = vrot.lane.b32.xlu1 %v13189_v62, %s10250_s27  ;;  %5265 = vrot.lane.b32.xlu0 %v13182_v49, %s10250_s27  ;;  %v9454_v59 = vpack.c.bf16 %v6761_v61, %v6729_v9  ;;  %v9460_v33 = vpack.c.bf16 %v6824_v29, %v6792_v15  ;;  %v6857_v37 = vld [vmem:[#allocation4 + $0xc38] sm:$0xff]  ;;  %v6919_v28 = vld [vmem:[#allocation4 + $0xe28] sm:$0xff] }
 0x5f4   : > { %9403 = vmatprep.subr.bf16.mxu0 %v9402_v0  ;;  %9451 = vmatprep.subr.bf16.mxu1 %v9450_v21  ;;  %v13236_v11 = vpop.permute.xlu1 %4527  ;;  %v9462_v0 = vpack.c.bf16 %v6889_v25, %v6857_v37  ;;  %v6856_v21 = vld [vmem:[#allocation4 + $0xc30] sm:$0xff]  ;;  %v6953_v9 = vld [vmem:[#allocation4 + $0xf38] sm:$0xff] }
 0x5f5   : > { %v4526_v12 = vpop.permute.xlu0 %4525 }
 0x5f6   : > { %v4583_v2 = vsel %vm2784_vm8, %v4524_v7, %v4526_v12  ;;  %v4584_v53 = vsel %vm2784_vm8, %v4526_v12, %v13236_v11  ;;  %9405 = vmatpush1.bf16.msra.mxu0 %v9404_v40  ;;  %9453 = vmatpush1.bf16.msra.mxu1 %v9452_v4  ;;  %v7015_v46 = vld [vmem:[#allocation4 + $0x1128] sm:$0xff]  ;;  %v9416_v40 = vpack.c.bf16 %v6950_v60, %v6918_v41  ;;  %v7014_v3 = vld [vmem:[#allocation4 + $0x1120] sm:$0xff] }
 0x5f7   : > { %4647 = vst [vmem:[#allocation4 + $0x1130] sm:$0xf] %v4583_v2  ;;  %4648 = vst [vmem:[#allocation4 + $0x1138] sm:$0xf] %v4584_v53  ;;  %5475 = vrot.lane.b32.xlu1 %v13138_v63, %s10251_s28  ;;  %5473 = vrot.lane.b32.xlu0 %v13131_v44, %s10251_s28  ;;  %v9464_v4 = vpack.c.bf16 %v6888_v18, %v6856_v21 }
 0x5f8   : > { %9407 = vmatprep.subr.bf16.mxu0 %v9406_v30  ;;  %9455 = vmatprep.subr.bf16.mxu1 %v9454_v59  ;;  %v4832_v7 = vpop.permute.xlu1 %4831  ;;  %v9418_v30 = vpack.c.bf16 %v7015_v46, %v6983_v48  ;;  %v9466_v59 = vpack.c.bf16 %v6953_v9, %v6921_v13 }
 0x5f9   : > { %v4830_v8 = vpop.permute.xlu0 %4829 }
 0x5fa   : > { %v4889_v43 = vsel %vm1293_vm1, %v13052_v50, %v4830_v8  ;;  %v4890_v35 = vsel %vm1293_vm1, %v4830_v8, %v4832_v7  ;;  %9409 = vmatpush1.bf16.msra.mxu0 %v9408_v27  ;;  %9457 = vmatpush1.bf16.msra.mxu1 %v9456_v16  ;;  %v6951_v50 = vld [vmem:[#allocation4 + $0xf28] sm:$0xff]  ;;  %v6985_v14 = vld [vmem:[#allocation4 + $0x1038] sm:$0xff]  ;;  %v6984_v20 = vld [vmem:[#allocation4 + $0x1030] sm:$0xff] }
 0x5fb   : > { %4953 = vst [vmem:[#allocation4 + $0x1320] sm:$0xf] %v4889_v43  ;;  %4954 = vst [vmem:[#allocation4 + $0x1328] sm:$0xf] %v4890_v35  ;;  %5687 = vrot.lane.b32.xlu1 %v13138_v63, %s10252_s29  ;;  %5685 = vrot.lane.b32.xlu0 %v13131_v44, %s10252_s29  ;;  %v9414_v10 = vpack.c.bf16 %v6951_v50, %v6919_v28  ;;  %v7046_v43 = vld [vmem:[#allocation4 + $0x1220] sm:$0xff]  ;;  %v7049_v50 = vld [vmem:[#allocation4 + $0x1238] sm:$0xff] }
 0x5fc   : > { %9411 = vmatprep.subr.bf16.mxu0 %v9410_v5  ;;  %9459 = vmatprep.subr.bf16.mxu1 %v9458_v6  ;;  %v13252_v1 = vpop.permute.xlu1 %4835 }
 0x5fd   : > { %v4834_v24 = vpop.permute.xlu0 %4833 }
 0x5fe   : > { %v4891_v26 = vsel %vm1293_vm1, %v4832_v7, %v4834_v24  ;;  %v4892_v23 = vsel %vm1293_vm1, %v4834_v24, %v13252_v1  ;;  %9413 = vmatpush1.bf16.msra.mxu0 %v9412_v17  ;;  %9461 = vmatpush1.bf16.msra.mxu1 %v9460_v33  ;;  %v7017_v7 = vld [vmem:[#allocation4 + $0x1138] sm:$0xff]  ;;  %v7016_v5 = vld [vmem:[#allocation4 + $0x1130] sm:$0xff] }
 0x5ff   : > { %4955 = vst [vmem:[#allocation4 + $0x1330] sm:$0xf] %v4891_v26  ;;  %4956 = vst [vmem:[#allocation4 + $0x1338] sm:$0xf] %v4892_v23  ;;  %5479 = vrot.lane.b32.xlu1 %v13189_v62, %s10251_s28  ;;  %5477 = vrot.lane.b32.xlu0 %v13182_v49, %s10251_s28  ;;  %v9470_v15 = vpack.c.bf16 %v7017_v7, %v6985_v14  ;;  %v9472_v33 = vpack.c.bf16 %v7016_v5, %v6984_v20  ;;  %v7048_v23 = vld [vmem:[#allocation4 + $0x1230] sm:$0xff] }
 0x600   : > { %9415 = vmatprep.subr.bf16.mxu0 %v9414_v10  ;;  %9463 = vmatprep.subr.bf16.mxu1 %v9462_v0  ;;  %v5044_v61 = vpop.permute.xlu1 %5043 }
 0x601   : > { %v5042_v12 = vpop.permute.xlu0 %5041 }
 0x602   : > { %v5101_v2 = vsel %vm1506_vm2, %v13077_v42, %v5042_v12  ;;  %v5102_v53 = vsel %vm1506_vm2, %v5042_v12, %v5044_v61  ;;  %9417 = vmatpush1.bf16.msra.mxu0 %v9416_v40  ;;  %9465 = vmatpush1.bf16.msra.mxu1 %v9464_v4  ;;  %v6982_v42 = vld [vmem:[#allocation4 + $0x1020] sm:$0xff]  ;;  %v7079_v56 = vld [vmem:[#allocation4 + $0x1328] sm:$0xff] }
 0x603   : > { %5165 = vst [vmem:[#allocation4 + $0x1420] sm:$0xf] %v5101_v2  ;;  %5166 = vst [vmem:[#allocation4 + $0x1428] sm:$0xf] %v5102_v53  ;;  %5691 = vrot.lane.b32.xlu1 %v13189_v62, %s10252_s29  ;;  %5689 = vrot.lane.b32.xlu0 %v13182_v49, %s10252_s29  ;;  %v9420_v16 = vpack.c.bf16 %v7014_v3, %v6982_v42  ;;  %v7078_v29 = vld [vmem:[#allocation4 + $0x1320] sm:$0xff]  ;;  %v9422_v6 = vpack.c.bf16 %v7079_v56, %v7047_v39 }
 0x604   : > { %9419 = vmatprep.subr.bf16.mxu0 %v9418_v30  ;;  %9467 = vmatprep.subr.bf16.mxu1 %v9466_v59  ;;  %v5256_v8 = vpop.permute.xlu1 %5255  ;;  %v9424_v17 = vpack.c.bf16 %v7078_v29, %v7046_v43 }
 0x605   : > { %v5254_v27 = vpop.permute.xlu0 %5253 }
 0x606   : > { %v5313_v35 = vsel %vm1719_vm3, %v13086_v32, %v5254_v27  ;;  %v5314_v58 = vsel %vm1719_vm3, %v5254_v27, %v5256_v8  ;;  %9421 = vmatpush1.bf16.msra.mxu0 %v9420_v16  ;;  %9469 = vmatpush1.bf16.msra.mxu1 %v9468_v36  ;;  %v7081_v32 = vld [vmem:[#allocation4 + $0x1338] sm:$0xff]  ;;  %v7080_v28 = vld [vmem:[#allocation4 + $0x1330] sm:$0xff] }
 0x607   : > { %5377 = vst [vmem:[#allocation4 + $0x1520] sm:$0xf] %v5313_v35  ;;  %5378 = vst [vmem:[#allocation4 + $0x1528] sm:$0xf] %v5314_v58  ;;  %5899 = vrot.lane.b32.xlu1 %v13138_v63, %s10253_s30  ;;  %5897 = vrot.lane.b32.xlu0 %v13131_v44, %s10253_s30  ;;  %v9474_v60 = vpack.c.bf16 %v7081_v32, %v7049_v50  ;;  %v9476_v0 = vpack.c.bf16 %v7080_v28, %v7048_v23  ;;  %v13330_v32 = vld [vmem:[%s10303_s24 + $0x48] sm:$0xff] }
 0x608   : > { %9423 = vmatprep.subr.bf16.mxu0 %v9422_v6  ;;  %9471 = vmatprep.subr.bf16.mxu1 %v9470_v15  ;;  %v13275_v25 = vpop.permute.xlu1 %5047  ;;  %v13323_v15 = vcombine.high %v13189_v62, %v13189_v62 }
 0x609   : > { %v5046_v24 = vpop.permute.xlu0 %5045 }
 0x60a   : > { %v5103_v37 = vsel %vm1506_vm2, %v5044_v61, %v5046_v24  ;;  %v5104_v26 = vsel %vm1506_vm2, %v5046_v24, %v13275_v25  ;;  %9425 = vmatpush1.bf16.msra.mxu0 %v9424_v17  ;;  %9473 = vmatpush1.bf16.msra.mxu1 %v9472_v33  ;;  %v7111_v21 = vld [vmem:[#allocation4 + $0x1428] sm:$0xff]  ;;  %v7110_v61 = vld [vmem:[#allocation4 + $0x1420] sm:$0xff] }
 0x60b   : > { %5167 = vst [vmem:[#allocation4 + $0x1430] sm:$0xf] %v5103_v37  ;;  %5168 = vst [vmem:[#allocation4 + $0x1438] sm:$0xf] %v5104_v26  ;;  %6111 = vrot.lane.b32.xlu1 %v13138_v63, %s10254_s6  ;;  %6109 = vrot.lane.b32.xlu0 %v13131_v44, %s10254_s6 }
 0x60c   : > { %9475 = vmatprep.subr.bf16.mxu1 %v9474_v60  ;;  %v13284_v18 = vpop.permute.xlu1 %5259 }
 0x60d   : > { %v5258_v10 = vpop.permute.xlu0 %5257 }
 0x60e   : > { %v5315_v41 = vsel %vm1719_vm3, %v5256_v8, %v5258_v10  ;;  %v5316_v46 = vsel %vm1719_vm3, %v5258_v10, %v13284_v18  ;;  %v7143_v9 = vld [vmem:[#allocation4 + $0x1528] sm:$0xff]  ;;  %v7142_v12 = vld [vmem:[#allocation4 + $0x1520] sm:$0xff]  ;;  %9477 = vmatpush1.bf16.msra.mxu1 %v9476_v0 }
 0x60f   : > { %5379 = vst [vmem:[#allocation4 + $0x1530] sm:$0xf] %v5315_v41  ;;  %5380 = vst [vmem:[#allocation4 + $0x1538] sm:$0xf] %v5316_v46  ;;  %v9426_v40 = vpack.c.bf16 %v7143_v9, %v7111_v21  ;;  %v9428_v4 = vpack.c.bf16 %v7142_v12, %v7110_v61  ;;  %5903 = vrot.lane.b32.xlu1 %v13189_v62, %s10253_s30  ;;  %5901 = vrot.lane.b32.xlu0 %v13182_v49, %s10253_s30 }
 0x610   : > { %v5468_v13 = vpop.permute.xlu1 %5467 }
 0x611   : > { %v5466_v2 = vpop.permute.xlu0 %5465  ;;  %9427 = vmatprep.subr.bf16.mxu0 %v9426_v40 }
 0x612   : > { %v5525_v53 = vsel %vm1932_vm4, %v13111_v57, %v5466_v2  ;;  %v5526_v48 = vsel %vm1932_vm4, %v5466_v2, %v5468_v13  ;;  %9429 = vmatpush1.bf16.msra.mxu0 %v9428_v4  ;;  %v7113_v30 = vld [vmem:[#allocation4 + $0x1438] sm:$0xff]  ;;  %v7112_v39 = vld [vmem:[#allocation4 + $0x1430] sm:$0xff] }
 0x613   : > { %5589 = vst [vmem:[#allocation4 + $0x1620] sm:$0xf] %v5525_v53  ;;  %5590 = vst [vmem:[#allocation4 + $0x1628] sm:$0xf] %v5526_v48  ;;  %6115 = vrot.lane.b32.xlu1 %v13189_v62, %s10254_s6  ;;  %6113 = vrot.lane.b32.xlu0 %v13182_v49, %s10254_s6 }
 0x614   : > { %v5680_v3 = vpop.permute.xlu1 %5679 }
 0x615   : > { %v5678_v45 = vpop.permute.xlu0 %5677 }
 0x616   : > { %v5737_v59 = vsel %vm2145_vm5, %v13120_v52, %v5678_v45  ;;  %v5738_v55 = vsel %vm2145_vm5, %v5678_v45, %v5680_v3  ;;  %v7145_v57 = vld [vmem:[#allocation4 + $0x1538] sm:$0xff]  ;;  %v7144_v42 = vld [vmem:[#allocation4 + $0x1530] sm:$0xff] }
 0x617   : > { %5801 = vst [vmem:[#allocation4 + $0x1720] sm:$0xf] %v5737_v59  ;;  %5802 = vst [vmem:[#allocation4 + $0x1728] sm:$0xf] %v5738_v55  ;;  %v9478_v56 = vpack.c.bf16 %v7145_v57, %v7113_v30  ;;  %v9480_v7 = vpack.c.bf16 %v7144_v42, %v7112_v39  ;;  %6323 = vrot.lane.b32.xlu1 %v13138_v63, %s10255_s7  ;;  %6321 = vrot.lane.b32.xlu0 %v13131_v44, %s10255_s7 }
 0x618   : > { %v13307_v8 = vpop.permute.xlu1 %5471 }
 0x619   : > { %v5470_v27 = vpop.permute.xlu0 %5469  ;;  %9479 = vmatprep.subr.bf16.mxu1 %v9478_v56 }
 0x61a   : > { %v5527_v52 = vsel %vm1932_vm4, %v5468_v13, %v5470_v27  ;;  %v5528_v16 = vsel %vm1932_vm4, %v5470_v27, %v13307_v8  ;;  %9481 = vmatpush1.bf16.msra.mxu1 %v9480_v7  ;;  %v7175_v36 = vld [vmem:[#allocation4 + $0x1628] sm:$0xff]  ;;  %v7174_v14 = vld [vmem:[#allocation4 + $0x1620] sm:$0xff] }
 0x61b   : > { %5591 = vst [vmem:[#allocation4 + $0x1630] sm:$0xf] %v5527_v52  ;;  %5592 = vst [vmem:[#allocation4 + $0x1638] sm:$0xf] %v5528_v16  ;;  %6327 = vrot.lane.b32.xlu1 %v13189_v62, %s10255_s7  ;;  %6325 = vrot.lane.b32.xlu0 %v13182_v49, %s10255_s7 }
 0x61c   : > { %v13316_v63 = vpop.permute.xlu1 %5683 }
 0x61d   : > { %v5682_v44 = vpop.permute.xlu0 %5681 }
 0x61e   : > { %v5739_v43 = vsel %vm2145_vm5, %v5680_v3, %v5682_v44  ;;  %v5740_v35 = vsel %vm2145_vm5, %v5682_v44, %v13316_v63  ;;  %v7207_v58 = vld [vmem:[#allocation4 + $0x1728] sm:$0xff]  ;;  %v7206_v29 = vld [vmem:[#allocation4 + $0x1720] sm:$0xff]  ;;  %v13378_v44 = vcombine.high %v13330_v32, %v13330_v32 }
 0x61f   : > { %5803 = vst [vmem:[#allocation4 + $0x1730] sm:$0xf] %v5739_v43  ;;  %5804 = vst [vmem:[#allocation4 + $0x1738] sm:$0xf] %v5740_v35  ;;  %v9430_v5 = vpack.c.bf16 %v7207_v58, %v7175_v36  ;;  %v9432_v6 = vpack.c.bf16 %v7206_v29, %v7174_v14  ;;  %4115 = vrot.lane.b32.xlu1 %v13189_v62, %s10253_s30  ;;  %4113 = vrot.lane.b32.xlu0 %v13182_v49, %s10253_s30  ;;  %v6474_v36 = vld [vmem:[#allocation4 + $0x40] sm:$0xff]  ;;  %v13385_v58 = vld [vmem:[%s10303_s24 + $0x50] sm:$0xff] }
 0x620   : > { %v5892_v20 = vpop.permute.xlu1 %5891  ;;  %v6475_v14 = vld [vmem:[#allocation4 + $0x48] sm:$0xff] }
 0x621   : > { %v5890_v50 = vpop.permute.xlu0 %5889  ;;  %9431 = vmatprep.subr.bf16.mxu0 %v9430_v5  ;;  %v6507_v29 = vld [vmem:[#allocation4 + $0x148] sm:$0xff] }
 0x622   : > { %v5949_v24 = vsel %vm2358_vm6, %v13152_v31, %v5890_v50  ;;  %v5950_v17 = vsel %vm2358_vm6, %v5890_v50, %v5892_v20  ;;  %9433 = vmatpush1.bf16.msra.mxu0 %v9432_v6  ;;  %v7177_v26 = vld [vmem:[#allocation4 + $0x1638] sm:$0xff]  ;;  %v7176_v60 = vld [vmem:[#allocation4 + $0x1630] sm:$0xff] }
 0x623   : > { %6013 = vst [vmem:[#allocation4 + $0x1820] sm:$0xf] %v5949_v24  ;;  %6014 = vst [vmem:[#allocation4 + $0x1828] sm:$0xf] %v5950_v17  ;;  %4119 = vrot.lane.b32.xlu1 %v13330_v32, %s10253_s30  ;;  %4117 = vrot.lane.b32.xlu0 %v13323_v15, %s10253_s30  ;;  %v6506_v24 = vld [vmem:[#allocation4 + $0x140] sm:$0xff]  ;;  %v9490_v17 = vpack.c.bf16 %v6507_v29, %v6475_v14  ;;  %v6605_v14 = vld [vmem:[#allocation4 + $0x458] sm:$0xff] }
 0x624   : > { %v6104_v33 = vpop.permute.xlu1 %6103 }
 0x625   : > { %v6102_v37 = vpop.permute.xlu0 %6101 }
 0x626   : > { %v6161_v23 = vsel %vm2571_vm7, %v13161_v47, %v6102_v37  ;;  %v6162_v28 = vsel %vm2571_vm7, %v6102_v37, %v6104_v33  ;;  %v7209_v31 = vld [vmem:[#allocation4 + $0x1738] sm:$0xff]  ;;  %v7208_v10 = vld [vmem:[#allocation4 + $0x1730] sm:$0xff] }
 0x627   : > { %6225 = vst [vmem:[#allocation4 + $0x1920] sm:$0xf] %v6161_v23  ;;  %6226 = vst [vmem:[#allocation4 + $0x1928] sm:$0xf] %v6162_v28  ;;  %v9482_v0 = vpack.c.bf16 %v7209_v31, %v7177_v26  ;;  %v9484_v21 = vpack.c.bf16 %v7208_v10, %v7176_v60  ;;  %4327 = vrot.lane.b32.xlu1 %v13189_v62, %s10254_s6  ;;  %4325 = vrot.lane.b32.xlu0 %v13182_v49, %s10254_s6  ;;  %v6477_v37 = vld [vmem:[#allocation4 + $0x58] sm:$0xff]  ;;  %v6476_v26 = vld [vmem:[#allocation4 + $0x50] sm:$0xff] }
 0x628   : > { %v13346_v41 = vpop.permute.xlu1 %5895  ;;  %v9492_v28 = vpack.c.bf16 %v6506_v24, %v6474_v36  ;;  %v6539_v31 = vld [vmem:[#allocation4 + $0x248] sm:$0xff]  ;;  %v6509_v60 = vld [vmem:[#allocation4 + $0x158] sm:$0xff]  ;;  %v6508_v10 = vld [vmem:[#allocation4 + $0x150] sm:$0xff] }
 0x629   : > { %v5894_v46 = vpop.permute.xlu0 %5893  ;;  %9483 = vmatprep.subr.bf16.mxu1 %v9482_v0 }
 0x62a   : > { %v5951_v47 = vsel %vm2358_vm6, %v5892_v20, %v5894_v46  ;;  %v5952_v9 = vsel %vm2358_vm6, %v5894_v46, %v13346_v41  ;;  %9485 = vmatpush1.bf16.msra.mxu1 %v9484_v21  ;;  %v7239_v40 = vld [vmem:[#allocation4 + $0x1828] sm:$0xff]  ;;  %v7238_v53 = vld [vmem:[#allocation4 + $0x1820] sm:$0xff]  ;;  %v13402_v46 = vld [vmem:[%s15156_s1] sm:$0xff] }
 0x62b   : > { %6015 = vst [vmem:[#allocation4 + $0x1830] sm:$0xf] %v5951_v47  ;;  %6016 = vst [vmem:[#allocation4 + $0x1838] sm:$0xf] %v5952_v9  ;;  %4539 = vrot.lane.b32.xlu1 %v13189_v62, %s10255_s7  ;;  %4537 = vrot.lane.b32.xlu0 %v13182_v49, %s10255_s7 }
 0x62c   : > { %v13355_v61 = vpop.permute.xlu1 %6107 }
 0x62d   : > { %v6106_v12 = vpop.permute.xlu0 %6105 }
 0x62e   : > { %v6163_v4 = vsel %vm2571_vm7, %v6104_v33, %v6106_v12  ;;  %v6164_v13 = vsel %vm2571_vm7, %v6106_v12, %v13355_v61  ;;  %v7271_v2 = vld [vmem:[#allocation4 + $0x1928] sm:$0xff]  ;;  %v7270_v48 = vld [vmem:[#allocation4 + $0x1920] sm:$0xff] }
 0x62f   : > { %6227 = vst [vmem:[#allocation4 + $0x1930] sm:$0xf] %v6163_v4  ;;  %6228 = vst [vmem:[#allocation4 + $0x1938] sm:$0xf] %v6164_v13  ;;  %v9434_v3 = vpack.c.bf16 %v7271_v2, %v7239_v40  ;;  %v9436_v45 = vpack.c.bf16 %v7270_v48, %v7238_v53  ;;  %4331 = vrot.lane.b32.xlu1 %v13330_v32, %s10254_s6  ;;  %4329 = vrot.lane.b32.xlu0 %v13323_v15, %s10254_s6  ;;  %v6571_v33 = vld [vmem:[#allocation4 + $0x348] sm:$0xff]  ;;  %v6570_v12 = vld [vmem:[#allocation4 + $0x340] sm:$0xff] }
 0x630   : > { %v6316_v49 = vpop.permute.xlu1 %6315  ;;  %v9494_v40 = vpack.c.bf16 %v6571_v33, %v6539_v31  ;;  %v9542_v4 = vpack.c.bf16 %v6509_v60, %v6477_v37  ;;  %v6538_v13 = vld [vmem:[#allocation4 + $0x240] sm:$0xff]  ;;  %v6635_v2 = vld [vmem:[#allocation4 + $0x548] sm:$0xff]  ;;  %v6573_v53 = vld [vmem:[#allocation4 + $0x358] sm:$0xff] }
 0x631   : > { %v6314_v62 = vpop.permute.xlu0 %6313  ;;  %9435 = vmatprep.subr.bf16.mxu0 %v9434_v3  ;;  %v6666_v33 = vld [vmem:[#allocation4 + $0x640] sm:$0xff]  ;;  %v6604_v37 = vld [vmem:[#allocation4 + $0x450] sm:$0xff] }
 0x632   : > { %v6373_v30 = vsel %vm2784_vm8, %v13175_v22, %v6314_v62  ;;  %v6374_v59 = vsel %vm2784_vm8, %v6314_v62, %v6316_v49  ;;  %9437 = vmatpush1.bf16.msra.mxu0 %v9436_v45  ;;  %v7241_v39 = vld [vmem:[#allocation4 + $0x1838] sm:$0xff]  ;;  %v7240_v7 = vld [vmem:[#allocation4 + $0x1830] sm:$0xff]  ;;  %v9496_v45 = vpack.c.bf16 %v6570_v12, %v6538_v13  ;;  %v6762_v12 = vld [vmem:[#allocation4 + $0x940] sm:$0xff] }
 0x633   : > { %6437 = vst [vmem:[#allocation4 + $0x1a20] sm:$0xf] %v6373_v30  ;;  %6438 = vst [vmem:[#allocation4 + $0x1a28] sm:$0xf] %v6374_v59  ;;  %4543 = vrot.lane.b32.xlu1 %v13330_v32, %s10255_s7  ;;  %4541 = vrot.lane.b32.xlu0 %v13323_v15, %s10255_s7  ;;  %v6541_v62 = vld [vmem:[#allocation4 + $0x258] sm:$0xff] }
 0x634   : > { %v13371_v55 = vpop.permute.xlu1 %6319 }
 0x635   : > { %v6318_v57 = vpop.permute.xlu0 %6317 }
 0x636   : > { %v6375_v42 = vsel %vm2784_vm8, %v6316_v49, %v6318_v57  ;;  %v6376_v22 = vsel %vm2784_vm8, %v6318_v57, %v13371_v55  ;;  %v7273_v56 = vld [vmem:[#allocation4 + $0x1938] sm:$0xff]  ;;  %v7272_v27 = vld [vmem:[#allocation4 + $0x1930] sm:$0xff]  ;;  %v9544_v49 = vpack.c.bf16 %v6508_v10, %v6476_v26  ;;  %v6603_v57 = vld [vmem:[#allocation4 + $0x448] sm:$0xff] }
 0x637   : > { %6439 = vst [vmem:[#allocation4 + $0x1a30] sm:$0xf] %v6375_v42  ;;  %6440 = vst [vmem:[#allocation4 + $0x1a38] sm:$0xf] %v6376_v22  ;;  %v9486_v52 = vpack.c.bf16 %v7273_v56, %v7241_v39  ;;  %v9488_v16 = vpack.c.bf16 %v7272_v27, %v7240_v7  ;;  %4847 = vrot.lane.b32.xlu1 %v13330_v32, %s10248_s25  ;;  %4845 = vrot.lane.b32.xlu0 %v13323_v15, %s10248_s25  ;;  %v6634_v39 = vld [vmem:[#allocation4 + $0x540] sm:$0xff]  ;;  %v6572_v42 = vld [vmem:[#allocation4 + $0x350] sm:$0xff] }
 0x638   : > { %v4108_v43 = vpop.permute.xlu1 %4107  ;;  %v9498_v22 = vpack.c.bf16 %v6635_v2, %v6603_v57  ;;  %v9546_v56 = vpack.c.bf16 %v6573_v53, %v6541_v62  ;;  %v6540_v7 = vld [vmem:[#allocation4 + $0x250] sm:$0xff]  ;;  %v6699_v27 = vld [vmem:[#allocation4 + $0x748] sm:$0xff] }
 0x639   : > { %v4106_v35 = vpop.permute.xlu0 %4105  ;;  %9487 = vmatprep.subr.bf16.mxu1 %v9486_v52  ;;  %v6637_v52 = vld [vmem:[#allocation4 + $0x558] sm:$0xff]  ;;  %v6763_v26 = vld [vmem:[#allocation4 + $0x948] sm:$0xff]  ;;  %v6668_v2 = vld [vmem:[#allocation4 + $0x650] sm:$0xff] }
 0x63a   : > { %v4161_v5 = vsel %vm2358_vm6, %v13198_v54, %v4106_v35  ;;  %v4162_v6 = vsel %vm2358_vm6, %v4106_v35, %v4108_v43  ;;  %9489 = vmatpush1.bf16.msra.mxu1 %v9488_v16  ;;  %v7303_v20 = vld [vmem:[#allocation4 + $0x1a28] sm:$0xff]  ;;  %v7302_v50 = vld [vmem:[#allocation4 + $0x1a20] sm:$0xff]  ;;  %v9548_v35 = vpack.c.bf16 %v6572_v42, %v6540_v7 }
 0x63b   : > { %4225 = vst [vmem:[#allocation4 + $0xf40] sm:$0xf] %v4161_v5  ;;  %4226 = vst [vmem:[#allocation4 + $0xf48] sm:$0xf] %v4162_v6  ;;  %7529 = vmatprep.subr.mxu0 %v7303_v20  ;;  %4851 = vrot.lane.b32.xlu1 %v13385_v58, %s10248_s25  ;;  %v6667_v6 = vld [vmem:[#allocation4 + $0x648] sm:$0xff]  ;;  %v6698_v20 = vld [vmem:[#allocation4 + $0x740] sm:$0xff] }
 0x63c   : > { %4849 = vrot.lane.b32.xlu0 %v13378_v44, %s10248_s25  ;;  %7530 = vmatpush1.msra.mxu0 %v7302_v50  ;;  %v13394_v54 = vpop.permute.xlu1 %4111  ;;  %v6636_v50 = vld [vmem:[#allocation4 + $0x550] sm:$0xff]  ;;  %v9502_v24 = vpack.c.bf16 %v6699_v27, %v6667_v6  ;;  %v9504_v60 = vpack.c.bf16 %v6698_v20, %v6666_v33  ;;  %v6827_v53 = vld [vmem:[#allocation4 + $0xb48] sm:$0xff]  ;;  %v6794_v27 = vld [vmem:[#allocation4 + $0xa40] sm:$0xff] }
 0x63d   : > { %v4110_v23 = vpop.permute.xlu0 %4109  ;;  %9491 = vmatprep.subr.bf16.mxu0 %v9490_v17  ;;  %7542 = vmatmul.mubr.f32.vlgmr.msra.gmra.mrb[2].mxu0 %v13402_v46  ;;  %v9550_v17 = vpack.c.bf16 %v6637_v52, %v6605_v14  ;;  %v9552_v10 = vpack.c.bf16 %v6636_v50, %v6604_v37  ;;  %v6795_v42 = vld [vmem:[#allocation4 + $0xa48] sm:$0xff]  ;;  %v6890_v50 = vld [vmem:[#allocation4 + $0xd40] sm:$0xff]  ;;  %v6796_v37 = vld [vmem:[#allocation4 + $0xa50] sm:$0xff] }
 0x63e   : > { %v4163_v0 = vsel %vm2358_vm6, %v4108_v43, %v4110_v23  ;;  %v4164_v21 = vsel %vm2358_vm6, %v4110_v23, %v13394_v54  ;;  %v7305_v47 = vld [vmem:[#allocation4 + $0x1a38] sm:$0xff]  ;;  %v7304_v9 = vld [vmem:[#allocation4 + $0x1a30] sm:$0xff]  ;;  %9493 = vmatpush1.bf16.msra.mxu0 %v9492_v28  ;;  %9232 = vmatprep.mubr.msk.f32.mxu0 %vm7332_vm9, %v12951_v19  ;;  %v9510_v7 = vpack.c.bf16 %v6827_v53, %v6795_v42  ;;  %v6891_v52 = vld [vmem:[#allocation4 + $0xd48] sm:$0xff] }
 0x63f   : > { %4227 = vst [vmem:[#allocation4 + $0xf50] sm:$0xf] %v4163_v0  ;;  %4228 = vst [vmem:[#allocation4 + $0xf58] sm:$0xf] %v4164_v21  ;;  %7600 = vmatprep.subr.mxu1 %v7305_v47  ;;  %5059 = vrot.lane.b32.xlu1 %v13330_v32, %s10249_s26  ;;  %v6701_v23 = vld [vmem:[#allocation4 + $0x758] sm:$0xff]  ;;  %v6859_v20 = vld [vmem:[#allocation4 + $0xc48] sm:$0xff] }
 0x640   : > { %5057 = vrot.lane.b32.xlu0 %v13323_v15, %s10249_s26  ;;  %9495 = vmatprep.subr.bf16.mxu0 %v9494_v40  ;;  %v4320_v48 = vpop.permute.xlu1 %4319  ;;  %v6669_v0 = vld [vmem:[#allocation4 + $0x658] sm:$0xff]  ;;  %v6700_v40 = vld [vmem:[#allocation4 + $0x750] sm:$0xff]  ;;  %v6922_v53 = vld [vmem:[#allocation4 + $0xe40] sm:$0xff] }
 0x641   : > { %7601 = vmatpush1.msra.mxu1 %v7304_v9  ;;  %v4318_v3 = vpop.permute.xlu0 %4317  ;;  %v6730_v9 = vld [vmem:[#allocation4 + $0x840] sm:$0xff]  ;;  %v9554_v13 = vpack.c.bf16 %v6701_v23, %v6669_v0  ;;  %v6861_v0 = vld [vmem:[#allocation4 + $0xc58] sm:$0xff] }
 0x642   : > { %v4373_v30 = vsel %vm2571_vm7, %v13227_v51, %v4318_v3  ;;  %v4374_v59 = vsel %vm2571_vm7, %v4318_v3, %v4320_v48  ;;  %9543 = vmatprep.subr.bf16.mxu1 %v9542_v4  ;;  %7613 = vmatmul.mubr.f32.vlgmr.msra.gmra.mrb[2].mxu1 %v13402_v46  ;;  %v6602_v51 = vld [vmem:[#allocation4 + $0x440] sm:$0xff]  ;;  %v6765_v3 = vld [vmem:[#allocation4 + $0x958] sm:$0xff]  ;;  %v9508_v62 = vpack.c.bf16 %v6762_v12, %v6730_v9  ;;  %v6923_v9 = vld [vmem:[#allocation4 + $0xe48] sm:$0xff] }
 0x643   : > { %4437 = vst [vmem:[#allocation4 + $0x1040] sm:$0xf] %v4373_v30  ;;  %4438 = vst [vmem:[#allocation4 + $0x1048] sm:$0xf] %v4374_v59  ;;  %9497 = vmatpush1.bf16.msra.mxu0 %v9496_v45  ;;  %9545 = vmatpush1.bf16.msra.mxu1 %v9544_v49  ;;  %v9500_v43 = vpack.c.bf16 %v6634_v39, %v6602_v51  ;;  %v9556_v30 = vpack.c.bf16 %v6700_v40, %v6668_v2  ;;  %v6764_v59 = vld [vmem:[#allocation4 + $0x950] sm:$0xff]  ;;  %v6954_v12 = vld [vmem:[#allocation4 + $0xf40] sm:$0xff] }
 0x644   : > { %5271 = vrot.lane.b32.xlu1 %v13330_v32, %s10250_s27  ;;  %5269 = vrot.lane.b32.xlu0 %v13323_v15, %s10250_s27  ;;  %v4532_v16 = vpop.permute.xlu1 %4531  ;;  %v6892_v40 = vld [vmem:[#allocation4 + $0xd50] sm:$0xff] }
 0x645   : > { %9499 = vmatprep.subr.bf16.mxu0 %v9498_v22  ;;  %9547 = vmatprep.subr.bf16.mxu1 %v9546_v56  ;;  %v4530_v36 = vpop.permute.xlu0 %4529  ;;  %v6826_v22 = vld [vmem:[#allocation4 + $0xb40] sm:$0xff]  ;;  %v6732_v56 = vld [vmem:[#allocation4 + $0x850] sm:$0xff] }
 0x646   : > { %v4585_v29 = vsel %vm2784_vm8, %v13236_v11, %v4530_v36  ;;  %v4586_v5 = vsel %vm2784_vm8, %v4530_v36, %v4532_v16  ;;  %9233 = vmatprep.mubr.msk.f32.mxu1 %vm7332_vm9, %v12951_v19  ;;  %v6731_v11 = vld [vmem:[#allocation4 + $0x848] sm:$0xff]  ;;  %v9560_v14 = vpack.c.bf16 %v6764_v59, %v6732_v56  ;;  %v6957_v2 = vld [vmem:[#allocation4 + $0xf58] sm:$0xff]  ;;  %v6956_v56 = vld [vmem:[#allocation4 + $0xf50] sm:$0xff] }
 0x647   : > { %4649 = vst [vmem:[#allocation4 + $0x1140] sm:$0xf] %v4585_v29  ;;  %4650 = vst [vmem:[#allocation4 + $0x1148] sm:$0xf] %v4586_v5  ;;  %9501 = vmatpush1.bf16.msra.mxu0 %v9500_v43  ;;  %9549 = vmatpush1.bf16.msra.mxu1 %v9548_v35  ;;  %v9506_v4 = vpack.c.bf16 %v6763_v26, %v6731_v11  ;;  %v9512_v35 = vpack.c.bf16 %v6826_v22, %v6794_v27  ;;  %v6797_v29 = vld [vmem:[#allocation4 + $0xa58] sm:$0xff]  ;;  %v6858_v11 = vld [vmem:[#allocation4 + $0xc40] sm:$0xff] }
 0x648   : > { %5063 = vrot.lane.b32.xlu1 %v13385_v58, %s10249_s26  ;;  %5061 = vrot.lane.b32.xlu0 %v13378_v44, %s10249_s26  ;;  %v13428_v28 = vpop.permute.xlu1 %4323  ;;  %v6893_v26 = vld [vmem:[#allocation4 + $0xd58] sm:$0xff] }
 0x649   : > { %9503 = vmatprep.subr.bf16.mxu0 %v9502_v24  ;;  %9551 = vmatprep.subr.bf16.mxu1 %v9550_v17  ;;  %v4322_v31 = vpop.permute.xlu0 %4321  ;;  %v6828_v24 = vld [vmem:[#allocation4 + $0xb50] sm:$0xff]  ;;  %v9514_v17 = vpack.c.bf16 %v6891_v52, %v6859_v20  ;;  %v6925_v59 = vld [vmem:[#allocation4 + $0xe58] sm:$0xff] }
 0x64a   : > { %v4375_v21 = vsel %vm2571_vm7, %v4320_v48, %v4322_v31  ;;  %v4376_v47 = vsel %vm2571_vm7, %v4322_v31, %v13428_v28  ;;  %v6733_v48 = vld [vmem:[#allocation4 + $0x858] sm:$0xff]  ;;  %v9570_v42 = vpack.c.bf16 %v6957_v2, %v6925_v59  ;;  %v6924_v52 = vld [vmem:[#allocation4 + $0xe50] sm:$0xff] }
 0x64b   : > { %4439 = vst [vmem:[#allocation4 + $0x1050] sm:$0xf] %v4375_v21  ;;  %4440 = vst [vmem:[#allocation4 + $0x1058] sm:$0xf] %v4376_v47  ;;  %9505 = vmatpush1.bf16.msra.mxu0 %v9504_v60  ;;  %9553 = vmatpush1.bf16.msra.mxu1 %v9552_v10  ;;  %v9558_v51 = vpack.c.bf16 %v6765_v3, %v6733_v48  ;;  %v9516_v60 = vpack.c.bf16 %v6890_v50, %v6858_v11  ;;  %v6860_v48 = vld [vmem:[#allocation4 + $0xc50] sm:$0xff]  ;;  %v7050_v50 = vld [vmem:[#allocation4 + $0x1240] sm:$0xff] }
 0x64c   : > { %5275 = vrot.lane.b32.xlu1 %v13385_v58, %s10250_s27  ;;  %5273 = vrot.lane.b32.xlu0 %v13378_v44, %s10250_s27  ;;  %v13437_v45 = vpop.permute.xlu1 %4535  ;;  %v9564_v10 = vpack.c.bf16 %v6828_v24, %v6796_v37 }
 0x64d   : > { %9507 = vmatprep.subr.bf16.mxu0 %v9506_v4  ;;  %9555 = vmatprep.subr.bf16.mxu1 %v9554_v13  ;;  %v4534_v49 = vpop.permute.xlu0 %4533  ;;  %v9566_v13 = vpack.c.bf16 %v6893_v26, %v6861_v0  ;;  %v7053_v26 = vld [vmem:[#allocation4 + $0x1258] sm:$0xff] }
 0x64e   : > { %v4587_v57 = vsel %vm2784_vm8, %v4532_v16, %v4534_v49  ;;  %v4588_v39 = vsel %vm2784_vm8, %v4534_v49, %v13437_v45  ;;  %v6829_v16 = vld [vmem:[#allocation4 + $0xb58] sm:$0xff]  ;;  %v7019_v3 = vld [vmem:[#allocation4 + $0x1148] sm:$0xff]  ;;  %v7018_v22 = vld [vmem:[#allocation4 + $0x1140] sm:$0xff] }
 0x64f   : > { %4651 = vst [vmem:[#allocation4 + $0x1150] sm:$0xf] %v4587_v57  ;;  %4652 = vst [vmem:[#allocation4 + $0x1158] sm:$0xf] %v4588_v39  ;;  %9509 = vmatpush1.bf16.msra.mxu0 %v9508_v62  ;;  %9557 = vmatpush1.bf16.msra.mxu1 %v9556_v30  ;;  %v9562_v33 = vpack.c.bf16 %v6829_v16, %v6797_v29  ;;  %v9520_v62 = vpack.c.bf16 %v6954_v12, %v6922_v53  ;;  %v6987_v39 = vld [vmem:[#allocation4 + $0x1048] sm:$0xff] }
 0x650   : > { %5483 = vrot.lane.b32.xlu1 %v13330_v32, %s10251_s28  ;;  %5481 = vrot.lane.b32.xlu0 %v13323_v15, %s10251_s28  ;;  %v4840_v36 = vpop.permute.xlu1 %4839  ;;  %v9568_v30 = vpack.c.bf16 %v6892_v40, %v6860_v48  ;;  %v9522_v27 = vpack.c.bf16 %v7019_v3, %v6987_v39 }
 0x651   : > { %9511 = vmatprep.subr.bf16.mxu0 %v9510_v7  ;;  %9559 = vmatprep.subr.bf16.mxu1 %v9558_v51  ;;  %v4838_v43 = vpop.permute.xlu0 %4837 }
 0x652   : > { %v4893_v5 = vsel %vm1293_vm1, %v13252_v1, %v4838_v43  ;;  %v4894_v6 = vsel %vm1293_vm1, %v4838_v43, %v4840_v36  ;;  %v6955_v1 = vld [vmem:[#allocation4 + $0xf48] sm:$0xff]  ;;  %v6989_v29 = vld [vmem:[#allocation4 + $0x1058] sm:$0xff] }
 0x653   : > { %4957 = vst [vmem:[#allocation4 + $0x1340] sm:$0xf] %v4893_v5  ;;  %4958 = vst [vmem:[#allocation4 + $0x1348] sm:$0xf] %v4894_v6  ;;  %9513 = vmatpush1.bf16.msra.mxu0 %v9512_v35  ;;  %9561 = vmatpush1.bf16.msra.mxu1 %v9560_v14  ;;  %v9518_v4 = vpack.c.bf16 %v6955_v1, %v6923_v9  ;;  %v7051_v43 = vld [vmem:[#allocation4 + $0x1248] sm:$0xff]  ;;  %v9572_v14 = vpack.c.bf16 %v6956_v56, %v6924_v52  ;;  %v6988_v1 = vld [vmem:[#allocation4 + $0x1050] sm:$0xff] }
 0x654   : > { %5695 = vrot.lane.b32.xlu1 %v13330_v32, %s10252_s29  ;;  %5693 = vrot.lane.b32.xlu0 %v13323_v15, %s10252_s29  ;;  %v13453_v23 = vpop.permute.xlu1 %4843 }
 0x655   : > { %9515 = vmatprep.subr.bf16.mxu0 %v9514_v17  ;;  %9563 = vmatprep.subr.bf16.mxu1 %v9562_v33  ;;  %v4842_v31 = vpop.permute.xlu0 %4841 }
 0x656   : > { %v4895_v21 = vsel %vm1293_vm1, %v4840_v36, %v4842_v31  ;;  %v4896_v47 = vsel %vm1293_vm1, %v4842_v31, %v13453_v23  ;;  %v7021_v16 = vld [vmem:[#allocation4 + $0x1158] sm:$0xff]  ;;  %v6986_v36 = vld [vmem:[#allocation4 + $0x1040] sm:$0xff]  ;;  %v7020_v17 = vld [vmem:[#allocation4 + $0x1150] sm:$0xff] }
 0x657   : > { %4959 = vst [vmem:[#allocation4 + $0x1350] sm:$0xf] %v4895_v21  ;;  %4960 = vst [vmem:[#allocation4 + $0x1358] sm:$0xf] %v4896_v47  ;;  %9517 = vmatpush1.bf16.msra.mxu0 %v9516_v60  ;;  %9565 = vmatpush1.bf16.msra.mxu1 %v9564_v10  ;;  %v9574_v20 = vpack.c.bf16 %v7021_v16, %v6989_v29  ;;  %v7052_v21 = vld [vmem:[#allocation4 + $0x1250] sm:$0xff] }
 0x658   : > { %5487 = vrot.lane.b32.xlu1 %v13385_v58, %s10251_s28  ;;  %5485 = vrot.lane.b32.xlu0 %v13378_v44, %s10251_s28  ;;  %v5052_v49 = vpop.permute.xlu1 %5051 }
 0x659   : > { %9519 = vmatprep.subr.bf16.mxu0 %v9518_v4  ;;  %9567 = vmatprep.subr.bf16.mxu1 %v9566_v13  ;;  %v5050_v57 = vpop.permute.xlu0 %5049 }
 0x65a   : > { %v5105_v7 = vsel %vm1506_vm2, %v13275_v25, %v5050_v57  ;;  %v5106_v51 = vsel %vm1506_vm2, %v5050_v57, %v5052_v49  ;;  %v7083_v35 = vld [vmem:[#allocation4 + $0x1348] sm:$0xff]  ;;  %v9524_v25 = vpack.c.bf16 %v7018_v22, %v6986_v36  ;;  %v7082_v24 = vld [vmem:[#allocation4 + $0x1340] sm:$0xff] }
 0x65b   : > { %9521 = vmatpush1.bf16.msra.mxu0 %v9520_v62  ;;  %9569 = vmatpush1.bf16.msra.mxu1 %v9568_v30  ;;  %5169 = vst [vmem:[#allocation4 + $0x1440] sm:$0xf] %v5105_v7  ;;  %5170 = vst [vmem:[#allocation4 + $0x1448] sm:$0xf] %v5106_v51  ;;  %v9526_v11 = vpack.c.bf16 %v7083_v35, %v7051_v43  ;;  %v9528_v60 = vpack.c.bf16 %v7082_v24, %v7050_v50 }
 0x65c   : > { %5699 = vrot.lane.b32.xlu1 %v13385_v58, %s10252_s29  ;;  %5697 = vrot.lane.b32.xlu0 %v13378_v44, %s10252_s29 }
 0x65d   : > { %9523 = vmatprep.subr.bf16.mxu0 %v9522_v27  ;;  %9571 = vmatprep.subr.bf16.mxu1 %v9570_v42  ;;  %v5264_v5 = vpop.permute.xlu1 %5263  ;;  %v5262_v6 = vpop.permute.xlu0 %5261 }
 0x65e   : > { %v5317_v33 = vsel %vm1719_vm3, %v13284_v18, %v5262_v6  ;;  %v5318_v37 = vsel %vm1719_vm3, %v5262_v6, %v5264_v5  ;;  %v7085_v31 = vld [vmem:[#allocation4 + $0x1358] sm:$0xff]  ;;  %v9576_v18 = vpack.c.bf16 %v7020_v17, %v6988_v1  ;;  %v7084_v47 = vld [vmem:[#allocation4 + $0x1350] sm:$0xff] }
 0x65f   : > { %9525 = vmatpush1.bf16.msra.mxu0 %v9524_v25  ;;  %9573 = vmatpush1.bf16.msra.mxu1 %v9572_v14  ;;  %5381 = vst [vmem:[#allocation4 + $0x1540] sm:$0xf] %v5317_v33  ;;  %5382 = vst [vmem:[#allocation4 + $0x1548] sm:$0xf] %v5318_v37  ;;  %v9578_v40 = vpack.c.bf16 %v7085_v31, %v7053_v26  ;;  %v9580_v4 = vpack.c.bf16 %v7084_v47, %v7052_v21  ;;  %v13527_v1 = vld [vmem:[%s10303_s24 + $0x58] sm:$0xff] }
 0x660   : > { %5907 = vrot.lane.b32.xlu1 %v13330_v32, %s10253_s30  ;;  %5905 = vrot.lane.b32.xlu0 %v13323_v15, %s10253_s30 }
 0x661   : > { %9527 = vmatprep.subr.bf16.mxu0 %v9526_v11  ;;  %9575 = vmatprep.subr.bf16.mxu1 %v9574_v20  ;;  %v13476_v10 = vpop.permute.xlu1 %5055  ;;  %v5054_v0 = vpop.permute.xlu0 %5053 }
 0x662   : > { %v5107_v9 = vsel %vm1506_vm2, %v5052_v49, %v5054_v0  ;;  %v5108_v12 = vsel %vm1506_vm2, %v5054_v0, %v13476_v10  ;;  %v7115_v53 = vld [vmem:[#allocation4 + $0x1448] sm:$0xff]  ;;  %v7114_v62 = vld [vmem:[#allocation4 + $0x1440] sm:$0xff]  ;;  %v13534_v0 = vcombine.high %v13385_v58, %v13385_v58 }
 0x663   : > { %9529 = vmatpush1.bf16.msra.mxu0 %v9528_v60  ;;  %9577 = vmatpush1.bf16.msra.mxu1 %v9576_v18  ;;  %5171 = vst [vmem:[#allocation4 + $0x1450] sm:$0xf] %v5107_v9  ;;  %5172 = vst [vmem:[#allocation4 + $0x1458] sm:$0xf] %v5108_v12 }
 0x664   : > { %6119 = vrot.lane.b32.xlu1 %v13330_v32, %s10254_s6  ;;  %6117 = vrot.lane.b32.xlu0 %v13323_v15, %s10254_s6 }
 0x665   : > { %9579 = vmatprep.subr.bf16.mxu1 %v9578_v40  ;;  %v13485_v13 = vpop.permute.xlu1 %5267  ;;  %v5266_v2 = vpop.permute.xlu0 %5265 }
 0x666   : > { %v5319_v48 = vsel %vm1719_vm3, %v5264_v5, %v5266_v2  ;;  %v5320_v3 = vsel %vm1719_vm3, %v5266_v2, %v13485_v13  ;;  %v7147_v49 = vld [vmem:[#allocation4 + $0x1548] sm:$0xff]  ;;  %v7146_v30 = vld [vmem:[#allocation4 + $0x1540] sm:$0xff] }
 0x667   : > { %9581 = vmatpush1.bf16.msra.mxu1 %v9580_v4  ;;  %5383 = vst [vmem:[#allocation4 + $0x1550] sm:$0xf] %v5319_v48  ;;  %5384 = vst [vmem:[#allocation4 + $0x1558] sm:$0xf] %v5320_v3  ;;  %v9530_v59 = vpack.c.bf16 %v7147_v49, %v7115_v53  ;;  %v9532_v57 = vpack.c.bf16 %v7146_v30, %v7114_v62 }
 0x668   : > { %5911 = vrot.lane.b32.xlu1 %v13385_v58, %s10253_s30  ;;  %5909 = vrot.lane.b32.xlu0 %v13378_v44, %s10253_s30 }
 0x669   : > { %v5476_v39 = vpop.permute.xlu1 %5475  ;;  %v5474_v42 = vpop.permute.xlu0 %5473  ;;  %9531 = vmatprep.subr.bf16.mxu0 %v9530_v59 }
 0x66a   : > { %v5529_v22 = vsel %vm1932_vm4, %v13307_v8, %v5474_v42  ;;  %v5530_v56 = vsel %vm1932_vm4, %v5474_v42, %v5476_v39  ;;  %9533 = vmatpush1.bf16.msra.mxu0 %v9532_v57  ;;  %v7117_v27 = vld [vmem:[#allocation4 + $0x1458] sm:$0xff]  ;;  %v7116_v36 = vld [vmem:[#allocation4 + $0x1450] sm:$0xff] }
 0x66b   : > { %5593 = vst [vmem:[#allocation4 + $0x1640] sm:$0xf] %v5529_v22  ;;  %5594 = vst [vmem:[#allocation4 + $0x1648] sm:$0xf] %v5530_v56 }
 0x66c   : > { %6123 = vrot.lane.b32.xlu1 %v13385_v58, %s10254_s6  ;;  %6121 = vrot.lane.b32.xlu0 %v13378_v44, %s10254_s6 }
 0x66d   : > { %v5688_v7 = vpop.permute.xlu1 %5687  ;;  %v5686_v51 = vpop.permute.xlu0 %5685 }
 0x66e   : > { %v5741_v52 = vsel %vm2145_vm5, %v13316_v63, %v5686_v51  ;;  %v5742_v16 = vsel %vm2145_vm5, %v5686_v51, %v5688_v7  ;;  %v7149_v8 = vld [vmem:[#allocation4 + $0x1558] sm:$0xff]  ;;  %v7148_v43 = vld [vmem:[#allocation4 + $0x1550] sm:$0xff] }
 0x66f   : > { %5805 = vst [vmem:[#allocation4 + $0x1740] sm:$0xf] %v5741_v52  ;;  %5806 = vst [vmem:[#allocation4 + $0x1748] sm:$0xf] %v5742_v16  ;;  %v9582_v35 = vpack.c.bf16 %v7149_v8, %v7117_v27  ;;  %v9584_v25 = vpack.c.bf16 %v7148_v43, %v7116_v36 }
 0x670   : > { %6331 = vrot.lane.b32.xlu1 %v13330_v32, %s10255_s7  ;;  %6329 = vrot.lane.b32.xlu0 %v13323_v15, %s10255_s7 }
 0x671   : > { %v13508_v14 = vpop.permute.xlu1 %5479  ;;  %v5478_v29 = vpop.permute.xlu0 %5477  ;;  %9583 = vmatprep.subr.bf16.mxu1 %v9582_v35 }
 0x672   : > { %v5531_v63 = vsel %vm1932_vm4, %v5476_v39, %v5478_v29  ;;  %v5532_v5 = vsel %vm1932_vm4, %v5478_v29, %v13508_v14  ;;  %9585 = vmatpush1.bf16.msra.mxu1 %v9584_v25  ;;  %v7179_v6 = vld [vmem:[#allocation4 + $0x1648] sm:$0xff]  ;;  %v7178_v17 = vld [vmem:[#allocation4 + $0x1640] sm:$0xff] }
 0x673   : > { %5595 = vst [vmem:[#allocation4 + $0x1650] sm:$0xf] %v5531_v63  ;;  %5596 = vst [vmem:[#allocation4 + $0x1658] sm:$0xf] %v5532_v5 }
 0x674   : > { %6335 = vrot.lane.b32.xlu1 %v13385_v58, %s10255_s7  ;;  %6333 = vrot.lane.b32.xlu0 %v13378_v44, %s10255_s7 }
 0x675   : > { %v13517_v15 = vpop.permute.xlu1 %5691  ;;  %v5690_v32 = vpop.permute.xlu0 %5689 }
 0x676   : > { %v5743_v20 = vsel %vm2145_vm5, %v5688_v7, %v5690_v32  ;;  %v5744_v50 = vsel %vm2145_vm5, %v5690_v32, %v13517_v15  ;;  %v7211_v24 = vld [vmem:[#allocation4 + $0x1748] sm:$0xff]  ;;  %v7210_v33 = vld [vmem:[#allocation4 + $0x1740] sm:$0xff] }
 0x677   : > { %5807 = vst [vmem:[#allocation4 + $0x1750] sm:$0xf] %v5743_v20  ;;  %5808 = vst [vmem:[#allocation4 + $0x1758] sm:$0xf] %v5744_v50  ;;  %v9534_v37 = vpack.c.bf16 %v7211_v24, %v7179_v6  ;;  %v9536_v11 = vpack.c.bf16 %v7210_v33, %v7178_v17  ;;  %v6479_v20 = vld [vmem:[#allocation4 + $0x68] sm:$0xff]  ;;  %v6478_v24 = vld [vmem:[#allocation4 + $0x60] sm:$0xff] }
 0x678   : > { %4123 = vrot.lane.b32.xlu1 %v13385_v58, %s10253_s30  ;;  %4121 = vrot.lane.b32.xlu0 %v13378_v44, %s10253_s30  ;;  %v6511_v50 = vld [vmem:[#allocation4 + $0x168] sm:$0xff] }
 0x679   : > { %v5900_v26 = vpop.permute.xlu1 %5899  ;;  %v5898_v31 = vpop.permute.xlu0 %5897  ;;  %9535 = vmatprep.subr.bf16.mxu0 %v9534_v37 }
 0x67a   : > { %v5953_v60 = vsel %vm2358_vm6, %v13346_v41, %v5898_v31  ;;  %v5954_v18 = vsel %vm2358_vm6, %v5898_v31, %v5900_v26  ;;  %9537 = vmatpush1.bf16.msra.mxu0 %v9536_v11  ;;  %v7181_v9 = vld [vmem:[#allocation4 + $0x1658] sm:$0xff]  ;;  %v7180_v4 = vld [vmem:[#allocation4 + $0x1650] sm:$0xff]  ;;  %v13590_v31 = vcombine.high %v13527_v1, %v13527_v1 }
 0x67b   : > { %6017 = vst [vmem:[#allocation4 + $0x1840] sm:$0xf] %v5953_v60  ;;  %6018 = vst [vmem:[#allocation4 + $0x1848] sm:$0xf] %v5954_v18  ;;  %v13593_v60 = vld [vmem:[%s10303_s24 + $0x60] sm:$0xff]  ;;  %v6575_v18 = vld [vmem:[#allocation4 + $0x368] sm:$0xff] }
 0x67c   : > { %3915 = vrot.lane.b32.xlu1 %v13527_v1, %s10252_s29  ;;  %3913 = vrot.lane.b32.xlu0 %v12695_v38, %s10252_s29 }
 0x67d   : > { %v6112_v21 = vpop.permute.xlu1 %6111  ;;  %v6110_v47 = vpop.permute.xlu0 %6109 }
 0x67e   : > { %v6165_v41 = vsel %vm2571_vm7, %v13355_v61, %v6110_v47  ;;  %v6166_v12 = vsel %vm2571_vm7, %v6110_v47, %v6112_v21  ;;  %v7213_v40 = vld [vmem:[#allocation4 + $0x1758] sm:$0xff]  ;;  %v7212_v2 = vld [vmem:[#allocation4 + $0x1750] sm:$0xff] }
 0x67f   : > { %6229 = vst [vmem:[#allocation4 + $0x1940] sm:$0xf] %v6165_v41  ;;  %6230 = vst [vmem:[#allocation4 + $0x1948] sm:$0xf] %v6166_v12  ;;  %v9586_v38 = vpack.c.bf16 %v7213_v40, %v7181_v9  ;;  %v9588_v53 = vpack.c.bf16 %v7212_v2, %v7180_v4  ;;  %v6480_v47 = vld [vmem:[#allocation4 + $0x70] sm:$0xff]  ;;  %v6543_v40 = vld [vmem:[#allocation4 + $0x268] sm:$0xff] }
 0x680   : > { %4127 = vrot.lane.b32.xlu1 %v13527_v1, %s10253_s30  ;;  %4125 = vrot.lane.b32.xlu0 %v13534_v0, %s10253_s30  ;;  %v6513_v4 = vld [vmem:[#allocation4 + $0x178] sm:$0xff]  ;;  %v6512_v2 = vld [vmem:[#allocation4 + $0x170] sm:$0xff] }
 0x681   : > { %v13547_v48 = vpop.permute.xlu1 %5903  ;;  %v5902_v3 = vpop.permute.xlu0 %5901  ;;  %9587 = vmatprep.subr.bf16.mxu1 %v9586_v38 }
 0x682   : > { %v5955_v61 = vsel %vm2358_vm6, %v5900_v26, %v5902_v3  ;;  %v5956_v49 = vsel %vm2358_vm6, %v5902_v3, %v13547_v48  ;;  %9589 = vmatpush1.bf16.msra.mxu1 %v9588_v53  ;;  %v7243_v59 = vld [vmem:[#allocation4 + $0x1848] sm:$0xff]  ;;  %v7242_v22 = vld [vmem:[#allocation4 + $0x1840] sm:$0xff] }
 0x683   : > { %6019 = vst [vmem:[#allocation4 + $0x1850] sm:$0xf] %v5955_v61  ;;  %6020 = vst [vmem:[#allocation4 + $0x1858] sm:$0xf] %v5956_v49  ;;  %v6510_v26 = vld [vmem:[#allocation4 + $0x160] sm:$0xff] }
 0x684   : > { %4335 = vrot.lane.b32.xlu1 %v13385_v58, %s10254_s6  ;;  %4333 = vrot.lane.b32.xlu0 %v13378_v44, %s10254_s6  ;;  %v9596_v12 = vpack.c.bf16 %v6510_v26, %v6478_v24  ;;  %v6574_v49 = vld [vmem:[#allocation4 + $0x360] sm:$0xff]  ;;  %v6671_v24 = vld [vmem:[#allocation4 + $0x668] sm:$0xff] }
 0x685   : > { %v13556_v62 = vpop.permute.xlu1 %6115  ;;  %v6114_v30 = vpop.permute.xlu0 %6113  ;;  %v6670_v26 = vld [vmem:[#allocation4 + $0x660] sm:$0xff] }
 0x686   : > { %v6167_v57 = vsel %vm2571_vm7, %v6112_v21, %v6114_v30  ;;  %v6168_v39 = vsel %vm2571_vm7, %v6114_v30, %v13556_v62  ;;  %v7275_v42 = vld [vmem:[#allocation4 + $0x1948] sm:$0xff]  ;;  %v7274_v56 = vld [vmem:[#allocation4 + $0x1940] sm:$0xff]  ;;  %v6481_v21 = vld [vmem:[#allocation4 + $0x78] sm:$0xff]  ;;  %v9598_v30 = vpack.c.bf16 %v6575_v18, %v6543_v40 }
 0x687   : > { %6231 = vst [vmem:[#allocation4 + $0x1950] sm:$0xf] %v6167_v57  ;;  %6232 = vst [vmem:[#allocation4 + $0x1958] sm:$0xf] %v6168_v39  ;;  %v9538_v7 = vpack.c.bf16 %v7275_v42, %v7243_v59  ;;  %v9540_v51 = vpack.c.bf16 %v7274_v56, %v7242_v22  ;;  %v9646_v59 = vpack.c.bf16 %v6513_v4, %v6481_v21  ;;  %v6542_v57 = vld [vmem:[#allocation4 + $0x260] sm:$0xff]  ;;  %v6639_v39 = vld [vmem:[#allocation4 + $0x568] sm:$0xff] }
 0x688   : > { %4547 = vrot.lane.b32.xlu1 %v13385_v58, %s10255_s7  ;;  %4545 = vrot.lane.b32.xlu0 %v13378_v44, %s10255_s7  ;;  %v6577_v42 = vld [vmem:[#allocation4 + $0x378] sm:$0xff]  ;;  %v6767_v18 = vld [vmem:[#allocation4 + $0x968] sm:$0xff] }
 0x689   : > { %v6324_v27 = vpop.permute.xlu1 %6323  ;;  %v6322_v52 = vpop.permute.xlu0 %6321  ;;  %9539 = vmatprep.subr.bf16.mxu0 %v9538_v7  ;;  %v9600_v7 = vpack.c.bf16 %v6574_v49, %v6542_v57  ;;  %v6705_v21 = vld [vmem:[#allocation4 + $0x778] sm:$0xff]  ;;  %v6831_v57 = vld [vmem:[#allocation4 + $0xb68] sm:$0xff] }
 0x68a   : > { %v6377_v16 = vsel %vm2784_vm8, %v13371_v55, %v6322_v52  ;;  %v6378_v8 = vsel %vm2784_vm8, %v6322_v52, %v6324_v27  ;;  %9541 = vmatpush1.bf16.msra.mxu0 %v9540_v51  ;;  %v7245_v36 = vld [vmem:[#allocation4 + $0x1858] sm:$0xff]  ;;  %v7244_v25 = vld [vmem:[#allocation4 + $0x1850] sm:$0xff]  ;;  %v9648_v51 = vpack.c.bf16 %v6512_v2, %v6480_v47 }
 0x68b   : > { %6441 = vst [vmem:[#allocation4 + $0x1a40] sm:$0xf] %v6377_v16  ;;  %6442 = vst [vmem:[#allocation4 + $0x1a48] sm:$0xf] %v6378_v8  ;;  %v6607_v8 = vld [vmem:[#allocation4 + $0x468] sm:$0xff]  ;;  %v6673_v4 = vld [vmem:[#allocation4 + $0x678] sm:$0xff] }
 0x68c   : > { %4339 = vrot.lane.b32.xlu1 %v13527_v1, %s10254_s6  ;;  %4337 = vrot.lane.b32.xlu0 %v13534_v0, %s10254_s6 }
 0x68d   : > { %v13572_v44 = vpop.permute.xlu1 %6327  ;;  %v6326_v58 = vpop.permute.xlu0 %6325 }
 0x68e   : > { %v6379_v43 = vsel %vm2784_vm8, %v6324_v27, %v6326_v58  ;;  %v6380_v55 = vsel %vm2784_vm8, %v6326_v58, %v13572_v44  ;;  %v7277_v35 = vld [vmem:[#allocation4 + $0x1958] sm:$0xff]  ;;  %v7276_v29 = vld [vmem:[#allocation4 + $0x1950] sm:$0xff]  ;;  %v6638_v58 = vld [vmem:[#allocation4 + $0x560] sm:$0xff] }
 0x68f   : > { %6443 = vst [vmem:[#allocation4 + $0x1a50] sm:$0xf] %v6379_v43  ;;  %6444 = vst [vmem:[#allocation4 + $0x1a58] sm:$0xf] %v6380_v55  ;;  %v9590_v63 = vpack.c.bf16 %v7277_v35, %v7245_v36  ;;  %v9592_v5 = vpack.c.bf16 %v7276_v29, %v7244_v25  ;;  %v6545_v27 = vld [vmem:[#allocation4 + $0x278] sm:$0xff]  ;;  %v6576_v36 = vld [vmem:[#allocation4 + $0x370] sm:$0xff]  ;;  %v9602_v43 = vpack.c.bf16 %v6639_v39, %v6607_v8 }
 0x690   : > { %4551 = vrot.lane.b32.xlu1 %v13527_v1, %s10255_s7  ;;  %4549 = vrot.lane.b32.xlu0 %v13534_v0, %s10255_s7  ;;  %v9650_v55 = vpack.c.bf16 %v6577_v42, %v6545_v27  ;;  %v6544_v35 = vld [vmem:[#allocation4 + $0x270] sm:$0xff]  ;;  %v6703_v25 = vld [vmem:[#allocation4 + $0x768] sm:$0xff]  ;;  %v6641_v29 = vld [vmem:[#allocation4 + $0x578] sm:$0xff] }
 0x691   : > { %v4116_v32 = vpop.permute.xlu1 %4115  ;;  %v4114_v6 = vpop.permute.xlu0 %4113  ;;  %9591 = vmatprep.subr.bf16.mxu1 %v9590_v63  ;;  %v6737_v39 = vld [vmem:[#allocation4 + $0x878] sm:$0xff]  ;;  %v6768_v27 = vld [vmem:[#allocation4 + $0x970] sm:$0xff]  ;;  %v6799_v8 = vld [vmem:[#allocation4 + $0xa68] sm:$0xff] }
 0x692   : > { %v4165_v17 = vsel %vm2358_vm6, %v13394_v54, %v4114_v6  ;;  %v4166_v33 = vsel %vm2358_vm6, %v4114_v6, %v4116_v32  ;;  %9593 = vmatpush1.bf16.msra.mxu1 %v9592_v5  ;;  %v7307_v37 = vld [vmem:[#allocation4 + $0x1a48] sm:$0xff]  ;;  %v7306_v11 = vld [vmem:[#allocation4 + $0x1a40] sm:$0xff]  ;;  %v9594_v54 = vpack.c.bf16 %v6511_v50, %v6479_v20  ;;  %v6609_v6 = vld [vmem:[#allocation4 + $0x478] sm:$0xff] }
 0x693   : > { %4229 = vst [vmem:[#allocation4 + $0xf60] sm:$0xf] %v4165_v17  ;;  %4230 = vst [vmem:[#allocation4 + $0xf68] sm:$0xf] %v4166_v33  ;;  %7671 = vmatprep.subr.mxu0 %v7307_v37  ;;  %v6702_v17 = vld [vmem:[#allocation4 + $0x760] sm:$0xff]  ;;  %v6640_v33 = vld [vmem:[#allocation4 + $0x570] sm:$0xff]  ;;  %v9606_v37 = vpack.c.bf16 %v6703_v25, %v6671_v24 }
 0x694   : > { %4855 = vrot.lane.b32.xlu1 %v13527_v1, %s10248_s25  ;;  %4853 = vrot.lane.b32.xlu0 %v13534_v0, %s10248_s25  ;;  %v6769_v42 = vld [vmem:[#allocation4 + $0x978] sm:$0xff]  ;;  %v6894_v24 = vld [vmem:[#allocation4 + $0xd60] sm:$0xff] }
 0x695   : > { %7672 = vmatpush1.msra.mxu0 %v7306_v11  ;;  %v13595_v9 = vpop.permute.xlu1 %4119  ;;  %v4118_v41 = vpop.permute.xlu0 %4117  ;;  %v9654_v11 = vpack.c.bf16 %v6641_v29, %v6609_v6  ;;  %v6833_v25 = vld [vmem:[#allocation4 + $0xb78] sm:$0xff] }
 0x696   : > { %v4167_v38 = vsel %vm2358_vm6, %v4116_v32, %v4118_v41  ;;  %v4168_v53 = vsel %vm2358_vm6, %v4118_v41, %v13595_v9  ;;  %9595 = vmatprep.subr.bf16.mxu0 %v9594_v54  ;;  %7684 = vmatmul.mubr.f32.vlgmr.msra.gmra.mrb[4].mxu0 %v13402_v46  ;;  %v7309_v3 = vld [vmem:[#allocation4 + $0x1a58] sm:$0xff]  ;;  %v7308_v61 = vld [vmem:[#allocation4 + $0x1a50] sm:$0xff]  ;;  %v9652_v32 = vpack.c.bf16 %v6576_v36, %v6544_v35  ;;  %v6798_v35 = vld [vmem:[#allocation4 + $0xa60] sm:$0xff] }
 0x697   : > { %4231 = vst [vmem:[#allocation4 + $0xf70] sm:$0xf] %v4167_v38  ;;  %4232 = vst [vmem:[#allocation4 + $0xf78] sm:$0xf] %v4168_v53  ;;  %9597 = vmatpush1.bf16.msra.mxu0 %v9596_v12  ;;  %7742 = vmatprep.subr.mxu1 %v7309_v3  ;;  %v6608_v54 = vld [vmem:[#allocation4 + $0x470] sm:$0xff]  ;;  %v9608_v12 = vpack.c.bf16 %v6702_v17, %v6670_v26  ;;  %v6734_v53 = vld [vmem:[#allocation4 + $0x860] sm:$0xff] }
 0x698   : > { %4859 = vrot.lane.b32.xlu1 %v13593_v60, %s10248_s25  ;;  %4857 = vrot.lane.b32.xlu0 %v13590_v31, %s10248_s25  ;;  %v9656_v40 = vpack.c.bf16 %v6640_v33, %v6608_v54  ;;  %v6766_v3 = vld [vmem:[#allocation4 + $0x960] sm:$0xff]  ;;  %v6736_v36 = vld [vmem:[#allocation4 + $0x870] sm:$0xff]  ;;  %v6897_v54 = vld [vmem:[#allocation4 + $0xd78] sm:$0xff] }
 0x699   : > { %9599 = vmatprep.subr.bf16.mxu0 %v9598_v30  ;;  %7743 = vmatpush1.msra.mxu1 %v7308_v61  ;;  %v4328_v22 = vpop.permute.xlu1 %4327  ;;  %v4326_v56 = vpop.permute.xlu0 %4325  ;;  %v6704_v61 = vld [vmem:[#allocation4 + $0x770] sm:$0xff]  ;;  %v9658_v30 = vpack.c.bf16 %v6705_v21, %v6673_v4  ;;  %v6862_v26 = vld [vmem:[#allocation4 + $0xc60] sm:$0xff] }
 0x69a   : > { %v4377_v52 = vsel %vm2571_vm7, %v13428_v28, %v4326_v56  ;;  %v4378_v16 = vsel %vm2571_vm7, %v4326_v56, %v4328_v22  ;;  %9647 = vmatprep.subr.bf16.mxu1 %v9646_v59  ;;  %7755 = vmatmul.mubr.f32.vlgmr.msra.gmra.mrb[4].mxu1 %v13402_v46  ;;  %v6606_v28 = vld [vmem:[#allocation4 + $0x460] sm:$0xff]  ;;  %v6672_v59 = vld [vmem:[#allocation4 + $0x670] sm:$0xff]  ;;  %v9620_v21 = vpack.c.bf16 %v6894_v24, %v6862_v26  ;;  %v7057_v26 = vld [vmem:[#allocation4 + $0x1278] sm:$0xff] }
 0x69b   : > { %4441 = vst [vmem:[#allocation4 + $0x1060] sm:$0xf] %v4377_v52  ;;  %4442 = vst [vmem:[#allocation4 + $0x1068] sm:$0xf] %v4378_v16  ;;  %9601 = vmatpush1.bf16.msra.mxu0 %v9600_v7  ;;  %9649 = vmatpush1.bf16.msra.mxu1 %v9648_v51  ;;  %v9604_v5 = vpack.c.bf16 %v6638_v58, %v6606_v28  ;;  %v9612_v7 = vpack.c.bf16 %v6766_v3, %v6734_v53  ;;  %v6830_v58 = vld [vmem:[#allocation4 + $0xb60] sm:$0xff]  ;;  %v6895_v28 = vld [vmem:[#allocation4 + $0xd68] sm:$0xff] }
 0x69c   : > { %5067 = vrot.lane.b32.xlu1 %v13527_v1, %s10249_s26  ;;  %5065 = vrot.lane.b32.xlu0 %v13534_v0, %s10249_s26  ;;  %v9660_v51 = vpack.c.bf16 %v6704_v61, %v6672_v59  ;;  %v6832_v17 = vld [vmem:[#allocation4 + $0xb70] sm:$0xff] }
 0x69d   : > { %9603 = vmatprep.subr.bf16.mxu0 %v9602_v43  ;;  %9651 = vmatprep.subr.bf16.mxu1 %v9650_v55  ;;  %v4540_v46 = vpop.permute.xlu1 %4539  ;;  %v4538_v63 = vpop.permute.xlu0 %4537  ;;  %v9614_v43 = vpack.c.bf16 %v6831_v57, %v6799_v8  ;;  %v9662_v55 = vpack.c.bf16 %v6769_v42, %v6737_v39  ;;  %v6896_v53 = vld [vmem:[#allocation4 + $0xd70] sm:$0xff] }
 0x69e   : > { %v4589_v20 = vsel %vm2784_vm8, %v13437_v45, %v4538_v63  ;;  %v4590_v50 = vsel %vm2784_vm8, %v4538_v63, %v4540_v46  ;;  %9234 = vmatprep.mubr.msk.f32.mxu0 %vm7332_vm9, %v12951_v19  ;;  %9235 = vmatprep.mubr.msk.f32.mxu1 %vm7332_vm9, %v12951_v19  ;;  %v6735_v45 = vld [vmem:[#allocation4 + $0x868] sm:$0xff]  ;;  %v9616_v63 = vpack.c.bf16 %v6830_v58, %v6798_v35  ;;  %v6961_v57 = vld [vmem:[#allocation4 + $0xf78] sm:$0xff]  ;;  %v6960_v58 = vld [vmem:[#allocation4 + $0xf70] sm:$0xff] }
 0x69f   : > { %4653 = vst [vmem:[#allocation4 + $0x1160] sm:$0xf] %v4589_v20  ;;  %4654 = vst [vmem:[#allocation4 + $0x1168] sm:$0xf] %v4590_v50  ;;  %9605 = vmatpush1.bf16.msra.mxu0 %v9604_v5  ;;  %9653 = vmatpush1.bf16.msra.mxu1 %v9652_v32  ;;  %v9610_v49 = vpack.c.bf16 %v6767_v18, %v6735_v45  ;;  %v9664_v5 = vpack.c.bf16 %v6768_v27, %v6736_v36  ;;  %v6801_v32 = vld [vmem:[#allocation4 + $0xa78] sm:$0xff]  ;;  %v6863_v50 = vld [vmem:[#allocation4 + $0xc68] sm:$0xff] }
 0x6a0   : > { %5279 = vrot.lane.b32.xlu1 %v13527_v1, %s10250_s27  ;;  %5277 = vrot.lane.b32.xlu0 %v13534_v0, %s10250_s27  ;;  %v9618_v33 = vpack.c.bf16 %v6895_v28, %v6863_v50  ;;  %v7055_v35 = vld [vmem:[#allocation4 + $0x1268] sm:$0xff] }
 0x6a1   : > { %9607 = vmatprep.subr.bf16.mxu0 %v9606_v37  ;;  %9655 = vmatprep.subr.bf16.mxu1 %v9654_v11  ;;  %v13624_v47 = vpop.permute.xlu1 %4331  ;;  %v4330_v41 = vpop.permute.xlu0 %4329  ;;  %v9666_v37 = vpack.c.bf16 %v6833_v25, %v6801_v32  ;;  %v6800_v11 = vld [vmem:[#allocation4 + $0xa70] sm:$0xff]  ;;  %v7054_v32 = vld [vmem:[#allocation4 + $0x1260] sm:$0xff] }
 0x6a2   : > { %v4379_v2 = vsel %vm2571_vm7, %v4328_v22, %v4330_v41  ;;  %v4380_v38 = vsel %vm2571_vm7, %v4330_v41, %v13624_v47  ;;  %v9668_v41 = vpack.c.bf16 %v6832_v17, %v6800_v11 }
 0x6a3   : > { %4443 = vst [vmem:[#allocation4 + $0x1070] sm:$0xf] %v4379_v2  ;;  %4444 = vst [vmem:[#allocation4 + $0x1078] sm:$0xf] %v4380_v38  ;;  %9609 = vmatpush1.bf16.msra.mxu0 %v9608_v12  ;;  %9657 = vmatpush1.bf16.msra.mxu1 %v9656_v40  ;;  %v6865_v12 = vld [vmem:[#allocation4 + $0xc78] sm:$0xff]  ;;  %v6927_v2 = vld [vmem:[#allocation4 + $0xe68] sm:$0xff] }
 0x6a4   : > { %5071 = vrot.lane.b32.xlu1 %v13593_v60, %s10249_s26  ;;  %5069 = vrot.lane.b32.xlu0 %v13590_v31, %s10249_s26  ;;  %v6958_v38 = vld [vmem:[#allocation4 + $0xf60] sm:$0xff]  ;;  %v9670_v61 = vpack.c.bf16 %v6897_v54, %v6865_v12 }
 0x6a5   : > { %9611 = vmatprep.subr.bf16.mxu0 %v9610_v49  ;;  %9659 = vmatprep.subr.bf16.mxu1 %v9658_v30  ;;  %v13633_v22 = vpop.permute.xlu1 %4543  ;;  %v4542_v56 = vpop.permute.xlu0 %4541  ;;  %v6864_v49 = vld [vmem:[#allocation4 + $0xc70] sm:$0xff]  ;;  %v6926_v30 = vld [vmem:[#allocation4 + $0xe60] sm:$0xff] }
 0x6a6   : > { %v4591_v52 = vsel %vm2784_vm8, %v4540_v46, %v4542_v56  ;;  %v4592_v16 = vsel %vm2784_vm8, %v4542_v56, %v13633_v22  ;;  %v7023_v59 = vld [vmem:[#allocation4 + $0x1168] sm:$0xff]  ;;  %v9624_v56 = vpack.c.bf16 %v6958_v38, %v6926_v30  ;;  %v7022_v8 = vld [vmem:[#allocation4 + $0x1160] sm:$0xff] }
 0x6a7   : > { %4655 = vst [vmem:[#allocation4 + $0x1170] sm:$0xf] %v4591_v52  ;;  %4656 = vst [vmem:[#allocation4 + $0x1178] sm:$0xf] %v4592_v16  ;;  %9613 = vmatpush1.bf16.msra.mxu0 %v9612_v7  ;;  %9661 = vmatpush1.bf16.msra.mxu1 %v9660_v51  ;;  %v9672_v7 = vpack.c.bf16 %v6896_v53, %v6864_v49  ;;  %v6929_v51 = vld [vmem:[#allocation4 + $0xe78] sm:$0xff]  ;;  %v6991_v16 = vld [vmem:[#allocation4 + $0x1068] sm:$0xff] }
 0x6a8   : > { %5283 = vrot.lane.b32.xlu1 %v13593_v60, %s10250_s27  ;;  %5281 = vrot.lane.b32.xlu0 %v13590_v31, %s10250_s27  ;;  %v9626_v36 = vpack.c.bf16 %v7023_v59, %v6991_v16 }
 0x6a9   : > { %9615 = vmatprep.subr.bf16.mxu0 %v9614_v43  ;;  %9663 = vmatprep.subr.bf16.mxu1 %v9662_v55  ;;  %v4848_v29 = vpop.permute.xlu1 %4847  ;;  %v4846_v46 = vpop.permute.xlu0 %4845  ;;  %v9674_v43 = vpack.c.bf16 %v6961_v57, %v6929_v51  ;;  %v6928_v55 = vld [vmem:[#allocation4 + $0xe70] sm:$0xff] }
 0x6aa   : > { %v4897_v6 = vsel %vm1293_vm1, %v13453_v23, %v4846_v46  ;;  %v4898_v20 = vsel %vm1293_vm1, %v4846_v46, %v4848_v29  ;;  %v6959_v23 = vld [vmem:[#allocation4 + $0xf68] sm:$0xff]  ;;  %v6993_v50 = vld [vmem:[#allocation4 + $0x1078] sm:$0xff]  ;;  %v6992_v11 = vld [vmem:[#allocation4 + $0x1070] sm:$0xff] }
 0x6ab   : > { %4961 = vst [vmem:[#allocation4 + $0x1360] sm:$0xf] %v4897_v6  ;;  %4962 = vst [vmem:[#allocation4 + $0x1368] sm:$0xf] %v4898_v20  ;;  %9617 = vmatpush1.bf16.msra.mxu0 %v9616_v63  ;;  %9665 = vmatpush1.bf16.msra.mxu1 %v9664_v5  ;;  %v9622_v3 = vpack.c.bf16 %v6959_v23, %v6927_v2  ;;  %v9676_v5 = vpack.c.bf16 %v6960_v58, %v6928_v55 }
 0x6ac   : > { %5491 = vrot.lane.b32.xlu1 %v13527_v1, %s10251_s28  ;;  %5489 = vrot.lane.b32.xlu0 %v13534_v0, %s10251_s28 }
 0x6ad   : > { %9619 = vmatprep.subr.bf16.mxu0 %v9618_v33  ;;  %9667 = vmatprep.subr.bf16.mxu1 %v9666_v37  ;;  %v13649_v45 = vpop.permute.xlu1 %4851 }
 0x6ae   : > { %v4850_v18 = vpop.permute.xlu0 %4849  ;;  %v7025_v25 = vld [vmem:[#allocation4 + $0x1178] sm:$0xff]  ;;  %v7024_v17 = vld [vmem:[#allocation4 + $0x1170] sm:$0xff] }
 0x6af   : > { %v4899_v40 = vsel %vm1293_vm1, %v4848_v29, %v4850_v18  ;;  %v4900_v4 = vsel %vm1293_vm1, %v4850_v18, %v13649_v45  ;;  %9621 = vmatpush1.bf16.msra.mxu0 %v9620_v21  ;;  %9669 = vmatpush1.bf16.msra.mxu1 %v9668_v41  ;;  %v9678_v37 = vpack.c.bf16 %v7025_v25, %v6993_v50 }
 0x6b0   : > { %4963 = vst [vmem:[#allocation4 + $0x1370] sm:$0xf] %v4899_v40  ;;  %4964 = vst [vmem:[#allocation4 + $0x1378] sm:$0xf] %v4900_v4  ;;  %5703 = vrot.lane.b32.xlu1 %v13527_v1, %s10252_s29  ;;  %5701 = vrot.lane.b32.xlu0 %v13534_v0, %s10252_s29  ;;  %v9680_v21 = vpack.c.bf16 %v7024_v17, %v6992_v11  ;;  %v7056_v40 = vld [vmem:[#allocation4 + $0x1270] sm:$0xff] }
 0x6b1   : > { %9623 = vmatprep.subr.bf16.mxu0 %v9622_v3  ;;  %9671 = vmatprep.subr.bf16.mxu1 %v9670_v61  ;;  %v5060_v39 = vpop.permute.xlu1 %5059 }
 0x6b2   : > { %v5058_v42 = vpop.permute.xlu0 %5057  ;;  %v7087_v28 = vld [vmem:[#allocation4 + $0x1368] sm:$0xff]  ;;  %v7086_v24 = vld [vmem:[#allocation4 + $0x1360] sm:$0xff] }
 0x6b3   : > { %v5109_v27 = vsel %vm1506_vm2, %v13476_v10, %v5058_v42  ;;  %v5110_v52 = vsel %vm1506_vm2, %v5058_v42, %v5060_v39  ;;  %9625 = vmatpush1.bf16.msra.mxu0 %v9624_v56  ;;  %9673 = vmatpush1.bf16.msra.mxu1 %v9672_v7  ;;  %v6990_v10 = vld [vmem:[#allocation4 + $0x1060] sm:$0xff]  ;;  %v9630_v33 = vpack.c.bf16 %v7087_v28, %v7055_v35 }
 0x6b4   : > { %5173 = vst [vmem:[#allocation4 + $0x1460] sm:$0xf] %v5109_v27  ;;  %5174 = vst [vmem:[#allocation4 + $0x1468] sm:$0xf] %v5110_v52  ;;  %5495 = vrot.lane.b32.xlu1 %v13593_v60, %s10251_s28  ;;  %5493 = vrot.lane.b32.xlu0 %v13590_v31, %s10251_s28  ;;  %v9628_v63 = vpack.c.bf16 %v7022_v8, %v6990_v10  ;;  %v9632_v18 = vpack.c.bf16 %v7086_v24, %v7054_v32 }
 0x6b5   : > { %9627 = vmatprep.subr.bf16.mxu0 %v9626_v36  ;;  %9675 = vmatprep.subr.bf16.mxu1 %v9674_v43 }
 0x6b6   : > { %v5272_v29 = vpop.permute.xlu1 %5271  ;;  %v5270_v46 = vpop.permute.xlu0 %5269 }
 0x6b7   : > { %v5321_v6 = vsel %vm1719_vm3, %v13485_v13, %v5270_v46  ;;  %v5322_v20 = vsel %vm1719_vm3, %v5270_v46, %v5272_v29  ;;  %9629 = vmatpush1.bf16.msra.mxu0 %v9628_v63  ;;  %9677 = vmatpush1.bf16.msra.mxu1 %v9676_v5  ;;  %v7089_v13 = vld [vmem:[#allocation4 + $0x1378] sm:$0xff]  ;;  %v7088_v4 = vld [vmem:[#allocation4 + $0x1370] sm:$0xff] }
 0x6b8   : > { %5385 = vst [vmem:[#allocation4 + $0x1560] sm:$0xf] %v5321_v6  ;;  %5386 = vst [vmem:[#allocation4 + $0x1568] sm:$0xf] %v5322_v20  ;;  %5707 = vrot.lane.b32.xlu1 %v13593_v60, %s10252_s29  ;;  %5705 = vrot.lane.b32.xlu0 %v13590_v31, %s10252_s29  ;;  %v9682_v2 = vpack.c.bf16 %v7089_v13, %v7057_v26  ;;  %v9684_v3 = vpack.c.bf16 %v7088_v4, %v7056_v40 }
 0x6b9   : > { %9631 = vmatprep.subr.bf16.mxu0 %v9630_v33  ;;  %9679 = vmatprep.subr.bf16.mxu1 %v9678_v37 }
 0x6ba   : > { %v13672_v23 = vpop.permute.xlu1 %5063  ;;  %v5062_v54 = vpop.permute.xlu0 %5061 }
 0x6bb   : > { %v5111_v41 = vsel %vm1506_vm2, %v5060_v39, %v5062_v54  ;;  %v5112_v12 = vsel %vm1506_vm2, %v5062_v54, %v13672_v23  ;;  %9633 = vmatpush1.bf16.msra.mxu0 %v9632_v18  ;;  %9681 = vmatpush1.bf16.msra.mxu1 %v9680_v21  ;;  %v7119_v61 = vld [vmem:[#allocation4 + $0x1468] sm:$0xff]  ;;  %v7118_v57 = vld [vmem:[#allocation4 + $0x1460] sm:$0xff] }
 0x6bc   : > { %5175 = vst [vmem:[#allocation4 + $0x1470] sm:$0xf] %v5111_v41  ;;  %5176 = vst [vmem:[#allocation4 + $0x1478] sm:$0xf] %v5112_v12  ;;  %5915 = vrot.lane.b32.xlu1 %v13527_v1, %s10253_s30  ;;  %5913 = vrot.lane.b32.xlu0 %v13534_v0, %s10253_s30 }
 0x6bd   : > { %9683 = vmatprep.subr.bf16.mxu1 %v9682_v2 }
 0x6be   : > { %v13681_v38 = vpop.permute.xlu1 %5275  ;;  %v5274_v53 = vpop.permute.xlu0 %5273 }
 0x6bf   : > { %v5323_v49 = vsel %vm1719_vm3, %v5272_v29, %v5274_v53  ;;  %v5324_v30 = vsel %vm1719_vm3, %v5274_v53, %v13681_v38  ;;  %v7151_v59 = vld [vmem:[#allocation4 + $0x1568] sm:$0xff]  ;;  %v7150_v39 = vld [vmem:[#allocation4 + $0x1560] sm:$0xff]  ;;  %9685 = vmatpush1.bf16.msra.mxu1 %v9684_v3  ;;  %v13734_v53 = vcombine.high %v13593_v60, %v13593_v60 }
 0x6c0   : > { %5387 = vst [vmem:[#allocation4 + $0x1570] sm:$0xf] %v5323_v49  ;;  %5388 = vst [vmem:[#allocation4 + $0x1578] sm:$0xf] %v5324_v30  ;;  %v9634_v42 = vpack.c.bf16 %v7151_v59, %v7119_v61  ;;  %v9636_v56 = vpack.c.bf16 %v7150_v39, %v7118_v57  ;;  %6127 = vrot.lane.b32.xlu1 %v13527_v1, %s10254_s6  ;;  %6125 = vrot.lane.b32.xlu0 %v13534_v0, %s10254_s6  ;;  %v13743_v61 = vld [vmem:[%s10303_s24 + $0x68] sm:$0xff] }
 0x6c2   : > { %v5484_v7 = vpop.permute.xlu1 %5483  ;;  %v5482_v51 = vpop.permute.xlu0 %5481  ;;  %9635 = vmatprep.subr.bf16.mxu0 %v9634_v42 }
 0x6c3   : > { %v5533_v27 = vsel %vm1932_vm4, %v13508_v14, %v5482_v51  ;;  %v5534_v52 = vsel %vm1932_vm4, %v5482_v51, %v5484_v7  ;;  %9637 = vmatpush1.bf16.msra.mxu0 %v9636_v56  ;;  %v7121_v58 = vld [vmem:[#allocation4 + $0x1478] sm:$0xff]  ;;  %v7120_v55 = vld [vmem:[#allocation4 + $0x1470] sm:$0xff] }
 0x6c4   : > { %5597 = vst [vmem:[#allocation4 + $0x1660] sm:$0xf] %v5533_v27  ;;  %5598 = vst [vmem:[#allocation4 + $0x1668] sm:$0xf] %v5534_v52  ;;  %5919 = vrot.lane.b32.xlu1 %v13593_v60, %s10253_s30  ;;  %5917 = vrot.lane.b32.xlu0 %v13590_v31, %s10253_s30 }
 0x6c6   : > { %v5696_v16 = vpop.permute.xlu1 %5695  ;;  %v5694_v8 = vpop.permute.xlu0 %5693 }
 0x6c7   : > { %v5745_v36 = vsel %vm2145_vm5, %v13517_v15, %v5694_v8  ;;  %v5746_v43 = vsel %vm2145_vm5, %v5694_v8, %v5696_v16  ;;  %v7153_v14 = vld [vmem:[#allocation4 + $0x1578] sm:$0xff]  ;;  %v7152_v35 = vld [vmem:[#allocation4 + $0x1570] sm:$0xff] }
 0x6c8   : > { %5809 = vst [vmem:[#allocation4 + $0x1760] sm:$0xf] %v5745_v36  ;;  %5810 = vst [vmem:[#allocation4 + $0x1768] sm:$0xf] %v5746_v43  ;;  %v9686_v10 = vpack.c.bf16 %v7153_v14, %v7121_v58  ;;  %v9688_v28 = vpack.c.bf16 %v7152_v35, %v7120_v55  ;;  %6131 = vrot.lane.b32.xlu1 %v13593_v60, %s10254_s6  ;;  %6129 = vrot.lane.b32.xlu0 %v13590_v31, %s10254_s6 }
 0x6ca   : > { %v13704_v25 = vpop.permute.xlu1 %5487  ;;  %v5486_v29 = vpop.permute.xlu0 %5485  ;;  %9687 = vmatprep.subr.bf16.mxu1 %v9686_v10 }
 0x6cb   : > { %v5535_v15 = vsel %vm1932_vm4, %v5484_v7, %v5486_v29  ;;  %v5536_v46 = vsel %vm1932_vm4, %v5486_v29, %v13704_v25  ;;  %9689 = vmatpush1.bf16.msra.mxu1 %v9688_v28  ;;  %v7183_v32 = vld [vmem:[#allocation4 + $0x1668] sm:$0xff]  ;;  %v7182_v24 = vld [vmem:[#allocation4 + $0x1660] sm:$0xff] }
 0x6cc   : > { %5599 = vst [vmem:[#allocation4 + $0x1670] sm:$0xf] %v5535_v15  ;;  %5600 = vst [vmem:[#allocation4 + $0x1678] sm:$0xf] %v5536_v46  ;;  %6339 = vrot.lane.b32.xlu1 %v13527_v1, %s10255_s7  ;;  %6337 = vrot.lane.b32.xlu0 %v13534_v0, %s10255_s7 }
 0x6ce   : > { %v13713_v63 = vpop.permute.xlu1 %5699  ;;  %v5698_v5 = vpop.permute.xlu0 %5697 }
 0x6cf   : > { %v5747_v6 = vsel %vm2145_vm5, %v5696_v16, %v5698_v5  ;;  %v5748_v20 = vsel %vm2145_vm5, %v5698_v5, %v13713_v63  ;;  %v7215_v50 = vld [vmem:[#allocation4 + $0x1768] sm:$0xff]  ;;  %v7214_v17 = vld [vmem:[#allocation4 + $0x1760] sm:$0xff] }
 0x6d0   : > { %5811 = vst [vmem:[#allocation4 + $0x1770] sm:$0xf] %v5747_v6  ;;  %5812 = vst [vmem:[#allocation4 + $0x1778] sm:$0xf] %v5748_v20  ;;  %v9638_v33 = vpack.c.bf16 %v7215_v50, %v7183_v32  ;;  %v9640_v37 = vpack.c.bf16 %v7214_v17, %v7182_v24  ;;  %6343 = vrot.lane.b32.xlu1 %v13593_v60, %s10255_s7  ;;  %6341 = vrot.lane.b32.xlu0 %v13590_v31, %s10255_s7  ;;  %v6483_v20 = vld [vmem:[#allocation4 + $0x88] sm:$0xff]  ;;  %v6482_v24 = vld [vmem:[#allocation4 + $0x80] sm:$0xff] }
 0x6d1   : > { %v6515_v50 = vld [vmem:[#allocation4 + $0x188] sm:$0xff] }
 0x6d2   : > { %v5908_v1 = vpop.permute.xlu1 %5907  ;;  %v5906_v0 = vpop.permute.xlu0 %5905  ;;  %9639 = vmatprep.subr.bf16.mxu0 %v9638_v33 }
 0x6d3   : > { %v5957_v11 = vsel %vm2358_vm6, %v13547_v48, %v5906_v0  ;;  %v5958_v26 = vsel %vm2358_vm6, %v5906_v0, %v5908_v1  ;;  %9641 = vmatpush1.bf16.msra.mxu0 %v9640_v37  ;;  %v7185_v18 = vld [vmem:[#allocation4 + $0x1678] sm:$0xff]  ;;  %v7184_v12 = vld [vmem:[#allocation4 + $0x1670] sm:$0xff]  ;;  %v6514_v0 = vld [vmem:[#allocation4 + $0x180] sm:$0xff] }
 0x6d4   : > { %6021 = vst [vmem:[#allocation4 + $0x1860] sm:$0xf] %v5957_v11  ;;  %6022 = vst [vmem:[#allocation4 + $0x1868] sm:$0xf] %v5958_v26  ;;  %3919 = vrot.lane.b32.xlu1 %v13593_v60, %s10252_s29  ;;  %3917 = vrot.lane.b32.xlu0 %v13590_v31, %s10252_s29  ;;  %v6485_v11 = vld [vmem:[#allocation4 + $0x98] sm:$0xff]  ;;  %v6484_v26 = vld [vmem:[#allocation4 + $0x90] sm:$0xff] }
 0x6d6   : > { %v6120_v13 = vpop.permute.xlu1 %6119  ;;  %v6118_v54 = vpop.permute.xlu0 %6117 }
 0x6d7   : > { %v6169_v21 = vsel %vm2571_vm7, %v13556_v62, %v6118_v54  ;;  %v6170_v48 = vsel %vm2571_vm7, %v6118_v54, %v6120_v13  ;;  %v7217_v41 = vld [vmem:[#allocation4 + $0x1778] sm:$0xff]  ;;  %v7216_v40 = vld [vmem:[#allocation4 + $0x1770] sm:$0xff]  ;;  %v9700_v54 = vpack.c.bf16 %v6514_v0, %v6482_v24 }
 0x6d8   : > { %6233 = vst [vmem:[#allocation4 + $0x1960] sm:$0xf] %v6169_v21  ;;  %6234 = vst [vmem:[#allocation4 + $0x1968] sm:$0xf] %v6170_v48  ;;  %v9690_v4 = vpack.c.bf16 %v7217_v41, %v7185_v18  ;;  %v9692_v2 = vpack.c.bf16 %v7216_v40, %v7184_v12  ;;  %4131 = vrot.lane.b32.xlu1 %v13593_v60, %s10253_s30  ;;  %4129 = vrot.lane.b32.xlu0 %v13590_v31, %s10253_s30  ;;  %v6547_v18 = vld [vmem:[#allocation4 + $0x288] sm:$0xff]  ;;  %v6517_v21 = vld [vmem:[#allocation4 + $0x198] sm:$0xff] }
 0x6d9   : > { %v6516_v48 = vld [vmem:[#allocation4 + $0x190] sm:$0xff]  ;;  %v13793_v40 = vld [vmem:[%s15156_s1] sm:$0xff] }
 0x6da   : > { %v13740_v62 = vpop.permute.xlu1 %5911  ;;  %v5910_v3 = vpop.permute.xlu0 %5909  ;;  %9691 = vmatprep.subr.bf16.mxu1 %v9690_v4 }
 0x6db   : > { %v5959_v49 = vsel %vm2358_vm6, %v5908_v1, %v5910_v3  ;;  %v5960_v30 = vsel %vm2358_vm6, %v5910_v3, %v13740_v62  ;;  %9693 = vmatpush1.bf16.msra.mxu1 %v9692_v2  ;;  %v7247_v39 = vld [vmem:[#allocation4 + $0x1868] sm:$0xff]  ;;  %v7246_v51 = vld [vmem:[#allocation4 + $0x1860] sm:$0xff] }
 0x6dc   : > { %6023 = vst [vmem:[#allocation4 + $0x1870] sm:$0xf] %v5959_v49  ;;  %6024 = vst [vmem:[#allocation4 + $0x1878] sm:$0xf] %v5960_v30  ;;  %3923 = vrot.lane.b32.xlu1 %v13743_v61, %s10252_s29  ;;  %3921 = vrot.lane.b32.xlu0 %v13734_v53, %s10252_s29  ;;  %v6578_v3 = vld [vmem:[#allocation4 + $0x380] sm:$0xff] }
 0x6dd   : > { %v6546_v30 = vld [vmem:[#allocation4 + $0x280] sm:$0xff] }
 0x6de   : > { %v13752_v59 = vpop.permute.xlu1 %6123  ;;  %v6122_v57 = vpop.permute.xlu0 %6121 }
 0x6df   : > { %v6171_v42 = vsel %vm2571_vm7, %v6120_v13, %v6122_v57  ;;  %v6172_v56 = vsel %vm2571_vm7, %v6122_v57, %v13752_v59  ;;  %v7279_v7 = vld [vmem:[#allocation4 + $0x1968] sm:$0xff]  ;;  %v7278_v27 = vld [vmem:[#allocation4 + $0x1960] sm:$0xff] }
 0x6e0   : > { %6235 = vst [vmem:[#allocation4 + $0x1970] sm:$0xf] %v6171_v42  ;;  %6236 = vst [vmem:[#allocation4 + $0x1978] sm:$0xf] %v6172_v56  ;;  %v9642_v52 = vpack.c.bf16 %v7279_v7, %v7247_v39  ;;  %v9644_v16 = vpack.c.bf16 %v7278_v27, %v7246_v51  ;;  %4135 = vrot.lane.b32.xlu1 %v13743_v61, %s10253_s30  ;;  %4133 = vrot.lane.b32.xlu0 %v13734_v53, %s10253_s30  ;;  %v6643_v57 = vld [vmem:[#allocation4 + $0x588] sm:$0xff]  ;;  %v6581_v39 = vld [vmem:[#allocation4 + $0x398] sm:$0xff] }
 0x6e1   : > { %v9704_v7 = vpack.c.bf16 %v6578_v3, %v6546_v30  ;;  %v9752_v51 = vpack.c.bf16 %v6516_v48, %v6484_v26  ;;  %v6549_v27 = vld [vmem:[#allocation4 + $0x298] sm:$0xff]  ;;  %v6708_v3 = vld [vmem:[#allocation4 + $0x790] sm:$0xff] }
 0x6e2   : > { %v6332_v8 = vpop.permute.xlu1 %6331  ;;  %v6330_v58 = vpop.permute.xlu0 %6329  ;;  %9643 = vmatprep.subr.bf16.mxu0 %v9642_v52  ;;  %v6709_v26 = vld [vmem:[#allocation4 + $0x798] sm:$0xff]  ;;  %v6676_v30 = vld [vmem:[#allocation4 + $0x690] sm:$0xff] }
 0x6e3   : > { %v6381_v36 = vsel %vm2784_vm8, %v13572_v44, %v6330_v58  ;;  %v6382_v43 = vsel %vm2784_vm8, %v6330_v58, %v6332_v8  ;;  %9645 = vmatpush1.bf16.msra.mxu0 %v9644_v16  ;;  %v7249_v35 = vld [vmem:[#allocation4 + $0x1878] sm:$0xff]  ;;  %v7248_v29 = vld [vmem:[#allocation4 + $0x1870] sm:$0xff]  ;;  %v6642_v58 = vld [vmem:[#allocation4 + $0x580] sm:$0xff] }
 0x6e4   : > { %6445 = vst [vmem:[#allocation4 + $0x1a60] sm:$0xf] %v6381_v36  ;;  %6446 = vst [vmem:[#allocation4 + $0x1a68] sm:$0xf] %v6382_v43  ;;  %4343 = vrot.lane.b32.xlu1 %v13593_v60, %s10254_s6  ;;  %4341 = vrot.lane.b32.xlu0 %v13590_v31, %s10254_s6  ;;  %v6580_v36 = vld [vmem:[#allocation4 + $0x390] sm:$0xff]  ;;  %v6677_v48 = vld [vmem:[#allocation4 + $0x698] sm:$0xff] }
 0x6e6   : > { %v13768_v14 = vpop.permute.xlu1 %6335  ;;  %v6334_v55 = vpop.permute.xlu0 %6333 }
 0x6e7   : > { %v6383_v10 = vsel %vm2784_vm8, %v6332_v8, %v6334_v55  ;;  %v6384_v44 = vsel %vm2784_vm8, %v6334_v55, %v13768_v14  ;;  %v7281_v28 = vld [vmem:[#allocation4 + $0x1978] sm:$0xff]  ;;  %v7280_v15 = vld [vmem:[#allocation4 + $0x1970] sm:$0xff]  ;;  %v6611_v8 = vld [vmem:[#allocation4 + $0x488] sm:$0xff]  ;;  %v9754_v55 = vpack.c.bf16 %v6581_v39, %v6549_v27  ;;  %v9764_v27 = vpack.c.bf16 %v6708_v3, %v6676_v30 }
 0x6e8   : > { %6447 = vst [vmem:[#allocation4 + $0x1a70] sm:$0xf] %v6383_v10  ;;  %6448 = vst [vmem:[#allocation4 + $0x1a78] sm:$0xf] %v6384_v44  ;;  %v9694_v46 = vpack.c.bf16 %v7281_v28, %v7249_v35  ;;  %v9696_v5 = vpack.c.bf16 %v7280_v15, %v7248_v29  ;;  %4555 = vrot.lane.b32.xlu1 %v13593_v60, %s10255_s7  ;;  %4553 = vrot.lane.b32.xlu0 %v13590_v31, %s10255_s7  ;;  %v6579_v60 = vld [vmem:[#allocation4 + $0x388] sm:$0xff]  ;;  %v6548_v35 = vld [vmem:[#allocation4 + $0x290] sm:$0xff] }
 0x6e9   : > { %v9698_v31 = vpack.c.bf16 %v6515_v50, %v6483_v20  ;;  %v9702_v49 = vpack.c.bf16 %v6579_v60, %v6547_v18  ;;  %v9706_v43 = vpack.c.bf16 %v6643_v57, %v6611_v8  ;;  %v13808_v10 = vcombine.high %v13743_v61, %v13743_v61  ;;  %v6610_v44 = vld [vmem:[#allocation4 + $0x480] sm:$0xff]  ;;  %v6707_v28 = vld [vmem:[#allocation4 + $0x788] sm:$0xff]  ;;  %v6645_v29 = vld [vmem:[#allocation4 + $0x598] sm:$0xff] }
 0x6ea   : > { %v4124_v32 = vpop.permute.xlu1 %4123  ;;  %v4122_v6 = vpop.permute.xlu0 %4121  ;;  %9695 = vmatprep.subr.bf16.mxu1 %v9694_v46  ;;  %v6613_v20 = vld [vmem:[#allocation4 + $0x498] sm:$0xff]  ;;  %v6612_v60 = vld [vmem:[#allocation4 + $0x490] sm:$0xff]  ;;  %v6835_v57 = vld [vmem:[#allocation4 + $0xb88] sm:$0xff] }
 0x6eb   : > { %v4169_v17 = vsel %vm2358_vm6, %v13595_v9, %v4122_v6  ;;  %v4170_v33 = vsel %vm2358_vm6, %v4122_v6, %v4124_v32  ;;  %9697 = vmatpush1.bf16.msra.mxu1 %v9696_v5  ;;  %v7311_v37 = vld [vmem:[#allocation4 + $0x1a68] sm:$0xff]  ;;  %v7310_v1 = vld [vmem:[#allocation4 + $0x1a60] sm:$0xff]  ;;  %v9708_v5 = vpack.c.bf16 %v6642_v58, %v6610_v44  ;;  %v9758_v0 = vpack.c.bf16 %v6645_v29, %v6613_v20  ;;  %v6773_v39 = vld [vmem:[#allocation4 + $0x998] sm:$0xff] }
 0x6ec   : > { %4233 = vst [vmem:[#allocation4 + $0xf80] sm:$0xf] %v4169_v17  ;;  %4234 = vst [vmem:[#allocation4 + $0xf88] sm:$0xf] %v4170_v33  ;;  %7813 = vmatprep.subr.mxu0 %v7311_v37  ;;  %4347 = vrot.lane.b32.xlu1 %v13743_v61, %s10254_s6  ;;  %v13815_v6 = vld [vmem:[%s10303_s24 + $0x70] sm:$0xff]  ;;  %v6706_v33 = vld [vmem:[#allocation4 + $0x780] sm:$0xff] }
 0x6ed   : > { %4345 = vrot.lane.b32.xlu0 %v13734_v53, %s10254_s6  ;;  %7814 = vmatpush1.msra.mxu0 %v7310_v1  ;;  %v6675_v17 = vld [vmem:[#allocation4 + $0x688] sm:$0xff]  ;;  %v6644_v37 = vld [vmem:[#allocation4 + $0x590] sm:$0xff]  ;;  %v6802_v44 = vld [vmem:[#allocation4 + $0xa80] sm:$0xff] }
 0x6ee   : > { %v13784_v9 = vpop.permute.xlu1 %3915  ;;  %v3914_v13 = vpop.permute.xlu0 %3913  ;;  %9699 = vmatprep.subr.bf16.mxu0 %v9698_v31  ;;  %7826 = vmatmul.mubr.f32.vlgmr.msra.gmra.mrb[6].mxu0 %v13793_v40  ;;  %v9710_v1 = vpack.c.bf16 %v6707_v28, %v6675_v17  ;;  %v6674_v31 = vld [vmem:[#allocation4 + $0x680] sm:$0xff]  ;;  %v6803_v58 = vld [vmem:[#allocation4 + $0xa88] sm:$0xff]  ;;  %v6837_v29 = vld [vmem:[#allocation4 + $0xb98] sm:$0xff] }
 0x6ef   : > { %v3959_v41 = vsel %vm2145_vm5, %v12979_v34, %v3914_v13  ;;  %v3960_v12 = vsel %vm2145_vm5, %v3914_v13, %v13784_v9  ;;  %v7313_v4 = vld [vmem:[#allocation4 + $0x1a78] sm:$0xff]  ;;  %v7312_v2 = vld [vmem:[#allocation4 + $0x1a70] sm:$0xff]  ;;  %9701 = vmatpush1.bf16.msra.mxu0 %v9700_v54  ;;  %v9750_v34 = vpack.c.bf16 %v6517_v21, %v6485_v11  ;;  %9236 = vmatprep.mubr.msk.f32.mxu0 %vm7332_vm9, %v12951_v19  ;;  %v6771_v11 = vld [vmem:[#allocation4 + $0x988] sm:$0xff] }
 0x6f0   : > { %4023 = vst [vmem:[#allocation4 + $0xe90] sm:$0xf] %v3959_v41  ;;  %4024 = vst [vmem:[#allocation4 + $0xe98] sm:$0xf] %v3960_v12  ;;  %7884 = vmatprep.subr.mxu1 %v7313_v4  ;;  %4559 = vrot.lane.b32.xlu1 %v13743_v61, %s10255_s7  ;;  %v9712_v18 = vpack.c.bf16 %v6706_v33, %v6674_v31  ;;  %v9760_v21 = vpack.c.bf16 %v6644_v37, %v6612_v60  ;;  %v6738_v4 = vld [vmem:[#allocation4 + $0x880] sm:$0xff]  ;;  %v6899_v28 = vld [vmem:[#allocation4 + $0xd88] sm:$0xff] }
 0x6f1   : > { %4557 = vrot.lane.b32.xlu0 %v13734_v53, %s10255_s7  ;;  %9703 = vmatprep.subr.bf16.mxu0 %v9702_v49  ;;  %v6805_v20 = vld [vmem:[#allocation4 + $0xa98] sm:$0xff]  ;;  %v6867_v17 = vld [vmem:[#allocation4 + $0xc88] sm:$0xff]  ;;  %v6898_v33 = vld [vmem:[#allocation4 + $0xd80] sm:$0xff] }
 0x6f2   : > { %7885 = vmatpush1.msra.mxu1 %v7312_v2  ;;  %v13800_v42 = vpop.permute.xlu1 %4127  ;;  %v4126_v56 = vpop.permute.xlu0 %4125  ;;  %v6770_v2 = vld [vmem:[#allocation4 + $0x980] sm:$0xff]  ;;  %v6836_v37 = vld [vmem:[#allocation4 + $0xb90] sm:$0xff] }
 0x6f3   : > { %v4171_v52 = vsel %vm2358_vm6, %v4124_v32, %v4126_v56  ;;  %v4172_v16 = vsel %vm2358_vm6, %v4126_v56, %v13800_v42  ;;  %9751 = vmatprep.subr.bf16.mxu1 %v9750_v34  ;;  %7897 = vmatmul.mubr.f32.vlgmr.msra.gmra.mrb[6].mxu1 %v13793_v40  ;;  %v9756_v32 = vpack.c.bf16 %v6580_v36, %v6548_v35  ;;  %v6834_v36 = vld [vmem:[#allocation4 + $0xb80] sm:$0xff]  ;;  %v6804_v31 = vld [vmem:[#allocation4 + $0xa90] sm:$0xff] }
 0x6f4   : > { %4235 = vst [vmem:[#allocation4 + $0xf90] sm:$0xf] %v4171_v52  ;;  %4236 = vst [vmem:[#allocation4 + $0xf98] sm:$0xf] %v4172_v16  ;;  %9705 = vmatpush1.bf16.msra.mxu0 %v9704_v7  ;;  %9753 = vmatpush1.bf16.msra.mxu1 %v9752_v51  ;;  %v9762_v34 = vpack.c.bf16 %v6709_v26, %v6677_v48  ;;  %v9716_v51 = vpack.c.bf16 %v6770_v2, %v6738_v4  ;;  %v6772_v52 = vld [vmem:[#allocation4 + $0x990] sm:$0xff]  ;;  %v6866_v60 = vld [vmem:[#allocation4 + $0xc80] sm:$0xff] }
 0x6f5   : > { %4863 = vrot.lane.b32.xlu1 %v13743_v61, %s10248_s25  ;;  %4861 = vrot.lane.b32.xlu0 %v13734_v53, %s10248_s25  ;;  %v6962_v4 = vld [vmem:[#allocation4 + $0xf80] sm:$0xff]  ;;  %v6900_v2 = vld [vmem:[#allocation4 + $0xd90] sm:$0xff] }
 0x6f6   : > { %9707 = vmatprep.subr.bf16.mxu0 %v9706_v43  ;;  %9755 = vmatprep.subr.bf16.mxu1 %v9754_v55  ;;  %v4336_v15 = vpop.permute.xlu1 %4335  ;;  %v4334_v46 = vpop.permute.xlu0 %4333  ;;  %v6740_v43 = vld [vmem:[#allocation4 + $0x890] sm:$0xff]  ;;  %v9718_v55 = vpack.c.bf16 %v6835_v57, %v6803_v58  ;;  %v6930_v30 = vld [vmem:[#allocation4 + $0xe80] sm:$0xff] }
 0x6f7   : > { %v4381_v50 = vsel %vm2571_vm7, %v13624_v47, %v4334_v46  ;;  %v4382_v24 = vsel %vm2571_vm7, %v4334_v46, %v4336_v15  ;;  %9237 = vmatprep.mubr.msk.f32.mxu1 %vm7332_vm9, %v12951_v19  ;;  %v6739_v47 = vld [vmem:[#allocation4 + $0x888] sm:$0xff] }
 0x6f8   : > { %4445 = vst [vmem:[#allocation4 + $0x1080] sm:$0xf] %v4381_v50  ;;  %4446 = vst [vmem:[#allocation4 + $0x1088] sm:$0xf] %v4382_v24  ;;  %9709 = vmatpush1.bf16.msra.mxu0 %v9708_v5  ;;  %9757 = vmatpush1.bf16.msra.mxu1 %v9756_v32  ;;  %v9714_v49 = vpack.c.bf16 %v6771_v11, %v6739_v47  ;;  %v9720_v5 = vpack.c.bf16 %v6834_v36, %v6802_v44  ;;  %v6963_v47 = vld [vmem:[#allocation4 + $0xf88] sm:$0xff]  ;;  %v6901_v11 = vld [vmem:[#allocation4 + $0xd98] sm:$0xff] }
 0x6f9   : > { %4867 = vrot.lane.b32.xlu1 %v13815_v6, %s10248_s25  ;;  %4865 = vrot.lane.b32.xlu0 %v13808_v10, %s10248_s25  ;;  %v9768_v32 = vpack.c.bf16 %v6772_v52, %v6740_v43 }
 0x6fa   : > { %9711 = vmatprep.subr.bf16.mxu0 %v9710_v1  ;;  %9759 = vmatprep.subr.bf16.mxu1 %v9758_v0  ;;  %v4548_v13 = vpop.permute.xlu1 %4547  ;;  %v4546_v54 = vpop.permute.xlu0 %4545  ;;  %v9722_v1 = vpack.c.bf16 %v6899_v28, %v6867_v17  ;;  %v9770_v0 = vpack.c.bf16 %v6837_v29, %v6805_v20  ;;  %v6932_v28 = vld [vmem:[#allocation4 + $0xe90] sm:$0xff]  ;;  %v7059_v29 = vld [vmem:[#allocation4 + $0x1288] sm:$0xff]  ;;  %v7058_v20 = vld [vmem:[#allocation4 + $0x1280] sm:$0xff] }
 0x6fb   : > { %v4593_v41 = vsel %vm2784_vm8, %v13633_v22, %v4546_v54  ;;  %v4594_v12 = vsel %vm2784_vm8, %v4546_v54, %v4548_v13  ;;  %v6741_v22 = vld [vmem:[#allocation4 + $0x898] sm:$0xff]  ;;  %v9724_v54 = vpack.c.bf16 %v6898_v33, %v6866_v60  ;;  %v6964_v58 = vld [vmem:[#allocation4 + $0xf90] sm:$0xff] }
 0x6fc   : > { %4657 = vst [vmem:[#allocation4 + $0x1180] sm:$0xf] %v4593_v41  ;;  %4658 = vst [vmem:[#allocation4 + $0x1188] sm:$0xf] %v4594_v12  ;;  %9713 = vmatpush1.bf16.msra.mxu0 %v9712_v18  ;;  %9761 = vmatpush1.bf16.msra.mxu1 %v9760_v21  ;;  %v9766_v35 = vpack.c.bf16 %v6773_v39, %v6741_v22  ;;  %v9772_v18 = vpack.c.bf16 %v6836_v37, %v6804_v31  ;;  %v6869_v21 = vld [vmem:[#allocation4 + $0xc98] sm:$0xff]  ;;  %v6931_v12 = vld [vmem:[#allocation4 + $0xe88] sm:$0xff] }
 0x6fd   : > { %5075 = vrot.lane.b32.xlu1 %v13743_v61, %s10249_s26  ;;  %5073 = vrot.lane.b32.xlu0 %v13734_v53, %s10249_s26  ;;  %v9726_v3 = vpack.c.bf16 %v6963_v47, %v6931_v12  ;;  %v9728_v39 = vpack.c.bf16 %v6962_v4, %v6930_v30 }
 0x6fe   : > { %9715 = vmatprep.subr.bf16.mxu0 %v9714_v49  ;;  %9763 = vmatprep.subr.bf16.mxu1 %v9762_v34  ;;  %v13835_v56 = vpop.permute.xlu1 %4339  ;;  %v4338_v7 = vpop.permute.xlu0 %4337  ;;  %v9774_v49 = vpack.c.bf16 %v6901_v11, %v6869_v21  ;;  %v6965_v34 = vld [vmem:[#allocation4 + $0xf98] sm:$0xff] }
 0x6ff   : > { %v4383_v16 = vsel %vm2571_vm7, %v4336_v15, %v4338_v7  ;;  %v4384_v8 = vsel %vm2571_vm7, %v4338_v7, %v13835_v56  ;;  %v6995_v52 = vld [vmem:[#allocation4 + $0x1088] sm:$0xff]  ;;  %v6994_v44 = vld [vmem:[#allocation4 + $0x1080] sm:$0xff] }
 0x700   : > { %4447 = vst [vmem:[#allocation4 + $0x1090] sm:$0xf] %v4383_v16  ;;  %4448 = vst [vmem:[#allocation4 + $0x1098] sm:$0xf] %v4384_v8  ;;  %9717 = vmatpush1.bf16.msra.mxu0 %v9716_v51  ;;  %9765 = vmatpush1.bf16.msra.mxu1 %v9764_v27  ;;  %v6933_v51 = vld [vmem:[#allocation4 + $0xe98] sm:$0xff] }
 0x701   : > { %5287 = vrot.lane.b32.xlu1 %v13743_v61, %s10250_s27  ;;  %5285 = vrot.lane.b32.xlu0 %v13734_v53, %s10250_s27  ;;  %v9778_v16 = vpack.c.bf16 %v6965_v34, %v6933_v51 }
 0x702   : > { %9719 = vmatprep.subr.bf16.mxu0 %v9718_v55  ;;  %9767 = vmatprep.subr.bf16.mxu1 %v9766_v35  ;;  %v13844_v15 = vpop.permute.xlu1 %4551  ;;  %v4550_v46 = vpop.permute.xlu0 %4549 }
 0x703   : > { %v4595_v50 = vsel %vm2784_vm8, %v4548_v13, %v4550_v46  ;;  %v4596_v24 = vsel %vm2784_vm8, %v4550_v46, %v13844_v15  ;;  %v7027_v57 = vld [vmem:[#allocation4 + $0x1188] sm:$0xff]  ;;  %v7026_v8 = vld [vmem:[#allocation4 + $0x1180] sm:$0xff] }
 0x704   : > { %4659 = vst [vmem:[#allocation4 + $0x1190] sm:$0xf] %v4595_v50  ;;  %4660 = vst [vmem:[#allocation4 + $0x1198] sm:$0xf] %v4596_v24  ;;  %9721 = vmatpush1.bf16.msra.mxu0 %v9720_v5  ;;  %9769 = vmatpush1.bf16.msra.mxu1 %v9768_v32  ;;  %v9730_v55 = vpack.c.bf16 %v7027_v57, %v6995_v52  ;;  %v9732_v46 = vpack.c.bf16 %v7026_v8, %v6994_v44 }
 0x705   : > { %5079 = vrot.lane.b32.xlu1 %v13815_v6, %s10249_s26  ;;  %5077 = vrot.lane.b32.xlu0 %v13808_v10, %s10249_s26  ;;  %v9780_v5 = vpack.c.bf16 %v6964_v58, %v6932_v28 }
 0x706   : > { %9723 = vmatprep.subr.bf16.mxu0 %v9722_v1  ;;  %9771 = vmatprep.subr.bf16.mxu1 %v9770_v0  ;;  %v4856_v26 = vpop.permute.xlu1 %4855  ;;  %v4854_v13 = vpop.permute.xlu0 %4853 }
 0x707   : > { %v4901_v48 = vsel %vm1293_vm1, %v13649_v45, %v4854_v13  ;;  %v4902_v41 = vsel %vm1293_vm1, %v4854_v13, %v4856_v26  ;;  %v6868_v45 = vld [vmem:[#allocation4 + $0xc90] sm:$0xff]  ;;  %v6997_v32 = vld [vmem:[#allocation4 + $0x1098] sm:$0xff] }
 0x708   : > { %4965 = vst [vmem:[#allocation4 + $0x1380] sm:$0xf] %v4901_v48  ;;  %4966 = vst [vmem:[#allocation4 + $0x1388] sm:$0xf] %v4902_v41  ;;  %9725 = vmatpush1.bf16.msra.mxu0 %v9724_v54  ;;  %9773 = vmatpush1.bf16.msra.mxu1 %v9772_v18  ;;  %v9776_v7 = vpack.c.bf16 %v6900_v2, %v6868_v45  ;;  %v6996_v11 = vld [vmem:[#allocation4 + $0x1090] sm:$0xff]  ;;  %v7061_v13 = vld [vmem:[#allocation4 + $0x1298] sm:$0xff] }
 0x709   : > { %5291 = vrot.lane.b32.xlu1 %v13815_v6, %s10250_s27  ;;  %5289 = vrot.lane.b32.xlu0 %v13808_v10, %s10250_s27 }
 0x70a   : > { %9727 = vmatprep.subr.bf16.mxu0 %v9726_v3  ;;  %9775 = vmatprep.subr.bf16.mxu1 %v9774_v49  ;;  %v13860_v22 = vpop.permute.xlu1 %4859  ;;  %v4858_v27 = vpop.permute.xlu0 %4857 }
 0x70b   : > { %v4903_v36 = vsel %vm1293_vm1, %v4856_v26, %v4858_v27  ;;  %v4904_v43 = vsel %vm1293_vm1, %v4858_v27, %v13860_v22  ;;  %v7029_v35 = vld [vmem:[#allocation4 + $0x1198] sm:$0xff]  ;;  %v7028_v1 = vld [vmem:[#allocation4 + $0x1190] sm:$0xff] }
 0x70c   : > { %9729 = vmatpush1.bf16.msra.mxu0 %v9728_v39  ;;  %9777 = vmatpush1.bf16.msra.mxu1 %v9776_v7  ;;  %4967 = vst [vmem:[#allocation4 + $0x1390] sm:$0xf] %v4903_v36  ;;  %4968 = vst [vmem:[#allocation4 + $0x1398] sm:$0xf] %v4904_v43  ;;  %v9782_v17 = vpack.c.bf16 %v7029_v35, %v6997_v32  ;;  %v9784_v26 = vpack.c.bf16 %v7028_v1, %v6996_v11 }
 0x70d   : > { %5499 = vrot.lane.b32.xlu1 %v13743_v61, %s10251_s28  ;;  %5497 = vrot.lane.b32.xlu0 %v13734_v53, %s10251_s28 }
 0x70e   : > { %9731 = vmatprep.subr.bf16.mxu0 %v9730_v55  ;;  %9779 = vmatprep.subr.bf16.mxu1 %v9778_v16  ;;  %v5068_v50 = vpop.permute.xlu1 %5067  ;;  %v5066_v24 = vpop.permute.xlu0 %5065 }
 0x70f   : > { %v7091_v33 = vld [vmem:[#allocation4 + $0x1388] sm:$0xff]  ;;  %v7090_v37 = vld [vmem:[#allocation4 + $0x1380] sm:$0xff]  ;;  %v5113_v0 = vsel %vm1506_vm2, %v13672_v23, %v5066_v24  ;;  %v5114_v31 = vsel %vm1506_vm2, %v5066_v24, %v5068_v50  ;;  %v7060_v23 = vld [vmem:[#allocation4 + $0x1290] sm:$0xff] }
 0x710   : > { %9733 = vmatpush1.bf16.msra.mxu0 %v9732_v46  ;;  %9781 = vmatpush1.bf16.msra.mxu1 %v9780_v5  ;;  %v9734_v60 = vpack.c.bf16 %v7091_v33, %v7059_v29  ;;  %5177 = vst [vmem:[#allocation4 + $0x1480] sm:$0xf] %v5113_v0  ;;  %5178 = vst [vmem:[#allocation4 + $0x1488] sm:$0xf] %v5114_v31  ;;  %v9736_v47 = vpack.c.bf16 %v7090_v37, %v7058_v20 }
 0x711   : > { %5711 = vrot.lane.b32.xlu1 %v13743_v61, %s10252_s29  ;;  %5709 = vrot.lane.b32.xlu0 %v13734_v53, %s10252_s29 }
 0x712   : > { %9783 = vmatprep.subr.bf16.mxu1 %v9782_v17  ;;  %9735 = vmatprep.subr.bf16.mxu0 %v9734_v60  ;;  %v5280_v54 = vpop.permute.xlu1 %5279  ;;  %v5278_v18 = vpop.permute.xlu0 %5277 }
 0x713   : > { %v5325_v21 = vsel %vm1719_vm3, %v13681_v38, %v5278_v18  ;;  %v5326_v48 = vsel %vm1719_vm3, %v5278_v18, %v5280_v54  ;;  %v7093_v41 = vld [vmem:[#allocation4 + $0x1398] sm:$0xff]  ;;  %v7092_v12 = vld [vmem:[#allocation4 + $0x1390] sm:$0xff] }
 0x714   : > { %9737 = vmatpush1.bf16.msra.mxu0 %v9736_v47  ;;  %9785 = vmatpush1.bf16.msra.mxu1 %v9784_v26  ;;  %5389 = vst [vmem:[#allocation4 + $0x1580] sm:$0xf] %v5325_v21  ;;  %5390 = vst [vmem:[#allocation4 + $0x1588] sm:$0xf] %v5326_v48  ;;  %v9786_v4 = vpack.c.bf16 %v7093_v41, %v7061_v13  ;;  %v9788_v2 = vpack.c.bf16 %v7092_v12, %v7060_v23 }
 0x715   : > { %5503 = vrot.lane.b32.xlu1 %v13815_v6, %s10251_s28  ;;  %5501 = vrot.lane.b32.xlu0 %v13808_v10, %s10251_s28 }
 0x716   : > { %v13883_v3 = vpop.permute.xlu1 %5071  ;;  %v5070_v49 = vpop.permute.xlu0 %5069  ;;  %9787 = vmatprep.subr.bf16.mxu1 %v9786_v4 }
 0x717   : > { %v5115_v38 = vsel %vm1506_vm2, %v5068_v50, %v5070_v49  ;;  %v5116_v34 = vsel %vm1506_vm2, %v5070_v49, %v13883_v3  ;;  %v7123_v57 = vld [vmem:[#allocation4 + $0x1488] sm:$0xff]  ;;  %v7122_v27 = vld [vmem:[#allocation4 + $0x1480] sm:$0xff] }
 0x718   : > { %9789 = vmatpush1.bf16.msra.mxu1 %v9788_v2  ;;  %5179 = vst [vmem:[#allocation4 + $0x1490] sm:$0xf] %v5115_v38  ;;  %5180 = vst [vmem:[#allocation4 + $0x1498] sm:$0xf] %v5116_v34 }
 0x719   : > { %5715 = vrot.lane.b32.xlu1 %v13815_v6, %s10252_s29  ;;  %5713 = vrot.lane.b32.xlu0 %v13808_v10, %s10252_s29 }
 0x71a   : > { %v13892_v30 = vpop.permute.xlu1 %5283  ;;  %v5282_v45 = vpop.permute.xlu0 %5281 }
 0x71b   : > { %v5327_v39 = vsel %vm1719_vm3, %v5280_v54, %v5282_v45  ;;  %v5328_v7 = vsel %vm1719_vm3, %v5282_v45, %v13892_v30  ;;  %v7155_v51 = vld [vmem:[#allocation4 + $0x1588] sm:$0xff]  ;;  %v7154_v52 = vld [vmem:[#allocation4 + $0x1580] sm:$0xff] }
 0x71c   : > { %5391 = vst [vmem:[#allocation4 + $0x1590] sm:$0xf] %v5327_v39  ;;  %5392 = vst [vmem:[#allocation4 + $0x1598] sm:$0xf] %v5328_v7  ;;  %v9738_v16 = vpack.c.bf16 %v7155_v51, %v7123_v57  ;;  %v9740_v8 = vpack.c.bf16 %v7154_v52, %v7122_v27  ;;  %v13954_v7 = vcombine.high %v13815_v6, %v13815_v6  ;;  %v13961_v51 = vld [vmem:[%s10303_s24 + $0x78] sm:$0xff] }
 0x71d   : > { %5923 = vrot.lane.b32.xlu1 %v13743_v61, %s10253_s30  ;;  %5921 = vrot.lane.b32.xlu0 %v13734_v53, %s10253_s30 }
 0x71e   : > { %v5492_v58 = vpop.permute.xlu1 %5491  ;;  %v5490_v36 = vpop.permute.xlu0 %5489  ;;  %9739 = vmatprep.subr.bf16.mxu0 %v9738_v16 }
 0x71f   : > { %v5537_v43 = vsel %vm1932_vm4, %v13704_v25, %v5490_v36  ;;  %v5538_v55 = vsel %vm1932_vm4, %v5490_v36, %v5492_v58  ;;  %9741 = vmatpush1.bf16.msra.mxu0 %v9740_v8  ;;  %v7125_v28 = vld [vmem:[#allocation4 + $0x1498] sm:$0xff]  ;;  %v7124_v5 = vld [vmem:[#allocation4 + $0x1490] sm:$0xff] }
 0x720   : > { %5601 = vst [vmem:[#allocation4 + $0x1680] sm:$0xf] %v5537_v43  ;;  %5602 = vst [vmem:[#allocation4 + $0x1688] sm:$0xf] %v5538_v55 }
 0x721   : > { %6135 = vrot.lane.b32.xlu1 %v13743_v61, %s10254_s6  ;;  %6133 = vrot.lane.b32.xlu0 %v13734_v53, %s10254_s6 }
 0x722   : > { %v5704_v35 = vpop.permute.xlu1 %5703  ;;  %v5702_v44 = vpop.permute.xlu0 %5701 }
 0x723   : > { %v5749_v29 = vsel %vm2145_vm5, %v13713_v63, %v5702_v44  ;;  %v5750_v46 = vsel %vm2145_vm5, %v5702_v44, %v5704_v35  ;;  %v7157_v25 = vld [vmem:[#allocation4 + $0x1598] sm:$0xff]  ;;  %v7156_v32 = vld [vmem:[#allocation4 + $0x1590] sm:$0xff] }
 0x724   : > { %5813 = vst [vmem:[#allocation4 + $0x1780] sm:$0xf] %v5749_v29  ;;  %5814 = vst [vmem:[#allocation4 + $0x1788] sm:$0xf] %v5750_v46  ;;  %v9790_v20 = vpack.c.bf16 %v7157_v25, %v7125_v28  ;;  %v9792_v50 = vpack.c.bf16 %v7156_v32, %v7124_v5  ;;  %v13972_v28 = vld [vmem:[#allocation4 + $0xa0] sm:$0xff]  ;;  %v13974_v29 = vld [vmem:[#allocation4 + $0xa8] sm:$0xff] }
 0x725   : > { %5927 = vrot.lane.b32.xlu1 %v13815_v6, %s10253_s30  ;;  %5925 = vrot.lane.b32.xlu0 %v13808_v10, %s10253_s30  ;;  %v13976_v46 = vld [vmem:[#allocation4 + $0xb8] sm:$0xff]  ;;  %v13978_v25 = vld [vmem:[#allocation4 + $0xb0] sm:$0xff] }
 0x726   : > { %v13915_v24 = vpop.permute.xlu1 %5495  ;;  %v5494_v17 = vpop.permute.xlu0 %5493  ;;  %9791 = vmatprep.subr.bf16.mxu1 %v9790_v20  ;;  %v13980_v20 = vld [vmem:[#allocation4 + $0x1a8] sm:$0xff] }
 0x727   : > { %v5539_v63 = vsel %vm1932_vm4, %v5492_v58, %v5494_v17  ;;  %v5540_v33 = vsel %vm1932_vm4, %v5494_v17, %v13915_v24  ;;  %9793 = vmatpush1.bf16.msra.mxu1 %v9792_v50  ;;  %v7187_v0 = vld [vmem:[#allocation4 + $0x1688] sm:$0xff]  ;;  %v7186_v11 = vld [vmem:[#allocation4 + $0x1680] sm:$0xff]  ;;  %v13984_v17 = vld [vmem:[#allocation4 + $0x1b0] sm:$0xff] }
 0x728   : > { %5603 = vst [vmem:[#allocation4 + $0x1690] sm:$0xf] %v5539_v63  ;;  %5604 = vst [vmem:[#allocation4 + $0x1698] sm:$0xf] %v5540_v33  ;;  %v13982_v50 = vld [vmem:[#allocation4 + $0x1a0] sm:$0xff] }
 0x729   : > { %6139 = vrot.lane.b32.xlu1 %v13815_v6, %s10254_s6  ;;  %6137 = vrot.lane.b32.xlu0 %v13808_v10, %s10254_s6 }
 0x72a   : > { %v13924_v37 = vpop.permute.xlu1 %5707  ;;  %v5706_v1 = vpop.permute.xlu0 %5705 }
 0x72b   : > { %v5751_v31 = vsel %vm2145_vm5, %v5704_v35, %v5706_v1  ;;  %v5752_v60 = vsel %vm2145_vm5, %v5706_v1, %v13924_v37  ;;  %v7219_v47 = vld [vmem:[#allocation4 + $0x1788] sm:$0xff]  ;;  %v7218_v26 = vld [vmem:[#allocation4 + $0x1780] sm:$0xff] }
 0x72c   : > { %5815 = vst [vmem:[#allocation4 + $0x1790] sm:$0xf] %v5751_v31  ;;  %5816 = vst [vmem:[#allocation4 + $0x1798] sm:$0xf] %v5752_v60  ;;  %v9742_v13 = vpack.c.bf16 %v7219_v47, %v7187_v0  ;;  %v9744_v23 = vpack.c.bf16 %v7218_v26, %v7186_v11  ;;  %v13989_v1 = vld [vmem:[#allocation4 + $0x3a8] sm:$0xff]  ;;  %v13991_v0 = vld [vmem:[#allocation4 + $0x1b8] sm:$0xff]  ;;  %v8562_v60 = vlaneseq }
 0x72d   : > { %6347 = vrot.lane.b32.xlu1 %v13743_v61, %s10255_s7  ;;  %6345 = vrot.lane.b32.xlu0 %v13734_v53, %s10255_s7  ;;  %v13993_v31 = vld [vmem:[#allocation4 + $0x3a0] sm:$0xff]  ;;  %v13999_v47 = vld [vmem:[#allocation4 + $0x2a8] sm:$0xff] }
 0x72e   : > { %v5916_v54 = vpop.permute.xlu1 %5915  ;;  %v5914_v18 = vpop.permute.xlu0 %5913  ;;  %9743 = vmatprep.subr.bf16.mxu0 %v9742_v13  ;;  %v14007_v13 = vld [vmem:[#allocation4 + $0x3b8] sm:$0xff] }
 0x72f   : > { %v5961_v21 = vsel %vm2358_vm6, %v13740_v62, %v5914_v18  ;;  %v5962_v48 = vsel %vm2358_vm6, %v5914_v18, %v5916_v54  ;;  %9745 = vmatpush1.bf16.msra.mxu0 %v9744_v23  ;;  %v7189_v41 = vld [vmem:[#allocation4 + $0x1698] sm:$0xff]  ;;  %v7188_v2 = vld [vmem:[#allocation4 + $0x1690] sm:$0xff]  ;;  %v14009_v23 = vld [vmem:[#allocation4 + $0x5a0] sm:$0xff] }
 0x730   : > { %6025 = vst [vmem:[#allocation4 + $0x1880] sm:$0xf] %v5961_v21  ;;  %6026 = vst [vmem:[#allocation4 + $0x1888] sm:$0xf] %v5962_v48  ;;  %v14013_v18 = vld [vmem:[#allocation4 + $0x3b0] sm:$0xff]  ;;  %v14015_v21 = vshrl.u32 %v8562_v60, 7 }
 0x731   : > { %6351 = vrot.lane.b32.xlu1 %v13815_v6, %s10255_s7  ;;  %6349 = vrot.lane.b32.xlu0 %v13808_v10, %s10255_s7 }
 0x732   : > { %v6128_v53 = vpop.permute.xlu1 %6127  ;;  %v6126_v61 = vpop.permute.xlu0 %6125 }
 0x733   : > { %v6173_v12 = vsel %vm2571_vm7, %v13752_v59, %v6126_v61  ;;  %v6174_v4 = vsel %vm2571_vm7, %v6126_v61, %v6128_v53  ;;  %v7221_v62 = vld [vmem:[#allocation4 + $0x1798] sm:$0xff]  ;;  %v7220_v49 = vld [vmem:[#allocation4 + $0x1790] sm:$0xff] }
 0x734   : > { %6237 = vst [vmem:[#allocation4 + $0x1980] sm:$0xf] %v6173_v12  ;;  %6238 = vst [vmem:[#allocation4 + $0x1988] sm:$0xf] %v6174_v4  ;;  %v9794_v38 = vpack.c.bf16 %v7221_v62, %v7189_v41  ;;  %v9796_v34 = vpack.c.bf16 %v7220_v49, %v7188_v2  ;;  %v14027_v2 = vld [vmem:[#allocation4 + $0x5a8] sm:$0xff]  ;;  %v14029_v49 = vld [vmem:[#allocation4 + $0x5b0] sm:$0xff] }
 0x735   : > { %3927 = vrot.lane.b32.xlu1 %v13815_v6, %s10252_s29  ;;  %3925 = vrot.lane.b32.xlu0 %v13808_v10, %s10252_s29 }
 0x736   : > { %v13947_v45 = vpop.permute.xlu1 %5919  ;;  %v5918_v57 = vpop.permute.xlu0 %5917  ;;  %9795 = vmatprep.subr.bf16.mxu1 %v9794_v38 }
 0x737   : > { %v5963_v59 = vsel %vm2358_vm6, %v5916_v54, %v5918_v57  ;;  %v5964_v39 = vsel %vm2358_vm6, %v5918_v57, %v13947_v45  ;;  %9797 = vmatpush1.bf16.msra.mxu1 %v9796_v34  ;;  %v7251_v16 = vld [vmem:[#allocation4 + $0x1888] sm:$0xff]  ;;  %v7250_v43 = vld [vmem:[#allocation4 + $0x1880] sm:$0xff]  ;;  %v14011_v54 = vld [vmem:[#allocation4 + $0x2b0] sm:$0xff] }
 0x738   : > { %6027 = vst [vmem:[#allocation4 + $0x1890] sm:$0xf] %v5963_v59  ;;  %6028 = vst [vmem:[#allocation4 + $0x1898] sm:$0xf] %v5964_v39 }
 0x739   : > { %4139 = vrot.lane.b32.xlu1 %v13815_v6, %s10253_s30  ;;  %4137 = vrot.lane.b32.xlu0 %v13808_v10, %s10253_s30 }
 0x73a   : > { %v13963_v27 = vpop.permute.xlu1 %6131  ;;  %v6130_v52 = vpop.permute.xlu0 %6129 }
 0x73b   : > { %v6175_v8 = vsel %vm2571_vm7, %v6128_v53, %v6130_v52  ;;  %v6176_v58 = vsel %vm2571_vm7, %v6130_v52, %v13963_v27  ;;  %v7283_v36 = vld [vmem:[#allocation4 + $0x1988] sm:$0xff]  ;;  %v7282_v55 = vld [vmem:[#allocation4 + $0x1980] sm:$0xff]  ;;  %v14035_v52 = vsub.s32 0, %v14015_v21 }
 0x73c   : > { %6239 = vst [vmem:[#allocation4 + $0x1990] sm:$0xf] %v6175_v8  ;;  %6240 = vst [vmem:[#allocation4 + $0x1998] sm:$0xf] %v6176_v58  ;;  %v9746_v35 = vpack.c.bf16 %v7283_v36, %v7251_v16  ;;  %v9748_v44 = vpack.c.bf16 %v7282_v55, %v7250_v43  ;;  %v14038_v16 = vsub.s32 1, %v14015_v21  ;;  %v14044_v36 = vld [vmem:[#allocation4 + $0x4a8] sm:$0xff] }
 0x73d   : > { %3931 = vrot.lane.b32.xlu1 %v13961_v51, %s10252_s29  ;;  %3929 = vrot.lane.b32.xlu0 %v13954_v7, %s10252_s29  ;;  %v14046_v43 = vld [vmem:[#allocation4 + $0x2b8] sm:$0xff] }
 0x73e   : > { %v6340_v5 = vpop.permute.xlu1 %6339  ;;  %v6338_v32 = vpop.permute.xlu0 %6337  ;;  %9747 = vmatprep.subr.bf16.mxu0 %v9746_v35  ;;  %v14053_v35 = vld [vmem:[%s15155_s0] sm:$0xff] }
 0x73f   : > { %v6385_v63 = vsel %vm2784_vm8, %v13768_v14, %v6338_v32  ;;  %v6386_v33 = vsel %vm2784_vm8, %v6338_v32, %v6340_v5  ;;  %9749 = vmatpush1.bf16.msra.mxu0 %v9748_v44  ;;  %v14001_v14 = vld [vmem:[#allocation4 + $0x2a0] sm:$0xff]  ;;  %v7253_v61 = vld [vmem:[#allocation4 + $0x1898] sm:$0xff]  ;;  %v7252_v59 = vld [vmem:[#allocation4 + $0x1890] sm:$0xff]  ;;  %v8565_v60 = vrot.slane %v14053_v35, %v14035_v52 }
 0x740   : > { %6449 = vst [vmem:[#allocation4 + $0x1a80] sm:$0xf] %v6385_v63  ;;  %6450 = vst [vmem:[#allocation4 + $0x1a88] sm:$0xf] %v6386_v33  ;;  %v14059_v32 = vld [vmem:[#allocation4 + $0x5b8] sm:$0xff]  ;;  %v14061_v63 = vld [vmem:[#allocation4 + $0x4b0] sm:$0xff] }
 0x741   : > { %4143 = vrot.lane.b32.xlu1 %v13961_v51, %s10253_s30  ;;  %4141 = vrot.lane.b32.xlu0 %v13954_v7, %s10253_s30  ;;  %v7401_v33 = vpop.f32.mrb[0].mxu0 }
 0x742   : > { %v14017_v48 = vpop.permute.xlu1 %6343  ;;  %v6342_v53 = vpop.permute.xlu0 %6341  ;;  %v8722_v12 = vmul.f32 %v8565_v60, %v7401_v33 }
 0x743   : > { %15162 = vst [vmem:[#allocation5_spill] sm:$0xff] %v14017_v48  ;;  %v6387_v38 = vsel %vm2784_vm8, %v6340_v5, %v6342_v53  ;;  %v6388_v34 = vsel %vm2784_vm8, %v6342_v53, %v14017_v48  ;;  %v7285_v57 = vld [vmem:[#allocation4 + $0x1998] sm:$0xff]  ;;  %v7284_v39 = vld [vmem:[#allocation4 + $0x1990] sm:$0xff]  ;;  %v14057_v5 = vld [vmem:[#allocation4 + $0x4a0] sm:$0xff]  ;;  %v8569_v53 = vrot.slane %v14053_v35, %v14038_v16  ;;  %v15164_v48 = vpack.c.bf16 %v13982_v50, %v13972_v28 }
 0x744   : > { %6451 = vst [vmem:[#allocation4 + $0x1a90] sm:$0xf] %v6387_v38  ;;  %6452 = vst [vmem:[#allocation4 + $0x1a98] sm:$0xf] %v6388_v34  ;;  %v9798_v8 = vpack.c.bf16 %v7285_v57, %v7253_v61  ;;  %v9800_v58 = vpack.c.bf16 %v7284_v39, %v7252_v59  ;;  %v14069_v61 = vsub.s32 2, %v14015_v21  ;;  %v7403_v57 = vpop.f32.mrb[1].mxu0 }
 0x745   : > { %4351 = vrot.lane.b32.xlu1 %v13815_v6, %s10254_s6  ;;  %4349 = vrot.lane.b32.xlu0 %v13808_v10, %s10254_s6  ;;  %v8723_v60 = vmul.f32 %v8569_v53, %v7403_v57  ;;  %v14099_v59 = vsub.s32 3, %v14015_v21 }
 0x746   : > { %v14071_v38 = vpop.permute.xlu1 %3919  ;;  %v3918_v34 = vpop.permute.xlu0 %3917  ;;  %9799 = vmatprep.subr.bf16.mxu1 %v9798_v8  ;;  %v14083_v8 = vld [vmem:[#allocation4 + $0x4b8] sm:$0xff]  ;;  %v8573_v39 = vrot.slane %v14053_v35, %v14069_v61 }
 0x747   : > { %v3961_v55 = vsel %vm2145_vm5, %v13784_v9, %v3918_v34  ;;  %v3962_v44 = vsel %vm2145_vm5, %v3918_v34, %v14071_v38  ;;  %9801 = vmatpush1.bf16.msra.mxu1 %v9800_v58  ;;  %v7315_v62 = vld [vmem:[#allocation4 + $0x1a88] sm:$0xff]  ;;  %v7314_v4 = vld [vmem:[#allocation4 + $0x1a80] sm:$0xff]  ;;  %v8503_v58 = vcombine.low %v7401_v33, %v7403_v57  ;;  %v7472_v34 = vpop.f32.mrb[0].mxu1  ;;  %v8757_v33 = vsel %vm8755_vm10, %v8723_v60, 0.0 }
 0x748   : > { %4025 = vst [vmem:[#allocation4 + $0xea0] sm:$0xf] %v3961_v55  ;;  %4026 = vst [vmem:[#allocation4 + $0xea8] sm:$0xf] %v3962_v44  ;;  %7955 = vmatprep.subr.mxu0 %v7315_v62  ;;  %v8756_v55 = vsel %vm8755_vm10, %v8722_v12, 0.0  ;;  %v8825_v44 = vmul.f32 %v8722_v12, %v8722_v12  ;;  %v8724_v41 = vmul.f32 %v8573_v39, %v7472_v34  ;;  %v7474_v26 = vpop.f32.mrb[1].mxu1 }
 0x749   : > { %4563 = vrot.lane.b32.xlu1 %v13815_v6, %s10255_s7  ;;  %4561 = vrot.lane.b32.xlu0 %v13808_v10, %s10255_s7  ;;  %v14103_v6 = vsub.s32 4, %v14015_v21  ;;  %8538 = vst [vmem:[%s14088_s21] sm:$0xff] %v8503_v58  ;;  %v8826_v53 = vmul.f32 %v8723_v60, %v8723_v60  ;;  %v8504_v57 = vcombine.low %v7472_v34, %v7474_v26 }
 0x74a   : > { %7956 = vmatpush1.msra.mxu0 %v7314_v4  ;;  %v14105_v10 = vpop.permute.xlu1 %4131  ;;  %v4130_v11 = vpop.permute.xlu0 %4129  ;;  %v8577_v62 = vrot.slane %v14053_v35, %v14099_v59  ;;  %v15163_v4 = vpack.c.bf16 %v13980_v20, %v13974_v29  ;;  %v8857_v60 = vsel %vm8755_vm10, %v8825_v44, 0.0  ;;  %v8758_v34 = vadd.f32 %v8757_v33, %v8756_v55 }
 0x74b   : > { %v4173_v12 = vsel %vm2358_vm6, %v13800_v42, %v4130_v11  ;;  %v4174_v39 = vsel %vm2358_vm6, %v4130_v11, %v14105_v10  ;;  %7968 = vmatmul.mubr.f32.vlgmr.msra.gmra.mrb[8].mxu0 %v13793_v40  ;;  %v7317_v58 = vld [vmem:[#allocation4 + $0x1a98] sm:$0xff]  ;;  %v7316_v9 = vld [vmem:[#allocation4 + $0x1a90] sm:$0xff]  ;;  %v8858_v42 = vsel %vm8755_vm10, %v8826_v53, 0.0  ;;  %v8759_v11 = vsel %vm8755_vm10, %v8724_v41, 0.0  ;;  %8539 = vst [vmem:[%s14088_s21 + $0x8] sm:$0xff] %v8504_v57  ;;  %v14140_v53 = vld [vmem:[#allocation4 + $0x7a0] sm:$0xff] }
 0x74c   : > { %9803 = vmatprep.subr.bf16.mxu0 %v15163_v4  ;;  %4237 = vst [vmem:[#allocation4 + $0xfa0] sm:$0xf] %v4173_v12  ;;  %4238 = vst [vmem:[#allocation4 + $0xfa8] sm:$0xf] %v4174_v39  ;;  %v8827_v29 = vmul.f32 %v8724_v41, %v8724_v41  ;;  %v8725_v20 = vmul.f32 %v8577_v62, %v7474_v26  ;;  %v7543_v4 = vpop.f32.mrb[2].mxu0  ;;  %8026 = vmatprep.subr.mxu1 %v7317_v58 }
 0x74d   : > { %9805 = vmatpush1.bf16.msra.mxu0 %v15164_v48  ;;  %4355 = vrot.lane.b32.xlu1 %v13961_v51, %s10254_s6  ;;  %v8859_v55 = vadd.f32 %v8858_v42, %v8857_v60  ;;  %v8760_v44 = vadd.f32 %v8759_v11, %v8758_v34  ;;  %v8581_v28 = vrot.slane %v14053_v35, %v14103_v6  ;;  %v7545_v50 = vpop.f32.mrb[3].mxu0  ;;  %v14133_v48 = vsub.s32 5, %v14015_v21  ;;  %v14161_v42 = vld [vmem:[#allocation4 + $0x6a0] sm:$0xff] }
 0x74e   : > { %4353 = vrot.lane.b32.xlu0 %v13954_v7, %s10254_s6  ;;  %v15165_v33 = vpack.c.bf16 %v13989_v1, %v13999_v47  ;;  %8027 = vmatpush1.msra.mxu1 %v7316_v9  ;;  %v14138_v26 = vpop.permute.xlu1 %3923  ;;  %v3922_v41 = vpop.permute.xlu0 %3921  ;;  %v8860_v57 = vsel %vm8755_vm10, %v8827_v29, 0.0  ;;  %v8761_v62 = vsel %vm8755_vm10, %v8725_v20, 0.0  ;;  %v8828_v12 = vmul.f32 %v8725_v20, %v8725_v20 }
 0x74f   : > { %v8505_v39 = vcombine.low %v7543_v4, %v7545_v50  ;;  %v3963_v58 = vsel %vm2145_vm5, %v14071_v38, %v3922_v41  ;;  %v3964_v1 = vsel %vm2145_vm5, %v3922_v41, %v14138_v26  ;;  %8039 = vmatmul.mubr.f32.vlgmr.msra.gmra.mrb[8].mxu1 %v13793_v40  ;;  %v15166_v47 = vpack.c.bf16 %v13991_v0, %v13976_v46  ;;  %v7614_v29 = vpop.f32.mrb[2].mxu1 }
 0x750   : > { %9807 = vmatprep.subr.bf16.mxu0 %v15165_v33  ;;  %v8861_v9 = vadd.f32 %v8860_v57, %v8859_v55  ;;  %v14153_v60 = vsub.s32 6, %v14015_v21  ;;  %4027 = vst [vmem:[#allocation4 + $0xeb0] sm:$0xf] %v3963_v58  ;;  %4028 = vst [vmem:[#allocation4 + $0xeb8] sm:$0xf] %v3964_v1  ;;  %v15167_v34 = vpack.c.bf16 %v13993_v31, %v14001_v14  ;;  %v8862_v46 = vsel %vm8755_vm10, %v8828_v12, 0.0 }
 0x751   : > { %9855 = vmatprep.subr.bf16.mxu1 %v15166_v47  ;;  %v15168_v38 = vpack.c.bf16 %v13984_v17, %v13978_v25  ;;  %v8762_v40 = vadd.f32 %v8761_v62, %v8760_v44  ;;  %v8726_v0 = vmul.f32 %v8581_v28, %v7543_v4  ;;  %8540 = vst [vmem:[%s14088_s21 + $0x10] sm:$0xff] %v8505_v39  ;;  %v6711_v31 = vld [vmem:[#allocation4 + $0x7a8] sm:$0xff]  ;;  %v7616_v20 = vpop.f32.mrb[3].mxu1  ;;  %v14176_v4 = vsub.s32 7, %v14015_v21 }
 0x752   : > { %9809 = vmatpush1.bf16.msra.mxu0 %v15167_v34  ;;  %v8585_v11 = vrot.slane %v14053_v35, %v14133_v48  ;;  %4567 = vrot.lane.b32.xlu1 %v13961_v51, %s10255_s7  ;;  %v9816_v25 = vpack.c.bf16 %v14140_v53, %v14161_v42  ;;  %v8863_v17 = vadd.f32 %v8862_v46, %v8861_v9  ;;  %v14184_v28 = vpop.permute.xlu1 %4135  ;;  %v4134_v33 = vpop.permute.xlu0 %4133  ;;  %v6743_v1 = vld [vmem:[#allocation4 + $0x8a8] sm:$0xff]  ;;  %v14218_v46 = vld [vmem:[%s10303_s24 + $0x80] sm:$0xff] }
 0x753   : > { %9857 = vmatpush1.bf16.msra.mxu1 %v15168_v38  ;;  %4565 = vrot.lane.b32.xlu0 %v13954_v7, %s10255_s7  ;;  %v8589_v14 = vrot.slane %v14053_v35, %v14153_v60  ;;  %v15169_v55 = vpack.c.bf16 %v14027_v2, %v14044_v36  ;;  %v15170_v44 = vpack.c.bf16 %v14007_v13, %v14046_v43  ;;  %v8763_v41 = vsel %vm8755_vm10, %v8726_v0, 0.0  ;;  %v6679_v2 = vld [vmem:[#allocation4 + $0x6a8] sm:$0xff]  ;;  %v6713_v36 = vld [vmem:[#allocation4 + $0x7b8] sm:$0xff] }
 0x754   : > { %v8829_v53 = vmul.f32 %v8726_v0, %v8726_v0  ;;  %v8727_v57 = vmul.f32 %v8585_v11, %v7545_v50  ;;  %v8506_v62 = vcombine.low %v7614_v29, %v7616_v20  ;;  %v4175_v12 = vsel %vm2358_vm6, %v14105_v10, %v4134_v33  ;;  %9238 = vmatprep.mubr.msk.f32.mxu0 %vm7332_vm9, %v12951_v19  ;;  %v6775_v47 = vld [vmem:[#allocation4 + $0x9a8] sm:$0xff]  ;;  %v6712_v11 = vld [vmem:[#allocation4 + $0x7b0] sm:$0xff] }
 0x755   : > { %9811 = vmatprep.subr.bf16.mxu0 %v15169_v55  ;;  %9859 = vmatprep.subr.bf16.mxu1 %v15170_v44  ;;  %v4176_v39 = vsel %vm2358_vm6, %v4134_v33, %v14184_v28  ;;  %v8764_v13 = vadd.f32 %v8763_v41, %v8762_v40  ;;  %v14197_v43 = vcombine.high %v13961_v51, %v13961_v51 }
 0x756   : > { %9239 = vmatprep.mubr.msk.f32.mxu1 %vm7332_vm9, %v12951_v19  ;;  %4239 = vst [vmem:[#allocation4 + $0xfb0] sm:$0xf] %v4175_v12  ;;  %4240 = vst [vmem:[#allocation4 + $0xfb8] sm:$0xf] %v4176_v39  ;;  %v15171_v10 = vpack.c.bf16 %v14009_v23, %v14057_v5  ;;  %v15172_v50 = vpack.c.bf16 %v14013_v18, %v14011_v54  ;;  %v9814_v58 = vpack.c.bf16 %v6711_v31, %v6679_v2  ;;  %v6681_v23 = vld [vmem:[#allocation4 + $0x6b8] sm:$0xff]  ;;  %v14215_v42 = vpop.permute.xlu1 %4343  ;;  %v4342_v40 = vpop.permute.xlu0 %4341  ;;  %v6839_v12 = vld [vmem:[#allocation4 + $0xba8] sm:$0xff] }
 0x757   : > { %v8864_v9 = vsel %vm8755_vm10, %v8829_v53, 0.0  ;;  %v8765_v34 = vsel %vm8755_vm10, %v8727_v57, 0.0  ;;  %8541 = vst [vmem:[%s14088_s21 + $0x18] sm:$0xff] %v8506_v62  ;;  %4871 = vrot.lane.b32.xlu1 %v13961_v51, %s10248_s25  ;;  %4869 = vrot.lane.b32.xlu0 %v13954_v7, %s10248_s25  ;;  %v8830_v54 = vmul.f32 %v8727_v57, %v8727_v57  ;;  %v15173_v18 = vpack.c.bf16 %v14059_v32, %v14083_v8  ;;  %v6742_v32 = vld [vmem:[#allocation4 + $0x8a0] sm:$0xff]  ;;  %v6745_v39 = vld [vmem:[#allocation4 + $0x8b8] sm:$0xff] }
 0x758   : > { %9813 = vmatpush1.bf16.msra.mxu0 %v15171_v10  ;;  %9861 = vmatpush1.bf16.msra.mxu1 %v15172_v50  ;;  %v8865_v5 = vadd.f32 %v8864_v9, %v8863_v17  ;;  %v8766_v38 = vadd.f32 %v8765_v34, %v8764_v13  ;;  %v9866_v0 = vpack.c.bf16 %v6713_v36, %v6681_v23  ;;  %v6774_v8 = vld [vmem:[#allocation4 + $0x9a0] sm:$0xff]  ;;  %v6776_v13 = vld [vmem:[#allocation4 + $0x9b0] sm:$0xff] }
 0x759   : > { %9815 = vmatprep.subr.bf16.mxu0 %v9814_v58  ;;  %9863 = vmatprep.subr.bf16.mxu1 %v15173_v18  ;;  %v8728_v31 = vmul.f32 %v8589_v14, %v7614_v29  ;;  %v8593_v55 = vrot.slane %v14053_v35, %v14176_v4  ;;  %v4385_v17 = vsel %vm2571_vm7, %v13835_v56, %v4342_v40  ;;  %v8866_v41 = vsel %vm8755_vm10, %v8830_v54, 0.0  ;;  %v6680_v14 = vld [vmem:[#allocation4 + $0x6b0] sm:$0xff]  ;;  %v6838_v9 = vld [vmem:[#allocation4 + $0xba0] sm:$0xff] }
 0x75a   : > { %v4386_v44 = vsel %vm2571_vm7, %v4342_v40, %v14215_v42  ;;  %v9818_v33 = vpack.c.bf16 %v6775_v47, %v6743_v1  ;;  %4449 = vst [vmem:[#allocation4 + $0x10a0] sm:$0xf] %v4385_v17  ;;  %v15174_v29 = vpack.c.bf16 %v14029_v49, %v14061_v63  ;;  %v8867_v35 = vadd.f32 %v8866_v41, %v8865_v5  ;;  %v4556_v49 = vpop.permute.xlu1 %4555  ;;  %v4554_v63 = vpop.permute.xlu0 %4553  ;;  %v6807_v47 = vld [vmem:[#allocation4 + $0xaa8] sm:$0xff]  ;;  %v6744_v34 = vld [vmem:[#allocation4 + $0x8b0] sm:$0xff] }
 0x75b   : > { %4450 = vst [vmem:[#allocation4 + $0x10a8] sm:$0xf] %v4386_v44  ;;  %v8767_v53 = vsel %vm8755_vm10, %v8728_v31, 0.0  ;;  %v8831_v56 = vmul.f32 %v8728_v31, %v8728_v31  ;;  %v8729_v57 = vmul.f32 %v8593_v55, %v7616_v20  ;;  %4875 = vrot.lane.b32.xlu1 %v14218_v46, %s10248_s25  ;;  %4873 = vrot.lane.b32.xlu0 %v14197_v43, %s10248_s25  ;;  %v6903_v40 = vld [vmem:[#allocation4 + $0xda8] sm:$0xff] }
 0x75c   : > { %9817 = vmatpush1.bf16.msra.mxu0 %v9816_v25  ;;  %9865 = vmatpush1.bf16.msra.mxu1 %v15174_v29  ;;  %v9868_v62 = vpack.c.bf16 %v6712_v11, %v6680_v14  ;;  %v6777_v25 = vld [vmem:[#allocation4 + $0x9b8] sm:$0xff]  ;;  %v8768_v2 = vadd.f32 %v8767_v53, %v8766_v38  ;;  %v9820_v36 = vpack.c.bf16 %v6774_v8, %v6742_v32  ;;  %v6871_v41 = vld [vmem:[#allocation4 + $0xca8] sm:$0xff]  ;;  %v6902_v29 = vld [vmem:[#allocation4 + $0xda0] sm:$0xff] }
 0x75d   : > { %9819 = vmatprep.subr.bf16.mxu0 %v9818_v33  ;;  %9867 = vmatprep.subr.bf16.mxu1 %v9866_v0  ;;  %v8868_v10 = vsel %vm8755_vm10, %v8831_v56, 0.0  ;;  %v8769_v20 = vsel %vm8755_vm10, %v8729_v57, 0.0  ;;  %v8832_v50 = vmul.f32 %v8729_v57, %v8729_v57  ;;  %v4597_v58 = vsel %vm2784_vm8, %v13844_v15, %v4554_v63  ;;  %v6806_v15 = vld [vmem:[#allocation4 + $0xaa0] sm:$0xff]  ;;  %v6841_v0 = vld [vmem:[#allocation4 + $0xbb8] sm:$0xff]  ;;  %v6840_v14 = vld [vmem:[#allocation4 + $0xbb0] sm:$0xff] }
 0x75e   : > { %v4598_v1 = vsel %vm2784_vm8, %v4554_v63, %v4556_v49  ;;  %v8869_v23 = vadd.f32 %v8868_v10, %v8867_v35  ;;  %v14240_v5 = vadd.f32 %v8769_v20, %v8768_v2  ;;  %4661 = vst [vmem:[#allocation4 + $0x11a0] sm:$0xf] %v4597_v58  ;;  %v9822_v38 = vpack.c.bf16 %v6839_v12, %v6807_v47  ;;  %v14249_v31 = vpop.permute.xlu1 %4347  ;;  %v6809_v33 = vld [vmem:[#allocation4 + $0xab8] sm:$0xff]  ;;  %v6808_v56 = vld [vmem:[#allocation4 + $0xab0] sm:$0xff]  ;;  %v6967_v57 = vld [vmem:[#allocation4 + $0xfa8] sm:$0xff] }
 0x75f   : > { %4662 = vst [vmem:[#allocation4 + $0x11a8] sm:$0xf] %v4598_v1  ;;  %v9870_v54 = vpack.c.bf16 %v6777_v25, %v6745_v39  ;;  %v8870_v18 = vsel %vm8755_vm10, %v8832_v50, 0.0  ;;  %5083 = vrot.lane.b32.xlu1 %v13961_v51, %s10249_s26  ;;  %5081 = vrot.lane.b32.xlu0 %v13954_v7, %s10249_s26  ;;  %v4346_v55 = vpop.permute.xlu0 %4345  ;;  %v9824_v17 = vpack.c.bf16 %v6838_v9, %v6806_v15  ;;  %v6873_v63 = vld [vmem:[#allocation4 + $0xcb8] sm:$0xff]  ;;  %v6935_v20 = vld [vmem:[#allocation4 + $0xea8] sm:$0xff]  ;;  %v6966_v50 = vld [vmem:[#allocation4 + $0xfa0] sm:$0xff] }
 0x760   : > { %9821 = vmatpush1.bf16.msra.mxu0 %v9820_v36  ;;  %9869 = vmatpush1.bf16.msra.mxu1 %v9868_v62  ;;  %v14247_v11 = vadd.f32 %v8870_v18, %v8869_v23  ;;  %v9872_v44 = vpack.c.bf16 %v6776_v13, %v6744_v34  ;;  %v4387_v32 = vsel %vm2571_vm7, %v14215_v42, %v4346_v55  ;;  %v6870_v42 = vld [vmem:[#allocation4 + $0xca0] sm:$0xff]  ;;  %v6905_v62 = vld [vmem:[#allocation4 + $0xdb8] sm:$0xff]  ;;  %v6904_v36 = vld [vmem:[#allocation4 + $0xdb0] sm:$0xff] }
 0x761   : > { %9823 = vmatprep.subr.bf16.mxu0 %v9822_v38  ;;  %9871 = vmatprep.subr.bf16.mxu1 %v9870_v54  ;;  %v4388_v8 = vsel %vm2571_vm7, %v4346_v55, %v14249_v31  ;;  %4451 = vst [vmem:[#allocation4 + $0x10b0] sm:$0xf] %v4387_v32  ;;  %v9826_v35 = vpack.c.bf16 %v6903_v40, %v6871_v41  ;;  %v14267_v58 = vld [vmem:[%s15155_s0 + $0x8] sm:$0xff]  ;;  %v6872_v9 = vld [vmem:[#allocation4 + $0xcb0] sm:$0xff]  ;;  %v6969_v23 = vld [vmem:[#allocation4 + $0xfb8] sm:$0xff] }
 0x762   : > { %4452 = vst [vmem:[#allocation4 + $0x10b8] sm:$0xf] %v4388_v8  ;;  %v9874_v53 = vpack.c.bf16 %v6841_v0, %v6809_v33  ;;  %v14259_v12 = vpop.permute.xlu1 %4559  ;;  %v9828_v25 = vpack.c.bf16 %v6902_v29, %v6870_v42  ;;  %v9876_v2 = vpack.c.bf16 %v6840_v14, %v6808_v56  ;;  %v9830_v1 = vpack.c.bf16 %v6967_v57, %v6935_v20  ;;  %v6937_v40 = vld [vmem:[#allocation4 + $0xeb8] sm:$0xff]  ;;  %v6968_v32 = vld [vmem:[#allocation4 + $0xfb0] sm:$0xff]  ;;  %v6998_v29 = vld [vmem:[#allocation4 + $0x10a0] sm:$0xff] }
 0x763   : > { %5295 = vrot.lane.b32.xlu1 %v13961_v51, %s10250_s27  ;;  %5293 = vrot.lane.b32.xlu0 %v13954_v7, %s10250_s27  ;;  %v4558_v39 = vpop.permute.xlu0 %4557  ;;  %v9878_v47 = vpack.c.bf16 %v6905_v62, %v6873_v63  ;;  %v9880_v15 = vpack.c.bf16 %v6904_v36, %v6872_v9  ;;  %v8597_v0 = vrot.slane %v14267_v58, %v14035_v52  ;;  %v6936_v14 = vld [vmem:[#allocation4 + $0xeb0] sm:$0xff] }
 0x764   : > { %9825 = vmatpush1.bf16.msra.mxu0 %v9824_v17  ;;  %9873 = vmatpush1.bf16.msra.mxu1 %v9872_v44  ;;  %v4599_v13 = vsel %vm2784_vm8, %v4556_v49, %v4558_v39  ;;  %v4600_v10 = vsel %vm2784_vm8, %v4558_v39, %v14259_v12  ;;  %v6934_v49 = vld [vmem:[#allocation4 + $0xea0] sm:$0xff]  ;;  %v6999_v44 = vld [vmem:[#allocation4 + $0x10a8] sm:$0xff]  ;;  %v9882_v41 = vpack.c.bf16 %v6969_v23, %v6937_v40 }
 0x765   : > { %9827 = vmatprep.subr.bf16.mxu0 %v9826_v35  ;;  %9875 = vmatprep.subr.bf16.mxu1 %v9874_v53  ;;  %4663 = vst [vmem:[#allocation4 + $0x11b0] sm:$0xf] %v4599_v13  ;;  %4664 = vst [vmem:[#allocation4 + $0x11b8] sm:$0xf] %v4600_v10  ;;  %v9832_v18 = vpack.c.bf16 %v6966_v50, %v6934_v49  ;;  %v7030_v33 = vld [vmem:[#allocation4 + $0x11a0] sm:$0xff]  ;;  %v8601_v35 = vrot.slane %v14267_v58, %v14038_v16 }
 0x766   : > { %v7031_v34 = vld [vmem:[#allocation4 + $0x11a8] sm:$0xff]  ;;  %v8605_v53 = vrot.slane %v14267_v58, %v14069_v61  ;;  %v9836_v57 = vpack.c.bf16 %v7030_v33, %v6998_v29  ;;  %v9884_v62 = vpack.c.bf16 %v6968_v32, %v6936_v14  ;;  %v8609_v50 = vrot.slane %v14267_v58, %v14099_v59  ;;  %v7062_v23 = vld [vmem:[#allocation4 + $0x12a0] sm:$0xff] }
 0x767   : > { %5087 = vrot.lane.b32.xlu1 %v14218_v46, %s10249_s26  ;;  %5085 = vrot.lane.b32.xlu0 %v14197_v43, %s10249_s26  ;;  %v4864_v38 = vpop.permute.xlu1 %4863  ;;  %v4862_v54 = vpop.permute.xlu0 %4861  ;;  %v9834_v8 = vpack.c.bf16 %v7031_v34, %v6999_v44  ;;  %v7063_v34 = vld [vmem:[#allocation4 + $0x12a8] sm:$0xff] }
 0x768   : > { %9829 = vmatpush1.bf16.msra.mxu0 %v9828_v25  ;;  %9877 = vmatpush1.bf16.msra.mxu1 %v9876_v2  ;;  %v4905_v55 = vsel %vm1293_vm1, %v13860_v22, %v4862_v54  ;;  %v4906_v17 = vsel %vm1293_vm1, %v4862_v54, %v4864_v38  ;;  %v7000_v13 = vld [vmem:[#allocation4 + $0x10b0] sm:$0xff] }
 0x769   : > { %9831 = vmatprep.subr.bf16.mxu0 %v9830_v1  ;;  %9879 = vmatprep.subr.bf16.mxu1 %v9878_v47  ;;  %4969 = vst [vmem:[#allocation4 + $0x13a0] sm:$0xf] %v4905_v55  ;;  %4970 = vst [vmem:[#allocation4 + $0x13a8] sm:$0xf] %v4906_v17  ;;  %v7685_v22 = vpop.f32.mrb[4].mxu0  ;;  %v7001_v39 = vld [vmem:[#allocation4 + $0x10b8] sm:$0xff] }
 0x76a   : > { %v8730_v25 = vmul.f32 %v8597_v0, %v7685_v22  ;;  %v7687_v20 = vpop.f32.mrb[5].mxu0 }
 0x76b   : > { %5299 = vrot.lane.b32.xlu1 %v14218_v46, %s10250_s27  ;;  %5297 = vrot.lane.b32.xlu0 %v14197_v43, %s10250_s27  ;;  %v14286_v56 = vpop.permute.xlu1 %4867  ;;  %v4866_v42 = vpop.permute.xlu0 %4865  ;;  %v8507_v54 = vcombine.low %v7685_v22, %v7687_v20 }
 0x76c   : > { %9833 = vmatpush1.bf16.msra.mxu0 %v9832_v18  ;;  %9881 = vmatpush1.bf16.msra.mxu1 %v9880_v15  ;;  %v4907_v2 = vsel %vm1293_vm1, %v4864_v38, %v4866_v42  ;;  %v4908_v63 = vsel %vm1293_vm1, %v4866_v42, %v14286_v56  ;;  %v7033_v36 = vld [vmem:[#allocation4 + $0x11b8] sm:$0xff]  ;;  %v7032_v10 = vld [vmem:[#allocation4 + $0x11b0] sm:$0xff]  ;;  %v8771_v9 = vsel %vm8755_vm10, %v8730_v25, 0.0  ;;  %v8833_v49 = vmul.f32 %v8730_v25, %v8730_v25 }
 0x76d   : > { %9835 = vmatprep.subr.bf16.mxu0 %v9834_v8  ;;  %9883 = vmatprep.subr.bf16.mxu1 %v9882_v41  ;;  %4971 = vst [vmem:[#allocation4 + $0x13b0] sm:$0xf] %v4907_v2  ;;  %4972 = vst [vmem:[#allocation4 + $0x13b8] sm:$0xf] %v4908_v63  ;;  %v9886_v1 = vpack.c.bf16 %v7033_v36, %v7001_v39  ;;  %v9888_v47 = vpack.c.bf16 %v7032_v10, %v7000_v13  ;;  %v7756_v15 = vpop.f32.mrb[4].mxu1  ;;  %v7064_v42 = vld [vmem:[#allocation4 + $0x12b0] sm:$0xff] }
 0x76e   : > { %v8772_v38 = vadd.f32 %v8771_v9, %v14240_v5  ;;  %v8731_v18 = vmul.f32 %v8601_v35, %v7687_v20  ;;  %v8872_v55 = vsel %vm8755_vm10, %v8833_v49, 0.0  ;;  %v8732_v17 = vmul.f32 %v8605_v53, %v7756_v15  ;;  %8542 = vst [vmem:[%s14088_s21 + $0x20] sm:$0xff] %v8507_v54  ;;  %v7758_v29 = vpop.f32.mrb[5].mxu1 }
 0x76f   : > { %5507 = vrot.lane.b32.xlu1 %v13961_v51, %s10251_s28  ;;  %5505 = vrot.lane.b32.xlu0 %v13954_v7, %s10251_s28  ;;  %v5076_v40 = vpop.permute.xlu1 %5075  ;;  %v5074_v0 = vpop.permute.xlu0 %5073  ;;  %v8873_v41 = vadd.f32 %v8872_v55, %v14247_v11  ;;  %v8733_v39 = vmul.f32 %v8609_v50, %v7758_v29 }
 0x770   : > { %9837 = vmatpush1.bf16.msra.mxu0 %v9836_v57  ;;  %9885 = vmatpush1.bf16.msra.mxu1 %v9884_v62  ;;  %v5117_v44 = vsel %vm1506_vm2, %v13883_v3, %v5074_v0  ;;  %v5118_v33 = vsel %vm1506_vm2, %v5074_v0, %v5076_v40  ;;  %v7095_v32 = vld [vmem:[#allocation4 + $0x13a8] sm:$0xff]  ;;  %v7094_v8 = vld [vmem:[#allocation4 + $0x13a0] sm:$0xff]  ;;  %v8773_v5 = vsel %vm8755_vm10, %v8731_v18, 0.0  ;;  %v8834_v53 = vmul.f32 %v8731_v18, %v8731_v18  ;;  %v7065_v3 = vld [vmem:[#allocation4 + $0x12b8] sm:$0xff] }
 0x771   : > { %9887 = vmatprep.subr.bf16.mxu1 %v9886_v1  ;;  %5181 = vst [vmem:[#allocation4 + $0x14a0] sm:$0xf] %v5117_v44  ;;  %5182 = vst [vmem:[#allocation4 + $0x14a8] sm:$0xf] %v5118_v33  ;;  %v9838_v14 = vpack.c.bf16 %v7095_v32, %v7063_v34  ;;  %v9840_v22 = vpack.c.bf16 %v7094_v8, %v7062_v23  ;;  %v8774_v35 = vadd.f32 %v8773_v5, %v8772_v38 }
 0x772   : > { %v8775_v11 = vsel %vm8755_vm10, %v8732_v17, 0.0  ;;  %v8835_v57 = vmul.f32 %v8732_v17, %v8732_v17  ;;  %v8508_v62 = vcombine.low %v7756_v15, %v7758_v29  ;;  %v8874_v63 = vsel %vm8755_vm10, %v8834_v53, 0.0 }
 0x773   : > { %5719 = vrot.lane.b32.xlu1 %v13961_v51, %s10252_s29  ;;  %5717 = vrot.lane.b32.xlu0 %v13954_v7, %s10252_s29  ;;  %v5288_v25 = vpop.permute.xlu1 %5287  ;;  %v5286_v2 = vpop.permute.xlu0 %5285  ;;  %v8776_v36 = vadd.f32 %v8775_v11, %v8774_v35  ;;  %v8777_v34 = vsel %vm8755_vm10, %v8733_v39, 0.0  ;;  %v8836_v23 = vmul.f32 %v8733_v39, %v8733_v39 }
 0x774   : > { %9889 = vmatpush1.bf16.msra.mxu1 %v9888_v47  ;;  %9839 = vmatprep.subr.bf16.mxu0 %v9838_v14  ;;  %v5329_v13 = vsel %vm1719_vm3, %v13892_v30, %v5286_v2  ;;  %v5330_v10 = vsel %vm1719_vm3, %v5286_v2, %v5288_v25  ;;  %v7097_v20 = vld [vmem:[#allocation4 + $0x13b8] sm:$0xff]  ;;  %v7096_v1 = vld [vmem:[#allocation4 + $0x13b0] sm:$0xff]  ;;  %v8875_v47 = vadd.f32 %v8874_v63, %v8873_v41  ;;  %v8876_v9 = vsel %vm8755_vm10, %v8835_v57, 0.0 }
 0x775   : > { %9841 = vmatpush1.bf16.msra.mxu0 %v9840_v22  ;;  %8543 = vst [vmem:[%s14088_s21 + $0x28] sm:$0xff] %v8508_v62  ;;  %5393 = vst [vmem:[#allocation4 + $0x15a0] sm:$0xf] %v5329_v13  ;;  %v9890_v50 = vpack.c.bf16 %v7097_v20, %v7065_v3  ;;  %v9892_v49 = vpack.c.bf16 %v7096_v1, %v7064_v42  ;;  %v14322_v38 = vadd.f32 %v8777_v34, %v8776_v36 }
 0x776   : > { %5394 = vst [vmem:[#allocation4 + $0x15a8] sm:$0xf] %v5330_v10  ;;  %v8877_v30 = vadd.f32 %v8876_v9, %v8875_v47  ;;  %v8878_v15 = vsel %vm8755_vm10, %v8836_v23, 0.0 }
 0x777   : > { %5511 = vrot.lane.b32.xlu1 %v14218_v46, %s10251_s28  ;;  %5509 = vrot.lane.b32.xlu0 %v14197_v43, %s10251_s28  ;;  %v14324_v54 = vpop.permute.xlu1 %5079  ;;  %v5078_v18 = vpop.permute.xlu0 %5077 }
 0x778   : > { %9891 = vmatprep.subr.bf16.mxu1 %v9890_v50  ;;  %v5119_v0 = vsel %vm1506_vm2, %v5076_v40, %v5078_v18  ;;  %v5120_v55 = vsel %vm1506_vm2, %v5078_v18, %v14324_v54  ;;  %v14330_v17 = vadd.f32 %v8878_v15, %v8877_v30  ;;  %v7127_v32 = vld [vmem:[#allocation4 + $0x14a8] sm:$0xff]  ;;  %v7126_v5 = vld [vmem:[#allocation4 + $0x14a0] sm:$0xff] }
 0x779   : > { %9893 = vmatpush1.bf16.msra.mxu1 %v9892_v49  ;;  %5183 = vst [vmem:[#allocation4 + $0x14b0] sm:$0xf] %v5119_v0  ;;  %5184 = vst [vmem:[#allocation4 + $0x14b8] sm:$0xf] %v5120_v55 }
 0x77b   : > { %5723 = vrot.lane.b32.xlu1 %v14218_v46, %s10252_s29  ;;  %5721 = vrot.lane.b32.xlu0 %v14197_v43, %s10252_s29  ;;  %v14336_v44 = vpop.permute.xlu1 %5291  ;;  %v5290_v33 = vpop.permute.xlu0 %5289 }
 0x77c   : > { %v5331_v40 = vsel %vm1719_vm3, %v5288_v25, %v5290_v33  ;;  %v5332_v8 = vsel %vm1719_vm3, %v5290_v33, %v14336_v44  ;;  %v7158_v29 = vld [vmem:[#allocation4 + $0x15a0] sm:$0xff] }
 0x77d   : > { %v7159_v41 = vld [vmem:[#allocation4 + $0x15a8] sm:$0xff]  ;;  %5395 = vst [vmem:[#allocation4 + $0x15b0] sm:$0xf] %v5331_v40  ;;  %5396 = vst [vmem:[#allocation4 + $0x15b8] sm:$0xf] %v5332_v8  ;;  %v9844_v22 = vpack.c.bf16 %v7158_v29, %v7126_v5 }
 0x77e   : > { %v9842_v14 = vpack.c.bf16 %v7159_v41, %v7127_v32 }
 0x77f   : > { %5931 = vrot.lane.b32.xlu1 %v13961_v51, %s10253_s30  ;;  %5929 = vrot.lane.b32.xlu0 %v13954_v7, %s10253_s30  ;;  %v5500_v35 = vpop.permute.xlu1 %5499  ;;  %v5498_v53 = vpop.permute.xlu0 %5497 }
 0x780   : > { %9843 = vmatprep.subr.bf16.mxu0 %v9842_v14  ;;  %v5541_v3 = vsel %vm1932_vm4, %v13915_v24, %v5498_v53  ;;  %v5542_v42 = vsel %vm1932_vm4, %v5498_v53, %v5500_v35  ;;  %v7129_v62 = vld [vmem:[#allocation4 + $0x14b8] sm:$0xff]  ;;  %v7128_v2 = vld [vmem:[#allocation4 + $0x14b0] sm:$0xff] }
 0x781   : > { %9845 = vmatpush1.bf16.msra.mxu0 %v9844_v22  ;;  %5605 = vst [vmem:[#allocation4 + $0x16a0] sm:$0xf] %v5541_v3  ;;  %5606 = vst [vmem:[#allocation4 + $0x16a8] sm:$0xf] %v5542_v42 }
 0x783   : > { %6143 = vrot.lane.b32.xlu1 %v13961_v51, %s10254_s6  ;;  %6141 = vrot.lane.b32.xlu0 %v13954_v7, %s10254_s6  ;;  %v5712_v11 = vpop.permute.xlu1 %5711  ;;  %v5710_v57 = vpop.permute.xlu0 %5709 }
 0x784   : > { %v5753_v39 = vsel %vm2145_vm5, %v13924_v37, %v5710_v57  ;;  %v5754_v25 = vsel %vm2145_vm5, %v5710_v57, %v5712_v11  ;;  %v7161_v24 = vld [vmem:[#allocation4 + $0x15b8] sm:$0xff]  ;;  %v7160_v63 = vld [vmem:[#allocation4 + $0x15b0] sm:$0xff] }
 0x785   : > { %5817 = vst [vmem:[#allocation4 + $0x17a0] sm:$0xf] %v5753_v39  ;;  %5818 = vst [vmem:[#allocation4 + $0x17a8] sm:$0xf] %v5754_v25  ;;  %v9894_v36 = vpack.c.bf16 %v7161_v24, %v7129_v62  ;;  %v9896_v13 = vpack.c.bf16 %v7160_v63, %v7128_v2  ;;  %v3841_v39 = vld [vmem:[%s10303_s24 + $0x88] sm:$0xf] }
 0x787   : > { %5935 = vrot.lane.b32.xlu1 %v14218_v46, %s10253_s30  ;;  %5933 = vrot.lane.b32.xlu0 %v14197_v43, %s10253_s30  ;;  %v14359_v10 = vpop.permute.xlu1 %5503  ;;  %v5502_v20 = vpop.permute.xlu0 %5501 }
 0x788   : > { %9895 = vmatprep.subr.bf16.mxu1 %v9894_v36  ;;  %v5543_v37 = vsel %vm1932_vm4, %v5500_v35, %v5502_v20  ;;  %v5544_v1 = vsel %vm1932_vm4, %v5502_v20, %v14359_v10  ;;  %v7191_v50 = vld [vmem:[#allocation4 + $0x16a8] sm:$0xff]  ;;  %v7190_v30 = vld [vmem:[#allocation4 + $0x16a0] sm:$0xff] }
 0x789   : > { %9897 = vmatpush1.bf16.msra.mxu1 %v9896_v13  ;;  %5607 = vst [vmem:[#allocation4 + $0x16b0] sm:$0xf] %v5543_v37  ;;  %5608 = vst [vmem:[#allocation4 + $0x16b8] sm:$0xf] %v5544_v1 }
 0x78b   : > { %6147 = vrot.lane.b32.xlu1 %v14218_v46, %s10254_s6  ;;  %6145 = vrot.lane.b32.xlu0 %v14197_v43, %s10254_s6  ;;  %v14368_v47 = vpop.permute.xlu1 %5715  ;;  %v5714_v9 = vpop.permute.xlu0 %5713 }
 0x78c   : > { %v5755_v49 = vsel %vm2145_vm5, %v5712_v11, %v5714_v9  ;;  %v5756_v34 = vsel %vm2145_vm5, %v5714_v9, %v14368_v47  ;;  %v7223_v23 = vld [vmem:[#allocation4 + $0x17a8] sm:$0xff]  ;;  %v7222_v18 = vld [vmem:[#allocation4 + $0x17a0] sm:$0xff]  ;;  %v14398_v11 = vcombine.high %v14218_v46, %v14218_v46 }
 0x78d   : > { %5819 = vst [vmem:[#allocation4 + $0x17b0] sm:$0xf] %v5755_v49  ;;  %5820 = vst [vmem:[#allocation4 + $0x17b8] sm:$0xf] %v5756_v34  ;;  %v9846_v15 = vpack.c.bf16 %v7223_v23, %v7191_v50  ;;  %v9848_v0 = vpack.c.bf16 %v7222_v18, %v7190_v30  ;;  %v4053_v50 = vld [vmem:[%s10303_s24 + $0x88] sm:$0xf] }
 0x78e   : > { %v15175_v49 = vld [vmem:[#allocation5_spill] sm:$0xff] }
 0x78f   : > { %6355 = vrot.lane.b32.xlu1 %v13961_v51, %s10255_s7  ;;  %6353 = vrot.lane.b32.xlu0 %v13954_v7, %s10255_s7  ;;  %v5924_v55 = vpop.permute.xlu1 %5923  ;;  %v5922_v33 = vpop.permute.xlu0 %5921 }
 0x790   : > { %9847 = vmatprep.subr.bf16.mxu0 %v9846_v15  ;;  %v5965_v32 = vsel %vm2358_vm6, %v13947_v45, %v5922_v33  ;;  %v5966_v40 = vsel %vm2358_vm6, %v5922_v33, %v5924_v55  ;;  %v7193_v7 = vld [vmem:[#allocation4 + $0x16b8] sm:$0xff]  ;;  %v7192_v29 = vld [vmem:[#allocation4 + $0x16b0] sm:$0xff] }
 0x791   : > { %9849 = vmatpush1.bf16.msra.mxu0 %v9848_v0  ;;  %6029 = vst [vmem:[#allocation4 + $0x18a0] sm:$0xf] %v5965_v32  ;;  %6030 = vst [vmem:[#allocation4 + $0x18a8] sm:$0xf] %v5966_v40 }
 0x793   : > { %6359 = vrot.lane.b32.xlu1 %v14218_v46, %s10255_s7  ;;  %6357 = vrot.lane.b32.xlu0 %v14197_v43, %s10255_s7  ;;  %v6136_v51 = vpop.permute.xlu1 %6135  ;;  %v6134_v8 = vpop.permute.xlu0 %6133 }
 0x794   : > { %v6177_v41 = vsel %vm2571_vm7, %v13963_v27, %v6134_v8  ;;  %v6178_v5 = vsel %vm2571_vm7, %v6134_v8, %v6136_v51  ;;  %v7225_v45 = vld [vmem:[#allocation4 + $0x17b8] sm:$0xff]  ;;  %v7224_v14 = vld [vmem:[#allocation4 + $0x17b0] sm:$0xff] }
 0x795   : > { %6241 = vst [vmem:[#allocation4 + $0x19a0] sm:$0xf] %v6177_v41  ;;  %6242 = vst [vmem:[#allocation4 + $0x19a8] sm:$0xf] %v6178_v5  ;;  %v9898_v22 = vpack.c.bf16 %v7225_v45, %v7193_v7  ;;  %v9900_v35 = vpack.c.bf16 %v7224_v14, %v7192_v29  ;;  %v6491_v5 = vld [vmem:[#allocation4 + $0xc8] sm:$0xff]  ;;  %v6490_v29 = vld [vmem:[#allocation4 + $0xc0] sm:$0xff] }
 0x796   : > { %v6523_v45 = vld [vmem:[#allocation4 + $0x1c8] sm:$0xff] }
 0x797   : > { %3935 = vrot.lane.b32.xlu1 %v14218_v46, %s10252_s29  ;;  %3933 = vrot.lane.b32.xlu0 %v14197_v43, %s10252_s29  ;;  %v14391_v53 = vpop.permute.xlu1 %5927  ;;  %v5926_v3 = vpop.permute.xlu0 %5925 }
 0x798   : > { %9899 = vmatprep.subr.bf16.mxu1 %v9898_v22  ;;  %v5967_v27 = vsel %vm2358_vm6, %v5924_v55, %v5926_v3  ;;  %v5968_v42 = vsel %vm2358_vm6, %v5926_v3, %v14391_v53  ;;  %v7255_v25 = vld [vmem:[#allocation4 + $0x18a8] sm:$0xff]  ;;  %v7254_v36 = vld [vmem:[#allocation4 + $0x18a0] sm:$0xff] }
 0x799   : > { %9901 = vmatpush1.bf16.msra.mxu1 %v9900_v35  ;;  %6031 = vst [vmem:[#allocation4 + $0x18b0] sm:$0xf] %v5967_v27  ;;  %6032 = vst [vmem:[#allocation4 + $0x18b8] sm:$0xf] %v5968_v42  ;;  %v6522_v27 = vld [vmem:[#allocation4 + $0x1c0] sm:$0xff]  ;;  %v9906_v42 = vpack.c.bf16 %v6523_v45, %v6491_v5  ;;  %v6619_v45 = vld [vmem:[#allocation4 + $0x4c8] sm:$0xff] }
 0x79b   : > { %4147 = vrot.lane.b32.xlu1 %v14218_v46, %s10253_s30  ;;  %4145 = vrot.lane.b32.xlu0 %v14197_v43, %s10253_s30  ;;  %v14404_v57 = vpop.permute.xlu1 %6139  ;;  %v6138_v62 = vpop.permute.xlu0 %6137 }
 0x79c   : > { %v6179_v24 = vsel %vm2571_vm7, %v6136_v51, %v6138_v62  ;;  %v6180_v2 = vsel %vm2571_vm7, %v6138_v62, %v14404_v57  ;;  %v7287_v63 = vld [vmem:[#allocation4 + $0x19a8] sm:$0xff]  ;;  %v7286_v13 = vld [vmem:[#allocation4 + $0x19a0] sm:$0xff] }
 0x79d   : > { %6243 = vst [vmem:[#allocation4 + $0x19b0] sm:$0xf] %v6179_v24  ;;  %6244 = vst [vmem:[#allocation4 + $0x19b8] sm:$0xf] %v6180_v2  ;;  %v9850_v20 = vpack.c.bf16 %v7287_v63, %v7255_v25  ;;  %v9852_v37 = vpack.c.bf16 %v7286_v13, %v7254_v36  ;;  %v6587_v62 = vld [vmem:[#allocation4 + $0x3c8] sm:$0xff]  ;;  %v6524_v25 = vld [vmem:[#allocation4 + $0x1d0] sm:$0xff]  ;;  %v9908_v63 = vpack.c.bf16 %v6522_v27, %v6490_v29 }
 0x79e   : > { %v4265_v36 = vld [vmem:[%s10303_s24 + $0x88] sm:$0xf]  ;;  %v6555_v13 = vld [vmem:[#allocation4 + $0x2c8] sm:$0xff] }
 0x79f   : > { %3939 = vrot.lane.b32.xlu1 %v3841_v39, %s10252_s29  ;;  %3937 = vrot.lane.b32.xlu0 %v14398_v11, %s10252_s29  ;;  %v6348_v1 = vpop.permute.xlu1 %6347  ;;  %v6346_v9 = vpop.permute.xlu0 %6345  ;;  %v6493_v39 = vld [vmem:[#allocation4 + $0xd8] sm:$0xff]  ;;  %v6650_v29 = vld [vmem:[#allocation4 + $0x5c0] sm:$0xff]  ;;  %v6715_v27 = vld [vmem:[#allocation4 + $0x7c8] sm:$0xff] }
 0x7a0   : > { %9851 = vmatprep.subr.bf16.mxu0 %v9850_v20  ;;  %v6389_v34 = vsel %vm2784_vm8, %v15175_v49, %v6346_v9  ;;  %v6390_v23 = vsel %vm2784_vm8, %v6346_v9, %v6348_v1  ;;  %v7257_v15 = vld [vmem:[#allocation4 + $0x18b8] sm:$0xff]  ;;  %v7256_v32 = vld [vmem:[#allocation4 + $0x18b0] sm:$0xff]  ;;  %v9910_v49 = vpack.c.bf16 %v6587_v62, %v6555_v13 }
 0x7a1   : > { %9853 = vmatpush1.bf16.msra.mxu0 %v9852_v37  ;;  %6453 = vst [vmem:[#allocation4 + $0x1aa0] sm:$0xf] %v6389_v34  ;;  %6454 = vst [vmem:[#allocation4 + $0x1aa8] sm:$0xf] %v6390_v23  ;;  %v6525_v20 = vld [vmem:[#allocation4 + $0x1d8] sm:$0xff]  ;;  %v6554_v23 = vld [vmem:[#allocation4 + $0x2c0] sm:$0xff] }
 0x7a2   : > { %v14446_v37 = vld [vmem:[%s15156_s1] sm:$0xff]  ;;  %v9958_v34 = vpack.c.bf16 %v6525_v20, %v6493_v39  ;;  %v6683_v20 = vld [vmem:[#allocation4 + $0x6c8] sm:$0xff] }
 0x7a3   : > { %4151 = vrot.lane.b32.xlu1 %v4053_v50, %s10253_s30  ;;  %4149 = vrot.lane.b32.xlu0 %v14398_v11, %s10253_s30  ;;  %v14420_v30 = vpop.permute.xlu1 %6351  ;;  %v6350_v18 = vpop.permute.xlu0 %6349  ;;  %v6586_v50 = vld [vmem:[#allocation4 + $0x3c0] sm:$0xff] }
 0x7a4   : > { %v6391_v0 = vsel %vm2784_vm8, %v6348_v1, %v6350_v18  ;;  %v6392_v55 = vsel %vm2784_vm8, %v6350_v18, %v14420_v30  ;;  %v7289_v33 = vld [vmem:[#allocation4 + $0x19b8] sm:$0xff]  ;;  %v7288_v40 = vld [vmem:[#allocation4 + $0x19b0] sm:$0xff]  ;;  %v6651_v18 = vld [vmem:[#allocation4 + $0x5c8] sm:$0xff] }
 0x7a5   : > { %6455 = vst [vmem:[#allocation4 + $0x1ab0] sm:$0xf] %v6391_v0  ;;  %6456 = vst [vmem:[#allocation4 + $0x1ab8] sm:$0xf] %v6392_v55  ;;  %v9902_v51 = vpack.c.bf16 %v7289_v33, %v7257_v15  ;;  %v9904_v8 = vpack.c.bf16 %v7288_v40, %v7256_v32  ;;  %v6589_v15 = vld [vmem:[#allocation4 + $0x3d8] sm:$0xff]  ;;  %v9912_v32 = vpack.c.bf16 %v6586_v50, %v6554_v23  ;;  %v6620_v50 = vld [vmem:[#allocation4 + $0x4d0] sm:$0xff] }
 0x7a6   : > { %v6717_v23 = vld [vmem:[#allocation4 + $0x7d8] sm:$0xff] }
 0x7a7   : > { %4359 = vrot.lane.b32.xlu1 %v14218_v46, %s10254_s6  ;;  %4357 = vrot.lane.b32.xlu0 %v14197_v43, %s10254_s6  ;;  %v3928_v7 = vpop.permute.xlu1 %3927  ;;  %v3926_v41 = vpop.permute.xlu0 %3925 }
 0x7a8   : > { %9903 = vmatprep.subr.bf16.mxu1 %v9902_v51  ;;  %v3965_v14 = vsel %vm2145_vm5, %v14138_v26, %v3926_v41  ;;  %v3966_v22 = vsel %vm2145_vm5, %v3926_v41, %v3928_v7  ;;  %v7319_v35 = vld [vmem:[#allocation4 + $0x1aa8] sm:$0xff]  ;;  %v7318_v3 = vld [vmem:[#allocation4 + $0x1aa0] sm:$0xff]  ;;  %v6492_v26 = vld [vmem:[#allocation4 + $0xd0] sm:$0xff] }
 0x7a9   : > { %9905 = vmatpush1.bf16.msra.mxu1 %v9904_v8  ;;  %4029 = vst [vmem:[#allocation4 + $0xec0] sm:$0xf] %v3965_v14  ;;  %4030 = vst [vmem:[#allocation4 + $0xec8] sm:$0xf] %v3966_v22  ;;  %8097 = vmatprep.subr.mxu0 %v7319_v35  ;;  %v9960_v40 = vpack.c.bf16 %v6524_v25, %v6492_v26  ;;  %v4477_v51 = vld [vmem:[%s10303_s24 + $0x88] sm:$0xf]  ;;  %v9914_v22 = vpack.c.bf16 %v6651_v18, %v6619_v45 }
 0x7aa   : > { %8098 = vmatpush1.msra.mxu0 %v7318_v3  ;;  %v6557_v8 = vld [vmem:[#allocation4 + $0x2d8] sm:$0xff]  ;;  %v6588_v14 = vld [vmem:[#allocation4 + $0x3d0] sm:$0xff] }
 0x7ab   : > { %4571 = vrot.lane.b32.xlu1 %v14218_v46, %s10255_s7  ;;  %4569 = vrot.lane.b32.xlu0 %v14197_v43, %s10255_s7  ;;  %v14436_v24 = vpop.permute.xlu1 %4139  ;;  %v4138_v2 = vpop.permute.xlu0 %4137  ;;  %v9962_v35 = vpack.c.bf16 %v6589_v15, %v6557_v8  ;;  %v6556_v3 = vld [vmem:[#allocation4 + $0x2d0] sm:$0xff] }
 0x7ac   : > { %v4177_v46 = vsel %vm2358_vm6, %v14184_v28, %v4138_v2  ;;  %v4178_v43 = vsel %vm2358_vm6, %v4138_v2, %v14436_v24  ;;  %8110 = vmatmul.mubr.f32.vlgmr.msra.gmra.mrb[10].mxu0 %v14446_v37  ;;  %9907 = vmatprep.subr.bf16.mxu0 %v9906_v42  ;;  %v7321_v1 = vld [vmem:[#allocation4 + $0x1ab8] sm:$0xff]  ;;  %v7320_v9 = vld [vmem:[#allocation4 + $0x1ab0] sm:$0xff]  ;;  %v4688_v28 = vld [vmem:[%s10303_s24 + $0x88] sm:$0xff]  ;;  %v9964_v25 = vpack.c.bf16 %v6588_v14, %v6556_v3 }
 0x7ad   : > { %4241 = vst [vmem:[#allocation4 + $0xfc0] sm:$0xf] %v4177_v46  ;;  %4242 = vst [vmem:[#allocation4 + $0xfc8] sm:$0xf] %v4178_v43  ;;  %9909 = vmatpush1.bf16.msra.mxu0 %v9908_v63  ;;  %8168 = vmatprep.subr.mxu1 %v7321_v1  ;;  %v4720_v0 = vcombine.high %v4688_v28, %v4688_v28  ;;  %v6653_v42 = vld [vmem:[#allocation4 + $0x5d8] sm:$0xff]  ;;  %v14466_v2 = vld [vmem:[%s10303_s24 + $0x88] sm:$0xff]  ;;  %v9918_v1 = vpack.c.bf16 %v6715_v27, %v6683_v20 }
 0x7ae   : > { %4767 = vst [vmem:[#allocation4 + $0x12f0] sm:$0xf] %v4688_v28  ;;  %9911 = vmatprep.subr.bf16.mxu0 %v9910_v49  ;;  %8169 = vmatpush1.msra.mxu1 %v7320_v9  ;;  %v6621_v63 = vld [vmem:[#allocation4 + $0x4d8] sm:$0xff]  ;;  %v6714_v46 = vld [vmem:[#allocation4 + $0x7c0] sm:$0xff]  ;;  %v6652_v43 = vld [vmem:[#allocation4 + $0x5d0] sm:$0xff]  ;;  %v14478_v49 = vcombine.high %v14466_v2, %v14466_v2 }
 0x7af   : > { %4363 = vrot.lane.b32.xlu1 %v4265_v36, %s10254_s6  ;;  %4361 = vrot.lane.b32.xlu0 %v14398_v11, %s10254_s6  ;;  %v14453_v55 = vpop.permute.xlu1 %3931  ;;  %v3930_v33 = vpop.permute.xlu0 %3929  ;;  %4768 = vst [vmem:[#allocation4 + $0x12f8] sm:$0xf] %v4720_v0  ;;  %v9966_v9 = vpack.c.bf16 %v6653_v42, %v6621_v63  ;;  %v6747_v28 = vld [vmem:[#allocation4 + $0x8c8] sm:$0xff]  ;;  %v6716_v45 = vld [vmem:[#allocation4 + $0x7d0] sm:$0xff]  ;;  %v6781_v3 = vld [vmem:[#allocation4 + $0x9d8] sm:$0xff] }
 0x7b0   : > { %v3967_v41 = vsel %vm2145_vm5, %v3928_v7, %v3930_v33  ;;  %v3968_v5 = vsel %vm2145_vm5, %v3930_v33, %v14453_v55  ;;  %8181 = vmatmul.mubr.f32.vlgmr.msra.gmra.mrb[10].mxu1 %v14446_v37  ;;  %9959 = vmatprep.subr.bf16.mxu1 %v9958_v34  ;;  %v6618_v7 = vld [vmem:[#allocation4 + $0x4c0] sm:$0xff]  ;;  %v6779_v34 = vld [vmem:[#allocation4 + $0x9c8] sm:$0xff]  ;;  %v9968_v33 = vpack.c.bf16 %v6652_v43, %v6620_v50  ;;  %v6748_v20 = vld [vmem:[#allocation4 + $0x8d0] sm:$0xff] }
 0x7b1   : > { %4031 = vst [vmem:[#allocation4 + $0xed0] sm:$0xf] %v3967_v41  ;;  %4032 = vst [vmem:[#allocation4 + $0xed8] sm:$0xf] %v3968_v5  ;;  %9913 = vmatpush1.bf16.msra.mxu0 %v9912_v32  ;;  %9961 = vmatpush1.bf16.msra.mxu1 %v9960_v40  ;;  %v9916_v26 = vpack.c.bf16 %v6650_v29, %v6618_v7  ;;  %v4785_v32 = vld [vmem:[%s10303_s24 + $0x90] sm:$0xf]  ;;  %v9922_v29 = vpack.c.bf16 %v6779_v34, %v6747_v28 }
 0x7b2   : > { %9915 = vmatprep.subr.bf16.mxu0 %v9914_v22  ;;  %9963 = vmatprep.subr.bf16.mxu1 %v9962_v35  ;;  %v6685_v40 = vld [vmem:[#allocation4 + $0x6d8] sm:$0xff]  ;;  %v6746_v41 = vld [vmem:[#allocation4 + $0x8c0] sm:$0xff]  ;;  %v6684_v22 = vld [vmem:[#allocation4 + $0x6d0] sm:$0xff] }
 0x7b3   : > { %4575 = vrot.lane.b32.xlu1 %v4477_v51, %s10255_s7  ;;  %4573 = vrot.lane.b32.xlu0 %v14398_v11, %s10255_s7  ;;  %v14463_v62 = vpop.permute.xlu1 %4143  ;;  %v4142_v39 = vpop.permute.xlu0 %4141  ;;  %v6778_v5 = vld [vmem:[#allocation4 + $0x9c0] sm:$0xff]  ;;  %v9970_v14 = vpack.c.bf16 %v6717_v23, %v6685_v40  ;;  %v6843_v35 = vld [vmem:[#allocation4 + $0xbc8] sm:$0xff] }
 0x7b4   : > { %v4179_v36 = vsel %vm2358_vm6, %v14436_v24, %v4142_v39  ;;  %v4180_v13 = vsel %vm2358_vm6, %v4142_v39, %v14463_v62  ;;  %9240 = vmatprep.mubr.msk.f32.mxu0 %vm7332_vm9, %v12951_v19  ;;  %9241 = vmatprep.mubr.msk.f32.mxu1 %vm7332_vm9, %v12951_v19  ;;  %v6682_v24 = vld [vmem:[#allocation4 + $0x6c0] sm:$0xff]  ;;  %v9924_v42 = vpack.c.bf16 %v6778_v5, %v6746_v41  ;;  %v6875_v40 = vld [vmem:[#allocation4 + $0xcc8] sm:$0xff]  ;;  %v14508_v41 = vld [vmem:[#allocation4 + $0xdd0] sm:$0xff] }
 0x7b5   : > { %4243 = vst [vmem:[#allocation4 + $0xfd0] sm:$0xf] %v4179_v36  ;;  %4244 = vst [vmem:[#allocation4 + $0xfd8] sm:$0xf] %v4180_v13  ;;  %9917 = vmatpush1.bf16.msra.mxu0 %v9916_v26  ;;  %9965 = vmatpush1.bf16.msra.mxu1 %v9964_v25  ;;  %v9920_v0 = vpack.c.bf16 %v6714_v46, %v6682_v24  ;;  %v9972_v39 = vpack.c.bf16 %v6716_v45, %v6684_v22  ;;  %v6780_v26 = vld [vmem:[#allocation4 + $0x9d0] sm:$0xff]  ;;  %v6811_v36 = vld [vmem:[#allocation4 + $0xac8] sm:$0xff] }
 0x7b6   : > { %9919 = vmatprep.subr.bf16.mxu0 %v9918_v1  ;;  %9967 = vmatprep.subr.bf16.mxu1 %v9966_v9  ;;  %v6842_v13 = vld [vmem:[#allocation4 + $0xbc0] sm:$0xff]  ;;  %v9926_v46 = vpack.c.bf16 %v6843_v35, %v6811_v36  ;;  %v6845_v1 = vld [vmem:[#allocation4 + $0xbd8] sm:$0xff]  ;;  %v6907_v9 = vld [vmem:[#allocation4 + $0xdc8] sm:$0xff]  ;;  %v9976_v34 = vpack.c.bf16 %v6780_v26, %v6748_v20  ;;  %v8617_v5 = vrot.slane %v14267_v58, %v14133_v48 }
 0x7b7   : > { %4879 = vrot.lane.b32.xlu1 %v14466_v2, %s10248_s25  ;;  %4877 = vrot.lane.b32.xlu0 %v14398_v11, %s10248_s25  ;;  %v14484_v18 = vpop.permute.xlu1 %4351  ;;  %v4350_v15 = vpop.permute.xlu0 %4349  ;;  %v6813_v24 = vld [vmem:[#allocation4 + $0xad8] sm:$0xff]  ;;  %v6906_v23 = vld [vmem:[#allocation4 + $0xdc0] sm:$0xff]  ;;  %v6971_v35 = vld [vmem:[#allocation4 + $0xfc8] sm:$0xff] }
 0x7b8   : > { %v4389_v51 = vsel %vm2571_vm7, %v14249_v31, %v4350_v15  ;;  %v4390_v8 = vsel %vm2571_vm7, %v4350_v15, %v14484_v18  ;;  %v6749_v31 = vld [vmem:[#allocation4 + $0x8d8] sm:$0xff]  ;;  %v6844_v15 = vld [vmem:[#allocation4 + $0xbd0] sm:$0xff]  ;;  %v6874_v22 = vld [vmem:[#allocation4 + $0xcc0] sm:$0xff] }
 0x7b9   : > { %4453 = vst [vmem:[#allocation4 + $0x10c0] sm:$0xf] %v4389_v51  ;;  %4454 = vst [vmem:[#allocation4 + $0x10c8] sm:$0xf] %v4390_v8  ;;  %9921 = vmatpush1.bf16.msra.mxu0 %v9920_v0  ;;  %9969 = vmatpush1.bf16.msra.mxu1 %v9968_v33  ;;  %v9974_v43 = vpack.c.bf16 %v6781_v3, %v6749_v31  ;;  %v6909_v0 = vld [vmem:[#allocation4 + $0xdd8] sm:$0xff]  ;;  %v8613_v33 = vrot.slane %v14267_v58, %v14103_v6  ;;  %v6812_v8 = vld [vmem:[#allocation4 + $0xad0] sm:$0xff] }
 0x7ba   : > { %9923 = vmatprep.subr.bf16.mxu0 %v9922_v29  ;;  %9971 = vmatprep.subr.bf16.mxu1 %v9970_v14  ;;  %v9978_v51 = vpack.c.bf16 %v6845_v1, %v6813_v24  ;;  %v9930_v14 = vpack.c.bf16 %v6907_v9, %v6875_v40  ;;  %v6877_v31 = vld [vmem:[#allocation4 + $0xcd8] sm:$0xff]  ;;  %v9932_v3 = vpack.c.bf16 %v6906_v23, %v6874_v22  ;;  %v6938_v24 = vld [vmem:[#allocation4 + $0xec0] sm:$0xff] }
 0x7bb   : > { %4883 = vrot.lane.b32.xlu1 %v4785_v32, %s10248_s25  ;;  %4881 = vrot.lane.b32.xlu0 %v14478_v49, %s10248_s25  ;;  %v14494_v7 = vpop.permute.xlu1 %4563  ;;  %v4562_v27 = vpop.permute.xlu0 %4561  ;;  %v6941_v40 = vld [vmem:[#allocation4 + $0xed8] sm:$0xff] }
 0x7bc   : > { %v4601_v25 = vsel %vm2784_vm8, %v14259_v12, %v4562_v27  ;;  %v4602_v63 = vsel %vm2784_vm8, %v4562_v27, %v14494_v7  ;;  %v6810_v12 = vld [vmem:[#allocation4 + $0xac0] sm:$0xff]  ;;  %v9982_v27 = vpack.c.bf16 %v6909_v0, %v6877_v31  ;;  %v6972_v22 = vld [vmem:[#allocation4 + $0xfd0] sm:$0xff] }
 0x7bd   : > { %4665 = vst [vmem:[#allocation4 + $0x11c0] sm:$0xf] %v4601_v25  ;;  %4666 = vst [vmem:[#allocation4 + $0x11c8] sm:$0xf] %v4602_v63  ;;  %9925 = vmatpush1.bf16.msra.mxu0 %v9924_v42  ;;  %9973 = vmatpush1.bf16.msra.mxu1 %v9972_v39  ;;  %v9928_v28 = vpack.c.bf16 %v6842_v13, %v6810_v12  ;;  %v6970_v42 = vld [vmem:[#allocation4 + $0xfc0] sm:$0xff]  ;;  %v6876_v39 = vld [vmem:[#allocation4 + $0xcd0] sm:$0xff] }
 0x7be   : > { %9927 = vmatprep.subr.bf16.mxu0 %v9926_v46  ;;  %9975 = vmatprep.subr.bf16.mxu1 %v9974_v43  ;;  %v4997_v25 = vld [vmem:[%s10303_s24 + $0x90] sm:$0xf]  ;;  %v9984_v36 = vpack.c.bf16 %v14508_v41, %v6876_v39  ;;  %v14522_v13 = vld [vmem:[#allocation4 + $0xfd8] sm:$0xff]  ;;  %v8621_v43 = vrot.slane %v14267_v58, %v14153_v60 }
 0x7bf   : > { %5091 = vrot.lane.b32.xlu1 %v14466_v2, %s10249_s26  ;;  %5089 = vrot.lane.b32.xlu0 %v14398_v11, %s10249_s26  ;;  %v14504_v50 = vpop.permute.xlu1 %4355  ;;  %v6939_v63 = vld [vmem:[#allocation4 + $0xec8] sm:$0xff] }
 0x7c0   : > { %v4354_v32 = vpop.permute.xlu0 %4353  ;;  %v9934_v9 = vpack.c.bf16 %v6971_v35, %v6939_v63 }
 0x7c1   : > { %v4391_v45 = vsel %vm2571_vm7, %v14484_v18, %v4354_v32  ;;  %v4392_v29 = vsel %vm2571_vm7, %v4354_v32, %v14504_v50  ;;  %9929 = vmatpush1.bf16.msra.mxu0 %v9928_v28  ;;  %9977 = vmatpush1.bf16.msra.mxu1 %v9976_v34  ;;  %v9980_v18 = vpack.c.bf16 %v6844_v15, %v6812_v8  ;;  %v7827_v26 = vpop.f32.mrb[6].mxu0 }
 0x7c2   : > { %4455 = vst [vmem:[#allocation4 + $0x10d0] sm:$0xf] %v4391_v45  ;;  %4456 = vst [vmem:[#allocation4 + $0x10d8] sm:$0xf] %v4392_v29  ;;  %9931 = vmatprep.subr.bf16.mxu0 %v9930_v14  ;;  %9979 = vmatprep.subr.bf16.mxu1 %v9978_v51  ;;  %v8734_v20 = vmul.f32 %v8613_v33, %v7827_v26  ;;  %v7829_v46 = vpop.f32.mrb[7].mxu0  ;;  %v8625_v15 = vrot.slane %v14267_v58, %v14176_v4  ;;  %v7003_v58 = vld [vmem:[#allocation4 + $0x10c8] sm:$0xff] }
 0x7c3   : > { %5303 = vrot.lane.b32.xlu1 %v14466_v2, %s10250_s27  ;;  %5301 = vrot.lane.b32.xlu0 %v14398_v11, %s10250_s27  ;;  %v8509_v34 = vcombine.low %v7827_v26, %v7829_v46  ;;  %v8735_v23 = vmul.f32 %v8617_v5, %v7829_v46  ;;  %v9936_v32 = vpack.c.bf16 %v6970_v42, %v6938_v24  ;;  %v5209_v29 = vld [vmem:[%s10303_s24 + $0x90] sm:$0xf] }
 0x7c4   : > { %v14526_v1 = vpop.permute.xlu1 %4567  ;;  %v7035_v28 = vld [vmem:[#allocation4 + $0x11c8] sm:$0xff]  ;;  %v8779_v51 = vsel %vm8755_vm10, %v8734_v20, 0.0  ;;  %v8837_v41 = vmul.f32 %v8734_v20, %v8734_v20  ;;  %v7034_v39 = vld [vmem:[#allocation4 + $0x11c0] sm:$0xff]  ;;  %v6940_v20 = vld [vmem:[#allocation4 + $0xed0] sm:$0xff] }
 0x7c5   : > { %v4566_v12 = vpop.permute.xlu0 %4565  ;;  %9933 = vmatpush1.bf16.msra.mxu0 %v9932_v3  ;;  %9981 = vmatpush1.bf16.msra.mxu1 %v9980_v18  ;;  %v8780_v8 = vadd.f32 %v8779_v51, %v14322_v38  ;;  %8544 = vst [vmem:[%s14088_s21 + $0x30] sm:$0xff] %v8509_v34  ;;  %v8781_v5 = vsel %vm8755_vm10, %v8735_v23, 0.0  ;;  %v9938_v14 = vpack.c.bf16 %v7035_v28, %v7003_v58 }
 0x7c6   : > { %v4603_v0 = vsel %vm2784_vm8, %v14494_v7, %v4566_v12  ;;  %v4604_v33 = vsel %vm2784_vm8, %v4566_v12, %v14526_v1  ;;  %v9986_v7 = vpack.c.bf16 %v14522_v13, %v6941_v40  ;;  %v7898_v45 = vpop.f32.mrb[6].mxu1  ;;  %9935 = vmatprep.subr.bf16.mxu0 %v9934_v9  ;;  %9983 = vmatprep.subr.bf16.mxu1 %v9982_v27  ;;  %v8880_v26 = vsel %vm8755_vm10, %v8837_v41, 0.0  ;;  %v7002_v12 = vld [vmem:[#allocation4 + $0x10c0] sm:$0xff] }
 0x7c7   : > { %4667 = vst [vmem:[#allocation4 + $0x11d0] sm:$0xf] %v4603_v0  ;;  %4668 = vst [vmem:[#allocation4 + $0x11d8] sm:$0xf] %v4604_v33  ;;  %5095 = vrot.lane.b32.xlu1 %v4997_v25, %s10249_s26  ;;  %5093 = vrot.lane.b32.xlu0 %v14478_v49, %s10249_s26  ;;  %v8838_v35 = vmul.f32 %v8735_v23, %v8735_v23  ;;  %v8736_v31 = vmul.f32 %v8621_v43, %v7898_v45  ;;  %v7900_v3 = vpop.f32.mrb[7].mxu1 }
 0x7c8   : > { %v8782_v25 = vadd.f32 %v8781_v5, %v8780_v8  ;;  %v8510_v38 = vcombine.low %v7898_v45, %v7900_v3  ;;  %v8737_v63 = vmul.f32 %v8625_v15, %v7900_v3  ;;  %v8881_v46 = vadd.f32 %v8880_v26, %v14330_v17 }
 0x7c9   : > { %v4872_v18 = vpop.permute.xlu1 %4871  ;;  %v4870_v42 = vpop.permute.xlu0 %4869  ;;  %9937 = vmatpush1.bf16.msra.mxu0 %v9936_v32  ;;  %9985 = vmatpush1.bf16.msra.mxu1 %v9984_v36  ;;  %v8882_v43 = vsel %vm8755_vm10, %v8838_v35, 0.0  ;;  %v9988_v9 = vpack.c.bf16 %v6972_v22, %v6940_v20  ;;  %v8839_v24 = vmul.f32 %v8736_v31, %v8736_v31  ;;  %v9940_v36 = vpack.c.bf16 %v7034_v39, %v7002_v12  ;;  %v7005_v33 = vld [vmem:[#allocation4 + $0x10d8] sm:$0xff]  ;;  %v7004_v8 = vld [vmem:[#allocation4 + $0x10d0] sm:$0xff]  ;;  %v7067_v22 = vld [vmem:[#allocation4 + $0x12c8] sm:$0xff] }
 0x7ca   : > { %v4909_v13 = vsel %vm1293_vm1, %v14286_v56, %v4870_v42  ;;  %v4910_v27 = vsel %vm1293_vm1, %v4870_v42, %v4872_v18  ;;  %v8783_v56 = vsel %vm8755_vm10, %v8736_v31, 0.0  ;;  %8545 = vst [vmem:[%s14088_s21 + $0x38] sm:$0xff] %v8510_v38  ;;  %v8840_v28 = vmul.f32 %v8737_v63, %v8737_v63  ;;  %9939 = vmatprep.subr.bf16.mxu0 %v9938_v14  ;;  %v7066_v35 = vld [vmem:[#allocation4 + $0x12c0] sm:$0xff]  ;;  %v7068_v20 = vld [vmem:[#allocation4 + $0x12d0] sm:$0xff] }
 0x7cb   : > { %4973 = vst [vmem:[#allocation4 + $0x13c0] sm:$0xf] %v4909_v13  ;;  %4974 = vst [vmem:[#allocation4 + $0x13c8] sm:$0xf] %v4910_v27  ;;  %5307 = vrot.lane.b32.xlu1 %v5209_v29, %s10250_s27  ;;  %5305 = vrot.lane.b32.xlu0 %v14478_v49, %s10250_s27  ;;  %v8883_v17 = vadd.f32 %v8882_v43, %v8881_v46  ;;  %v8784_v34 = vadd.f32 %v8783_v56, %v8782_v25  ;;  %v8785_v23 = vsel %vm8755_vm10, %v8737_v63, 0.0  ;;  %v7069_v27 = vld [vmem:[#allocation4 + $0x12d8] sm:$0xff] }
 0x7cc   : > { %9987 = vmatprep.subr.bf16.mxu1 %v9986_v7  ;;  %v8884_v32 = vsel %vm8755_vm10, %v8839_v24, 0.0  ;;  %v8886_v40 = vsel %vm8755_vm10, %v8840_v28, 0.0  ;;  %v5421_v13 = vld [vmem:[%s10303_s24 + $0x90] sm:$0xf] }
 0x7cd   : > { %v14555_v15 = vpop.permute.xlu1 %4875  ;;  %v4874_v0 = vpop.permute.xlu0 %4873  ;;  %9941 = vmatpush1.bf16.msra.mxu0 %v9940_v36  ;;  %9989 = vmatpush1.bf16.msra.mxu1 %v9988_v9  ;;  %v8885_v5 = vadd.f32 %v8884_v32, %v8883_v17  ;;  %v14566_v14 = vadd.f32 %v8785_v23, %v8784_v34  ;;  %v5633_v36 = vld [vmem:[%s10303_s24 + $0x90] sm:$0xf] }
 0x7ce   : > { %v4911_v51 = vsel %vm1293_vm1, %v4872_v18, %v4874_v0  ;;  %v4912_v58 = vsel %vm1293_vm1, %v4874_v0, %v14555_v15  ;;  %v7037_v7 = vld [vmem:[#allocation4 + $0x11d8] sm:$0xff]  ;;  %v7036_v41 = vld [vmem:[#allocation4 + $0x11d0] sm:$0xff] }
 0x7cf   : > { %4975 = vst [vmem:[#allocation4 + $0x13d0] sm:$0xf] %v4911_v51  ;;  %4976 = vst [vmem:[#allocation4 + $0x13d8] sm:$0xf] %v4912_v58  ;;  %5515 = vrot.lane.b32.xlu1 %v14466_v2, %s10251_s28  ;;  %5513 = vrot.lane.b32.xlu0 %v14398_v11, %s10251_s28  ;;  %v9990_v45 = vpack.c.bf16 %v7037_v7, %v7005_v33  ;;  %v9992_v29 = vpack.c.bf16 %v7036_v41, %v7004_v8 }
 0x7d0   : > { %v14568_v31 = vadd.f32 %v8886_v40, %v8885_v5 }
 0x7d1   : > { %v5084_v3 = vpop.permute.xlu1 %5083  ;;  %v5082_v18 = vpop.permute.xlu0 %5081  ;;  %9991 = vmatprep.subr.bf16.mxu1 %v9990_v45 }
 0x7d2   : > { %v5121_v42 = vsel %vm1506_vm2, %v14324_v54, %v5082_v18  ;;  %v5122_v39 = vsel %vm1506_vm2, %v5082_v18, %v5084_v3  ;;  %9993 = vmatpush1.bf16.msra.mxu1 %v9992_v29  ;;  %v7099_v26 = vld [vmem:[#allocation4 + $0x13c8] sm:$0xff]  ;;  %v7098_v25 = vld [vmem:[#allocation4 + $0x13c0] sm:$0xff] }
 0x7d3   : > { %5185 = vst [vmem:[#allocation4 + $0x14c0] sm:$0xf] %v5121_v42  ;;  %5186 = vst [vmem:[#allocation4 + $0x14c8] sm:$0xf] %v5122_v39  ;;  %5727 = vrot.lane.b32.xlu1 %v14466_v2, %s10252_s29  ;;  %5725 = vrot.lane.b32.xlu0 %v14398_v11, %s10252_s29  ;;  %v9942_v38 = vpack.c.bf16 %v7099_v26, %v7067_v22  ;;  %v9944_v63 = vpack.c.bf16 %v7098_v25, %v7066_v35 }
 0x7d5   : > { %v5296_v54 = vpop.permute.xlu1 %5295  ;;  %v5294_v46 = vpop.permute.xlu0 %5293  ;;  %9943 = vmatprep.subr.bf16.mxu0 %v9942_v38 }
 0x7d6   : > { %v5333_v43 = vsel %vm1719_vm3, %v14336_v44, %v5294_v46  ;;  %v5334_v12 = vsel %vm1719_vm3, %v5294_v46, %v5296_v54  ;;  %9945 = vmatpush1.bf16.msra.mxu0 %v9944_v63  ;;  %v7101_v9 = vld [vmem:[#allocation4 + $0x13d8] sm:$0xff]  ;;  %v7100_v56 = vld [vmem:[#allocation4 + $0x13d0] sm:$0xff] }
 0x7d7   : > { %5397 = vst [vmem:[#allocation4 + $0x15c0] sm:$0xf] %v5333_v43  ;;  %5398 = vst [vmem:[#allocation4 + $0x15c8] sm:$0xf] %v5334_v12  ;;  %5519 = vrot.lane.b32.xlu1 %v5421_v13, %s10251_s28  ;;  %5517 = vrot.lane.b32.xlu0 %v14478_v49, %s10251_s28  ;;  %v9994_v24 = vpack.c.bf16 %v7101_v9, %v7069_v27  ;;  %v9996_v28 = vpack.c.bf16 %v7100_v56, %v7068_v20  ;;  %v6057_v20 = vld [vmem:[%s10303_s24 + $0x90] sm:$0xf] }
 0x7d9   : > { %v14585_v17 = vpop.permute.xlu1 %5087  ;;  %v5086_v34 = vpop.permute.xlu0 %5085  ;;  %9995 = vmatprep.subr.bf16.mxu1 %v9994_v24 }
 0x7da   : > { %v5123_v44 = vsel %vm1506_vm2, %v5084_v3, %v5086_v34  ;;  %v5124_v23 = vsel %vm1506_vm2, %v5086_v34, %v14585_v17  ;;  %9997 = vmatpush1.bf16.msra.mxu1 %v9996_v28  ;;  %v7131_v32 = vld [vmem:[#allocation4 + $0x14c8] sm:$0xff]  ;;  %v7130_v7 = vld [vmem:[#allocation4 + $0x14c0] sm:$0xff] }
 0x7db   : > { %5187 = vst [vmem:[#allocation4 + $0x14d0] sm:$0xf] %v5123_v44  ;;  %5188 = vst [vmem:[#allocation4 + $0x14d8] sm:$0xf] %v5124_v23  ;;  %5731 = vrot.lane.b32.xlu1 %v5633_v36, %s10252_s29  ;;  %5729 = vrot.lane.b32.xlu0 %v14478_v49, %s10252_s29  ;;  %v5845_v3 = vld [vmem:[%s10303_s24 + $0x90] sm:$0xf] }
 0x7dd   : > { %v14593_v0 = vpop.permute.xlu1 %5299  ;;  %v5298_v33 = vpop.permute.xlu0 %5297 }
 0x7de   : > { %v5335_v40 = vsel %vm1719_vm3, %v5296_v54, %v5298_v33  ;;  %v5336_v51 = vsel %vm1719_vm3, %v5298_v33, %v14593_v0  ;;  %v7163_v58 = vld [vmem:[#allocation4 + $0x15c8] sm:$0xff]  ;;  %v7162_v8 = vld [vmem:[#allocation4 + $0x15c0] sm:$0xff] }
 0x7df   : > { %5399 = vst [vmem:[#allocation4 + $0x15d0] sm:$0xf] %v5335_v40  ;;  %5400 = vst [vmem:[#allocation4 + $0x15d8] sm:$0xf] %v5336_v51  ;;  %5939 = vrot.lane.b32.xlu1 %v14466_v2, %s10253_s30  ;;  %5937 = vrot.lane.b32.xlu0 %v14398_v11, %s10253_s30  ;;  %v9946_v41 = vpack.c.bf16 %v7163_v58, %v7131_v32  ;;  %v9948_v5 = vpack.c.bf16 %v7162_v8, %v7130_v7  ;;  %v6269_v32 = vld [vmem:[%s10303_s24 + $0x90] sm:$0xf] }
 0x7e1   : > { %v5508_v45 = vpop.permute.xlu1 %5507  ;;  %v5506_v29 = vpop.permute.xlu0 %5505  ;;  %9947 = vmatprep.subr.bf16.mxu0 %v9946_v41 }
 0x7e2   : > { %v5545_v22 = vsel %vm1932_vm4, %v14359_v10, %v5506_v29  ;;  %v5546_v35 = vsel %vm1932_vm4, %v5506_v29, %v5508_v45  ;;  %9949 = vmatpush1.bf16.msra.mxu0 %v9948_v5  ;;  %v7133_v39 = vld [vmem:[#allocation4 + $0x14d8] sm:$0xff]  ;;  %v7132_v38 = vld [vmem:[#allocation4 + $0x14d0] sm:$0xff] }
 0x7e3   : > { %5609 = vst [vmem:[#allocation4 + $0x16c0] sm:$0xf] %v5545_v22  ;;  %5610 = vst [vmem:[#allocation4 + $0x16c8] sm:$0xf] %v5546_v35  ;;  %6151 = vrot.lane.b32.xlu1 %v14466_v2, %s10254_s6  ;;  %6149 = vrot.lane.b32.xlu0 %v14398_v11, %s10254_s6 }
 0x7e5   : > { %v5720_v18 = vpop.permute.xlu1 %5719  ;;  %v5718_v42 = vpop.permute.xlu0 %5717 }
 0x7e6   : > { %v5757_v26 = vsel %vm2145_vm5, %v14368_v47, %v5718_v42  ;;  %v5758_v10 = vsel %vm2145_vm5, %v5718_v42, %v5720_v18  ;;  %v7165_v25 = vld [vmem:[#allocation4 + $0x15d8] sm:$0xff]  ;;  %v7164_v63 = vld [vmem:[#allocation4 + $0x15d0] sm:$0xff] }
 0x7e7   : > { %5821 = vst [vmem:[#allocation4 + $0x17c0] sm:$0xf] %v5757_v26  ;;  %5822 = vst [vmem:[#allocation4 + $0x17c8] sm:$0xf] %v5758_v10  ;;  %5943 = vrot.lane.b32.xlu1 %v5845_v3, %s10253_s30  ;;  %5941 = vrot.lane.b32.xlu0 %v14478_v49, %s10253_s30  ;;  %v9998_v13 = vpack.c.bf16 %v7165_v25, %v7133_v39  ;;  %v10000_v27 = vpack.c.bf16 %v7164_v63, %v7132_v38 }
 0x7e9   : > { %v14617_v54 = vpop.permute.xlu1 %5511  ;;  %v5510_v46 = vpop.permute.xlu0 %5509  ;;  %9999 = vmatprep.subr.bf16.mxu1 %v9998_v13 }
 0x7ea   : > { %v5547_v47 = vsel %vm1932_vm4, %v5508_v45, %v5510_v46  ;;  %v5548_v43 = vsel %vm1932_vm4, %v5510_v46, %v14617_v54  ;;  %10001 = vmatpush1.bf16.msra.mxu1 %v10000_v27  ;;  %v7195_v56 = vld [vmem:[#allocation4 + $0x16c8] sm:$0xff]  ;;  %v7194_v34 = vld [vmem:[#allocation4 + $0x16c0] sm:$0xff] }
 0x7eb   : > { %5611 = vst [vmem:[#allocation4 + $0x16d0] sm:$0xf] %v5547_v47  ;;  %5612 = vst [vmem:[#allocation4 + $0x16d8] sm:$0xf] %v5548_v43  ;;  %6155 = vrot.lane.b32.xlu1 %v6057_v20, %s10254_s6  ;;  %6153 = vrot.lane.b32.xlu0 %v14478_v49, %s10254_s6 }
 0x7ed   : > { %v14625_v12 = vpop.permute.xlu1 %5723  ;;  %v5722_v9 = vpop.permute.xlu0 %5721 }
 0x7ee   : > { %v5759_v24 = vsel %vm2145_vm5, %v5720_v18, %v5722_v9  ;;  %v5760_v28 = vsel %vm2145_vm5, %v5722_v9, %v14625_v12  ;;  %v7227_v36 = vld [vmem:[#allocation4 + $0x17c8] sm:$0xff]  ;;  %v7226_v44 = vld [vmem:[#allocation4 + $0x17c0] sm:$0xff] }
 0x7ef   : > { %5823 = vst [vmem:[#allocation4 + $0x17d0] sm:$0xf] %v5759_v24  ;;  %5824 = vst [vmem:[#allocation4 + $0x17d8] sm:$0xf] %v5760_v28  ;;  %6363 = vrot.lane.b32.xlu1 %v14466_v2, %s10255_s7  ;;  %6361 = vrot.lane.b32.xlu0 %v14398_v11, %s10255_s7  ;;  %v9950_v23 = vpack.c.bf16 %v7227_v36, %v7195_v56  ;;  %v9952_v33 = vpack.c.bf16 %v7226_v44, %v7194_v34 }
 0x7f1   : > { %v5932_v40 = vpop.permute.xlu1 %5931  ;;  %v5930_v51 = vpop.permute.xlu0 %5929  ;;  %9951 = vmatprep.subr.bf16.mxu0 %v9950_v23 }
 0x7f2   : > { %v5969_v58 = vsel %vm2358_vm6, %v14391_v53, %v5930_v51  ;;  %v5970_v7 = vsel %vm2358_vm6, %v5930_v51, %v5932_v40  ;;  %9953 = vmatpush1.bf16.msra.mxu0 %v9952_v33  ;;  %v7197_v8 = vld [vmem:[#allocation4 + $0x16d8] sm:$0xff]  ;;  %v7196_v53 = vld [vmem:[#allocation4 + $0x16d0] sm:$0xff]  ;;  %v6527_v51 = vld [vmem:[#allocation4 + $0x1e8] sm:$0xff] }
 0x7f3   : > { %6033 = vst [vmem:[#allocation4 + $0x18c0] sm:$0xf] %v5969_v58  ;;  %6034 = vst [vmem:[#allocation4 + $0x18c8] sm:$0xf] %v5970_v7  ;;  %6367 = vrot.lane.b32.xlu1 %v6269_v32, %s10255_s7  ;;  %6365 = vrot.lane.b32.xlu0 %v14478_v49, %s10255_s7 }
 0x7f5   : > { %v6144_v11 = vpop.permute.xlu1 %6143  ;;  %v6142_v2 = vpop.permute.xlu0 %6141 }
 0x7f6   : > { %v6181_v41 = vsel %vm2571_vm7, %v14404_v57, %v6142_v2  ;;  %v6182_v5 = vsel %vm2571_vm7, %v6142_v2, %v6144_v11  ;;  %v7229_v45 = vld [vmem:[#allocation4 + $0x17d8] sm:$0xff]  ;;  %v7228_v29 = vld [vmem:[#allocation4 + $0x17d0] sm:$0xff]  ;;  %v6526_v2 = vld [vmem:[#allocation4 + $0x1e0] sm:$0xff] }
 0x7f7   : > { %6245 = vst [vmem:[#allocation4 + $0x19c0] sm:$0xf] %v6181_v41  ;;  %6246 = vst [vmem:[#allocation4 + $0x19c8] sm:$0xf] %v6182_v5  ;;  %v10002_v22 = vpack.c.bf16 %v7229_v45, %v7197_v8  ;;  %v10004_v35 = vpack.c.bf16 %v7228_v29, %v7196_v53  ;;  %v6591_v53 = vld [vmem:[#allocation4 + $0x3e8] sm:$0xff] }
 0x7f9   : > { %v14644_v3 = vpop.permute.xlu1 %5935  ;;  %v5934_v18 = vpop.permute.xlu0 %5933  ;;  %10003 = vmatprep.subr.bf16.mxu1 %v10002_v22  ;;  %v6496_v22 = vld [vmem:[#allocation4 + $0xf0] sm:$0xff] }
 0x7fa   : > { %v5971_v49 = vsel %vm2358_vm6, %v5932_v40, %v5934_v18  ;;  %v5972_v42 = vsel %vm2358_vm6, %v5934_v18, %v14644_v3  ;;  %10005 = vmatpush1.bf16.msra.mxu1 %v10004_v35  ;;  %v7259_v26 = vld [vmem:[#allocation4 + $0x18c8] sm:$0xff]  ;;  %v7258_v63 = vld [vmem:[#allocation4 + $0x18c0] sm:$0xff] }
 0x7fb   : > { %6035 = vst [vmem:[#allocation4 + $0x18d0] sm:$0xf] %v5971_v49  ;;  %6036 = vst [vmem:[#allocation4 + $0x18d8] sm:$0xf] %v5972_v42  ;;  %v6495_v40 = vld [vmem:[#allocation4 + $0xe8] sm:$0xff]  ;;  %v6497_v49 = vld [vmem:[#allocation4 + $0xf8] sm:$0xff] }
 0x7fc   : > { %v10010_v29 = vpack.c.bf16 %v6527_v51, %v6495_v40  ;;  %v6559_v18 = vld [vmem:[#allocation4 + $0x2e8] sm:$0xff]  ;;  %v6529_v42 = vld [vmem:[#allocation4 + $0x1f8] sm:$0xff] }
 0x7fd   : > { %v14649_v57 = vpop.permute.xlu1 %6147  ;;  %v6146_v39 = vpop.permute.xlu0 %6145  ;;  %v6719_v51 = vld [vmem:[#allocation4 + $0x7e8] sm:$0xff] }
 0x7fe   : > { %v6183_v10 = vsel %vm2571_vm7, %v6144_v11, %v6146_v39  ;;  %v6184_v25 = vsel %vm2571_vm7, %v6146_v39, %v14649_v57  ;;  %v7291_v38 = vld [vmem:[#allocation4 + $0x19c8] sm:$0xff]  ;;  %v7290_v13 = vld [vmem:[#allocation4 + $0x19c0] sm:$0xff] }
 0x7ff   : > { %6247 = vst [vmem:[#allocation4 + $0x19d0] sm:$0xf] %v6183_v10  ;;  %6248 = vst [vmem:[#allocation4 + $0x19d8] sm:$0xf] %v6184_v25  ;;  %v9954_v27 = vpack.c.bf16 %v7291_v38, %v7259_v26  ;;  %v9956_v20 = vpack.c.bf16 %v7290_v13, %v7258_v63  ;;  %v6494_v11 = vld [vmem:[#allocation4 + $0xe0] sm:$0xff]  ;;  %v6528_v25 = vld [vmem:[#allocation4 + $0x1f0] sm:$0xff] }
 0x800   : > { %v10012_v35 = vpack.c.bf16 %v6526_v2, %v6494_v11  ;;  %v6590_v10 = vld [vmem:[#allocation4 + $0x3e0] sm:$0xff]  ;;  %v6593_v38 = vld [vmem:[#allocation4 + $0x3f8] sm:$0xff]  ;;  %v6560_v2 = vld [vmem:[#allocation4 + $0x2f0] sm:$0xff] }
 0x801   : > { %v6356_v46 = vpop.permute.xlu1 %6355  ;;  %v6354_v47 = vpop.permute.xlu0 %6353  ;;  %9955 = vmatprep.subr.bf16.mxu0 %v9954_v27  ;;  %v6622_v11 = vld [vmem:[#allocation4 + $0x4e0] sm:$0xff] }
 0x802   : > { %v6393_v43 = vsel %vm2784_vm8, %v14420_v30, %v6354_v47  ;;  %v6394_v9 = vsel %vm2784_vm8, %v6354_v47, %v6356_v46  ;;  %9957 = vmatpush1.bf16.msra.mxu0 %v9956_v20  ;;  %v7261_v28 = vld [vmem:[#allocation4 + $0x18d8] sm:$0xff]  ;;  %v7260_v23 = vld [vmem:[#allocation4 + $0x18d0] sm:$0xff]  ;;  %v10062_v47 = vpack.c.bf16 %v6529_v42, %v6497_v49  ;;  %v6751_v42 = vld [vmem:[#allocation4 + $0x8e8] sm:$0xff] }
 0x803   : > { %6457 = vst [vmem:[#allocation4 + $0x1ac0] sm:$0xf] %v6393_v43  ;;  %6458 = vst [vmem:[#allocation4 + $0x1ac8] sm:$0xf] %v6394_v9  ;;  %v6558_v43 = vld [vmem:[#allocation4 + $0x2e0] sm:$0xff] }
 0x804   : > { %v10016_v9 = vpack.c.bf16 %v6590_v10, %v6558_v43  ;;  %v6624_v10 = vld [vmem:[#allocation4 + $0x4f0] sm:$0xff] }
 0x805   : > { %v14657_v56 = vpop.permute.xlu1 %6359  ;;  %v6358_v24 = vpop.permute.xlu0 %6357  ;;  %v6720_v43 = vld [vmem:[#allocation4 + $0x7f0] sm:$0xff] }
 0x806   : > { %v6395_v36 = vsel %vm2784_vm8, %v6356_v46, %v6358_v24  ;;  %v6396_v34 = vsel %vm2784_vm8, %v6358_v24, %v14657_v56  ;;  %v7293_v44 = vld [vmem:[#allocation4 + $0x19d8] sm:$0xff]  ;;  %v7292_v33 = vld [vmem:[#allocation4 + $0x19d0] sm:$0xff]  ;;  %v6655_v46 = vld [vmem:[#allocation4 + $0x5e8] sm:$0xff]  ;;  %v10064_v24 = vpack.c.bf16 %v6528_v25, %v6496_v22 }
 0x807   : > { %6459 = vst [vmem:[#allocation4 + $0x1ad0] sm:$0xf] %v6395_v36  ;;  %6460 = vst [vmem:[#allocation4 + $0x1ad8] sm:$0xf] %v6396_v34  ;;  %v10006_v30 = vpack.c.bf16 %v7293_v44, %v7261_v28  ;;  %v10008_v32 = vpack.c.bf16 %v7292_v33, %v7260_v23  ;;  %v6623_v28 = vld [vmem:[#allocation4 + $0x4e8] sm:$0xff]  ;;  %v6654_v33 = vld [vmem:[#allocation4 + $0x5e0] sm:$0xff] }
 0x808   : > { %v10018_v44 = vpack.c.bf16 %v6655_v46, %v6623_v28  ;;  %v6718_v22 = vld [vmem:[#allocation4 + $0x7e0] sm:$0xff] }
 0x809   : > { %v3936_v58 = vpop.permute.xlu1 %3935  ;;  %v3934_v7 = vpop.permute.xlu0 %3933  ;;  %10007 = vmatprep.subr.bf16.mxu1 %v10006_v30  ;;  %v6592_v30 = vld [vmem:[#allocation4 + $0x3f0] sm:$0xff] }
 0x80a   : > { %v3969_v8 = vsel %vm2145_vm5, %v14453_v55, %v3934_v7  ;;  %v3970_v41 = vsel %vm2145_vm5, %v3934_v7, %v3936_v58  ;;  %10009 = vmatpush1.bf16.msra.mxu1 %v10008_v32  ;;  %v7323_v5 = vld [vmem:[#allocation4 + $0x1ac8] sm:$0xff]  ;;  %v7322_v45 = vld [vmem:[#allocation4 + $0x1ac0] sm:$0xff]  ;;  %v10014_v55 = vpack.c.bf16 %v6591_v53, %v6559_v18  ;;  %v6657_v7 = vld [vmem:[#allocation4 + $0x5f8] sm:$0xff] }
 0x80b   : > { %4033 = vst [vmem:[#allocation4 + $0xee0] sm:$0xf] %v3969_v8  ;;  %4034 = vst [vmem:[#allocation4 + $0xee8] sm:$0xf] %v3970_v41  ;;  %8239 = vmatprep.subr.mxu0 %v7323_v5  ;;  %v10068_v8 = vpack.c.bf16 %v6592_v30, %v6560_v2  ;;  %v6687_v41 = vld [vmem:[#allocation4 + $0x6e8] sm:$0xff]  ;;  %v6625_v5 = vld [vmem:[#allocation4 + $0x4f8] sm:$0xff] }
 0x80c   : > { %8240 = vmatpush1.msra.mxu0 %v7322_v45  ;;  %v10022_v53 = vpack.c.bf16 %v6719_v51, %v6687_v41  ;;  %v6815_v30 = vld [vmem:[#allocation4 + $0xae8] sm:$0xff]  ;;  %v6846_v2 = vld [vmem:[#allocation4 + $0xbe0] sm:$0xff] }
 0x80d   : > { %v4148_v39 = vpop.permute.xlu1 %4147  ;;  %v4146_v26 = vpop.permute.xlu0 %4145  ;;  %8252 = vmatmul.mubr.f32.vlgmr.msra.gmra.mrb[12].mxu0 %v14446_v37  ;;  %10011 = vmatprep.subr.bf16.mxu0 %v10010_v29  ;;  %v10070_v29 = vpack.c.bf16 %v6657_v7, %v6625_v5 }
 0x80e   : > { %v4181_v63 = vsel %vm2358_vm6, %v14463_v62, %v4146_v26  ;;  %v4182_v13 = vsel %vm2358_vm6, %v4146_v26, %v4148_v39  ;;  %10013 = vmatpush1.bf16.msra.mxu0 %v10012_v35  ;;  %v7325_v27 = vld [vmem:[#allocation4 + $0x1ad8] sm:$0xff]  ;;  %v7324_v20 = vld [vmem:[#allocation4 + $0x1ad0] sm:$0xff]  ;;  %9242 = vmatprep.mubr.msk.f32.mxu0 %vm7332_vm9, %v12951_v19  ;;  %v6783_v26 = vld [vmem:[#allocation4 + $0x9e8] sm:$0xff] }
 0x80f   : > { %4245 = vst [vmem:[#allocation4 + $0xfe0] sm:$0xf] %v4181_v63  ;;  %4246 = vst [vmem:[#allocation4 + $0xfe8] sm:$0xf] %v4182_v13  ;;  %8310 = vmatprep.subr.mxu1 %v7325_v27  ;;  %10015 = vmatprep.subr.bf16.mxu0 %v10014_v55  ;;  %v6561_v62 = vld [vmem:[#allocation4 + $0x2f8] sm:$0xff]  ;;  %v6656_v35 = vld [vmem:[#allocation4 + $0x5f0] sm:$0xff] }
 0x810   : > { %8311 = vmatpush1.msra.mxu1 %v7324_v20  ;;  %v10066_v23 = vpack.c.bf16 %v6593_v38, %v6561_v62  ;;  %v6721_v55 = vld [vmem:[#allocation4 + $0x7f8] sm:$0xff]  ;;  %v10072_v38 = vpack.c.bf16 %v6656_v35, %v6624_v10  ;;  %v6782_v13 = vld [vmem:[#allocation4 + $0x9e0] sm:$0xff]  ;;  %v6847_v62 = vld [vmem:[#allocation4 + $0xbe8] sm:$0xff] }
 0x811   : > { %v3940_v36 = vpop.permute.xlu1 %3939  ;;  %v3938_v34 = vpop.permute.xlu0 %3937  ;;  %8323 = vmatmul.mubr.f32.vlgmr.msra.gmra.mrb[12].mxu1 %v14446_v37  ;;  %10063 = vmatprep.subr.bf16.mxu1 %v10062_v47  ;;  %v10020_v37 = vpack.c.bf16 %v6654_v33, %v6622_v11  ;;  %v6689_v63 = vld [vmem:[#allocation4 + $0x6f8] sm:$0xff]  ;;  %v6750_v47 = vld [vmem:[#allocation4 + $0x8e0] sm:$0xff]  ;;  %v10030_v51 = vpack.c.bf16 %v6847_v62, %v6815_v30 }
 0x812   : > { %v3971_v32 = vsel %vm2145_vm5, %v3936_v58, %v3938_v34  ;;  %v3972_v40 = vsel %vm2145_vm5, %v3938_v34, %v3940_v36  ;;  %10017 = vmatpush1.bf16.msra.mxu0 %v10016_v9  ;;  %10065 = vmatpush1.bf16.msra.mxu1 %v10064_v24  ;;  %v10074_v46 = vpack.c.bf16 %v6721_v55, %v6689_v63  ;;  %v6785_v9 = vld [vmem:[#allocation4 + $0x9f8] sm:$0xff]  ;;  %v14684_v34 = vld [vmem:[%s15155_s0 + $0x10] sm:$0xff]  ;;  %v6910_v35 = vld [vmem:[#allocation4 + $0xde0] sm:$0xff] }
 0x813   : > { %4035 = vst [vmem:[#allocation4 + $0xef0] sm:$0xf] %v3971_v32  ;;  %4036 = vst [vmem:[#allocation4 + $0xef8] sm:$0xf] %v3972_v40  ;;  %10019 = vmatprep.subr.bf16.mxu0 %v10018_v44  ;;  %10067 = vmatprep.subr.bf16.mxu1 %v10066_v23  ;;  %v6753_v36 = vld [vmem:[#allocation4 + $0x8f8] sm:$0xff]  ;;  %v6688_v44 = vld [vmem:[#allocation4 + $0x6f0] sm:$0xff]  ;;  %v10028_v23 = vpack.c.bf16 %v6782_v13, %v6750_v47  ;;  %v8629_v11 = vrot.slane %v14684_v34, %v14035_v52 }
 0x814   : > { %9243 = vmatprep.mubr.msk.f32.mxu1 %vm7332_vm9, %v12951_v19  ;;  %v6686_v19 = vld [vmem:[#allocation4 + $0x6e0] sm:$0xff]  ;;  %v10076_v33 = vpack.c.bf16 %v6720_v43, %v6688_v44  ;;  %v10078_v7 = vpack.c.bf16 %v6785_v9, %v6753_v36  ;;  %v6816_v55 = vld [vmem:[#allocation4 + $0xaf0] sm:$0xff]  ;;  %v8637_v63 = vrot.slane %v14684_v34, %v14069_v61 }
 0x815   : > { %v4152_v58 = vpop.permute.xlu1 %4151  ;;  %v4150_v45 = vpop.permute.xlu0 %4149  ;;  %v10024_v25 = vpack.c.bf16 %v6718_v22, %v6686_v19  ;;  %v6817_v22 = vld [vmem:[#allocation4 + $0xaf8] sm:$0xff]  ;;  %v6878_v13 = vld [vmem:[#allocation4 + $0xce0] sm:$0xff] }
 0x816   : > { %v4183_v18 = vsel %vm2358_vm6, %v4148_v39, %v4150_v45  ;;  %v4184_v49 = vsel %vm2358_vm6, %v4150_v45, %v4152_v58  ;;  %10021 = vmatpush1.bf16.msra.mxu0 %v10020_v37  ;;  %10069 = vmatpush1.bf16.msra.mxu1 %v10068_v8  ;;  %v10026_v39 = vpack.c.bf16 %v6783_v26, %v6751_v42  ;;  %v6752_v37 = vld [vmem:[#allocation4 + $0x8f0] sm:$0xff]  ;;  %v6849_v8 = vld [vmem:[#allocation4 + $0xbf8] sm:$0xff]  ;;  %v6911_v58 = vld [vmem:[#allocation4 + $0xde8] sm:$0xff] }
 0x817   : > { %4247 = vst [vmem:[#allocation4 + $0xff0] sm:$0xf] %v4183_v18  ;;  %4248 = vst [vmem:[#allocation4 + $0xff8] sm:$0xf] %v4184_v49  ;;  %10023 = vmatprep.subr.bf16.mxu0 %v10022_v53  ;;  %10071 = vmatprep.subr.bf16.mxu1 %v10070_v29  ;;  %v14694_v45 = vld [vmem:[#allocation4 + $0xbf0] sm:$0xff]  ;;  %v8633_v53 = vrot.slane %v14684_v34, %v14038_v16  ;;  %v6814_v29 = vld [vmem:[#allocation4 + $0xae0] sm:$0xff]  ;;  %v10082_v26 = vpack.c.bf16 %v6849_v8, %v6817_v22 }
 0x818   : > { %v6879_v42 = vld [vmem:[#allocation4 + $0xce8] sm:$0xff]  ;;  %v6912_v22 = vld [vmem:[#allocation4 + $0xdf0] sm:$0xff] }
 0x819   : > { %v4360_v27 = vpop.permute.xlu1 %4359  ;;  %v4358_v20 = vpop.permute.xlu0 %4357 }
 0x81a   : > { %v4393_v24 = vsel %vm2571_vm7, %v14504_v50, %v4358_v20  ;;  %v4394_v28 = vsel %vm2571_vm7, %v4358_v20, %v4360_v27  ;;  %10025 = vmatpush1.bf16.msra.mxu0 %v10024_v25  ;;  %10073 = vmatpush1.bf16.msra.mxu1 %v10072_v38  ;;  %v6784_v50 = vld [vmem:[#allocation4 + $0x9f0] sm:$0xff]  ;;  %v10034_v38 = vpack.c.bf16 %v6911_v58, %v6879_v42 }
 0x81b   : > { %4457 = vst [vmem:[#allocation4 + $0x10e0] sm:$0xf] %v4393_v24  ;;  %4458 = vst [vmem:[#allocation4 + $0x10e8] sm:$0xf] %v4394_v28  ;;  %10027 = vmatprep.subr.bf16.mxu0 %v10026_v39  ;;  %10075 = vmatprep.subr.bf16.mxu1 %v10074_v46  ;;  %v10080_v49 = vpack.c.bf16 %v6784_v50, %v6752_v37  ;;  %v10084_v20 = vpack.c.bf16 %v14694_v45, %v6816_v55  ;;  %v6975_v39 = vld [vmem:[#allocation4 + $0xfe8] sm:$0xff]  ;;  %v6913_v46 = vld [vmem:[#allocation4 + $0xdf8] sm:$0xff] }
 0x81c   : > { %v10036_v24 = vpack.c.bf16 %v6910_v35, %v6878_v13  ;;  %v8641_v50 = vrot.slane %v14684_v34, %v14099_v59 }
 0x81d   : > { %v14686_v32 = vpop.permute.xlu1 %4571  ;;  %v4570_v40 = vpop.permute.xlu0 %4569 }
 0x81e   : > { %v4605_v41 = vsel %vm2784_vm8, %v14526_v1, %v4570_v40  ;;  %v4606_v5 = vsel %vm2784_vm8, %v4570_v40, %v14686_v32  ;;  %10029 = vmatpush1.bf16.msra.mxu0 %v10028_v23  ;;  %10077 = vmatpush1.bf16.msra.mxu1 %v10076_v33  ;;  %v7969_v18 = vpop.f32.mrb[8].mxu0  ;;  %v10032_v1 = vpack.c.bf16 %v6846_v2, %v6814_v29  ;;  %v6943_v23 = vld [vmem:[#allocation4 + $0xee8] sm:$0xff]  ;;  %v6881_v33 = vld [vmem:[#allocation4 + $0xcf8] sm:$0xff] }
 0x81f   : > { %4669 = vst [vmem:[#allocation4 + $0x11e0] sm:$0xf] %v4605_v41  ;;  %4670 = vst [vmem:[#allocation4 + $0x11e8] sm:$0xf] %v4606_v5  ;;  %10031 = vmatprep.subr.bf16.mxu0 %v10030_v51  ;;  %10079 = vmatprep.subr.bf16.mxu1 %v10078_v7  ;;  %v8738_v19 = vmul.f32 %v8629_v11, %v7969_v18  ;;  %v7971_v9 = vpop.f32.mrb[9].mxu0  ;;  %v10038_v40 = vpack.c.bf16 %v6975_v39, %v6943_v23  ;;  %v6974_v5 = vld [vmem:[#allocation4 + $0xfe0] sm:$0xff] }
 0x820   : > { %v8511_v36 = vcombine.low %v7969_v18, %v7971_v9  ;;  %v8739_v44 = vmul.f32 %v8633_v53, %v7971_v9  ;;  %v10086_v51 = vpack.c.bf16 %v6913_v46, %v6881_v33  ;;  %v6977_v18 = vld [vmem:[#allocation4 + $0xff8] sm:$0xff] }
 0x821   : > { %v4364_v10 = vpop.permute.xlu1 %4363  ;;  %v4362_v25 = vpop.permute.xlu0 %4361  ;;  %v8787_v28 = vsel %vm8755_vm10, %v8738_v19, 0.0  ;;  %v8841_v62 = vmul.f32 %v8738_v19, %v8738_v19 }
 0x822   : > { %v4395_v47 = vsel %vm2571_vm7, %v4360_v27, %v4362_v25  ;;  %v4396_v43 = vsel %vm2571_vm7, %v4362_v25, %v4364_v10  ;;  %10033 = vmatpush1.bf16.msra.mxu0 %v10032_v1  ;;  %10081 = vmatpush1.bf16.msra.mxu1 %v10080_v49  ;;  %v8788_v27 = vadd.f32 %v8787_v28, %v14566_v14  ;;  %v8040_v30 = vpop.f32.mrb[8].mxu1  ;;  %v8789_v11 = vsel %vm8755_vm10, %v8739_v44, 0.0  ;;  %v6880_v25 = vld [vmem:[#allocation4 + $0xcf0] sm:$0xff] }
 0x823   : > { %4459 = vst [vmem:[#allocation4 + $0x10f0] sm:$0xf] %v4395_v47  ;;  %4460 = vst [vmem:[#allocation4 + $0x10f8] sm:$0xf] %v4396_v43  ;;  %10035 = vmatprep.subr.bf16.mxu0 %v10034_v38  ;;  %10083 = vmatprep.subr.bf16.mxu1 %v10082_v26  ;;  %v8888_v7 = vsel %vm8755_vm10, %v8841_v62, 0.0  ;;  %v8842_v2 = vmul.f32 %v8739_v44, %v8739_v44  ;;  %v8740_v37 = vmul.f32 %v8637_v63, %v8040_v30  ;;  %v8042_v29 = vpop.f32.mrb[9].mxu1 }
 0x824   : > { %8546 = vst [vmem:[%s14088_s21 + $0x40] sm:$0xff] %v8511_v36  ;;  %v8889_v58 = vadd.f32 %v8888_v7, %v14568_v31  ;;  %v8790_v45 = vadd.f32 %v8789_v11, %v8788_v27  ;;  %v8512_v31 = vcombine.low %v8040_v30, %v8042_v29  ;;  %v6942_v26 = vld [vmem:[#allocation4 + $0xee0] sm:$0xff]  ;;  %v8741_v19 = vmul.f32 %v8641_v50, %v8042_v29  ;;  %v7007_v38 = vld [vmem:[#allocation4 + $0x10e8] sm:$0xff]  ;;  %v6945_v63 = vld [vmem:[#allocation4 + $0xef8] sm:$0xff] }
 0x825   : > { %v4576_v8 = vpop.permute.xlu1 %4575  ;;  %v4574_v41 = vpop.permute.xlu0 %4573  ;;  %v8890_v1 = vsel %vm8755_vm10, %v8842_v2, 0.0  ;;  %v8791_v49 = vsel %vm8755_vm10, %v8740_v37, 0.0  ;;  %v8843_v42 = vmul.f32 %v8740_v37, %v8740_v37  ;;  %v10040_v10 = vpack.c.bf16 %v6974_v5, %v6942_v26  ;;  %v6976_v44 = vld [vmem:[#allocation4 + $0xff0] sm:$0xff]  ;;  %v7006_v27 = vld [vmem:[#allocation4 + $0x10e0] sm:$0xff] }
 0x826   : > { %v4607_v14 = vsel %vm2784_vm8, %v14686_v32, %v4574_v41  ;;  %v4608_v53 = vsel %vm2784_vm8, %v4574_v41, %v4576_v8  ;;  %10037 = vmatpush1.bf16.msra.mxu0 %v10036_v24  ;;  %v7039_v35 = vld [vmem:[#allocation4 + $0x11e8] sm:$0xff]  ;;  %10085 = vmatpush1.bf16.msra.mxu1 %v10084_v20  ;;  %v8891_v32 = vadd.f32 %v8890_v1, %v8889_v58  ;;  %v7038_v24 = vld [vmem:[#allocation4 + $0x11e0] sm:$0xff]  ;;  %v8793_v28 = vsel %vm8755_vm10, %v8741_v19, 0.0 }
 0x827   : > { %4671 = vst [vmem:[#allocation4 + $0x11f0] sm:$0xf] %v4607_v14  ;;  %4672 = vst [vmem:[#allocation4 + $0x11f8] sm:$0xf] %v4608_v53  ;;  %10039 = vmatprep.subr.bf16.mxu0 %v10038_v40  ;;  %v8792_v55 = vadd.f32 %v8791_v49, %v8790_v45  ;;  %10087 = vmatprep.subr.bf16.mxu1 %v10086_v51  ;;  %v8892_v13 = vsel %vm8755_vm10, %v8843_v42, 0.0  ;;  %v10088_v47 = vpack.c.bf16 %v6912_v22, %v6880_v25  ;;  %v6944_v40 = vld [vmem:[#allocation4 + $0xef0] sm:$0xff] }
 0x828   : > { %8547 = vst [vmem:[%s14088_s21 + $0x48] sm:$0xff] %v8512_v31  ;;  %v10042_v43 = vpack.c.bf16 %v7039_v35, %v7007_v38  ;;  %v10090_v9 = vpack.c.bf16 %v6977_v18, %v6945_v63  ;;  %v8893_v20 = vadd.f32 %v8892_v13, %v8891_v32  ;;  %v8844_v62 = vmul.f32 %v8741_v19, %v8741_v19  ;;  %v7070_v53 = vld [vmem:[#allocation4 + $0x12e0] sm:$0xff]  ;;  %v7071_v35 = vld [vmem:[#allocation4 + $0x12e8] sm:$0xff]  ;;  %v7073_v32 = vld [vmem:[#allocation4 + $0x12f8] sm:$0xff] }
 0x829   : > { %v4880_v39 = vpop.permute.xlu1 %4879  ;;  %v4878_v46 = vpop.permute.xlu0 %4877  ;;  %v14721_v23 = vadd.f32 %v8793_v28, %v8792_v55  ;;  %v10044_v50 = vpack.c.bf16 %v7038_v24, %v7006_v27  ;;  %v10092_v11 = vpack.c.bf16 %v6976_v44, %v6944_v40  ;;  %v7072_v55 = vld [vmem:[#allocation4 + $0x12f0] sm:$0xff] }
 0x82a   : > { %v4913_v36 = vsel %vm1293_vm1, %v14555_v15, %v4878_v46  ;;  %10041 = vmatpush1.bf16.msra.mxu0 %v10040_v10  ;;  %v4914_v33 = vsel %vm1293_vm1, %v4878_v46, %v4880_v39  ;;  %10089 = vmatpush1.bf16.msra.mxu1 %v10088_v47  ;;  %v8894_v30 = vsel %vm8755_vm10, %v8844_v62, 0.0  ;;  %v7009_v2 = vld [vmem:[#allocation4 + $0x10f8] sm:$0xff]  ;;  %v7008_v5 = vld [vmem:[#allocation4 + $0x10f0] sm:$0xff] }
 0x82b   : > { %4977 = vst [vmem:[#allocation4 + $0x13e0] sm:$0xf] %v4913_v36  ;;  %10043 = vmatprep.subr.bf16.mxu0 %v10042_v43  ;;  %4978 = vst [vmem:[#allocation4 + $0x13e8] sm:$0xf] %v4914_v33  ;;  %10091 = vmatprep.subr.bf16.mxu1 %v10090_v9  ;;  %v14725_v51 = vadd.f32 %v8894_v30, %v8893_v20 }
 0x82d   : > { %v4884_v7 = vpop.permute.xlu1 %4883  ;;  %v4882_v15 = vpop.permute.xlu0 %4881 }
 0x82e   : > { %v4915_v37 = vsel %vm1293_vm1, %v4880_v39, %v4882_v15  ;;  %v4916_v8 = vsel %vm1293_vm1, %v4882_v15, %v4884_v7  ;;  %10045 = vmatpush1.bf16.msra.mxu0 %v10044_v50  ;;  %v7041_v41 = vld [vmem:[#allocation4 + $0x11f8] sm:$0xff]  ;;  %v7040_v58 = vld [vmem:[#allocation4 + $0x11f0] sm:$0xff]  ;;  %10093 = vmatpush1.bf16.msra.mxu1 %v10092_v11 }
 0x82f   : > { %4979 = vst [vmem:[#allocation4 + $0x13f0] sm:$0xf] %v4915_v37  ;;  %4980 = vst [vmem:[#allocation4 + $0x13f8] sm:$0xf] %v4916_v8  ;;  %v10094_v45 = vpack.c.bf16 %v7041_v41, %v7009_v2  ;;  %v10096_v14 = vpack.c.bf16 %v7040_v58, %v7008_v5 }
 0x831   : > { %v5092_v29 = vpop.permute.xlu1 %5091  ;;  %v5090_v22 = vpop.permute.xlu0 %5089  ;;  %10095 = vmatprep.subr.bf16.mxu1 %v10094_v45 }
 0x832   : > { %v5125_v18 = vsel %vm1506_vm2, %v14585_v17, %v5090_v22  ;;  %v5126_v1 = vsel %vm1506_vm2, %v5090_v22, %v5092_v29  ;;  %v7102_v49 = vld [vmem:[#allocation4 + $0x13e0] sm:$0xff]  ;;  %10097 = vmatpush1.bf16.msra.mxu1 %v10096_v14  ;;  %v7103_v42 = vld [vmem:[#allocation4 + $0x13e8] sm:$0xff] }
 0x833   : > { %5189 = vst [vmem:[#allocation4 + $0x14e0] sm:$0xf] %v5125_v18  ;;  %5190 = vst [vmem:[#allocation4 + $0x14e8] sm:$0xf] %v5126_v1  ;;  %v10048_v31 = vpack.c.bf16 %v7102_v49, %v7070_v53  ;;  %v10046_v26 = vpack.c.bf16 %v7103_v42, %v7071_v35 }
 0x835   : > { %v5304_v19 = vpop.permute.xlu1 %5303  ;;  %v5302_v10 = vpop.permute.xlu0 %5301  ;;  %10047 = vmatprep.subr.bf16.mxu0 %v10046_v26 }
 0x836   : > { %v5337_v25 = vsel %vm1719_vm3, %v14593_v0, %v5302_v10  ;;  %v5338_v38 = vsel %vm1719_vm3, %v5302_v10, %v5304_v19  ;;  %v7105_v17 = vld [vmem:[#allocation4 + $0x13f8] sm:$0xff]  ;;  %v7104_v63 = vld [vmem:[#allocation4 + $0x13f0] sm:$0xff]  ;;  %10049 = vmatpush1.bf16.msra.mxu0 %v10048_v31 }
 0x837   : > { %5401 = vst [vmem:[#allocation4 + $0x15e0] sm:$0xf] %v5337_v25  ;;  %5402 = vst [vmem:[#allocation4 + $0x15e8] sm:$0xf] %v5338_v38  ;;  %v10098_v13 = vpack.c.bf16 %v7105_v17, %v7073_v32  ;;  %v10100_v39 = vpack.c.bf16 %v7104_v63, %v7072_v55 }
 0x839   : > { %v5096_v46 = vpop.permute.xlu1 %5095  ;;  %v5094_v47 = vpop.permute.xlu0 %5093  ;;  %10099 = vmatprep.subr.bf16.mxu1 %v10098_v13 }
 0x83a   : > { %v5127_v43 = vsel %vm1506_vm2, %v5092_v29, %v5094_v47  ;;  %v5128_v9 = vsel %vm1506_vm2, %v5094_v47, %v5096_v46  ;;  %10101 = vmatpush1.bf16.msra.mxu1 %v10100_v39  ;;  %v7135_v20 = vld [vmem:[#allocation4 + $0x14e8] sm:$0xff]  ;;  %v7134_v44 = vld [vmem:[#allocation4 + $0x14e0] sm:$0xff] }
 0x83b   : > { %5191 = vst [vmem:[#allocation4 + $0x14f0] sm:$0xf] %v5127_v43  ;;  %5192 = vst [vmem:[#allocation4 + $0x14f8] sm:$0xf] %v5128_v9 }
 0x83d   : > { %v5308_v0 = vpop.permute.xlu1 %5307  ;;  %v5306_v24 = vpop.permute.xlu0 %5305 }
 0x83e   : > { %v5339_v28 = vsel %vm1719_vm3, %v5304_v19, %v5306_v24  ;;  %v5340_v62 = vsel %vm1719_vm3, %v5306_v24, %v5308_v0  ;;  %v7167_v36 = vld [vmem:[#allocation4 + $0x15e8] sm:$0xff]  ;;  %v7166_v33 = vld [vmem:[#allocation4 + $0x15e0] sm:$0xff] }
 0x83f   : > { %5403 = vst [vmem:[#allocation4 + $0x15f0] sm:$0xf] %v5339_v28  ;;  %5404 = vst [vmem:[#allocation4 + $0x15f8] sm:$0xf] %v5340_v62  ;;  %v10050_v27 = vpack.c.bf16 %v7167_v36, %v7135_v20  ;;  %v10052_v30 = vpack.c.bf16 %v7166_v33, %v7134_v44 }
 0x841   : > { %v5516_v50 = vpop.permute.xlu1 %5515  ;;  %v5514_v40 = vpop.permute.xlu0 %5513  ;;  %10051 = vmatprep.subr.bf16.mxu0 %v10050_v27 }
 0x842   : > { %v5549_v7 = vsel %vm1932_vm4, %v14617_v54, %v5514_v40  ;;  %v5550_v15 = vsel %vm1932_vm4, %v5514_v40, %v5516_v50  ;;  %10053 = vmatpush1.bf16.msra.mxu0 %v10052_v30  ;;  %v7137_v37 = vld [vmem:[#allocation4 + $0x14f8] sm:$0xff]  ;;  %v7136_v58 = vld [vmem:[#allocation4 + $0x14f0] sm:$0xff] }
 0x843   : > { %5613 = vst [vmem:[#allocation4 + $0x16e0] sm:$0xf] %v5549_v7  ;;  %5614 = vst [vmem:[#allocation4 + $0x16e8] sm:$0xf] %v5550_v15 }
 0x845   : > { %v5728_v11 = vpop.permute.xlu1 %5727  ;;  %v5726_v2 = vpop.permute.xlu0 %5725 }
 0x846   : > { %v5761_v8 = vsel %vm2145_vm5, %v14625_v12, %v5726_v2  ;;  %v5762_v41 = vsel %vm2145_vm5, %v5726_v2, %v5728_v11  ;;  %v7169_v5 = vld [vmem:[#allocation4 + $0x15f8] sm:$0xff]  ;;  %v7168_v45 = vld [vmem:[#allocation4 + $0x15f0] sm:$0xff] }
 0x847   : > { %5825 = vst [vmem:[#allocation4 + $0x17e0] sm:$0xf] %v5761_v8  ;;  %5826 = vst [vmem:[#allocation4 + $0x17e8] sm:$0xf] %v5762_v41  ;;  %v10102_v14 = vpack.c.bf16 %v7169_v5, %v7137_v37  ;;  %v10104_v54 = vpack.c.bf16 %v7168_v45, %v7136_v58 }
 0x849   : > { %v5520_v53 = vpop.permute.xlu1 %5519  ;;  %v5518_v29 = vpop.permute.xlu0 %5517  ;;  %10103 = vmatprep.subr.bf16.mxu1 %v10102_v14 }
 0x84a   : > { %v5551_v22 = vsel %vm1932_vm4, %v5516_v50, %v5518_v29  ;;  %v5552_v35 = vsel %vm1932_vm4, %v5518_v29, %v5520_v53  ;;  %10105 = vmatpush1.bf16.msra.mxu1 %v10104_v54  ;;  %v7199_v1 = vld [vmem:[#allocation4 + $0x16e8] sm:$0xff]  ;;  %v7198_v26 = vld [vmem:[#allocation4 + $0x16e0] sm:$0xff] }
 0x84b   : > { %5615 = vst [vmem:[#allocation4 + $0x16f0] sm:$0xf] %v5551_v22  ;;  %5616 = vst [vmem:[#allocation4 + $0x16f8] sm:$0xf] %v5552_v35 }
 0x84d   : > { %v5732_v12 = vpop.permute.xlu1 %5731  ;;  %v5730_v18 = vpop.permute.xlu0 %5729 }
 0x84e   : > { %v5763_v49 = vsel %vm2145_vm5, %v5728_v11, %v5730_v18  ;;  %v5764_v42 = vsel %vm2145_vm5, %v5730_v18, %v5732_v12  ;;  %v7231_v31 = vld [vmem:[#allocation4 + $0x17e8] sm:$0xff]  ;;  %v7230_v32 = vld [vmem:[#allocation4 + $0x17e0] sm:$0xff] }
 0x84f   : > { %5827 = vst [vmem:[#allocation4 + $0x17f0] sm:$0xf] %v5763_v49  ;;  %5828 = vst [vmem:[#allocation4 + $0x17f8] sm:$0xf] %v5764_v42  ;;  %v10054_v55 = vpack.c.bf16 %v7231_v31, %v7199_v1  ;;  %v10056_v19 = vpack.c.bf16 %v7230_v32, %v7198_v26  ;;  %v10235_v1 = vld [vmem:[%s15156_s1] sm:$0xff]  ;;  %v8645_v31 = vrot.slane %v14684_v34, %v14103_v6 }
 0x850   : > { %v8649_v26 = vrot.slane %v14684_v34, %v14133_v48 }
 0x851   : > { %v5940_v10 = vpop.permute.xlu1 %5939  ;;  %v5938_v25 = vpop.permute.xlu0 %5937  ;;  %10055 = vmatprep.subr.bf16.mxu0 %v10054_v55 }
 0x852   : > { %v5973_v38 = vsel %vm2358_vm6, %v14644_v3, %v5938_v25  ;;  %v5974_v17 = vsel %vm2358_vm6, %v5938_v25, %v5940_v10  ;;  %10057 = vmatpush1.bf16.msra.mxu0 %v10056_v19  ;;  %v7201_v39 = vld [vmem:[#allocation4 + $0x16f8] sm:$0xff]  ;;  %v7200_v9 = vld [vmem:[#allocation4 + $0x16f0] sm:$0xff] }
 0x853   : > { %6037 = vst [vmem:[#allocation4 + $0x18e0] sm:$0xf] %v5973_v38  ;;  %6038 = vst [vmem:[#allocation4 + $0x18e8] sm:$0xf] %v5974_v17 }
 0x855   : > { %v6152_v63 = vpop.permute.xlu1 %6151  ;;  %v6150_v13 = vpop.permute.xlu0 %6149 }
 0x856   : > { %v6185_v46 = vsel %vm2571_vm7, %v14649_v57, %v6150_v13  ;;  %v6186_v47 = vsel %vm2571_vm7, %v6150_v13, %v6152_v63  ;;  %v7233_v43 = vld [vmem:[#allocation4 + $0x17f8] sm:$0xff]  ;;  %v7232_v0 = vld [vmem:[#allocation4 + $0x17f0] sm:$0xff]  ;;  %v8657_v13 = vrot.slane %v14684_v34, %v14176_v4 }
 0x857   : > { %6249 = vst [vmem:[#allocation4 + $0x19e0] sm:$0xf] %v6185_v46  ;;  %6250 = vst [vmem:[#allocation4 + $0x19e8] sm:$0xf] %v6186_v47  ;;  %v10106_v24 = vpack.c.bf16 %v7233_v43, %v7201_v39  ;;  %v10108_v3 = vpack.c.bf16 %v7232_v0, %v7200_v9 }
 0x859   : > { %v5944_v20 = vpop.permute.xlu1 %5943  ;;  %v5942_v28 = vpop.permute.xlu0 %5941  ;;  %10107 = vmatprep.subr.bf16.mxu1 %v10106_v24 }
 0x85a   : > { %v5975_v62 = vsel %vm2358_vm6, %v5940_v10, %v5942_v28  ;;  %v5976_v36 = vsel %vm2358_vm6, %v5942_v28, %v5944_v20  ;;  %10109 = vmatpush1.bf16.msra.mxu1 %v10108_v3  ;;  %v7263_v33 = vld [vmem:[#allocation4 + $0x18e8] sm:$0xff]  ;;  %v7262_v40 = vld [vmem:[#allocation4 + $0x18e0] sm:$0xff]  ;;  %v8653_v10 = vrot.slane %v14684_v34, %v14153_v60 }
 0x85b   : > { %6039 = vst [vmem:[#allocation4 + $0x18f0] sm:$0xf] %v5975_v62  ;;  %6040 = vst [vmem:[#allocation4 + $0x18f8] sm:$0xf] %v5976_v36 }
 0x85d   : > { %v6156_v57 = vpop.permute.xlu1 %6155  ;;  %v6154_v44 = vpop.permute.xlu0 %6153 }
 0x85e   : > { %v6187_v27 = vsel %vm2571_vm7, %v6152_v63, %v6154_v44  ;;  %v6188_v30 = vsel %vm2571_vm7, %v6154_v44, %v6156_v57  ;;  %v7295_v50 = vld [vmem:[#allocation4 + $0x19e8] sm:$0xff]  ;;  %v7294_v7 = vld [vmem:[#allocation4 + $0x19e0] sm:$0xff] }
 0x85f   : > { %6251 = vst [vmem:[#allocation4 + $0x19f0] sm:$0xf] %v6187_v27  ;;  %6252 = vst [vmem:[#allocation4 + $0x19f8] sm:$0xf] %v6188_v30  ;;  %v10058_v15 = vpack.c.bf16 %v7295_v50, %v7263_v33  ;;  %v10060_v11 = vpack.c.bf16 %v7294_v7, %v7262_v40 }
 0x861   : > { %v6364_v2 = vpop.permute.xlu1 %6363  ;;  %v6362_v37 = vpop.permute.xlu0 %6361  ;;  %10059 = vmatprep.subr.bf16.mxu0 %v10058_v15  ;;  %v14790_v15 = vld [vmem:[%s15155_s0 + $0x18] sm:$0xff] }
 0x862   : > { %v6397_v8 = vsel %vm2784_vm8, %v14657_v56, %v6362_v37  ;;  %v6398_v41 = vsel %vm2784_vm8, %v6362_v37, %v6364_v2  ;;  %10061 = vmatpush1.bf16.msra.mxu0 %v10060_v11  ;;  %v7265_v45 = vld [vmem:[#allocation4 + $0x18f8] sm:$0xff]  ;;  %v7264_v29 = vld [vmem:[#allocation4 + $0x18f0] sm:$0xff]  ;;  %v8661_v11 = vrot.slane %v14790_v15, %v14035_v52 }
 0x863   : > { %6461 = vst [vmem:[#allocation4 + $0x1ae0] sm:$0xf] %v6397_v8  ;;  %6462 = vst [vmem:[#allocation4 + $0x1ae8] sm:$0xf] %v6398_v41 }
 0x865   : > { %v6368_v5 = vpop.permute.xlu1 %6367  ;;  %v6366_v58 = vpop.permute.xlu0 %6365 }
 0x866   : > { %v6399_v14 = vsel %vm2784_vm8, %v6364_v2, %v6366_v58  ;;  %v6400_v54 = vsel %vm2784_vm8, %v6366_v58, %v6368_v5  ;;  %v7297_v53 = vld [vmem:[#allocation4 + $0x19f8] sm:$0xff]  ;;  %v7296_v22 = vld [vmem:[#allocation4 + $0x19f0] sm:$0xff]  ;;  %v8665_v2 = vrot.slane %v14790_v15, %v14038_v16  ;;  %v8669_v5 = vrot.slane %v14790_v15, %v14069_v61 }
 0x867   : > { %6463 = vst [vmem:[#allocation4 + $0x1af0] sm:$0xf] %v6399_v14  ;;  %6464 = vst [vmem:[#allocation4 + $0x1af8] sm:$0xf] %v6400_v54  ;;  %v10110_v35 = vpack.c.bf16 %v7297_v53, %v7265_v45  ;;  %v10112_v12 = vpack.c.bf16 %v7296_v22, %v7264_v29  ;;  %v8673_v53 = vrot.slane %v14790_v15, %v14099_v59 }
 0x869   : > { %10111 = vmatprep.subr.bf16.mxu1 %v10110_v35 }
 0x86a   : > { %10113 = vmatpush1.bf16.msra.mxu1 %v10112_v12  ;;  %v7327_v56 = vld [vmem:[#allocation4 + $0x1ae8] sm:$0xff]  ;;  %v7326_v18 = vld [vmem:[#allocation4 + $0x1ae0] sm:$0xff] }
 0x86b   : > { %8381 = vmatprep.subr.mxu0 %v7327_v56 }
 0x86c   : > { %8382 = vmatpush1.msra.mxu0 %v7326_v18 }
 0x86d   : > { %8394 = vmatmul.mubr.f32.vlgmr.msra.gmra.mrb[14].mxu0 %v10235_v1 }
 0x86e   : > { %v7329_v49 = vld [vmem:[#allocation4 + $0x1af8] sm:$0xff]  ;;  %v7328_v42 = vld [vmem:[#allocation4 + $0x1af0] sm:$0xff] }
 0x86f   : > { %8452 = vmatprep.subr.mxu1 %v7329_v49 }
 0x870   : > { %8453 = vmatpush1.msra.mxu1 %v7328_v42 }
 0x871   : > { %8465 = vmatmul.mubr.f32.vlgmr.msra.gmra.mrb[14].mxu1 %v10235_v1 }
 0x87f   : > { %v8111_v32 = vpop.f32.mrb[10].mxu0 }
 0x880   : > { %v8742_v55 = vmul.f32 %v8645_v31, %v8111_v32  ;;  %v8113_v19 = vpop.f32.mrb[11].mxu0 }
 0x881   : > { %v8513_v25 = vcombine.low %v8111_v32, %v8113_v19  ;;  %v8743_v38 = vmul.f32 %v8649_v26, %v8113_v19 }
 0x882   : > { %v8795_v17 = vsel %vm8755_vm10, %v8742_v55, 0.0  ;;  %v8845_v63 = vmul.f32 %v8742_v55, %v8742_v55 }
 0x883   : > { %v8796_v39 = vadd.f32 %v8795_v17, %v14721_v23  ;;  %8548 = vst [vmem:[%s14088_s21 + $0x50] sm:$0xff] %v8513_v25  ;;  %v8797_v46 = vsel %vm8755_vm10, %v8743_v38, 0.0  ;;  %v8846_v47 = vmul.f32 %v8743_v38, %v8743_v38  ;;  %v8182_v43 = vpop.f32.mrb[10].mxu1 }
 0x884   : > { %v8896_v9 = vsel %vm8755_vm10, %v8845_v63, 0.0  ;;  %v8744_v0 = vmul.f32 %v8653_v10, %v8182_v43  ;;  %v8184_v24 = vpop.f32.mrb[11].mxu1 }
 0x885   : > { %v8897_v3 = vadd.f32 %v8896_v9, %v14725_v51  ;;  %v8798_v20 = vadd.f32 %v8797_v46, %v8796_v39  ;;  %v8898_v28 = vsel %vm8755_vm10, %v8846_v47, 0.0  ;;  %v8514_v62 = vcombine.low %v8182_v43, %v8184_v24 }
 0x886   : > { %v8799_v34 = vsel %vm8755_vm10, %v8744_v0, 0.0  ;;  %v8847_v36 = vmul.f32 %v8744_v0, %v8744_v0  ;;  %v8745_v23 = vmul.f32 %v8657_v13, %v8184_v24  ;;  %v8677_v13 = vrot.slane %v14790_v15, %v14103_v6 }
 0x887   : > { %v8899_v57 = vadd.f32 %v8898_v28, %v8897_v3  ;;  %v8800_v44 = vadd.f32 %v8799_v34, %v8798_v20  ;;  %8549 = vst [vmem:[%s14088_s21 + $0x58] sm:$0xff] %v8514_v62  ;;  %v8681_v39 = vrot.slane %v14790_v15, %v14133_v48  ;;  %v8685_v9 = vrot.slane %v14790_v15, %v14153_v60 }
 0x888   : > { %v8900_v33 = vsel %vm8755_vm10, %v8847_v36, 0.0  ;;  %v8801_v27 = vsel %vm8755_vm10, %v8745_v23, 0.0  ;;  %v8848_v30 = vmul.f32 %v8745_v23, %v8745_v23  ;;  %v8689_v28 = vrot.slane %v14790_v15, %v14176_v4 }
 0x889   : > { %v8901_v50 = vadd.f32 %v8900_v33, %v8899_v57  ;;  %v8802_v40 = vadd.f32 %v8801_v27, %v8800_v44 }
 0x88a   : > { %v8902_v51 = vsel %vm8755_vm10, %v8848_v30, 0.0 }
 0x88b   : > { %v8903_v7 = vadd.f32 %v8902_v51, %v8901_v50 }
 0x8e0   : > { %v8253_v37 = vpop.f32.mrb[12].mxu0 }
 0x8e1   : > { %v8746_v8 = vmul.f32 %v8661_v11, %v8253_v37  ;;  %v8255_v41 = vpop.f32.mrb[13].mxu0 }
 0x8e2   : > { %v8515_v58 = vcombine.low %v8253_v37, %v8255_v41  ;;  %v8747_v45 = vmul.f32 %v8665_v2, %v8255_v41 }
 0x8e3   : > { %v8803_v14 = vsel %vm8755_vm10, %v8746_v8, 0.0  ;;  %v8849_v54 = vmul.f32 %v8746_v8, %v8746_v8 }
 0x8e4   : > { %v8804_v29 = vadd.f32 %v8803_v14, %v8802_v40  ;;  %8550 = vst [vmem:[%s14088_s21 + $0x60] sm:$0xff] %v8515_v58  ;;  %v8805_v52 = vsel %vm8755_vm10, %v8747_v45, 0.0  ;;  %v8850_v16 = vmul.f32 %v8747_v45, %v8747_v45  ;;  %v8324_v22 = vpop.f32.mrb[12].mxu1  ;;  %v8824_v45 = vld [vmem:[#allocation3] sm:$0xf] }
 0x8e5   : > { %v8904_v35 = vsel %vm8755_vm10, %v8849_v54, 0.0  ;;  %v8748_v12 = vmul.f32 %v8669_v5, %v8324_v22  ;;  %v8326_v56 = vpop.f32.mrb[13].mxu1  ;;  %v8754_v5 = vld [vmem:[#allocation2] sm:$0xf] }
 0x8e6   : > { %v8905_v61 = vadd.f32 %v8904_v35, %v8903_v7  ;;  %v8806_v18 = vadd.f32 %v8805_v52, %v8804_v29  ;;  %v8906_v1 = vsel %vm8755_vm10, %v8850_v16, 0.0  ;;  %v8516_v49 = vcombine.low %v8324_v22, %v8326_v56 }
 0x8e7   : > { %v8807_v42 = vsel %vm8755_vm10, %v8748_v12, 0.0  ;;  %v8851_v31 = vmul.f32 %v8748_v12, %v8748_v12  ;;  %v8749_v59 = vmul.f32 %v8673_v53, %v8326_v56  ;;  %v10256_v16 = vmov (!%p9246_p5), 0  }
 0x8e8   : > { %v8907_v26 = vadd.f32 %v8906_v1, %v8905_v61  ;;  %v8808_v32 = vadd.f32 %v8807_v42, %v8806_v18  ;;  %8551 = vst [vmem:[%s14088_s21 + $0x68] sm:$0xff] %v8516_v49  ;;  %10236 = vset.pattern.permute.xlu0 (!%p9246_p5), %v10256_v16  ;;  %v8936_v1 = vld [vmem:[%s15157_s2] sm:$0xf] (!%p9246_p5) }
 0x8e9   : > { %v8908_v55 = vsel %vm8755_vm10, %v8851_v31, 0.0  ;;  %v8809_v19 = vsel %vm8755_vm10, %v8749_v59, 0.0  ;;  %v8852_v10 = vmul.f32 %v8749_v59, %v8749_v59  ;;  %v8940_v31 = vld [vmem:[%s15158_s3] sm:$0xf] (!%p9246_p5) }
 0x8ea   : > { %v8909_v25 = vadd.f32 %v8908_v55, %v8907_v26  ;;  %v8810_v38 = vadd.f32 %v8809_v19, %v8808_v32  ;;  %v10257_v32 = vmov (!%p9246_p5), 839922192  }
 0x8eb   : > { %v8910_v17 = vsel %vm8755_vm10, %v8852_v10, 0.0  ;;  %v8964_v55 = vunpack.c.l.s4 (!%p9246_p5), %v10257_v32 }
 0x8ec   : > { %v8911_v63 = vadd.f32 %v8910_v17, %v8909_v25 }
 0x8ed   : > { %v8965_v19 = vunpack.c.0.s8 (!%p9246_p5), %v8964_v55 }
 0x8ef   : > { %v14836_v10 = vsub.s32 (!%p9246_p5), %v8965_v19, %v14015_v21 }
 0x940   : > { %v8395_v46 = vpop.f32.mrb[14].mxu0 }
 0x941   : > { %v8750_v47 = vmul.f32 %v8677_v13, %v8395_v46  ;;  %v8397_v43 = vpop.f32.mrb[15].mxu0 }
 0x942   : > { %v8517_v0 = vcombine.low %v8395_v46, %v8397_v43  ;;  %v8751_v24 = vmul.f32 %v8681_v39, %v8397_v43 }
 0x943   : > { %v8811_v3 = vsel %vm8755_vm10, %v8750_v47, 0.0  ;;  %v8853_v20 = vmul.f32 %v8750_v47, %v8750_v47 }
 0x944   : > { %v8812_v62 = vadd.f32 %v8811_v3, %v8810_v38  ;;  %8552 = vst [vmem:[%s14088_s21 + $0x70] sm:$0xff] %v8517_v0  ;;  %v8813_v6 = vsel %vm8755_vm10, %v8751_v24, 0.0  ;;  %v8854_v48 = vmul.f32 %v8751_v24, %v8751_v24  ;;  %v8466_v34 = vpop.f32.mrb[14].mxu1 }
 0x945   : > { %v8912_v36 = vsel %vm8755_vm10, %v8853_v20, 0.0  ;;  %v8752_v23 = vmul.f32 %v8685_v9, %v8466_v34  ;;  %v8468_v57 = vpop.f32.mrb[15].mxu1 }
 0x946   : > { %v8913_v60 = vadd.f32 %v8912_v36, %v8911_v63  ;;  %v8814_v44 = vadd.f32 %v8813_v6, %v8812_v62  ;;  %v8914_v33 = vsel %vm8755_vm10, %v8854_v48, 0.0  ;;  %v8518_v27 = vcombine.low %v8466_v34, %v8468_v57 }
 0x947   : > { %v8815_v30 = vsel %vm8755_vm10, %v8752_v23, 0.0  ;;  %v8855_v50 = vmul.f32 %v8752_v23, %v8752_v23  ;;  %v8753_v4 = vmul.f32 %v8689_v28, %v8468_v57 }
 0x948   : > { %v8915_v40 = vadd.f32 %v8914_v33, %v8913_v60  ;;  %v8816_v51 = vadd.f32 %v8815_v30, %v8814_v44  ;;  %8553 = vst [vmem:[%s14088_s21 + $0x78] sm:$0xff] %v8518_v27 }
 0x949   : > { %v8916_v7 = vsel %vm8755_vm10, %v8855_v50, 0.0  ;;  %v8817_v15 = vsel %vm8755_vm10, %v8753_v4, 0.0  ;;  %v8856_v11 = vmul.f32 %v8753_v4, %v8753_v4 }
 0x94a   : > { %v8818_v2 = vadd.f32 %v8817_v15, %v8816_v51  ;;  %v8917_v37 = vadd.f32 %v8916_v7, %v8915_v40 }
 0x94b   : > { %v8918_v8 = vsel %vm8755_vm10, %v8856_v11, 0.0 }
 0x94c   : > { %8819 = vadd.xlane.f32.xlu0 %v8818_v2  ;;  %v8919_v41 = vadd.f32 %v8918_v8, %v8917_v37 }
 0x94e   : > { %8920 = vadd.xlane.f32.xlu1 %v8919_v41 }
 0x94f   : > { %v8943_v25 = vld [vmem:[%s15160_s5] sm:$0xff] (!%p9246_p5)  ;;  %v8944_v38 = vld [vmem:[%s15160_s5 + $0x8] sm:$0xff] (!%p9246_p5)  ;;  %v8945_v17 = vld [vmem:[%s15160_s5 + $0x10] sm:$0xff] (!%p9246_p5) }
 0x950   : > { %v8946_v63 = vld [vmem:[%s15160_s5 + $0x18] sm:$0xff] (!%p9246_p5)  ;;  %v8947_v21 = vld [vmem:[%s15160_s5 + $0x20] sm:$0xff] (!%p9246_p5)  ;;  %v8948_v39 = vld [vmem:[%s15160_s5 + $0x28] sm:$0xff] (!%p9246_p5) }
 0x951   : > { %v8949_v46 = vld [vmem:[%s15160_s5 + $0x30] sm:$0xff] (!%p9246_p5)  ;;  %v8950_v47 = vld [vmem:[%s15160_s5 + $0x38] sm:$0xff] (!%p9246_p5)  ;;  %v8951_v9 = vld [vmem:[%s15160_s5 + $0x40] sm:$0xff] (!%p9246_p5) }
 0x952   : > { %v8952_v0 = vld [vmem:[%s15160_s5 + $0x48] sm:$0xff] (!%p9246_p5)  ;;  %v8953_v24 = vld [vmem:[%s15160_s5 + $0x50] sm:$0xff] (!%p9246_p5)  ;;  %v8954_v3 = vld [vmem:[%s15160_s5 + $0x58] sm:$0xff] (!%p9246_p5) }
 0x953   : > { %v8955_v20 = vld [vmem:[%s15160_s5 + $0x60] sm:$0xff] (!%p9246_p5)  ;;  %v8956_v28 = vld [vmem:[%s15160_s5 + $0x68] sm:$0xff] (!%p9246_p5)  ;;  %v8957_v62 = vld [vmem:[%s15160_s5 + $0x70] sm:$0xff] (!%p9246_p5) }
 0x954   : > { %v8958_v6 = vld [vmem:[%s15160_s5 + $0x78] sm:$0xff] (!%p9246_p5)  ;;  %v9247_v48 = vld [vmem:[%s15160_s5 + $0x80] sm:$0xff] (!%p9246_p5)  ;;  %v9248_v36 = vld [vmem:[%s15160_s5 + $0x88] sm:$0xff] (!%p9246_p5) }
 0x955   : > { %v9249_v23 = vld [vmem:[%s15160_s5 + $0x90] sm:$0xff] (!%p9246_p5)  ;;  %v9250_v57 = vld [vmem:[%s15160_s5 + $0x98] sm:$0xff] (!%p9246_p5)  ;;  %v9251_v30 = vld [vmem:[%s15160_s5 + $0xa0] sm:$0xff] (!%p9246_p5) }
 0x956   : > { %v9252_v50 = vld [vmem:[%s15160_s5 + $0xa8] sm:$0xff] (!%p9246_p5)  ;;  %v9253_v4 = vld [vmem:[%s15160_s5 + $0xb0] sm:$0xff] (!%p9246_p5)  ;;  %v9254_v11 = vld [vmem:[%s15160_s5 + $0xb8] sm:$0xff] (!%p9246_p5) }
 0x957   : > { %v9255_v2 = vld [vmem:[%s15160_s5 + $0xc0] sm:$0xff] (!%p9246_p5)  ;;  %v9256_v37 = vld [vmem:[%s15160_s5 + $0xc8] sm:$0xff] (!%p9246_p5) }
 0x9d8   : > { %8927 = sbr.rel (%p9246_p5) target bundleno = 2732 (0xaac), region = 48 }
 0x9d9   : > { %v8820_v58 = vpop.xlane.xlu0 %8819 }
 0x9da   : > { %v8821_v14 = vadd.f32 %v8820_v58, %v8754_v5 }
 0x9db   : > { %v8921_v54 = vpop.xlane.xlu1 %8920 }
 0x9dc   : > { %8823 = vst.msk [vmem:[#allocation2] sm:$0xf] %vm8822_vm11, %v8821_v14  ;;  %v8922_v53 = vadd.f32 %v8921_v54, %v8824_v45  ;;  %v9257_v45 = vld [vmem:[%s15160_s5 + $0xd0] sm:$0xff] (!%p9246_p5)  ;;  %v9258_v14 = vld [vmem:[%s15160_s5 + $0xd8] sm:$0xff] (!%p9246_p5)  ;;  %v9259_v54 = vld [vmem:[%s15160_s5 + $0xe0] sm:$0xff] (!%p9246_p5) }
 0x9de   : > { %8923 = vst.msk [vmem:[#allocation3] sm:$0xf] %vm8822_vm11, %v8922_v53 }
 0x9e3   : > { %v8928_v29 = vld [vmem:[#allocation2] sm:$0xf] }
 0x9e4   : > { %v8930_v22 = vmul.f32 0.00018221575, %v8928_v29 }
 0x9e5   : > { %v8931_v52 = vld [vmem:[#allocation3] sm:$0xf] }
 0x9e6   : > { %v8932_v35 = vmul.f32 0.00018221575, %v8931_v52  ;;  %v8933_v12 = vmul.f32 %v8930_v22, %v8930_v22 }
 0x9e8   : > { %v8934_v56 = vsub.f32 %v8932_v35, %v8933_v12  ;;  %v9260_v35 = vld [vmem:[%s15160_s5 + $0xe8] sm:$0xff]  ;;  %v9261_v12 = vld [vmem:[%s15160_s5 + $0xf0] sm:$0xff] }
 0x9ea   : > { %v8935_v61 = vmax.f32 %v8934_v56, 0.0  ;;  %v9262_v56 = vld [vmem:[%s15160_s5 + $0xf8] sm:$0xff] }
 0x9ec   : > { %v8937_v18 = vadd.f32 1e-05, %v8935_v61 }
 0x9ee   : > { %10237 = vrsqrt.f32 %v8937_v18 }
 0x9f8   : > { %v10238_v49 = vpop.eup %10237 }
 0x9f9   : > { %v8939_v42 = vmul.f32 %v10238_v49, %v8936_v1 }
 0x9fb   : > { %8961 = vperm.xlu0 %10236, %v8939_v42   ;;  %v8941_v59 = vmul.f32 %v8939_v42, %v8930_v22 }
 0x9fd   : > { %v8942_v26 = vsub.f32 %v8940_v31, %v8941_v59 }
 0x9ff   : > { %8989 = vperm.xlu0 %10236, %v8942_v26  }
 0xa7a   : > { %v8962_v13 = vpop.permute.xlu0 %8961 }
 0xa7b   : > { %v8969_v43 = vrot.slane %v8962_v13, %v14836_v10 }
 0xa7d   : > { %v8971_v34 = vmul.f32 %v8969_v43, %v8943_v25  ;;  %v8972_v60 = vmul.f32 %v8969_v43, %v8944_v38  ;;  %v8973_v44 = vmul.f32 %v8969_v43, %v8945_v17  ;;  %v8974_v33 = vmul.f32 %v8969_v43, %v8946_v63 }
 0xa7e   : > { %v8975_v27 = vmul.f32 %v8969_v43, %v8947_v21  ;;  %v8976_v40 = vmul.f32 %v8969_v43, %v8948_v39  ;;  %v8977_v51 = vmul.f32 %v8969_v43, %v8949_v46  ;;  %v8978_v7 = vmul.f32 %v8969_v43, %v8950_v47  ;;  %v8990_v22 = vpop.permute.xlu0 %8989 }
 0xa7f   : > { %v8979_v15 = vmul.f32 %v8969_v43, %v8951_v9  ;;  %v8980_v8 = vmul.f32 %v8969_v43, %v8952_v0  ;;  %v8981_v41 = vmul.f32 %v8969_v43, %v8953_v24  ;;  %v8982_v5 = vmul.f32 %v8969_v43, %v8954_v3 }
 0xa80   : > { %v8983_v58 = vmul.f32 %v8969_v43, %v8955_v20  ;;  %v8984_v53 = vmul.f32 %v8969_v43, %v8956_v28  ;;  %v8985_v29 = vmul.f32 %v8969_v43, %v8957_v62  ;;  %v8986_v52 = vmul.f32 %v8969_v43, %v8958_v6 }
 0xa81   : > { %v9096_v16 = vmul.f32 %v9247_v48, %v8969_v43  ;;  %v9097_v61 = vmul.f32 %v9248_v36, %v8969_v43  ;;  %v14935_v18 = vmul.f32 %v9249_v23, %v8969_v43  ;;  %v14937_v1 = vmul.f32 %v9250_v57, %v8969_v43 }
 0xa82   : > { %v14939_v49 = vmul.f32 %v9251_v30, %v8969_v43  ;;  %v14941_v42 = vmul.f32 %v9252_v50, %v8969_v43  ;;  %v14943_v31 = vmul.f32 %v9253_v4, %v8969_v43  ;;  %v14945_v59 = vmul.f32 %v9254_v11, %v8969_v43 }
 0xa83   : > { %v14947_v26 = vmul.f32 %v9255_v2, %v8969_v43  ;;  %v14949_v32 = vmul.f32 %v9256_v37, %v8969_v43  ;;  %v14951_v55 = vmul.f32 %v9257_v45, %v8969_v43  ;;  %v14953_v19 = vmul.f32 %v9258_v14, %v8969_v43 }
 0xa84   : > { %v14956_v25 = vrot.slane %v8990_v22, %v14836_v10  ;;  %v14958_v38 = vmul.f32 %v9259_v54, %v8969_v43  ;;  %v14960_v17 = vmul.f32 %v9260_v35, %v8969_v43  ;;  %v14962_v63 = vmul.f32 %v9261_v12, %v8969_v43 }
 0xa85   : > { %v14964_v21 = vmul.f32 %v9262_v56, %v8969_v43 }
 0xa86   : > { %v8999_v13 = vadd.f32 %v14956_v25, %v8971_v34  ;;  %v9000_v39 = vadd.f32 %v14956_v25, %v8972_v60  ;;  %v9001_v46 = vadd.f32 %v14956_v25, %v8973_v44  ;;  %v9002_v47 = vadd.f32 %v14956_v25, %v8974_v33 }
 0xa87   : > { %v9003_v9 = vadd.f32 %v14956_v25, %v8975_v27  ;;  %v9004_v10 = vadd.f32 %v14956_v25, %v8976_v40  ;;  %v9005_v0 = vadd.f32 %v14956_v25, %v8977_v51  ;;  %v9006_v24 = vadd.f32 %v14956_v25, %v8978_v7 }
 0xa88   : > { %v9007_v3 = vadd.f32 %v14956_v25, %v8979_v15  ;;  %v9008_v43 = vadd.f32 %v14956_v25, %v8980_v8  ;;  %v9009_v20 = vadd.f32 %v14956_v25, %v8981_v41  ;;  %v9010_v28 = vadd.f32 %v14956_v25, %v8982_v5 }
 0xa89   : > { %v9011_v62 = vadd.f32 %v14956_v25, %v8983_v58  ;;  %v9012_v6 = vadd.f32 %v14956_v25, %v8984_v53  ;;  %v9013_v48 = vadd.f32 %v14956_v25, %v8985_v29  ;;  %v9014_v34 = vadd.f32 %v14956_v25, %v8986_v52 }
 0xa8a   : > { %vm9015_vm12 = vcmp.ge.f32.partialorder %v8999_v13, 0.0  ;;  %vm9016_vm13 = vcmp.ge.f32.partialorder %v9000_v39, 0.0  ;;  %vm9017_vm14 = vcmp.ge.f32.partialorder %v9001_v46, 0.0  ;;  %vm9018_vm15 = vcmp.ge.f32.partialorder %v9002_v47, 0.0 }
 0xa8b   : > { %vm9019_vm0 = vcmp.ge.f32.partialorder %v9003_v9, 0.0  ;;  %vm9020_vm1 = vcmp.ge.f32.partialorder %v9004_v10, 0.0  ;;  %vm9021_vm2 = vcmp.ge.f32.partialorder %v9005_v0, 0.0  ;;  %vm9022_vm3 = vcmp.ge.f32.partialorder %v9006_v24, 0.0 }
 0xa8c   : > { %vm9023_vm4 = vcmp.ge.f32.partialorder %v9007_v3, 0.0  ;;  %vm9024_vm5 = vcmp.ge.f32.partialorder %v9008_v43, 0.0  ;;  %vm9025_vm6 = vcmp.ge.f32.partialorder %v9009_v20, 0.0  ;;  %vm9026_vm7 = vcmp.ge.f32.partialorder %v9010_v28, 0.0 }
 0xa8d   : > { %vm9027_vm8 = vcmp.ge.f32.partialorder %v9011_v62, 0.0  ;;  %vm9028_vm9 = vcmp.ge.f32.partialorder %v9012_v6, 0.0  ;;  %vm9029_vm10 = vcmp.ge.f32.partialorder %v9013_v48, 0.0  ;;  %vm9030_vm11 = vcmp.ge.f32.partialorder %v9014_v34, 0.0 }
 0xa8e   : > { %v9031_v36 = vmul.f32 0.01, %v8999_v13  ;;  %v9032_v23 = vmul.f32 0.01, %v9000_v39  ;;  %v9033_v57 = vmul.f32 0.01, %v9001_v46  ;;  %v14983_v60 = vadd.f32 %v9096_v16, %v14956_v25 }
 0xa8f   : > { %v9034_v44 = vmul.f32 0.01, %v9002_v47  ;;  %v9035_v33 = vmul.f32 0.01, %v9003_v9  ;;  %v9036_v27 = vmul.f32 0.01, %v9004_v10  ;;  %v14986_v30 = vadd.f32 %v9097_v61, %v14956_v25 }
 0xa90   : > { %v9037_v50 = vmul.f32 0.01, %v9005_v0  ;;  %v9038_v4 = vmul.f32 0.01, %v9006_v24  ;;  %v9039_v40 = vmul.f32 0.01, %v9007_v3  ;;  %v9047_v51 = vsel %vm9015_vm12, %v8999_v13, %v9031_v36 }
 0xa91   : > { %v9040_v7 = vmul.f32 0.01, %v9008_v43  ;;  %v9041_v15 = vmul.f32 0.01, %v9009_v20  ;;  %v9042_v11 = vmul.f32 0.01, %v9010_v28  ;;  %v9048_v2 = vsel %vm9016_vm13, %v9000_v39, %v9032_v23  ;;  %9063 = vst [vmem:[%s15160_s5] sm:$0xff] %v9047_v51 }
 0xa92   : > { %v9043_v37 = vmul.f32 0.01, %v9011_v62  ;;  %v9044_v8 = vmul.f32 0.01, %v9012_v6  ;;  %v9045_v41 = vmul.f32 0.01, %v9013_v48  ;;  %v9049_v5 = vsel %vm9017_vm14, %v9001_v46, %v9033_v57 }
 0xa93   : > { %9064 = vst [vmem:[%s15160_s5 + $0x8] sm:$0xff] %v9048_v2  ;;  %v9046_v58 = vmul.f32 0.01, %v9014_v34  ;;  %v9050_v45 = vsel %vm9018_vm15, %v9002_v47, %v9034_v44  ;;  %v9051_v14 = vsel %vm9019_vm0, %v9003_v9, %v9035_v33  ;;  %v9052_v54 = vsel %vm9020_vm1, %v9004_v10, %v9036_v27  ;;  %9065 = vst [vmem:[%s15160_s5 + $0x10] sm:$0xff] %v9049_v5 }
 0xa94   : > { %v9053_v53 = vsel %vm9021_vm2, %v9005_v0, %v9037_v50  ;;  %v9054_v29 = vsel %vm9022_vm3, %v9006_v24, %v9038_v4  ;;  %v9055_v52 = vsel %vm9023_vm4, %v9007_v3, %v9039_v40  ;;  %v9056_v16 = vsel %vm9024_vm5, %v9008_v43, %v9040_v7  ;;  %9066 = vst [vmem:[%s15160_s5 + $0x18] sm:$0xff] %v9050_v45 }
 0xa95   : > { %9067 = vst [vmem:[%s15160_s5 + $0x20] sm:$0xff] %v9051_v14  ;;  %9068 = vst [vmem:[%s15160_s5 + $0x28] sm:$0xff] %v9052_v54  ;;  %v9057_v22 = vsel %vm9025_vm6, %v9009_v20, %v9041_v15  ;;  %v9058_v35 = vsel %vm9026_vm7, %v9010_v28, %v9042_v11  ;;  %v9059_v12 = vsel %vm9027_vm8, %v9011_v62, %v9043_v37  ;;  %vm9128_vm12 = vcmp.ge.f32.partialorder %v14983_v60, 0.0 }
 0xa96   : > { %v9060_v56 = vsel %vm9028_vm9, %v9012_v6, %v9044_v8  ;;  %9069 = vst [vmem:[%s15160_s5 + $0x30] sm:$0xff] %v9053_v53  ;;  %9070 = vst [vmem:[%s15160_s5 + $0x38] sm:$0xff] %v9054_v29  ;;  %v9061_v61 = vsel %vm9029_vm10, %v9013_v48, %v9045_v41  ;;  %v9062_v13 = vsel %vm9030_vm11, %v9014_v34, %v9046_v58  ;;  %vm9129_vm13 = vcmp.ge.f32.partialorder %v14986_v30, 0.0 }
 0xa97   : > { %9071 = vst [vmem:[%s15160_s5 + $0x40] sm:$0xff] %v9055_v52  ;;  %9072 = vst [vmem:[%s15160_s5 + $0x48] sm:$0xff] %v9056_v16  ;;  %v9114_v39 = vadd.f32 %v14935_v18, %v14956_v25  ;;  %v9115_v46 = vadd.f32 %v14937_v1, %v14956_v25  ;;  %v9116_v47 = vadd.f32 %v14939_v49, %v14956_v25 }
 0xa98   : > { %9073 = vst [vmem:[%s15160_s5 + $0x50] sm:$0xff] %v9057_v22  ;;  %9074 = vst [vmem:[%s15160_s5 + $0x58] sm:$0xff] %v9058_v35  ;;  %v9117_v9 = vadd.f32 %v14941_v42, %v14956_v25  ;;  %v9118_v18 = vadd.f32 %v14943_v31, %v14956_v25  ;;  %v9119_v1 = vadd.f32 %v14945_v59, %v14956_v25 }
 0xa99   : > { %9075 = vst [vmem:[%s15160_s5 + $0x60] sm:$0xff] %v9059_v12  ;;  %9076 = vst [vmem:[%s15160_s5 + $0x68] sm:$0xff] %v9060_v56  ;;  %v9120_v10 = vadd.f32 %v14947_v26, %v14956_v25  ;;  %v9121_v0 = vadd.f32 %v14949_v32, %v14956_v25  ;;  %v9122_v24 = vadd.f32 %v14951_v55, %v14956_v25  ;;  %vm9130_vm14 = vcmp.ge.f32.partialorder %v9114_v39, 0.0 }
 0xa9a   : > { %9077 = vst [vmem:[%s15160_s5 + $0x70] sm:$0xff] %v9061_v61  ;;  %9078 = vst [vmem:[%s15160_s5 + $0x78] sm:$0xff] %v9062_v13  ;;  %v9123_v49 = vadd.f32 %v14953_v19, %v14956_v25  ;;  %v9124_v42 = vadd.f32 %v14958_v38, %v14956_v25  ;;  %v9125_v31 = vadd.f32 %v14960_v17, %v14956_v25  ;;  %vm9131_vm15 = vcmp.ge.f32.partialorder %v9115_v46, 0.0 }
 0xa9b   : > { %v9126_v59 = vadd.f32 %v14962_v63, %v14956_v25  ;;  %v9127_v26 = vadd.f32 %v14964_v21, %v14956_v25  ;;  %vm9132_vm0 = vcmp.ge.f32.partialorder %v9116_v47, 0.0  ;;  %vm9133_vm1 = vcmp.ge.f32.partialorder %v9117_v9, 0.0 }
 0xa9c   : > { %vm9134_vm2 = vcmp.ge.f32.partialorder %v9118_v18, 0.0  ;;  %vm9135_vm3 = vcmp.ge.f32.partialorder %v9119_v1, 0.0  ;;  %vm9136_vm4 = vcmp.ge.f32.partialorder %v9120_v10, 0.0  ;;  %vm9137_vm5 = vcmp.ge.f32.partialorder %v9121_v0, 0.0 }
 0xa9d   : > { %vm9138_vm6 = vcmp.ge.f32.partialorder %v9122_v24, 0.0  ;;  %vm9139_vm7 = vcmp.ge.f32.partialorder %v9123_v49, 0.0  ;;  %vm9140_vm8 = vcmp.ge.f32.partialorder %v9124_v42, 0.0  ;;  %vm9141_vm9 = vcmp.ge.f32.partialorder %v9125_v31, 0.0 }
 0xa9e   : > { %vm9142_vm10 = vcmp.ge.f32.partialorder %v9126_v59, 0.0  ;;  %vm9143_vm11 = vcmp.ge.f32.partialorder %v9127_v26, 0.0  ;;  %v9144_v32 = vmul.f32 0.01, %v14983_v60  ;;  %v9145_v55 = vmul.f32 0.01, %v14986_v30 }
 0xa9f   : > { %v9146_v19 = vmul.f32 0.01, %v9114_v39  ;;  %v9147_v25 = vmul.f32 0.01, %v9115_v46  ;;  %v9148_v38 = vmul.f32 0.01, %v9116_v47 }
 0xaa0   : > { %v9149_v17 = vmul.f32 0.01, %v9117_v9  ;;  %v9150_v63 = vmul.f32 0.01, %v9118_v18  ;;  %v9151_v21 = vmul.f32 0.01, %v9119_v1  ;;  %v9160_v43 = vsel %vm9128_vm12, %v14983_v60, %v9144_v32 }
 0xaa1   : > { %v9152_v3 = vmul.f32 0.01, %v9120_v10  ;;  %v9153_v20 = vmul.f32 0.01, %v9121_v0  ;;  %v9154_v28 = vmul.f32 0.01, %v9122_v24  ;;  %v9161_v6 = vsel %vm9129_vm13, %v14986_v30, %v9145_v55 }
 0xaa2   : > { %v9155_v62 = vmul.f32 0.01, %v9123_v49  ;;  %9263 = vst [vmem:[%s15160_s5 + $0x80] sm:$0xff] %v9160_v43  ;;  %v9156_v48 = vmul.f32 0.01, %v9124_v42  ;;  %v9162_v23 = vsel %vm9130_vm14, %v9114_v39, %v9146_v19  ;;  %9264 = vst [vmem:[%s15160_s5 + $0x88] sm:$0xff] %v9161_v6  ;;  %v9163_v60 = vsel %vm9131_vm15, %v9115_v46, %v9147_v25 }
 0xaa3   : > { %v9157_v34 = vmul.f32 0.01, %v9125_v31  ;;  %v9158_v36 = vmul.f32 0.01, %v9126_v59  ;;  %v9159_v57 = vmul.f32 0.01, %v9127_v26  ;;  %v9164_v44 = vsel %vm9132_vm0, %v9116_v47, %v9148_v38 }
 0xaa4   : > { %v9165_v33 = vsel %vm9133_vm1, %v9117_v9, %v9149_v17  ;;  %9265 = vst [vmem:[%s15160_s5 + $0x90] sm:$0xff] %v9162_v23  ;;  %v9166_v27 = vsel %vm9134_vm2, %v9118_v18, %v9150_v63  ;;  %v9167_v30 = vsel %vm9135_vm3, %v9119_v1, %v9151_v21  ;;  %v9168_v50 = vsel %vm9136_vm4, %v9120_v10, %v9152_v3 }
 0xaa5   : > { %v9169_v4 = vsel %vm9137_vm5, %v9121_v0, %v9153_v20  ;;  %9266 = vst [vmem:[%s15160_s5 + $0x98] sm:$0xff] %v9163_v60  ;;  %9267 = vst [vmem:[%s15160_s5 + $0xa0] sm:$0xff] %v9164_v44  ;;  %v9170_v40 = vsel %vm9138_vm6, %v9122_v24, %v9154_v28  ;;  %v9171_v51 = vsel %vm9139_vm7, %v9123_v49, %v9155_v62 }
 0xaa6   : > { %9268 = vst [vmem:[%s15160_s5 + $0xa8] sm:$0xff] %v9165_v33  ;;  %v9172_v7 = vsel %vm9140_vm8, %v9124_v42, %v9156_v48  ;;  %v9173_v15 = vsel %vm9141_vm9, %v9125_v31, %v9157_v34  ;;  %9269 = vst [vmem:[%s15160_s5 + $0xb0] sm:$0xff] %v9166_v27  ;;  %v9174_v11 = vsel %vm9142_vm10, %v9126_v59, %v9158_v36 }
 0xaa7   : > { %9270 = vst [vmem:[%s15160_s5 + $0xb8] sm:$0xff] %v9167_v30  ;;  %9271 = vst [vmem:[%s15160_s5 + $0xc0] sm:$0xff] %v9168_v50  ;;  %v9175_v2 = vsel %vm9143_vm11, %v9127_v26, %v9159_v57 }
 0xaa8   : > { %9272 = vst [vmem:[%s15160_s5 + $0xc8] sm:$0xff] %v9169_v4  ;;  %9273 = vst [vmem:[%s15160_s5 + $0xd0] sm:$0xff] %v9170_v40 }
 0xaa9   : > { %9274 = vst [vmem:[%s15160_s5 + $0xd8] sm:$0xff] %v9171_v51  ;;  %9275 = vst [vmem:[%s15160_s5 + $0xe0] sm:$0xff] %v9172_v7 }
 0xaaa   : > { %9276 = vst [vmem:[%s15160_s5 + $0xe8] sm:$0xff] %v9173_v15  ;;  %9277 = vst [vmem:[%s15160_s5 + $0xf0] sm:$0xff] %v9174_v11 }
 0xaab   : > { %9278 = vst [vmem:[%s15160_s5 + $0xf8] sm:$0xff] %v9175_v2 }
 0xaac PF: > { %s15_s18 = sadd.s32 1, %s10245_s18  }
 0xaad   : > { %p12_p6 = scmp.ge.s32.totalorder %s15_s18, 4  }
 0xaaf   :  { %14 = sbr.rel (!%p12_p6) target bundleno = 1 (0x1), region = 76 }

</bundles_post_ra>
